<compile_context>
chip_gen: v7x
topology: tpu7x:2x2x1
jax: 0.10.0
libtpu: 0.0.40
codegen_flags: <defaults>
</compile_context>

<pallas_src>
import functools
import math

import jax
import jax.numpy as jnp
from jax.experimental import pallas as pl
from jax.experimental.pallas import tpu as pltpu

ARC_DIM = 1024    # hard-coded in the PyTorch module (nn.Linear(annotation_dim, 1024))
TYPE_DIM = 250    # hard-coded in the PyTorch module (nn.Linear(annotation_dim, 250))
TYPE_PAD = 256    # TYPE_DIM padded to a lane-friendly multiple of 128
LABEL_PAD = 128   # out_type label dim padded to the 128-lane store width
PROJ_DIM = ARC_DIM + TYPE_PAD
TM = 128          # row tile: lane-dense transposed stores, v7x VMEM-safe, grid>=2 for n>128


def _round_up(x, m):
    return (x + m - 1) // m * m


def _vmem_limit_bytes():
    # Derive a safe scoped-VMEM limit (v7x has only 64 MiB physical per TC).
    try:
        cap = int(pltpu.get_tpu_info().vmem_capacity_bytes)
    except Exception:
        cap = 64 << 20
    return int(min(cap * 3 // 4, 96 << 20))


def _invariant_spec(shape, single_buffer):
    """BlockSpec for a grid-invariant (constant index_map) operand."""
    if single_buffer:
        # Single-buffer: the window never changes, so double-buffering only wastes VMEM.
        return pl.BlockSpec(shape, lambda i: (0, 0), pipeline_mode=pl.Buffered(1))
    return pl.BlockSpec(shape, lambda i: (0, 0))


# --------------------------------------------------------------------------
# Kernel 1: fused ReLU projections.  One bf16 matmul per input produces both
# the arc (1024) and type (256, lane-padded) activations; arc_c is written
# out pre-transposed so kernel 2 never relayouts it.
# --------------------------------------------------------------------------
def proj_kernel(outs_ref, oute_ref, w_h_ref, b_h_ref, w_c_ref, b_c_ref,
                arc_h_ref, type_h_ref, arc_ct_ref, type_c_ref):
    bf16 = jnp.bfloat16

    def project(x_ref, w_ref, b_ref):
        p = jnp.dot(x_ref[...], w_ref[...], preferred_element_type=jnp.float32)
        return jnp.maximum(p + b_ref[...], 0.0)            # f32 [TM, 1280]

    ph = project(outs_ref, w_h_ref, b_h_ref)
    pc = project(oute_ref, w_c_ref, b_c_ref)
    arc_h_ref[...] = ph[:, :ARC_DIM].astype(bf16)          # 1024: lane-aligned slice
    type_h_ref[...] = ph[:, ARC_DIM:].astype(bf16)
    # Transpose once per tile (f32 XLU) so out_arc in kernel 2 is a plain NN matmul.
    arc_ct_ref[...] = pc[:, :ARC_DIM].T.astype(bf16)       # [1024, TM]
    type_c_ref[...] = pc[:, ARC_DIM:].astype(bf16)


# --------------------------------------------------------------------------
# Kernel 2: BiAAttention (out_arc row tile) + BiLinear (out_type row tile).
# arc_c^T and all weights stay VMEM-resident across the row grid.
# --------------------------------------------------------------------------
def score_kernel(arc_h_ref, type_h_ref, type_c_ref, arc_ct_ref,
                 dep_a_ref, dep_rb_ref, dep_u_ref, dep_c_ref,
                 u_flat_ref, bil_b_ref, wl_ref, wr_ref,
                 out_arc_ref, out_type_ref, *, num_labels):
    f32 = jnp.float32
    bf16 = jnp.bfloat16

    # ---- BiAAttention: out_arc = [arc_h,1] @ W_dep @ [arc_c,1]^T ----
    arc_h = arc_h_ref[...]                                            # [TM, 1024] bf16
    score = (jnp.dot(arc_h, dep_a_ref[...], preferred_element_type=f32)
             + dep_rb_ref[...])                                       # [TM, 1024] f32
    # N=1 term stays off the MXU; bf16*f32 widens per-vreg (no f32 copy of arc_h).
    col = jnp.sum(arc_h * dep_u_ref[...], axis=-1, keepdims=True) + dep_c_ref[...]
    out_arc_ref[...] = (
        jnp.dot(score.astype(bf16), arc_ct_ref[...], preferred_element_type=f32)
        + col)                                                        # [TM, n_pad]

    # ---- BiLinear: per-label chunk matmul + f32 row-wise reduce ----
    th = type_h_ref[...]                                              # [TM, 256] bf16
    tc = type_c_ref[...]                                              # [TM, 256] bf16
    acc = (jnp.dot(th, wl_ref[...], preferred_element_type=f32)
           + jnp.dot(tc, wr_ref[...], preferred_element_type=f32)
           + bil_b_ref[...])                                          # [TM, L_pad] f32
    lp = acc.shape[-1]
    lane = jax.lax.broadcasted_iota(jnp.int32, (1, lp), 1)
    for o in range(num_labels):       # unrolled; each [TM,256] chunk stays on-chip
        u_o = u_flat_ref[:, o * TYPE_PAD:(o + 1) * TYPE_PAD]          # [256, 256] bf16
        tmp = jnp.dot(th, u_o, preferred_element_type=f32)            # [TM, 256] f32
        col_o = jnp.sum(tmp * tc, axis=-1, keepdims=True)             # f32 reduce
        acc = acc + jnp.where(lane == o, col_o, 0.0)                  # scatter into lane o
    out_type_ref[...] = acc


# --------------------------------------------------------------------------
# One-time host-side parameter packing (fuse / pad / cast to bf16).
# --------------------------------------------------------------------------
def pack_params(params, num_labels):
    bf16, f32 = jnp.bfloat16, jnp.float32
    l, t, tp = num_labels, TYPE_DIM, TYPE_PAD
    lp = _round_up(l, LABEL_PAD)

    def pad2(x, rows, cols):
        return jnp.pad(x, ((0, rows - x.shape[0]), (0, cols - x.shape[1])))

    def pad_cols(x, cols):
        return jnp.pad(x, ((0, 0), (0, cols - x.shape[1])))

    # Fused projection weights/biases: [d, 1024 + 256]
    w_h = jnp.concatenate([params["w_arc_h"], pad_cols(params["w_type_h"], tp)], axis=1)
    w_c = jnp.concatenate([params["w_arc_c"], pad_cols(params["w_type_c"], tp)], axis=1)
    b_h = jnp.concatenate([params["b_arc_h"], pad_cols(params["b_type_h"], tp)], axis=1)
    b_c = jnp.concatenate([params["b_arc_c"], pad_cols(params["b_type_c"], tp)], axis=1)

    # BiLinear: U[l, 250, 250] -> U_flat[256, l*256] (per-label 256-lane blocks).
    u_pad = jnp.pad(params["U"], ((0, 0), (0, tp - t), (0, tp - t)))
    u_flat = jnp.transpose(u_pad, (1, 0, 2)).reshape(tp, l * tp)

    return dict(
        w_h=w_h.astype(bf16), b_h=b_h.astype(f32),
        w_c=w_c.astype(bf16), b_c=b_c.astype(f32),
        dep_A=params["dep_A"].astype(bf16),
        dep_rowbias=params["dep_rowbias"].astype(f32),        # [1, 1024]
        dep_u_row=params["dep_u"].T.astype(f32),              # [1, 1024]
        dep_c=params["dep_c"].astype(f32),                    # [1, 1]
        U_flat=u_flat.astype(bf16),                           # [256, l*256]
        bil_bias=pad_cols(params["bil_bias"], lp).astype(f32),
        w_l_t=pad2(params["w_l_t"], tp, lp).astype(bf16),
        w_r_t=pad2(params["w_r_t"], tp, lp).astype(bf16),
    )


# --------------------------------------------------------------------------
# Forward wrapper.
# --------------------------------------------------------------------------
def _forward(outputs, outpute, packed, *, num_labels, single_buffer_invariants):
    n, d = outputs.shape
    l = num_labels
    lp = packed["bil_bias"].shape[1]

    n_pad = _round_up(n, TM)
    grid = (n_pad // TM,)

    # Pre-cast inputs to bf16 (halves input DMA, removes the in-kernel cast).
    outputs = outputs.astype(jnp.bfloat16)
    outpute = outpute.astype(jnp.bfloat16)
    if n_pad != n:
        pad = ((0, n_pad - n), (0, 0))
        outputs = jnp.pad(outputs, pad)
        outpute = jnp.pad(outpute, pad)

    vmem_limit = _vmem_limit_bytes()
    bf16, f32 = jnp.bfloat16, jnp.float32
    inv = functools.partial(_invariant_spec, single_buffer=single_buffer_invariants)

    # ---- call 1: fused projections (row-parallel) ----
    proj_cost = pl.CostEstimate(
        flops=2 * 2 * n_pad * d * PROJ_DIM,
        transcendentals=0,
        bytes_accessed=(2 * n_pad * d * 2 + 2 * d * PROJ_DIM * 2 + 2 * PROJ_DIM * 4
                        + 2 * n_pad * (ARC_DIM + TYPE_PAD) * 2))
    arc_h, type_h, arc_ct, type_c = pl.pallas_call(
        proj_kernel,
        grid=grid,
        in_specs=[
            pl.BlockSpec((TM, d), lambda i: (i, 0)),
            pl.BlockSpec((TM, d), lambda i: (i, 0)),
            inv((d, PROJ_DIM)),
            inv((1, PROJ_DIM)),
            inv((d, PROJ_DIM)),
            inv((1, PROJ_DIM)),
        ],
        out_specs=(
            pl.BlockSpec((TM, ARC_DIM), lambda i: (i, 0)),
            pl.BlockSpec((TM, TYPE_PAD), lambda i: (i, 0)),
            pl.BlockSpec((ARC_DIM, TM), lambda i: (0, i)),     # arc_c^T column tiles
            pl.BlockSpec((TM, TYPE_PAD), lambda i: (i, 0)),
        ),
        out_shape=(
            jax.ShapeDtypeStruct((n_pad, ARC_DIM), bf16),
            jax.ShapeDtypeStruct((n_pad, TYPE_PAD), bf16),
            jax.ShapeDtypeStruct((ARC_DIM, n_pad), bf16),
            jax.ShapeDtypeStruct((n_pad, TYPE_PAD), bf16),
        ),
        compiler_params=pltpu.CompilerParams(
            dimension_semantics=("parallel",), vmem_limit_bytes=vmem_limit),
        cost_estimate=proj_cost,
    )(outputs, outpute, packed["w_h"], packed["b_h"], packed["w_c"], packed["b_c"])

    # ---- call 2: arc + label scores (row-parallel; weights & arc_c^T resident) ----
    score_cost = pl.CostEstimate(
        flops=(2 * n_pad * ARC_DIM * ARC_DIM
               + 2 * n_pad * n_pad * ARC_DIM
               + 2 * n_pad * TYPE_PAD * TYPE_PAD * l
               + 2 * 2 * n_pad * TYPE_PAD * lp),
        transcendentals=0,
        bytes_accessed=(n_pad * (2 * ARC_DIM + 2 * TYPE_PAD) * 2
                        + ARC_DIM * ARC_DIM * 2
                        + TYPE_PAD * l * TYPE_PAD * 2
                        + 2 * TYPE_PAD * lp * 2
                        + n_pad * n_pad * 4 + n_pad * lp * 4))
    kernel2 = functools.partial(score_kernel, num_labels=l)
    out_arc, out_type = pl.pallas_call(
        kernel2,
        grid=grid,
        in_specs=[
            pl.BlockSpec((TM, ARC_DIM), lambda i: (i, 0)),             # arc_h tile
            pl.BlockSpec((TM, TYPE_PAD), lambda i: (i, 0)),            # type_h tile
            pl.BlockSpec((TM, TYPE_PAD), lambda i: (i, 0)),            # type_c tile
            inv((ARC_DIM, n_pad)),                                     # arc_c^T (full)
            inv((ARC_DIM, ARC_DIM)),                                   # dep_A
            inv((1, ARC_DIM)),                                         # dep rowbias
            inv((1, ARC_DIM)),                                         # dep u (row)
            inv((1, 1)),                                               # dep c
            inv((TYPE_PAD, l * TYPE_PAD)),                             # U_flat
            inv((1, lp)),                                              # bil bias
            inv((TYPE_PAD, lp)),                                       # W_l^T
            inv((TYPE_PAD, lp)),                                       # W_r^T
        ],
        out_specs=(
            pl.BlockSpec((TM, n_pad), lambda i: (i, 0)),
            pl.BlockSpec((TM, lp), lambda i: (i, 0)),
        ),
        out_shape=(
            jax.ShapeDtypeStruct((n_pad, n_pad), f32),
            jax.ShapeDtypeStruct((n_pad, lp), f32),
        ),
        compiler_params=pltpu.CompilerParams(
            dimension_semantics=("parallel",), vmem_limit_bytes=vmem_limit),
        cost_estimate=score_cost,
    )(arc_h, type_h, type_c, arc_ct,
      packed["dep_A"], packed["dep_rowbias"], packed["dep_u_row"], packed["dep_c"],
      packed["U_flat"], packed["bil_bias"], packed["w_l_t"], packed["w_r_t"])

    # Surface any lowering/compile error inside the caller's try/except.
    jax.block_until_ready((out_arc, out_type))
    return out_arc[:n, :n], out_type[:n, :l]


def dep_score_forward(outputs, outpute, packed, *, num_labels):
    try:
        return _forward(outputs, outpute, packed, num_labels=num_labels,
                        single_buffer_invariants=True)
    except Exception:
        # pl.Buffered(1) single-buffering not supported by this JAX/libtpu build:
        # fall back to default double-buffered pipelining (identical math).
        return _forward(outputs, outpute, packed, num_labels=num_labels,
                        single_buffer_invariants=False)


# --------------------------------------------------------------------------
# Parameter init (unpacked, f32 — mirrors the PyTorch module's structure).
# --------------------------------------------------------------------------
def init_params(key, annotation_dim, num_labels):
    keys = jax.random.split(key, 12)

    def w(k, shape, fan_in, fan_out):
        bound = math.sqrt(6.0 / (fan_in + fan_out))   # xavier-uniform-like
        return jax.random.uniform(k, shape, jnp.float32, -bound, bound)

    a, t, l, d = ARC_DIM, TYPE_DIM, num_labels, annotation_dim
    dep_w = w(keys[0], (a + 1, a + 1), a + 1, a + 1)  # BiAAttention.dep_weight
    return dict(
        # nn.Linear weights stored pre-transposed: x @ W + b
        w_arc_h=w(keys[1], (d, a), d, a), b_arc_h=jnp.zeros((1, a), jnp.float32),
        w_arc_c=w(keys[2], (d, a), d, a), b_arc_c=jnp.zeros((1, a), jnp.float32),
        w_type_h=w(keys[3], (d, t), d, t), b_type_h=jnp.zeros((1, t), jnp.float32),
        w_type_c=w(keys[4], (d, t), d, t), b_type_c=jnp.zeros((1, t), jnp.float32),
        # dep_weight split into blocks (ones-column augmentation folded in)
        dep_A=dep_w[:a, :a],
        dep_rowbias=dep_w[a:a + 1, :a],
        dep_u=dep_w[:a, a:a + 1],
        dep_c=dep_w[a:a + 1, a:a + 1],
        # BiLinear params
        U=w(keys[5], (l, t, t), t, t),
        bil_bias=jnp.zeros((1, l), jnp.float32),
        w_l_t=w(keys[6], (t, l), t, l),    # W_l^T
        w_r_t=w(keys[7], (t, l), t, l),    # W_r^T
    )


def dep_score_reference(outputs, outpute, params):
    relu = lambda x: jnp.maximum(x, 0.0)
    arc_h = relu(outputs @ params["w_arc_h"] + params["b_arc_h"])
    arc_c = relu(outpute @ params["w_arc_c"] + params["b_arc_c"])
    type_h = relu(outputs @ params["w_type_h"] + params["b_type_h"])
    type_c = relu(outpute @ params["w_type_c"] + params["b_type_c"])
    n = outputs.shape[0]
    ones = jnp.ones((n, 1), jnp.float32)
    dep_w = jnp.block([[params["dep_A"], params["dep_u"]],
                       [params["dep_rowbias"], params["dep_c"]]])
    score = jnp.concatenate([arc_h, ones], 1) @ dep_w
    out_arc = score @ jnp.concatenate([arc_c, ones], 1).T
    bil = jnp.einsum("ni,oij,nj->no", type_h, params["U"], type_c)
    out_type = bil + params["bil_bias"] + type_h @ params["w_l_t"] + type_c @ params["w_r_t"]
    return out_arc, out_type


if __name__ == "__main__":
    key = jax.random.PRNGKey(0)
    k_in1, k_in2, k_par = jax.random.split(key, 3)

    seq_len, annotation_dim, num_labels = 8, 32, 8
    outputs = jax.random.normal(k_in1, (seq_len, annotation_dim), jnp.float32)
    outpute = jax.random.normal(k_in2, (seq_len, annotation_dim), jnp.float32)
    params = init_params(k_par, annotation_dim, num_labels)
    packed = pack_params(params, num_labels)          # one-time weight packing

    out_arc, out_type = dep_score_forward(outputs, outpute, packed,
                                          num_labels=num_labels)
    jax.block_until_ready((out_arc, out_type))

    ref_arc, ref_type = dep_score_reference(outputs, outpute, params)
    assert out_arc.shape == (seq_len, seq_len)
    assert out_type.shape == (seq_len, num_labels)
    # bf16 MXU inputs (f32 accumulation) vs an f32 reference -> loosened tolerance.
    assert jnp.allclose(out_arc, ref_arc, atol=3e-2, rtol=3e-2)
    assert jnp.allclose(out_type, ref_type, atol=3e-2, rtol=3e-2)
    print("KERNEL_OK")
</pallas_src>

<mosaic_0001>
module attributes {stable_mosaic.version = 11 : i64} {
  func.func @proj_kernel(%arg0: i32, %arg1: memref<128x32xbf16, #tpu.memory_space<vmem>>, %arg2: memref<128x32xbf16, #tpu.memory_space<vmem>>, %arg3: memref<32x1280xbf16, #tpu.memory_space<vmem>>, %arg4: memref<1x1280xf32, #tpu.memory_space<vmem>>, %arg5: memref<32x1280xbf16, #tpu.memory_space<vmem>>, %arg6: memref<1x1280xf32, #tpu.memory_space<vmem>>, %arg7: memref<128x1024xbf16, #tpu.memory_space<vmem>>, %arg8: memref<128x256xbf16, #tpu.memory_space<vmem>>, %arg9: memref<1024x128xbf16, #tpu.memory_space<vmem>>, %arg10: memref<128x256xbf16, #tpu.memory_space<vmem>>) attributes {dimension_semantics = [#tpu.dimension_semantics<parallel>], iteration_bounds = array<i64: 1>, scalar_prefetch = 0 : i64, scratch_operands = 0 : i64, tpu.core_type = #tpu.core_type<tc>, window_params = [{transform_indices = @transform_0, window_bounds = array<i64: 128, 32>}, {transform_indices = @transform_1, window_bounds = array<i64: 128, 32>}, {pipeline_mode = #tpu.pipeline_mode<synchronous>, transform_indices = @transform_2, window_bounds = array<i64: 32, 1280>}, {pipeline_mode = #tpu.pipeline_mode<synchronous>, transform_indices = @transform_3, window_bounds = array<i64: 1, 1280>}, {pipeline_mode = #tpu.pipeline_mode<synchronous>, transform_indices = @transform_4, window_bounds = array<i64: 32, 1280>}, {pipeline_mode = #tpu.pipeline_mode<synchronous>, transform_indices = @transform_5, window_bounds = array<i64: 1, 1280>}, {transform_indices = @transform_6, window_bounds = array<i64: 128, 1024>}, {transform_indices = @transform_7, window_bounds = array<i64: 128, 256>}, {transform_indices = @transform_8, window_bounds = array<i64: 1024, 128>}, {transform_indices = @transform_9, window_bounds = array<i64: 128, 256>}]} {
    %c0 = arith.constant 0 : index
    %c0_0 = arith.constant 0 : index
    %0 = vector.load %arg1[%c0, %c0_0] : memref<128x32xbf16, #tpu.memory_space<vmem>>, vector<128x32xbf16>
    %c0_1 = arith.constant 0 : index
    %c0_2 = arith.constant 0 : index
    %1 = vector.load %arg3[%c0_1, %c0_2] : memref<32x1280xbf16, #tpu.memory_space<vmem>>, vector<32x1280xbf16>
    %cst = arith.constant dense<0.000000e+00> : vector<128x1280xf32>
    %2 = tpu.matmul %0, %1, %cst {dimension_numbers = #tpu.dot_dimension_numbers<[1], [0], [0], [1], [0, 0, 1, 1], [], []>} : vector<128x32xbf16>, vector<32x1280xbf16>, vector<128x1280xf32> -> vector<128x1280xf32>
    %c0_3 = arith.constant 0 : index
    %c0_4 = arith.constant 0 : index
    %3 = vector.load %arg4[%c0_3, %c0_4] : memref<1x1280xf32, #tpu.memory_space<vmem>>, vector<1x1280xf32>
    %4 = vector.broadcast %3 : vector<1x1280xf32> to vector<128x1280xf32>
    %5 = arith.addf %2, %4 : vector<128x1280xf32>
    %cst_5 = arith.constant 0.000000e+00 : f32
    %6 = vector.broadcast %cst_5 : f32 to vector<128x1280xf32>
    %7 = arith.maximumf %5, %6 : vector<128x1280xf32>
    %c0_6 = arith.constant 0 : index
    %c0_7 = arith.constant 0 : index
    %8 = vector.load %arg2[%c0_6, %c0_7] : memref<128x32xbf16, #tpu.memory_space<vmem>>, vector<128x32xbf16>
    %c0_8 = arith.constant 0 : index
    %c0_9 = arith.constant 0 : index
    %9 = vector.load %arg5[%c0_8, %c0_9] : memref<32x1280xbf16, #tpu.memory_space<vmem>>, vector<32x1280xbf16>
    %cst_10 = arith.constant dense<0.000000e+00> : vector<128x1280xf32>
    %10 = tpu.matmul %8, %9, %cst_10 {dimension_numbers = #tpu.dot_dimension_numbers<[1], [0], [0], [1], [0, 0, 1, 1], [], []>} : vector<128x32xbf16>, vector<32x1280xbf16>, vector<128x1280xf32> -> vector<128x1280xf32>
    %c0_11 = arith.constant 0 : index
    %c0_12 = arith.constant 0 : index
    %11 = vector.load %arg6[%c0_11, %c0_12] : memref<1x1280xf32, #tpu.memory_space<vmem>>, vector<1x1280xf32>
    %12 = vector.broadcast %11 : vector<1x1280xf32> to vector<128x1280xf32>
    %13 = arith.addf %10, %12 : vector<128x1280xf32>
    %cst_13 = arith.constant 0.000000e+00 : f32
    %14 = vector.broadcast %cst_13 : f32 to vector<128x1280xf32>
    %15 = arith.maximumf %13, %14 : vector<128x1280xf32>
    %16 = vector.extract_strided_slice %7 {offsets = [0, 0], sizes = [128, 1024], strides = [1, 1]} : vector<128x1280xf32> to vector<128x1024xf32>
    %17 = arith.truncf %16 : vector<128x1024xf32> to vector<128x1024xbf16>
    %c0_14 = arith.constant 0 : index
    %c0_15 = arith.constant 0 : index
    %18 = vector.load %arg7[%c0_14, %c0_15] : memref<128x1024xbf16, #tpu.memory_space<vmem>>, vector<128x1024xbf16>
    tpu.vector_store %arg7[%c0_14, %c0_15], %17 {strides = array<i32>} : memref<128x1024xbf16, #tpu.memory_space<vmem>>, vector<128x1024xbf16>,
    %19 = vector.extract_strided_slice %7 {offsets = [0, 1024], sizes = [128, 256], strides = [1, 1]} : vector<128x1280xf32> to vector<128x256xf32>
    %20 = arith.truncf %19 : vector<128x256xf32> to vector<128x256xbf16>
    %c0_16 = arith.constant 0 : index
    %c0_17 = arith.constant 0 : index
    %21 = vector.load %arg8[%c0_16, %c0_17] : memref<128x256xbf16, #tpu.memory_space<vmem>>, vector<128x256xbf16>
    tpu.vector_store %arg8[%c0_16, %c0_17], %20 {strides = array<i32>} : memref<128x256xbf16, #tpu.memory_space<vmem>>, vector<128x256xbf16>,
    %22 = vector.extract_strided_slice %15 {offsets = [0, 0], sizes = [128, 1024], strides = [1, 1]} : vector<128x1280xf32> to vector<128x1024xf32>
    %23 = tpu.transpose %22, [1, 0] : vector<128x1024xf32> -> vector<1024x128xf32>
    %24 = arith.truncf %23 : vector<1024x128xf32> to vector<1024x128xbf16>
    %c0_18 = arith.constant 0 : index
    %c0_19 = arith.constant 0 : index
    %25 = vector.load %arg9[%c0_18, %c0_19] : memref<1024x128xbf16, #tpu.memory_space<vmem>>, vector<1024x128xbf16>
    tpu.vector_store %arg9[%c0_18, %c0_19], %24 {strides = array<i32>} : memref<1024x128xbf16, #tpu.memory_space<vmem>>, vector<1024x128xbf16>,
    %26 = vector.extract_strided_slice %15 {offsets = [0, 1024], sizes = [128, 256], strides = [1, 1]} : vector<128x1280xf32> to vector<128x256xf32>
    %27 = arith.truncf %26 : vector<128x256xf32> to vector<128x256xbf16>
    %c0_20 = arith.constant 0 : index
    %c0_21 = arith.constant 0 : index
    %28 = vector.load %arg10[%c0_20, %c0_21] : memref<128x256xbf16, #tpu.memory_space<vmem>>, vector<128x256xbf16>
    tpu.vector_store %arg10[%c0_20, %c0_21], %27 {strides = array<i32>} : memref<128x256xbf16, #tpu.memory_space<vmem>>, vector<128x256xbf16>,
    return
  }
  func.func @transform_0(%arg0: i32) -> (i32, i32) {
    %c0_i32 = arith.constant 0 : i32
    %c0_i32_0 = arith.constant 0 : i32
    return %arg0, %c0_i32 : i32, i32
  }
  func.func @transform_1(%arg0: i32) -> (i32, i32) {
    %c0_i32 = arith.constant 0 : i32
    %c0_i32_0 = arith.constant 0 : i32
    return %arg0, %c0_i32 : i32, i32
  }
  func.func @transform_2(%arg0: i32) -> (i32, i32) {
    %c0_i32 = arith.constant 0 : i32
    %c0_i32_0 = arith.constant 0 : i32
    %c0_i32_1 = arith.constant 0 : i32
    return %c0_i32, %c0_i32_0 : i32, i32
  }
  func.func @transform_3(%arg0: i32) -> (i32, i32) {
    %c0_i32 = arith.constant 0 : i32
    %c0_i32_0 = arith.constant 0 : i32
    %c0_i32_1 = arith.constant 0 : i32
    return %c0_i32, %c0_i32_0 : i32, i32
  }
  func.func @transform_4(%arg0: i32) -> (i32, i32) {
    %c0_i32 = arith.constant 0 : i32
    %c0_i32_0 = arith.constant 0 : i32
    %c0_i32_1 = arith.constant 0 : i32
    return %c0_i32, %c0_i32_0 : i32, i32
  }
  func.func @transform_5(%arg0: i32) -> (i32, i32) {
    %c0_i32 = arith.constant 0 : i32
    %c0_i32_0 = arith.constant 0 : i32
    %c0_i32_1 = arith.constant 0 : i32
    return %c0_i32, %c0_i32_0 : i32, i32
  }
  func.func @transform_6(%arg0: i32) -> (i32, i32) {
    %c0_i32 = arith.constant 0 : i32
    %c0_i32_0 = arith.constant 0 : i32
    return %arg0, %c0_i32 : i32, i32
  }
  func.func @transform_7(%arg0: i32) -> (i32, i32) {
    %c0_i32 = arith.constant 0 : i32
    %c0_i32_0 = arith.constant 0 : i32
    return %arg0, %c0_i32 : i32, i32
  }
  func.func @transform_8(%arg0: i32) -> (i32, i32) {
    %c0_i32 = arith.constant 0 : i32
    %c0_i32_0 = arith.constant 0 : i32
    return %c0_i32, %arg0 : i32, i32
  }
  func.func @transform_9(%arg0: i32) -> (i32, i32) {
    %c0_i32 = arith.constant 0 : i32
    %c0_i32_0 = arith.constant 0 : i32
    return %arg0, %c0_i32 : i32, i32
  }
}

module attributes {stable_mosaic.version = 11 : i64} {
  func.func @proj_kernel(%arg0: i32, %arg1: memref<128x32xbf16, #tpu.memory_space<vmem>>, %arg2: memref<128x32xbf16, #tpu.memory_space<vmem>>, %arg3: memref<32x1280xbf16, #tpu.memory_space<vmem>>, %arg4: memref<1x1280xf32, #tpu.memory_space<vmem>>, %arg5: memref<32x1280xbf16, #tpu.memory_space<vmem>>, %arg6: memref<1x1280xf32, #tpu.memory_space<vmem>>, %arg7: memref<128x1024xbf16, #tpu.memory_space<vmem>>, %arg8: memref<128x256xbf16, #tpu.memory_space<vmem>>, %arg9: memref<1024x128xbf16, #tpu.memory_space<vmem>>, %arg10: memref<128x256xbf16, #tpu.memory_space<vmem>>) attributes {dimension_semantics = [#tpu.dimension_semantics<parallel>], iteration_bounds = array<i64: 1>, scalar_prefetch = 0 : i64, scratch_operands = 0 : i64, tpu.core_type = #tpu.core_type<tc>, window_params = [{transform_indices = @transform_0, window_bounds = array<i64: 128, 32>}, {transform_indices = @transform_1, window_bounds = array<i64: 128, 32>}, {pipeline_mode = #tpu.pipeline_mode<synchronous>, transform_indices = @transform_2, window_bounds = array<i64: 32, 1280>}, {pipeline_mode = #tpu.pipeline_mode<synchronous>, transform_indices = @transform_3, window_bounds = array<i64: 1, 1280>}, {pipeline_mode = #tpu.pipeline_mode<synchronous>, transform_indices = @transform_4, window_bounds = array<i64: 32, 1280>}, {pipeline_mode = #tpu.pipeline_mode<synchronous>, transform_indices = @transform_5, window_bounds = array<i64: 1, 1280>}, {transform_indices = @transform_6, window_bounds = array<i64: 128, 1024>}, {transform_indices = @transform_7, window_bounds = array<i64: 128, 256>}, {transform_indices = @transform_8, window_bounds = array<i64: 1024, 128>}, {transform_indices = @transform_9, window_bounds = array<i64: 128, 256>}]} {
    %c0 = arith.constant 0 : index
    %c0_0 = arith.constant 0 : index
    %0 = vector.load %arg1[%c0, %c0_0] : memref<128x32xbf16, #tpu.memory_space<vmem>>, vector<128x32xbf16>
    %c0_1 = arith.constant 0 : index
    %c0_2 = arith.constant 0 : index
    %1 = vector.load %arg3[%c0_1, %c0_2] : memref<32x1280xbf16, #tpu.memory_space<vmem>>, vector<32x1280xbf16>
    %cst = arith.constant dense<0.000000e+00> : vector<128x1280xf32>
    %2 = tpu.matmul %0, %1, %cst {dimension_numbers = #tpu.dot_dimension_numbers<[1], [0], [0], [1], [0, 0, 1, 1], [], []>} : vector<128x32xbf16>, vector<32x1280xbf16>, vector<128x1280xf32> -> vector<128x1280xf32>
    %c0_3 = arith.constant 0 : index
    %c0_4 = arith.constant 0 : index
    %3 = vector.load %arg4[%c0_3, %c0_4] : memref<1x1280xf32, #tpu.memory_space<vmem>>, vector<1x1280xf32>
    %4 = vector.broadcast %3 : vector<1x1280xf32> to vector<128x1280xf32>
    %5 = arith.addf %2, %4 : vector<128x1280xf32>
    %cst_5 = arith.constant 0.000000e+00 : f32
    %6 = vector.broadcast %cst_5 : f32 to vector<128x1280xf32>
    %7 = arith.maximumf %5, %6 : vector<128x1280xf32>
    %c0_6 = arith.constant 0 : index
    %c0_7 = arith.constant 0 : index
    %8 = vector.load %arg2[%c0_6, %c0_7] : memref<128x32xbf16, #tpu.memory_space<vmem>>, vector<128x32xbf16>
    %c0_8 = arith.constant 0 : index
    %c0_9 = arith.constant 0 : index
    %9 = vector.load %arg5[%c0_8, %c0_9] : memref<32x1280xbf16, #tpu.memory_space<vmem>>, vector<32x1280xbf16>
    %cst_10 = arith.constant dense<0.000000e+00> : vector<128x1280xf32>
    %10 = tpu.matmul %8, %9, %cst_10 {dimension_numbers = #tpu.dot_dimension_numbers<[1], [0], [0], [1], [0, 0, 1, 1], [], []>} : vector<128x32xbf16>, vector<32x1280xbf16>, vector<128x1280xf32> -> vector<128x1280xf32>
    %c0_11 = arith.constant 0 : index
    %c0_12 = arith.constant 0 : index
    %11 = vector.load %arg6[%c0_11, %c0_12] : memref<1x1280xf32, #tpu.memory_space<vmem>>, vector<1x1280xf32>
    %12 = vector.broadcast %11 : vector<1x1280xf32> to vector<128x1280xf32>
    %13 = arith.addf %10, %12 : vector<128x1280xf32>
    %cst_13 = arith.constant 0.000000e+00 : f32
    %14 = vector.broadcast %cst_13 : f32 to vector<128x1280xf32>
    %15 = arith.maximumf %13, %14 : vector<128x1280xf32>
    %16 = vector.extract_strided_slice %7 {offsets = [0, 0], sizes = [128, 1024], strides = [1, 1]} : vector<128x1280xf32> to vector<128x1024xf32>
    %17 = arith.truncf %16 : vector<128x1024xf32> to vector<128x1024xbf16>
    %c0_14 = arith.constant 0 : index
    %c0_15 = arith.constant 0 : index
    %18 = vector.load %arg7[%c0_14, %c0_15] : memref<128x1024xbf16, #tpu.memory_space<vmem>>, vector<128x1024xbf16>
    tpu.vector_store %arg7[%c0_14, %c0_15], %17 {strides = array<i32>} : memref<128x1024xbf16, #tpu.memory_space<vmem>>, vector<128x1024xbf16>,
    %19 = vector.extract_strided_slice %7 {offsets = [0, 1024], sizes = [128, 256], strides = [1, 1]} : vector<128x1280xf32> to vector<128x256xf32>
    %20 = arith.truncf %19 : vector<128x256xf32> to vector<128x256xbf16>
    %c0_16 = arith.constant 0 : index
    %c0_17 = arith.constant 0 : index
    %21 = vector.load %arg8[%c0_16, %c0_17] : memref<128x256xbf16, #tpu.memory_space<vmem>>, vector<128x256xbf16>
    tpu.vector_store %arg8[%c0_16, %c0_17], %20 {strides = array<i32>} : memref<128x256xbf16, #tpu.memory_space<vmem>>, vector<128x256xbf16>,
    %22 = vector.extract_strided_slice %15 {offsets = [0, 0], sizes = [128, 1024], strides = [1, 1]} : vector<128x1280xf32> to vector<128x1024xf32>
    %23 = tpu.transpose %22, [1, 0] : vector<128x1024xf32> -> vector<1024x128xf32>
    %24 = arith.truncf %23 : vector<1024x128xf32> to vector<1024x128xbf16>
    %c0_18 = arith.constant 0 : index
    %c0_19 = arith.constant 0 : index
    %25 = vector.load %arg9[%c0_18, %c0_19] : memref<1024x128xbf16, #tpu.memory_space<vmem>>, vector<1024x128xbf16>
    tpu.vector_store %arg9[%c0_18, %c0_19], %24 {strides = array<i32>} : memref<1024x128xbf16, #tpu.memory_space<vmem>>, vector<1024x128xbf16>,
    %26 = vector.extract_strided_slice %15 {offsets = [0, 1024], sizes = [128, 256], strides = [1, 1]} : vector<128x1280xf32> to vector<128x256xf32>
    %27 = arith.truncf %26 : vector<128x256xf32> to vector<128x256xbf16>
    %c0_20 = arith.constant 0 : index
    %c0_21 = arith.constant 0 : index
    %28 = vector.load %arg10[%c0_20, %c0_21] : memref<128x256xbf16, #tpu.memory_space<vmem>>, vector<128x256xbf16>
    tpu.vector_store %arg10[%c0_20, %c0_21], %27 {strides = array<i32>} : memref<128x256xbf16, #tpu.memory_space<vmem>>, vector<128x256xbf16>,
    return
  }
  func.func @transform_0(%arg0: i32) -> (i32, i32) {
    %c0_i32 = arith.constant 0 : i32
    %c0_i32_0 = arith.constant 0 : i32
    return %arg0, %c0_i32 : i32, i32
  }
  func.func @transform_1(%arg0: i32) -> (i32, i32) {
    %c0_i32 = arith.constant 0 : i32
    %c0_i32_0 = arith.constant 0 : i32
    return %arg0, %c0_i32 : i32, i32
  }
  func.func @transform_2(%arg0: i32) -> (i32, i32) {
    %c0_i32 = arith.constant 0 : i32
    %c0_i32_0 = arith.constant 0 : i32
    %c0_i32_1 = arith.constant 0 : i32
    return %c0_i32, %c0_i32_0 : i32, i32
  }
  func.func @transform_3(%arg0: i32) -> (i32, i32) {
    %c0_i32 = arith.constant 0 : i32
    %c0_i32_0 = arith.constant 0 : i32
    %c0_i32_1 = arith.constant 0 : i32
    return %c0_i32, %c0_i32_0 : i32, i32
  }
  func.func @transform_4(%arg0: i32) -> (i32, i32) {
    %c0_i32 = arith.constant 0 : i32
    %c0_i32_0 = arith.constant 0 : i32
    %c0_i32_1 = arith.constant 0 : i32
    return %c0_i32, %c0_i32_0 : i32, i32
  }
  func.func @transform_5(%arg0: i32) -> (i32, i32) {
    %c0_i32 = arith.constant 0 : i32
    %c0_i32_0 = arith.constant 0 : i32
    %c0_i32_1 = arith.constant 0 : i32
    return %c0_i32, %c0_i32_0 : i32, i32
  }
  func.func @transform_6(%arg0: i32) -> (i32, i32) {
    %c0_i32 = arith.constant 0 : i32
    %c0_i32_0 = arith.constant 0 : i32
    return %arg0, %c0_i32 : i32, i32
  }
  func.func @transform_7(%arg0: i32) -> (i32, i32) {
    %c0_i32 = arith.constant 0 : i32
    %c0_i32_0 = arith.constant 0 : i32
    return %arg0, %c0_i32 : i32, i32
  }
  func.func @transform_8(%arg0: i32) -> (i32, i32) {
    %c0_i32 = arith.constant 0 : i32
    %c0_i32_0 = arith.constant 0 : i32
    return %c0_i32, %arg0 : i32, i32
  }
  func.func @transform_9(%arg0: i32) -> (i32, i32) {
    %c0_i32 = arith.constant 0 : i32
    %c0_i32_0 = arith.constant 0 : i32
    return %arg0, %c0_i32 : i32, i32
  }
}

</mosaic_0001>

<bundles_post_ra>
// kernel: tpu_custom_call.1
= control target key start
LH: loop header
LB: loop body
LE: loop exit
PB: predicated region body
PF: predicated region fallthrough
CT: control target
= control target key end

     0   :  { %15 = vsyncpa [#allocation3], 0  ;;  %s6264_s0 = inlined_call_operand.vmem [shape: bf16[128,32], index: 0, kind: input, shape index: {}]   ;;  %s6265_s1 = inlined_call_operand.vmem [shape: bf16[128,32], index: 1, kind: input, shape index: {}]   ;;  %s6266_s2 = inlined_call_operand.vmem [shape: bf16[32,1280], index: 2, kind: input, shape index: {}]   ;;  %s6267_s3 = inlined_call_operand.vmem [shape: f32[1,1280], index: 3, kind: input, shape index: {}]   ;;  %s6268_s4 = inlined_call_operand.hbm [shape: bf16[32,1280], index: 4, kind: input, shape index: {}]   ;;  %s6269_s5 = inlined_call_operand.hbm [shape: f32[1,1280], index: 5, kind: input, shape index: {}]   ;;  %s6270_s6 = inlined_call_operand.hbm [shape: bf16[128,1024], index: 6, kind: output, shape index: {0}]   ;;  %s6271_s7 = inlined_call_operand.hbm [shape: bf16[128,256], index: 7, kind: output, shape index: {1}]   ;;  %s6272_s8 = inlined_call_operand.hbm [shape: bf16[1024,128], index: 8, kind: output, shape index: {2}]   ;;  %s6273_s9 = inlined_call_operand.hbm [shape: bf16[128,256], index: 9, kind: output, shape index: {3}]  }
   0x1   :  { %16 = vsyncpa [#allocation6], 0 }
   0x2   :  { %17 = vsyncpa [#allocation4], 0 }
   0x3   :  { %18 = vsyncpa [#allocation9], 0 }
   0x4   :  { %19 = vsyncpa [#allocation12], 0  ;;  %s5298_s30 = smov [#allocation2]   ;;  %s5156_s13 = scalar_lea.hbm %s6268_s4, 2560 }
   0x5   :  { %s33_s10 = sshll.u32 %s5298_s30, 4  ;;  %p5157_p0 = scmp.ne.s32.totalorder %s6268_s4, %s5156_s13  ;;  %s34_s10 = int_to_ptr.vmem [resolvable:$true] %s33_s10 }
   0x6   :  { %p5160_p1 = scmp.lt.u32.totalorder %s5156_s13, %s6268_s4 }
   0x8   :  { %p5162_p2 = pnand %p5160_p1, %p5157_p0 }
   0xa   :  { %5165 = shalt.err (!%p5162_p2)
}
   0xb   :  { %s5166_s18 = scalar_lea.vmem %s34_s10, 2560  ;;  %p5171_p4 = scmp.lt.s32.totalorder %s34_s10, %s34_s10 }
   0xc   :  { %p5167_p3 = scmp.ne.s32.totalorder %s34_s10, %s5166_s18  ;;  %p5172_p5 = scmp.lt.s32.totalorder %s5166_s18, %s5166_s18 }
   0xe   :  { %p5173_p6 = por %p5172_p5, %p5171_p4 }
  0x10   :  { %p5174_p7 = pnand %p5173_p6, %p5167_p3 }
  0x12   :  { %5177 = shalt.err (!%p5174_p7)
}
  0x13   :  { %s5299_s19 = smov 640   ;;  %s5300_s20 = smov 40  }
  0x14   :  { %39 = dma.hbm_to_vmem [thread:$0]  %s6268_s4, 2560, %s34_s10, [#allocation3], %s5299_s19, %s5299_s19, %s5300_s20  }
  0x15   :  { %s5301_s23 = smov [#allocation5]   ;;  %s5178_s27 = scalar_lea.hbm %s6269_s5, 160 }
  0x16   :  { %s46_s24 = sshll.u32 %s5301_s23, 4  ;;  %p5179_p8 = scmp.ne.s32.totalorder %s6269_s5, %s5178_s27  ;;  %s47_s24 = int_to_ptr.vmem [resolvable:$true] %s46_s24 }
  0x17   :  { %p5182_p9 = scmp.lt.u32.totalorder %s5178_s27, %s6269_s5 }
  0x19   :  { %p5184_p10 = pnand %p5182_p9, %p5179_p8 }
  0x1b   :  { %5187 = shalt.err (!%p5184_p10)
}
  0x1c   :  { %s5188_s12 = scalar_lea.vmem %s47_s24, 160  ;;  %p5193_p12 = scmp.lt.s32.totalorder %s47_s24, %s47_s24 }
  0x1d   :  { %p5189_p11 = scmp.ne.s32.totalorder %s47_s24, %s5188_s12  ;;  %p5194_p13 = scmp.lt.s32.totalorder %s5188_s12, %s5188_s12 }
  0x1f   :  { %p5195_p0 = por %p5194_p13, %p5193_p12 }
  0x21   :  { %p5196_p1 = pnand %p5195_p0, %p5189_p11 }
  0x23   :  { %5199 = shalt.err (!%p5196_p1)
}
  0x24   :  { %49 = dma.hbm_to_vmem [thread:$0]  %s6269_s5, 160, %s47_s24, [#allocation6]  }
  0x25   :  { %5288 = dma.done.wait [#allocation3], 2560  }
  0x26   :  { %5289 = vsyncadd [#allocation3], 4294964736 }
  0x27   :  { %5290 = dma.done.wait [#allocation6], 160  }
  0x28   :  { %5291 = vsyncadd [#allocation6], 4294967136  ;;  %v5302_v0 = vmov 0   ;;  %v5079_v1 = vld [vmem:[%s6266_s2 + $0x4] ss:$40 sps:$4 sm:$0xff]   ;;  %vm287_vm0 = vcmask 261120   ;;  %v97_v53 = vlaneseq }
  0x29   :  { %344 = vmatprep.mubr.bf16.mxu0 %v5302_v0  ;;  %457 = vmatprep.mubr.bf16.mxu1 %v5302_v0  ;;  %v5081_v2 = vld [vmem:[%s6266_s2] ss:$40 sps:$4 sm:$0xff]   ;;  %v5082_v3 = vld [vmem:[%s6266_s2 + $0x54] ss:$40 sps:$4 sm:$0xff]   ;;  %v5084_v4 = vld [vmem:[%s6266_s2 + $0x50] ss:$40 sps:$4 sm:$0xff]  }
  0x2a   :  { %312 = vmatprep.subr.bf16.mxu0 %v5079_v1  ;;  %v5088_v5 = vld [vmem:[%s6266_s2 + $0x14] ss:$40 sps:$4 sm:$0xff]   ;;  %v5407_v6 = vld [vmem:[%s6264_s0] sm:$0xff]   ;;  %v5086_v7 = vld [vmem:[%s6266_s2 + $0x10] ss:$40 sps:$4 sm:$0xff]   ;;  %v5678_v54 = vshrl.u32 %v97_v53, 7 }
  0x2b   :  { %313 = vmatpush1.bf16.msra.mxu0 %v5081_v2  ;;  %v5095_v8 = vld [vmem:[%s6266_s2 + $0x64] ss:$40 sps:$4 sm:$0xff]   ;;  %v5093_v9 = vld [vmem:[%s6266_s2 + $0x60] ss:$40 sps:$4 sm:$0xff]   ;;  %v5456_v19 = vld [vmem:[%s6264_s0 + $0x10] sm:$0xff]  }
  0x2c   :  { %314 = vmatprep.subr.bf16.mxu0 %v5082_v3  ;;  %v5098_v10 = vld [vmem:[%s6266_s2 + $0xc] ss:$40 sps:$4 sm:$0xff]   ;;  %v5100_v11 = vld [vmem:[%s6266_s2 + $0x8] ss:$40 sps:$4 sm:$0xff]   ;;  %v5102_v13 = vld [vmem:[%s6266_s2 + $0x5c] ss:$40 sps:$4 sm:$0xff]  }
  0x2d   :  { %v5430_v12 = vld [vmem:[%s6264_s0 + $0x8] sm:$0xff]   ;;  %425 = vmatprep.subr.bf16.mxu1 %v5098_v10  ;;  %v5104_v14 = vld [vmem:[%s6266_s2 + $0x58] ss:$40 sps:$4 sm:$0xff]   ;;  %v5107_v15 = vld [vmem:[%s6266_s2 + $0x1c] ss:$40 sps:$4 sm:$0xff]   ;;  %v5682_v55 = vsub.s32 0, %v5678_v54 }
  0x2e   :  { %426 = vmatpush1.bf16.msra.mxu1 %v5100_v11  ;;  %v5110_v16 = vld [vmem:[%s6266_s2 + $0x24] ss:$40 sps:$4 sm:$0xff]   ;;  %v5105_v17 = vld [vmem:[%s6266_s2 + $0x18] ss:$40 sps:$4 sm:$0xff]   ;;  %v5111_v20 = vld [vmem:[%s6266_s2 + $0x68] ss:$40 sps:$4 sm:$0xff]  }
  0x2f   :  { %315 = vmatpush1.bf16.msra.mxu0 %v5084_v4  ;;  %427 = vmatprep.subr.bf16.mxu1 %v5102_v13  ;;  %v5113_v18 = vld [vmem:[%s6266_s2 + $0x6c] ss:$40 sps:$4 sm:$0xff]   ;;  %v5470_v22 = vld [vmem:[%s6264_s0 + $0x18] sm:$0xff]   ;;  %v5481_v23 = vld [vmem:[%s6264_s0 + $0x20] sm:$0xff]   ;;  %v5690_v57 = vsub.s32 1, %v5678_v54  ;;  %v111_v13 = vsub.s32 3, %v5678_v54 }
  0x30   :  { %538 = vmatprep.subr.bf16.mxu0 %v5088_v5  ;;  %v5119_v21 = vld [vmem:[#allocation2 + $0x4] ss:$40 sps:$4 sm:$0xff]   ;;  %v5503_v25 = vld [vmem:[%s6264_s0 + $0x30] sm:$0xff]   ;;  %v5514_v26 = vld [vmem:[%s6264_s0 + $0x38] sm:$0xff]  }
  0x31   :  { %v5492_v24 = vld [vmem:[%s6264_s0 + $0x28] sm:$0xff]   ;;  %v5116_v28 = vld [vmem:[%s6266_s2 + $0x74] ss:$40 sps:$4 sm:$0xff]   ;;  %v5114_v29 = vld [vmem:[%s6266_s2 + $0x70] ss:$40 sps:$4 sm:$0xff]   ;;  %s5304_s0 = smov [#allocation7]  }
  0x32   :  { %3677 = vmatmul.mubr.msk.bf16.vlgmr.msra.gmra.mrb[0].mxu0 %vm287_vm0, %v5407_v6  ;;  %428 = vmatpush1.bf16.msra.mxu1 %v5104_v14  ;;  %v5108_v27 = vld [vmem:[%s6266_s2 + $0x20] ss:$40 sps:$4 sm:$0xff]   ;;  %v5122_v30 = vld [vmem:[#allocation2 + $0xc] ss:$40 sps:$4 sm:$0xff]   ;;  %v5123_v33 = vld [vmem:[#allocation2 + $0x50] ss:$40 sps:$4 sm:$0xff]  }
  0x33   :  { %539 = vmatpush1.bf16.msra.mxu0 %v5086_v7  ;;  %354 = vmatprep.mubr.bf16.mxu0 %v5302_v0  ;;  %v5117_v31 = vld [vmem:[#allocation2] ss:$40 sps:$4 sm:$0xff]   ;;  %v5125_v32 = vld [vmem:[#allocation2 + $0x54] ss:$40 sps:$4 sm:$0xff]   ;;  %v5130_v40 = vld [vmem:[#allocation2 + $0x10] ss:$40 sps:$4 sm:$0xff]  }
  0x34   :  { %540 = vmatprep.subr.bf16.mxu0 %v5095_v8  ;;  %651 = vmatprep.subr.bf16.mxu1 %v5107_v15  ;;  %v5132_v34 = vld [vmem:[#allocation2 + $0x14] ss:$40 sps:$4 sm:$0xff]   ;;  %v5120_v35 = vld [vmem:[#allocation2 + $0x8] ss:$40 sps:$4 sm:$0xff]   ;;  %v5126_v37 = vld [vmem:[#allocation2 + $0x58] ss:$40 sps:$4 sm:$0xff]  }
  0x35   :  { %3685 = vmatmul.mubr.msk.bf16.vlgmr.msra.gmra.mrb[0].mxu1 %vm287_vm0, %v5407_v6  ;;  %v5128_v36 = vld [vmem:[#allocation2 + $0x5c] ss:$40 sps:$4 sm:$0xff]   ;;  %v5140_v42 = vld [vmem:[#allocation2 + $0x60] ss:$40 sps:$4 sm:$0xff]   ;;  %v5616_v44 = vld [vmem:[%s6265_s1 + $0x10] sm:$0xff]   ;;  %s3589_s19 = sshll.u32 %s5304_s0, 4  ;;  %s3590_s19 = int_to_ptr.vmem [resolvable:$true] %s3589_s19 }
  0x36   :  { %652 = vmatpush1.bf16.msra.mxu1 %v5105_v17  ;;  %467 = vmatprep.mubr.bf16.mxu1 %v5302_v0  ;;  %v5135_v38 = vld [vmem:[#allocation2 + $0x1c] ss:$40 sps:$4 sm:$0xff]   ;;  %v5605_v43 = vld [vmem:[%s6265_s1 + $0x8] sm:$0xff]   ;;  %v5660_v48 = vld [vmem:[%s6265_s1 + $0x30] sm:$0xff]  }
  0x37   :  { %541 = vmatpush1.bf16.msra.mxu0 %v5093_v9  ;;  %653 = vmatprep.subr.bf16.mxu1 %v5113_v18  ;;  %v5594_v39 = vld [vmem:[%s6265_s1] sm:$0xff]   ;;  %v5627_v45 = vld [vmem:[%s6265_s1 + $0x18] sm:$0xff]   ;;  %v5649_v47 = vld [vmem:[%s6265_s1 + $0x28] sm:$0xff]  }
  0x38   :  { %764 = vmatprep.subr.bf16.mxu0 %v5110_v16  ;;  %v5142_v41 = vld [vmem:[#allocation2 + $0x64] ss:$40 sps:$4 sm:$0xff]   ;;  %v5133_v49 = vld [vmem:[#allocation2 + $0x18] ss:$40 sps:$4 sm:$0xff]   ;;  %v5143_v51 = vld [vmem:[#allocation2 + $0x68] ss:$40 sps:$4 sm:$0xff]  }
  0x39   :  { %v5638_v46 = vld [vmem:[%s6265_s1 + $0x20] sm:$0xff]   ;;  %v5145_v50 = vld [vmem:[#allocation2 + $0x6c] ss:$40 sps:$4 sm:$0xff]   ;;  %v5671_v52 = vld [vmem:[%s6265_s1 + $0x38] sm:$0xff]  }
  0x3a   :  { %3678 = vmatmul.mubr.msk.bf16.gmra.mrb[4].mxu0 %vm287_vm0, %v5430_v12  ;;  %654 = vmatpush1.bf16.msra.mxu1 %v5111_v20  ;;  %v5687_v56 = vld [vmem:[%s6267_s3] sm:$0xff] }
  0x3b   :  { %364 = vmatprep.mubr.bf16.mxu0 %v5302_v0  ;;  %1291 = vmatprep.subr.bf16.mxu1 %v5119_v21  ;;  %v5149_v58 = vld [vmem:[#allocation2 + $0x20] ss:$40 sps:$4 sm:$0xff]   ;;  %v5151_v59 = vld [vmem:[#allocation2 + $0x24] ss:$40 sps:$4 sm:$0xff]   ;;  %v5699_v60 = vrot.slane %v5687_v56, %v5682_v55  ;;  %v5703_v61 = vrot.slane %v5687_v56, %v5690_v57 }
  0x3d   :  { %3686 = vmatmul.mubr.msk.bf16.gmra.mrb[4].mxu1 %vm287_vm0, %v5430_v12 }
  0x3e   :  { %477 = vmatprep.mubr.bf16.mxu1 %v5302_v0 }
  0x42   :  { %3679 = vmatmul.mubr.msk.bf16.gmra.mrb[8].mxu0 %vm287_vm0, %v5456_v19 }
  0x43   :  { %374 = vmatprep.mubr.bf16.mxu0 %v5302_v0 }
  0x45   :  { %3687 = vmatmul.mubr.msk.bf16.gmra.mrb[8].mxu1 %vm287_vm0, %v5456_v19 }
  0x46   :  { %487 = vmatprep.mubr.bf16.mxu1 %v5302_v0 }
  0x4a   :  { %3680 = vmatmul.mubr.msk.bf16.gmra.mrb[12].mxu0 %vm287_vm0, %v5470_v22 }
  0x4b   :  { %384 = vmatprep.mubr.bf16.mxu0 %v5302_v0 }
  0x4d   :  { %3688 = vmatmul.mubr.msk.bf16.gmra.mrb[12].mxu1 %vm287_vm0, %v5470_v22 }
  0x4e   :  { %497 = vmatprep.mubr.bf16.mxu1 %v5302_v0 }
  0x52   :  { %3681 = vmatmul.mubr.msk.bf16.gmra.mrb[16].mxu0 %vm287_vm0, %v5481_v23 }
  0x53   :  { %394 = vmatprep.mubr.bf16.mxu0 %v5302_v0 }
  0x55   :  { %3689 = vmatmul.mubr.msk.bf16.gmra.mrb[16].mxu1 %vm287_vm0, %v5481_v23 }
  0x56   :  { %507 = vmatprep.mubr.bf16.mxu1 %v5302_v0 }
  0x5a   :  { %3682 = vmatmul.mubr.msk.bf16.gmra.mrb[20].mxu0 %vm287_vm0, %v5492_v24 }
  0x5b   :  { %404 = vmatprep.mubr.bf16.mxu0 %v5302_v0 }
  0x5d   :  { %3690 = vmatmul.mubr.msk.bf16.gmra.mrb[20].mxu1 %vm287_vm0, %v5492_v24 }
  0x5e   :  { %517 = vmatprep.mubr.bf16.mxu1 %v5302_v0 }
  0x62   :  { %3683 = vmatmul.mubr.msk.bf16.gmra.mrb[24].mxu0 %vm287_vm0, %v5503_v25 }
  0x63   :  { %414 = vmatprep.mubr.bf16.mxu0 %v5302_v0 }
  0x65   :  { %3691 = vmatmul.mubr.msk.bf16.gmra.mrb[24].mxu1 %vm287_vm0, %v5503_v25 }
  0x66   :  { %527 = vmatprep.mubr.bf16.mxu1 %v5302_v0 }
  0x6a   :  { %3684 = vmatmul.mubr.msk.bf16.gmra.mrb[28].mxu0 %vm287_vm0, %v5514_v26 }
  0x6b   :  { %570 = vmatprep.mubr.bf16.mxu0 %v5302_v0 }
  0x6d   :  { %3692 = vmatmul.mubr.msk.bf16.gmra.mrb[28].mxu1 %vm287_vm0, %v5514_v26 }
  0x6e   :  { %683 = vmatprep.mubr.bf16.mxu1 %v5302_v0 }
  0x72   :  { %3693 = vmatmul.mubr.msk.bf16.vlgmr.msra.gmra.mrb[32].mxu0 %vm287_vm0, %v5407_v6 }
  0x73   :  { %765 = vmatpush1.bf16.msra.mxu0 %v5108_v27  ;;  %580 = vmatprep.mubr.bf16.mxu0 %v5302_v0 }
  0x74   :  { %766 = vmatprep.subr.bf16.mxu0 %v5116_v28 }
  0x75   :  { %3701 = vmatmul.mubr.msk.bf16.vlgmr.msra.gmra.mrb[32].mxu1 %vm287_vm0, %v5407_v6 }
  0x76   :  { %1292 = vmatpush1.bf16.msra.mxu1 %v5117_v31  ;;  %693 = vmatprep.mubr.bf16.mxu1 %v5302_v0 }
  0x77   :  { %767 = vmatpush1.bf16.msra.mxu0 %v5114_v29  ;;  %1293 = vmatprep.subr.bf16.mxu1 %v5125_v32 }
  0x78   :  { %1404 = vmatprep.subr.bf16.mxu0 %v5122_v30 }
  0x7a   :  { %3694 = vmatmul.mubr.msk.bf16.gmra.mrb[36].mxu0 %vm287_vm0, %v5430_v12  ;;  %1294 = vmatpush1.bf16.msra.mxu1 %v5123_v33 }
  0x7b   :  { %590 = vmatprep.mubr.bf16.mxu0 %v5302_v0  ;;  %1517 = vmatprep.subr.bf16.mxu1 %v5132_v34 }
  0x7d   :  { %3702 = vmatmul.mubr.msk.bf16.gmra.mrb[36].mxu1 %vm287_vm0, %v5430_v12 }
  0x7e   :  { %703 = vmatprep.mubr.bf16.mxu1 %v5302_v0 }
  0x82   :  { %3695 = vmatmul.mubr.msk.bf16.gmra.mrb[40].mxu0 %vm287_vm0, %v5456_v19 }
  0x83   :  { %600 = vmatprep.mubr.bf16.mxu0 %v5302_v0 }
  0x85   :  { %3703 = vmatmul.mubr.msk.bf16.gmra.mrb[40].mxu1 %vm287_vm0, %v5456_v19 }
  0x86   :  { %713 = vmatprep.mubr.bf16.mxu1 %v5302_v0 }
  0x8a   :  { %3696 = vmatmul.mubr.msk.bf16.gmra.mrb[44].mxu0 %vm287_vm0, %v5470_v22 }
  0x8b   :  { %610 = vmatprep.mubr.bf16.mxu0 %v5302_v0 }
  0x8d   :  { %3704 = vmatmul.mubr.msk.bf16.gmra.mrb[44].mxu1 %vm287_vm0, %v5470_v22 }
  0x8e   :  { %723 = vmatprep.mubr.bf16.mxu1 %v5302_v0 }
  0x92   :  { %3697 = vmatmul.mubr.msk.bf16.gmra.mrb[48].mxu0 %vm287_vm0, %v5481_v23 }
  0x93   :  { %620 = vmatprep.mubr.bf16.mxu0 %v5302_v0 }
  0x95   :  { %3705 = vmatmul.mubr.msk.bf16.gmra.mrb[48].mxu1 %vm287_vm0, %v5481_v23 }
  0x96   :  { %733 = vmatprep.mubr.bf16.mxu1 %v5302_v0 }
  0x9a   :  { %3698 = vmatmul.mubr.msk.bf16.gmra.mrb[52].mxu0 %vm287_vm0, %v5492_v24 }
  0x9b   :  { %630 = vmatprep.mubr.bf16.mxu0 %v5302_v0 }
  0x9d   :  { %3706 = vmatmul.mubr.msk.bf16.gmra.mrb[52].mxu1 %vm287_vm0, %v5492_v24 }
  0x9e   :  { %743 = vmatprep.mubr.bf16.mxu1 %v5302_v0 }
  0xa2   :  { %3699 = vmatmul.mubr.msk.bf16.gmra.mrb[56].mxu0 %vm287_vm0, %v5503_v25 }
  0xa3   :  { %640 = vmatprep.mubr.bf16.mxu0 %v5302_v0 }
  0xa5   :  { %3707 = vmatmul.mubr.msk.bf16.gmra.mrb[56].mxu1 %vm287_vm0, %v5503_v25 }
  0xa6   :  { %753 = vmatprep.mubr.bf16.mxu1 %v5302_v0 }
  0xaa   :  { %3700 = vmatmul.mubr.msk.bf16.gmra.mrb[60].mxu0 %vm287_vm0, %v5514_v26 }
  0xab   :  { %796 = vmatprep.mubr.bf16.mxu0 %v5302_v0 }
  0xad   :  { %3708 = vmatmul.mubr.msk.bf16.gmra.mrb[60].mxu1 %vm287_vm0, %v5514_v26 }
  0xae   :  { %1323 = vmatprep.mubr.bf16.mxu1 %v5302_v0 }
  0xb2   :  { %3709 = vmatmul.mubr.msk.bf16.vlgmr.msra.gmra.mrb[64].mxu0 %vm287_vm0, %v5407_v6 }
  0xb3   :  { %1405 = vmatpush1.bf16.msra.mxu0 %v5120_v35  ;;  %806 = vmatprep.mubr.bf16.mxu0 %v5302_v0 }
  0xb4   :  { %1406 = vmatprep.subr.bf16.mxu0 %v5128_v36 }
  0xb5   :  { %3745 = vmatmul.mubr.msk.bf16.vlgmr.msra.gmra.mrb[64].mxu1 %vm287_vm0, %v5594_v39 }
  0xb6   :  { %1518 = vmatpush1.bf16.msra.mxu1 %v5130_v40  ;;  %1333 = vmatprep.mubr.bf16.mxu1 %v5302_v0 }
  0xb7   :  { %1407 = vmatpush1.bf16.msra.mxu0 %v5126_v37  ;;  %1519 = vmatprep.subr.bf16.mxu1 %v5142_v41 }
  0xb8   :  { %1630 = vmatprep.subr.bf16.mxu0 %v5135_v38 }
  0xba   :  { %3710 = vmatmul.mubr.msk.bf16.gmra.mrb[68].mxu0 %vm287_vm0, %v5430_v12  ;;  %1520 = vmatpush1.bf16.msra.mxu1 %v5140_v42  ;;  %v107_v12 = vsub.s32 2, %v5678_v54 }
  0xbb   :  { %816 = vmatprep.mubr.bf16.mxu0 %v5302_v0  ;;  %1743 = vmatprep.subr.bf16.mxu1 %v5151_v59 }
  0xbc   :  { %v5725_v20 = vrot.slane %v5687_v56, %v107_v12 }
  0xbd   :  { %3746 = vmatmul.mubr.msk.bf16.gmra.mrb[68].mxu1 %vm287_vm0, %v5605_v43 }
  0xbe   :  { %1343 = vmatprep.mubr.bf16.mxu1 %v5302_v0 }
  0xc2   :  { %3711 = vmatmul.mubr.msk.bf16.gmra.mrb[72].mxu0 %vm287_vm0, %v5456_v19 }
  0xc3   :  { %826 = vmatprep.mubr.bf16.mxu0 %v5302_v0 }
  0xc5   :  { %3747 = vmatmul.mubr.msk.bf16.gmra.mrb[72].mxu1 %vm287_vm0, %v5616_v44 }
  0xc6   :  { %1353 = vmatprep.mubr.bf16.mxu1 %v5302_v0 }
  0xca   :  { %3712 = vmatmul.mubr.msk.bf16.gmra.mrb[76].mxu0 %vm287_vm0, %v5470_v22 }
  0xcb   :  { %836 = vmatprep.mubr.bf16.mxu0 %v5302_v0 }
  0xcd   :  { %3748 = vmatmul.mubr.msk.bf16.gmra.mrb[76].mxu1 %vm287_vm0, %v5627_v45 }
  0xce   :  { %1363 = vmatprep.mubr.bf16.mxu1 %v5302_v0 }
  0xd2   :  { %3713 = vmatmul.mubr.msk.bf16.gmra.mrb[80].mxu0 %vm287_vm0, %v5481_v23 }
  0xd3   :  { %846 = vmatprep.mubr.bf16.mxu0 %v5302_v0 }
  0xd5   :  { %3749 = vmatmul.mubr.msk.bf16.gmra.mrb[80].mxu1 %vm287_vm0, %v5638_v46 }
  0xd6   :  { %1373 = vmatprep.mubr.bf16.mxu1 %v5302_v0 }
  0xda   :  { %3714 = vmatmul.mubr.msk.bf16.gmra.mrb[84].mxu0 %vm287_vm0, %v5492_v24  ;;  %v5731_v24 = vrot.slane %v5687_v56, %v111_v13 }
  0xdb   :  { %856 = vmatprep.mubr.bf16.mxu0 %v5302_v0 }
  0xdd   :  { %3750 = vmatmul.mubr.msk.bf16.gmra.mrb[84].mxu1 %vm287_vm0, %v5649_v47 }
  0xde   :  { %1383 = vmatprep.mubr.bf16.mxu1 %v5302_v0 }
  0xe2   :  { %3715 = vmatmul.mubr.msk.bf16.gmra.mrb[88].mxu0 %vm287_vm0, %v5503_v25 }
  0xe3   :  { %866 = vmatprep.mubr.bf16.mxu0 %v5302_v0 }
  0xe5   :  { %3751 = vmatmul.mubr.msk.bf16.gmra.mrb[88].mxu1 %vm287_vm0, %v5660_v48 }
  0xe6   :  { %1393 = vmatprep.mubr.bf16.mxu1 %v5302_v0 }
  0xea   :  { %3716 = vmatmul.mubr.msk.bf16.gmra.mrb[92].mxu0 %vm287_vm0, %v5514_v26 }
  0xeb   :  { %1436 = vmatprep.mubr.bf16.mxu0 %v5302_v0 }
  0xed   :  { %3752 = vmatmul.mubr.msk.bf16.gmra.mrb[92].mxu1 %vm287_vm0, %v5671_v52 }
  0xee   :  { %1549 = vmatprep.mubr.bf16.mxu1 %v5302_v0 }
  0xf2   :  { %3753 = vmatmul.mubr.msk.bf16.vlgmr.msra.gmra.mrb[96].mxu0 %vm287_vm0, %v5594_v39 }
  0xf3   :  { %1631 = vmatpush1.bf16.msra.mxu0 %v5133_v49  ;;  %1446 = vmatprep.mubr.bf16.mxu0 %v5302_v0 }
  0xf4   :  { %1632 = vmatprep.subr.bf16.mxu0 %v5145_v50 }
  0xf5   :  { %3761 = vmatmul.mubr.msk.bf16.vlgmr.msra.gmra.mrb[96].mxu1 %vm287_vm0, %v5594_v39 }
  0xf6   :  { %1559 = vmatprep.mubr.bf16.mxu1 %v5302_v0  ;;  %1744 = vmatpush1.bf16.msra.mxu1 %v5149_v58 }
  0xf7   :  { %1633 = vmatpush1.bf16.msra.mxu0 %v5143_v51 }
  0xfa   :  { %3754 = vmatmul.mubr.msk.bf16.gmra.mrb[100].mxu0 %vm287_vm0, %v5605_v43 }
  0xfb   :  { %1456 = vmatprep.mubr.bf16.mxu0 %v5302_v0 }
  0xfd   :  { %3762 = vmatmul.mubr.msk.bf16.gmra.mrb[100].mxu1 %vm287_vm0, %v5605_v43 }
  0xfe   :  { %1569 = vmatprep.mubr.bf16.mxu1 %v5302_v0 }
 0x102   :  { %3755 = vmatmul.mubr.msk.bf16.gmra.mrb[104].mxu0 %vm287_vm0, %v5616_v44 }
 0x103   :  { %1466 = vmatprep.mubr.bf16.mxu0 %v5302_v0 }
 0x105   :  { %v346_v62 = vpop.f32.mrb[0].mxu0  ;;  %3763 = vmatmul.mubr.msk.bf16.gmra.mrb[104].mxu1 %vm287_vm0, %v5616_v44 }
 0x106   :  { %v347_v63 = vadd.f32 %v346_v62, %v5699_v60  ;;  %v348_v1 = vpop.f32.mrb[1].mxu0  ;;  %1579 = vmatprep.mubr.bf16.mxu1 %v5302_v0 }
 0x107   :  { %v349_v2 = vadd.f32 %v348_v1, %v5703_v61  ;;  %v350_v3 = vpop.f32.mrb[2].mxu0 }
 0x108   :  { %v877_v4 = vmax.f32 %v347_v63, 0.0  ;;  %v351_v5 = vadd.f32 %v350_v3, %v5699_v60  ;;  %v352_v6 = vpop.f32.mrb[3].mxu0  ;;  %v459_v28 = vpop.f32.mrb[0].mxu1 }
 0x109   :  { %v878_v7 = vmax.f32 %v349_v2, 0.0  ;;  %v353_v8 = vadd.f32 %v352_v6, %v5703_v61  ;;  %v460_v31 = vadd.f32 %v459_v28, %v5725_v20  ;;  %v461_v32 = vpop.f32.mrb[1].mxu1 }
 0x10a   :  { %v887_v9 = vmax.f32 %v351_v5, 0.0  ;;  %3756 = vmatmul.mubr.msk.bf16.gmra.mrb[108].mxu0 %vm287_vm0, %v5627_v45  ;;  %v462_v33 = vadd.f32 %v461_v32, %v5731_v24  ;;  %v463_v34 = vpop.f32.mrb[2].mxu1 }
 0x10b   :  { %v4009_v10 = vpack.c.bf16 %v878_v7, %v877_v4  ;;  %v888_v11 = vmax.f32 %v353_v8, 0.0  ;;  %1476 = vmatprep.mubr.bf16.mxu0 %v5302_v0  ;;  %v879_v37 = vmax.f32 %v460_v31, 0.0  ;;  %v464_v38 = vadd.f32 %v463_v34, %v5725_v20  ;;  %v465_v40 = vpop.f32.mrb[3].mxu1  ;;  %v5154_v31 = vld [vmem:[#allocation2 + $0x74] ss:$40 sps:$4 sm:$0xff]  }
 0x10c   :  { %v880_v49 = vmax.f32 %v462_v33, 0.0  ;;  %v466_v50 = vadd.f32 %v465_v40, %v5731_v24  ;;  %1745 = vmatprep.subr.bf16.mxu1 %v5154_v31 }
 0x10d   :  { %2400 = vst [vmem:[#allocation7] sm:$0xff] %v4009_v10  ;;  %v4013_v14 = vpack.c.bf16 %v888_v11, %v887_v9  ;;  %v356_v15 = vpop.f32.mrb[4].mxu0  ;;  %v889_v58 = vmax.f32 %v464_v38, 0.0  ;;  %3764 = vmatmul.mubr.msk.bf16.gmra.mrb[108].mxu1 %vm287_vm0, %v5627_v45 }
 0x10e   :  { %v357_v16 = vadd.f32 %v356_v15, %v5699_v60  ;;  %v358_v17 = vpop.f32.mrb[5].mxu0  ;;  %v4010_v1 = vpack.c.bf16 %v880_v49, %v879_v37  ;;  %v890_v2 = vmax.f32 %v466_v50, 0.0  ;;  %1589 = vmatprep.mubr.bf16.mxu1 %v5302_v0 }
 0x10f   :  { %2404 = vst [vmem:[#allocation7 + $0x20] sm:$0xff] %v4013_v14  ;;  %v359_v18 = vadd.f32 %v358_v17, %v5703_v61  ;;  %v360_v19 = vpop.f32.mrb[6].mxu0 }
 0x110   :  { %v897_v21 = vmax.f32 %v357_v16, 0.0  ;;  %v361_v22 = vadd.f32 %v360_v19, %v5699_v60  ;;  %v362_v23 = vpop.f32.mrb[7].mxu0  ;;  %2401 = vst [vmem:[#allocation7 + $0x8] sm:$0xff] %v4010_v1  ;;  %v4014_v6 = vpack.c.bf16 %v890_v2, %v889_v58  ;;  %v469_v7 = vpop.f32.mrb[4].mxu1 }
 0x111   :  { %v898_v25 = vmax.f32 %v359_v18, 0.0  ;;  %v363_v26 = vadd.f32 %v362_v23, %v5703_v61  ;;  %v470_v10 = vadd.f32 %v469_v7, %v5725_v20  ;;  %v471_v11 = vpop.f32.mrb[5].mxu1 }
 0x112   :  { %v907_v27 = vmax.f32 %v361_v22, 0.0  ;;  %3757 = vmatmul.mubr.msk.bf16.gmra.mrb[112].mxu0 %vm287_vm0, %v5638_v46  ;;  %2405 = vst [vmem:[#allocation7 + $0x28] sm:$0xff] %v4014_v6  ;;  %v472_v14 = vadd.f32 %v471_v11, %v5731_v24  ;;  %v473_v15 = vpop.f32.mrb[6].mxu1 }
 0x113   :  { %v4017_v29 = vpack.c.bf16 %v898_v25, %v897_v21  ;;  %v908_v30 = vmax.f32 %v363_v26, 0.0  ;;  %1486 = vmatprep.mubr.bf16.mxu0 %v5302_v0  ;;  %v899_v18 = vmax.f32 %v470_v10, 0.0  ;;  %v474_v19 = vadd.f32 %v473_v15, %v5725_v20  ;;  %v475_v21 = vpop.f32.mrb[7].mxu1 }
 0x114   :  { %v900_v25 = vmax.f32 %v472_v14, 0.0  ;;  %v476_v26 = vadd.f32 %v475_v21, %v5731_v24 }
 0x115   :  { %2408 = vst [vmem:[#allocation7 + $0x40] sm:$0xff] %v4017_v29  ;;  %v4021_v35 = vpack.c.bf16 %v908_v30, %v907_v27  ;;  %v366_v36 = vpop.f32.mrb[8].mxu0  ;;  %v909_v29 = vmax.f32 %v474_v19, 0.0  ;;  %3765 = vmatmul.mubr.msk.bf16.gmra.mrb[112].mxu1 %vm287_vm0, %v5638_v46  ;;  %v5152_v30 = vld [vmem:[#allocation2 + $0x70] ss:$40 sps:$4 sm:$0xff]  }
 0x116   :  { %v367_v41 = vadd.f32 %v366_v36, %v5699_v60  ;;  %v368_v42 = vpop.f32.mrb[9].mxu0  ;;  %v910_v36 = vmax.f32 %v476_v26, 0.0  ;;  %1599 = vmatprep.mubr.bf16.mxu1 %v5302_v0  ;;  %1746 = vmatpush1.bf16.msra.mxu1 %v5152_v30 }
 0x117   :  { %2412 = vst [vmem:[#allocation7 + $0x60] sm:$0xff] %v4021_v35  ;;  %v369_v51 = vadd.f32 %v368_v42, %v5703_v61  ;;  %v370_v53 = vpop.f32.mrb[10].mxu0  ;;  %v4018_v35 = vpack.c.bf16 %v900_v25, %v899_v18 }
 0x118   :  { %v917_v59 = vmax.f32 %v367_v41, 0.0  ;;  %v371_v62 = vadd.f32 %v370_v53, %v5699_v60  ;;  %v372_v63 = vpop.f32.mrb[11].mxu0  ;;  %v4022_v41 = vpack.c.bf16 %v910_v36, %v909_v29  ;;  %v479_v42 = vpop.f32.mrb[8].mxu1 }
 0x119   :  { %v918_v3 = vmax.f32 %v369_v51, 0.0  ;;  %v373_v4 = vadd.f32 %v372_v63, %v5703_v61  ;;  %2409 = vst [vmem:[#allocation7 + $0x48] sm:$0xff] %v4018_v35  ;;  %v480_v51 = vadd.f32 %v479_v42, %v5725_v20  ;;  %v481_v53 = vpop.f32.mrb[9].mxu1 }
 0x11a   :  { %v927_v5 = vmax.f32 %v371_v62, 0.0  ;;  %3758 = vmatmul.mubr.msk.bf16.gmra.mrb[116].mxu0 %vm287_vm0, %v5649_v47  ;;  %2413 = vst [vmem:[#allocation7 + $0x68] sm:$0xff] %v4022_v41  ;;  %v482_v58 = vadd.f32 %v481_v53, %v5731_v24 }
 0x11b   :  { %v4025_v8 = vpack.c.bf16 %v918_v3, %v917_v59  ;;  %v928_v9 = vmax.f32 %v373_v4, 0.0  ;;  %1496 = vmatprep.mubr.bf16.mxu0 %v5302_v0  ;;  %v483_v59 = vpop.f32.mrb[10].mxu1  ;;  %v919_v1 = vmax.f32 %v480_v51, 0.0 }
 0x11c   :  { %v484_v2 = vadd.f32 %v483_v59, %v5725_v20  ;;  %v485_v3 = vpop.f32.mrb[11].mxu1  ;;  %v920_v6 = vmax.f32 %v482_v58, 0.0 }
 0x11d   :  { %2416 = vst [vmem:[#allocation7 + $0x80] sm:$0xff] %v4025_v8  ;;  %v4029_v16 = vpack.c.bf16 %v928_v9, %v927_v5  ;;  %v376_v17 = vpop.f32.mrb[12].mxu0  ;;  %v486_v7 = vadd.f32 %v485_v3, %v5731_v24  ;;  %3766 = vmatmul.mubr.msk.bf16.gmra.mrb[116].mxu1 %vm287_vm0, %v5649_v47 }
 0x11e   :  { %v377_v22 = vadd.f32 %v376_v17, %v5699_v60  ;;  %v378_v23 = vpop.f32.mrb[13].mxu0  ;;  %v929_v10 = vmax.f32 %v484_v2, 0.0  ;;  %1609 = vmatprep.mubr.bf16.mxu1 %v5302_v0 }
 0x11f   :  { %2420 = vst [vmem:[#allocation7 + $0xa0] sm:$0xff] %v4029_v16  ;;  %v379_v27 = vadd.f32 %v378_v23, %v5703_v61  ;;  %v380_v28 = vpop.f32.mrb[14].mxu0  ;;  %v4026_v16 = vpack.c.bf16 %v920_v6, %v919_v1  ;;  %v930_v17 = vmax.f32 %v486_v7, 0.0 }
 0x120   :  { %v937_v32 = vmax.f32 %v377_v22, 0.0  ;;  %v381_v33 = vadd.f32 %v380_v28, %v5699_v60  ;;  %v382_v34 = vpop.f32.mrb[15].mxu0  ;;  %v489_v23 = vpop.f32.mrb[12].mxu1 }
 0x121   :  { %v938_v37 = vmax.f32 %v379_v27, 0.0  ;;  %v383_v38 = vadd.f32 %v382_v34, %v5703_v61  ;;  %2417 = vst [vmem:[#allocation7 + $0x88] sm:$0xff] %v4026_v16  ;;  %v4030_v22 = vpack.c.bf16 %v930_v17, %v929_v10  ;;  %v490_v27 = vadd.f32 %v489_v23, %v5725_v20  ;;  %v491_v28 = vpop.f32.mrb[13].mxu1 }
 0x122   :  { %v947_v40 = vmax.f32 %v381_v33, 0.0  ;;  %3759 = vmatmul.mubr.msk.bf16.gmra.mrb[120].mxu0 %vm287_vm0, %v5660_v48  ;;  %v492_v29 = vadd.f32 %v491_v28, %v5731_v24  ;;  %v493_v30 = vpop.f32.mrb[14].mxu1 }
 0x123   :  { %v4033_v49 = vpack.c.bf16 %v938_v37, %v937_v32  ;;  %v948_v50 = vmax.f32 %v383_v38, 0.0  ;;  %1506 = vmatprep.mubr.bf16.mxu0 %v5302_v0  ;;  %2421 = vst [vmem:[#allocation7 + $0xa8] sm:$0xff] %v4030_v22  ;;  %v939_v33 = vmax.f32 %v490_v27, 0.0  ;;  %v494_v34 = vadd.f32 %v493_v30, %v5725_v20  ;;  %v495_v35 = vpop.f32.mrb[15].mxu1 }
 0x124   :  { %v940_v38 = vmax.f32 %v492_v29, 0.0 }
 0x125   :  { %2424 = vst [vmem:[#allocation7 + $0xc0] sm:$0xff] %v4033_v49  ;;  %v4037_v62 = vpack.c.bf16 %v948_v50, %v947_v40  ;;  %v386_v63 = vpop.f32.mrb[16].mxu0  ;;  %v496_v40 = vadd.f32 %v495_v35, %v5731_v24  ;;  %v949_v49 = vmax.f32 %v494_v34, 0.0  ;;  %3767 = vmatmul.mubr.msk.bf16.gmra.mrb[120].mxu1 %vm287_vm0, %v5660_v48 }
 0x126   :  { %v387_v4 = vadd.f32 %v386_v63, %v5699_v60  ;;  %v388_v5 = vpop.f32.mrb[17].mxu0  ;;  %v4034_v58 = vpack.c.bf16 %v940_v38, %v939_v33  ;;  %1619 = vmatprep.mubr.bf16.mxu1 %v5302_v0 }
 0x127   :  { %2428 = vst [vmem:[#allocation7 + $0xe0] sm:$0xff] %v4037_v62  ;;  %v389_v8 = vadd.f32 %v388_v5, %v5703_v61  ;;  %v390_v9 = vpop.f32.mrb[18].mxu0  ;;  %v950_v59 = vmax.f32 %v496_v40, 0.0 }
 0x128   :  { %v957_v11 = vmax.f32 %v387_v4, 0.0  ;;  %v391_v14 = vadd.f32 %v390_v9, %v5699_v60  ;;  %v392_v15 = vpop.f32.mrb[19].mxu0  ;;  %2425 = vst [vmem:[#allocation7 + $0xc8] sm:$0xff] %v4034_v58  ;;  %v499_v3 = vpop.f32.mrb[16].mxu1 }
 0x129   :  { %v958_v18 = vmax.f32 %v389_v8, 0.0  ;;  %v393_v19 = vadd.f32 %v392_v15, %v5703_v61  ;;  %v4038_v2 = vpack.c.bf16 %v950_v59, %v949_v49  ;;  %v500_v6 = vadd.f32 %v499_v3, %v5725_v20  ;;  %v501_v7 = vpop.f32.mrb[17].mxu1 }
 0x12a   :  { %v967_v21 = vmax.f32 %v391_v14, 0.0  ;;  %3760 = vmatmul.mubr.msk.bf16.gmra.mrb[124].mxu0 %vm287_vm0, %v5671_v52  ;;  %v502_v8 = vadd.f32 %v501_v7, %v5731_v24  ;;  %v503_v9 = vpop.f32.mrb[18].mxu1 }
 0x12b   :  { %v4041_v25 = vpack.c.bf16 %v958_v18, %v957_v11  ;;  %v968_v26 = vmax.f32 %v393_v19, 0.0  ;;  %1662 = vmatprep.mubr.bf16.mxu0 %v5302_v0  ;;  %2429 = vst [vmem:[#allocation7 + $0xe8] sm:$0xff] %v4038_v2  ;;  %v959_v14 = vmax.f32 %v500_v6, 0.0  ;;  %v504_v15 = vadd.f32 %v503_v9, %v5725_v20  ;;  %v505_v16 = vpop.f32.mrb[19].mxu1 }
 0x12c   :  { %v960_v19 = vmax.f32 %v502_v8, 0.0 }
 0x12d   :  { %2432 = vst [vmem:[#allocation7 + $0x100] sm:$0xff] %v4041_v25  ;;  %v4045_v31 = vpack.c.bf16 %v968_v26, %v967_v21  ;;  %v396_v32 = vpop.f32.mrb[20].mxu0  ;;  %v506_v21 = vadd.f32 %v505_v16, %v5731_v24  ;;  %v969_v25 = vmax.f32 %v504_v15, 0.0  ;;  %3768 = vmatmul.mubr.msk.bf16.gmra.mrb[124].mxu1 %vm287_vm0, %v5671_v52 }
 0x12e   :  { %v397_v36 = vadd.f32 %v396_v32, %v5699_v60  ;;  %v398_v37 = vpop.f32.mrb[21].mxu0  ;;  %v4042_v29 = vpack.c.bf16 %v960_v19, %v959_v14  ;;  %1775 = vmatprep.mubr.bf16.mxu1 %v5302_v0 }
 0x12f   :  { %2436 = vst [vmem:[#allocation7 + $0x120] sm:$0xff] %v4045_v31  ;;  %v399_v41 = vadd.f32 %v398_v37, %v5703_v61  ;;  %v400_v42 = vpop.f32.mrb[22].mxu0  ;;  %v970_v30 = vmax.f32 %v506_v21, 0.0 }
 0x130   :  { %v977_v50 = vmax.f32 %v397_v36, 0.0  ;;  %v401_v51 = vadd.f32 %v400_v42, %v5699_v60  ;;  %v402_v53 = vpop.f32.mrb[23].mxu0  ;;  %2433 = vst [vmem:[#allocation7 + $0x108] sm:$0xff] %v4042_v29  ;;  %v509_v35 = vpop.f32.mrb[20].mxu1 }
 0x131   :  { %v978_v62 = vmax.f32 %v399_v41, 0.0  ;;  %v403_v63 = vadd.f32 %v402_v53, %v5703_v61  ;;  %v4046_v34 = vpack.c.bf16 %v970_v30, %v969_v25  ;;  %v510_v38 = vadd.f32 %v509_v35, %v5725_v20  ;;  %v511_v40 = vpop.f32.mrb[21].mxu1 }
 0x132   :  { %v987_v1 = vmax.f32 %v401_v51, 0.0  ;;  %3769 = vmatmul.mubr.msk.bf16.vlgmr.msra.gmra.mrb[128].mxu0 %vm287_vm0, %v5594_v39  ;;  %v512_v41 = vadd.f32 %v511_v40, %v5731_v24  ;;  %v513_v42 = vpop.f32.mrb[22].mxu1 }
 0x133   :  { %v4049_v4 = vpack.c.bf16 %v978_v62, %v977_v50  ;;  %v988_v5 = vmax.f32 %v403_v63, 0.0  ;;  %1672 = vmatprep.mubr.bf16.mxu0 %v5302_v0  ;;  %2437 = vst [vmem:[#allocation7 + $0x128] sm:$0xff] %v4046_v34  ;;  %v979_v51 = vmax.f32 %v510_v38, 0.0  ;;  %v514_v53 = vadd.f32 %v513_v42, %v5725_v20  ;;  %v515_v58 = vpop.f32.mrb[23].mxu1 }
 0x134   :  { %v115_v63 = vsub.s32 4, %v5678_v54  ;;  %v516_v2 = vadd.f32 %v515_v58, %v5731_v24 }
 0x135   :  { %2440 = vst [vmem:[#allocation7 + $0x140] sm:$0xff] %v4049_v4  ;;  %v4053_v10 = vpack.c.bf16 %v988_v5, %v987_v1  ;;  %v406_v11 = vpop.f32.mrb[24].mxu0  ;;  %v980_v1 = vmax.f32 %v512_v41, 0.0  ;;  %v119_v5 = vsub.s32 5, %v5678_v54  ;;  %v989_v6 = vmax.f32 %v514_v53, 0.0  ;;  %3777 = vmatmul.mubr.msk.bf16.vlgmr.msra.gmra.mrb[128].mxu1 %vm287_vm0, %v5594_v39 }
 0x136   :  { %v407_v17 = vadd.f32 %v406_v11, %v5699_v60  ;;  %v408_v18 = vpop.f32.mrb[25].mxu0  ;;  %v990_v11 = vmax.f32 %v516_v2, 0.0  ;;  %1785 = vmatprep.mubr.bf16.mxu1 %v5302_v0 }
 0x137   :  { %2444 = vst [vmem:[#allocation7 + $0x160] sm:$0xff] %v4053_v10  ;;  %v409_v22 = vadd.f32 %v408_v18, %v5703_v61  ;;  %v410_v23 = vpop.f32.mrb[26].mxu0  ;;  %v4050_v10 = vpack.c.bf16 %v980_v1, %v979_v51  ;;  %v5831_v21 = vrot.slane %v5687_v56, %v119_v5 }
 0x138   :  { %v997_v26 = vmax.f32 %v407_v17, 0.0  ;;  %v411_v27 = vadd.f32 %v410_v23, %v5699_v60  ;;  %v412_v28 = vpop.f32.mrb[27].mxu0  ;;  %v5826_v17 = vrot.slane %v5687_v56, %v115_v63  ;;  %v4054_v39 = vpack.c.bf16 %v990_v11, %v989_v6 }
 0x139   :  { %v998_v31 = vmax.f32 %v409_v22, 0.0  ;;  %v413_v32 = vadd.f32 %v412_v28, %v5703_v61  ;;  %2441 = vst [vmem:[#allocation7 + $0x148] sm:$0xff] %v4050_v10 }
 0x13a   :  { %v1007_v33 = vmax.f32 %v411_v27, 0.0  ;;  %3770 = vmatmul.mubr.msk.bf16.gmra.mrb[132].mxu0 %vm287_vm0, %v5605_v43  ;;  %2445 = vst [vmem:[#allocation7 + $0x168] sm:$0xff] %v4054_v39 }
 0x13b   :  { %v4057_v36 = vpack.c.bf16 %v998_v31, %v997_v26  ;;  %v1008_v37 = vmax.f32 %v413_v32, 0.0  ;;  %1682 = vmatprep.mubr.bf16.mxu0 %v5302_v0 }
 0x13d   :  { %2448 = vst [vmem:[#allocation7 + $0x180] sm:$0xff] %v4057_v36  ;;  %v4061_v49 = vpack.c.bf16 %v1008_v37, %v1007_v33  ;;  %v416_v50 = vpop.f32.mrb[28].mxu0  ;;  %3778 = vmatmul.mubr.msk.bf16.gmra.mrb[132].mxu1 %vm287_vm0, %v5605_v43  ;;  %v123_v43 = vsub.s32 6, %v5678_v54 }
 0x13e   :  { %v417_v59 = vadd.f32 %v416_v50, %v5699_v60  ;;  %v418_v62 = vpop.f32.mrb[29].mxu0  ;;  %1795 = vmatprep.mubr.bf16.mxu1 %v5302_v0 }
 0x13f   :  { %2452 = vst [vmem:[#allocation7 + $0x1a0] sm:$0xff] %v4061_v49  ;;  %v419_v3 = vadd.f32 %v418_v62, %v5703_v61  ;;  %v420_v4 = vpop.f32.mrb[30].mxu0 }
 0x140   :  { %v1017_v7 = vmax.f32 %v417_v59, 0.0  ;;  %v421_v8 = vadd.f32 %v420_v4, %v5699_v60  ;;  %v422_v9 = vpop.f32.mrb[31].mxu0  ;;  %v519_v60 = vpop.f32.mrb[24].mxu1  ;;  %v127_v4 = vsub.s32 7, %v5678_v54 }
 0x141   :  { %v1018_v14 = vmax.f32 %v419_v3, 0.0  ;;  %v423_v15 = vadd.f32 %v422_v9, %v5703_v61  ;;  %v520_v61 = vadd.f32 %v519_v60, %v5725_v20  ;;  %v521_v22 = vpop.f32.mrb[25].mxu1 }
 0x142   :  { %v1027_v16 = vmax.f32 %v421_v8, 0.0  ;;  %3771 = vmatmul.mubr.msk.bf16.gmra.mrb[136].mxu0 %vm287_vm0, %v5616_v44  ;;  %v522_v23 = vadd.f32 %v521_v22, %v5731_v24  ;;  %v523_v25 = vpop.f32.mrb[26].mxu1  ;;  %v5859_v22 = vrot.slane %v5687_v56, %v123_v43 }
 0x143   :  { %v4065_v18 = vpack.c.bf16 %v1018_v14, %v1017_v7  ;;  %v1028_v19 = vmax.f32 %v423_v15, 0.0  ;;  %1692 = vmatprep.mubr.bf16.mxu0 %v5302_v0  ;;  %v999_v28 = vmax.f32 %v520_v61, 0.0  ;;  %v524_v29 = vadd.f32 %v523_v25, %v5725_v20  ;;  %v525_v30 = vpop.f32.mrb[27].mxu1 }
 0x144   :  { %v1000_v33 = vmax.f32 %v522_v23, 0.0  ;;  %v526_v34 = vadd.f32 %v525_v30, %v5731_v24  ;;  %v529_v59 = vpop.f32.mrb[28].mxu1 }
 0x145   :  { %2456 = vst [vmem:[#allocation7 + $0x1c0] sm:$0xff] %v4065_v18  ;;  %v4069_v26 = vpack.c.bf16 %v1028_v19, %v1027_v16  ;;  %v572_v27 = vpop.f32.mrb[32].mxu0  ;;  %v1009_v37 = vmax.f32 %v524_v29, 0.0  ;;  %v530_v2 = vadd.f32 %v529_v59, %v5725_v20  ;;  %v531_v3 = vpop.f32.mrb[29].mxu1  ;;  %3779 = vmatmul.mubr.msk.bf16.gmra.mrb[136].mxu1 %vm287_vm0, %v5616_v44 }
 0x146   :  { %v573_v31 = vadd.f32 %v572_v27, %v5826_v17  ;;  %v574_v32 = vpop.f32.mrb[33].mxu0  ;;  %v4058_v42 = vpack.c.bf16 %v1000_v33, %v999_v28  ;;  %v1010_v49 = vmax.f32 %v526_v34, 0.0  ;;  %v532_v6 = vadd.f32 %v531_v3, %v5731_v24  ;;  %v533_v7 = vpop.f32.mrb[30].mxu1  ;;  %1805 = vmatprep.mubr.bf16.mxu1 %v5302_v0 }
 0x147   :  { %2460 = vst [vmem:[#allocation7 + $0x1e0] sm:$0xff] %v4069_v26  ;;  %v575_v35 = vadd.f32 %v574_v32, %v5831_v21  ;;  %v576_v36 = vpop.f32.mrb[34].mxu0  ;;  %v1019_v10 = vmax.f32 %v530_v2, 0.0  ;;  %v534_v11 = vadd.f32 %v533_v7, %v5725_v20  ;;  %v535_v14 = vpop.f32.mrb[31].mxu1  ;;  %v5864_v20 = vrot.slane %v5687_v56, %v127_v4 }
 0x148   :  { %v881_v38 = vmax.f32 %v573_v31, 0.0  ;;  %v577_v40 = vadd.f32 %v576_v36, %v5826_v17  ;;  %v578_v41 = vpop.f32.mrb[35].mxu0  ;;  %2449 = vst [vmem:[#allocation7 + $0x188] sm:$0xff] %v4058_v42  ;;  %v4062_v58 = vpack.c.bf16 %v1010_v49, %v1009_v37  ;;  %v1020_v39 = vmax.f32 %v532_v6, 0.0  ;;  %v685_v31 = vpop.f32.mrb[32].mxu1 }
 0x149   :  { %v882_v50 = vmax.f32 %v575_v35, 0.0  ;;  %v579_v51 = vadd.f32 %v578_v41, %v5831_v21  ;;  %v536_v60 = vadd.f32 %v535_v14, %v5731_v24  ;;  %v1029_v61 = vmax.f32 %v534_v11, 0.0  ;;  %v687_v34 = vpop.f32.mrb[33].mxu1 }
 0x14a   :  { %v891_v53 = vmax.f32 %v577_v40, 0.0  ;;  %3772 = vmatmul.mubr.msk.bf16.gmra.mrb[140].mxu0 %vm287_vm0, %v5627_v45  ;;  %2453 = vst [vmem:[#allocation7 + $0x1a8] sm:$0xff] %v4062_v58  ;;  %v4066_v26 = vpack.c.bf16 %v1020_v39, %v1019_v10  ;;  %v686_v33 = vadd.f32 %v685_v31, %v5859_v22  ;;  %v688_v35 = vadd.f32 %v687_v34, %v5864_v20  ;;  %v689_v36 = vpop.f32.mrb[34].mxu1 }
 0x14b   :  { %v4011_v62 = vpack.c.bf16 %v882_v50, %v881_v38  ;;  %v892_v1 = vmax.f32 %v579_v51, 0.0  ;;  %1702 = vmatprep.mubr.bf16.mxu0 %v5302_v0  ;;  %v1030_v27 = vmax.f32 %v536_v60, 0.0  ;;  %v690_v41 = vadd.f32 %v689_v36, %v5859_v22  ;;  %v691_v42 = vpop.f32.mrb[35].mxu1 }
 0x14c   :  { %2457 = vst [vmem:[#allocation7 + $0x1c8] sm:$0xff] %v4066_v26  ;;  %v883_v40 = vmax.f32 %v686_v33, 0.0  ;;  %v884_v51 = vmax.f32 %v688_v35, 0.0 }
 0x14d   :  { %2402 = vst [vmem:[#allocation7 + $0x10] sm:$0xff] %v4011_v62  ;;  %v4015_v8 = vpack.c.bf16 %v892_v1, %v891_v53  ;;  %v582_v9 = vpop.f32.mrb[36].mxu0  ;;  %v4070_v56 = vpack.c.bf16 %v1030_v27, %v1029_v61  ;;  %v692_v53 = vadd.f32 %v691_v42, %v5864_v20  ;;  %v893_v62 = vmax.f32 %v690_v41, 0.0  ;;  %3780 = vmatmul.mubr.msk.bf16.gmra.mrb[140].mxu1 %vm287_vm0, %v5627_v45 }
 0x14e   :  { %v583_v15 = vadd.f32 %v582_v9, %v5826_v17  ;;  %v584_v16 = vpop.f32.mrb[37].mxu0  ;;  %v4012_v6 = vpack.c.bf16 %v884_v51, %v883_v40  ;;  %1815 = vmatprep.mubr.bf16.mxu1 %v5302_v0 }
 0x14f   :  { %2406 = vst [vmem:[#allocation7 + $0x30] sm:$0xff] %v4015_v8  ;;  %v585_v18 = vadd.f32 %v584_v16, %v5831_v21  ;;  %v586_v19 = vpop.f32.mrb[38].mxu0  ;;  %2461 = vst [vmem:[#allocation7 + $0x1e8] sm:$0xff] %v4070_v56  ;;  %v894_v7 = vmax.f32 %v692_v53, 0.0 }
 0x150   :  { %v901_v23 = vmax.f32 %v583_v15, 0.0  ;;  %v587_v24 = vadd.f32 %v586_v19, %v5826_v17  ;;  %v588_v25 = vpop.f32.mrb[39].mxu0  ;;  %2403 = vst [vmem:[#allocation7 + $0x18] sm:$0xff] %v4012_v6  ;;  %v695_v14 = vpop.f32.mrb[36].mxu1 }
 0x151   :  { %v902_v28 = vmax.f32 %v585_v18, 0.0  ;;  %v589_v29 = vadd.f32 %v588_v25, %v5831_v21  ;;  %v4016_v11 = vpack.c.bf16 %v894_v7, %v893_v62  ;;  %v696_v16 = vadd.f32 %v695_v14, %v5859_v22  ;;  %v697_v39 = vpop.f32.mrb[37].mxu1 }
 0x152   :  { %v911_v30 = vmax.f32 %v587_v24, 0.0  ;;  %3773 = vmatmul.mubr.msk.bf16.gmra.mrb[144].mxu0 %vm287_vm0, %v5638_v46  ;;  %v698_v60 = vadd.f32 %v697_v39, %v5864_v20  ;;  %v699_v18 = vpop.f32.mrb[38].mxu1 }
 0x153   :  { %v4019_v32 = vpack.c.bf16 %v902_v28, %v901_v23  ;;  %v912_v44 = vmax.f32 %v589_v29, 0.0  ;;  %1712 = vmatprep.mubr.bf16.mxu0 %v5302_v0  ;;  %2407 = vst [vmem:[#allocation7 + $0x38] sm:$0xff] %v4016_v11  ;;  %v903_v23 = vmax.f32 %v696_v16, 0.0  ;;  %v700_v24 = vadd.f32 %v699_v18, %v5859_v22  ;;  %v701_v25 = vpop.f32.mrb[39].mxu1 }
 0x154   :  { %v904_v28 = vmax.f32 %v698_v60, 0.0  ;;  %v702_v29 = vadd.f32 %v701_v25, %v5864_v20 }
 0x155   :  { %2410 = vst [vmem:[#allocation7 + $0x50] sm:$0xff] %v4019_v32  ;;  %v4023_v37 = vpack.c.bf16 %v912_v44, %v911_v30  ;;  %v592_v38 = vpop.f32.mrb[40].mxu0  ;;  %v913_v31 = vmax.f32 %v700_v24, 0.0  ;;  %3781 = vmatmul.mubr.msk.bf16.gmra.mrb[144].mxu1 %vm287_vm0, %v5638_v46 }
 0x156   :  { %v593_v49 = vadd.f32 %v592_v38, %v5826_v17  ;;  %v594_v50 = vpop.f32.mrb[41].mxu0  ;;  %v4020_v34 = vpack.c.bf16 %v904_v28, %v903_v23  ;;  %v914_v35 = vmax.f32 %v702_v29, 0.0  ;;  %1825 = vmatprep.mubr.bf16.mxu1 %v5302_v0 }
 0x157   :  { %2414 = vst [vmem:[#allocation7 + $0x70] sm:$0xff] %v4023_v37  ;;  %v595_v58 = vadd.f32 %v594_v50, %v5831_v21  ;;  %v596_v59 = vpop.f32.mrb[42].mxu0 }
 0x158   :  { %v921_v1 = vmax.f32 %v593_v49, 0.0  ;;  %v597_v2 = vadd.f32 %v596_v59, %v5826_v17  ;;  %v598_v3 = vpop.f32.mrb[43].mxu0  ;;  %2411 = vst [vmem:[#allocation7 + $0x58] sm:$0xff] %v4020_v34  ;;  %v4024_v40 = vpack.c.bf16 %v914_v35, %v913_v31  ;;  %v705_v41 = vpop.f32.mrb[40].mxu1 }
 0x159   :  { %v922_v8 = vmax.f32 %v595_v58, 0.0  ;;  %v599_v9 = vadd.f32 %v598_v3, %v5831_v21  ;;  %v706_v49 = vadd.f32 %v705_v41, %v5859_v22  ;;  %v707_v50 = vpop.f32.mrb[41].mxu1 }
 0x15a   :  { %v931_v10 = vmax.f32 %v597_v2, 0.0  ;;  %3774 = vmatmul.mubr.msk.bf16.gmra.mrb[148].mxu0 %vm287_vm0, %v5649_v47  ;;  %2415 = vst [vmem:[#allocation7 + $0x78] sm:$0xff] %v4024_v40  ;;  %v708_v51 = vadd.f32 %v707_v50, %v5864_v20  ;;  %v709_v53 = vpop.f32.mrb[42].mxu1 }
 0x15b   :  { %v4027_v15 = vpack.c.bf16 %v922_v8, %v921_v1  ;;  %v932_v45 = vmax.f32 %v599_v9, 0.0  ;;  %1722 = vmatprep.mubr.bf16.mxu0 %v5302_v0  ;;  %v923_v62 = vmax.f32 %v706_v49, 0.0  ;;  %v710_v1 = vadd.f32 %v709_v53, %v5859_v22  ;;  %v711_v2 = vpop.f32.mrb[43].mxu1 }
 0x15c   :  { %v924_v7 = vmax.f32 %v708_v51, 0.0  ;;  %v712_v8 = vadd.f32 %v711_v2, %v5864_v20 }
 0x15d   :  { %2418 = vst [vmem:[#allocation7 + $0x90] sm:$0xff] %v4027_v15  ;;  %v4031_v19 = vpack.c.bf16 %v932_v45, %v931_v10  ;;  %v602_v61 = vpop.f32.mrb[44].mxu0  ;;  %v933_v11 = vmax.f32 %v710_v1, 0.0  ;;  %3782 = vmatmul.mubr.msk.bf16.gmra.mrb[148].mxu1 %vm287_vm0, %v5649_v47 }
 0x15e   :  { %v603_v26 = vadd.f32 %v602_v61, %v5826_v17  ;;  %v604_v27 = vpop.f32.mrb[45].mxu0  ;;  %v4028_v16 = vpack.c.bf16 %v924_v7, %v923_v62  ;;  %v934_v39 = vmax.f32 %v712_v8, 0.0  ;;  %1835 = vmatprep.mubr.bf16.mxu1 %v5302_v0 }
 0x15f   :  { %2422 = vst [vmem:[#allocation7 + $0xb0] sm:$0xff] %v4031_v19  ;;  %v605_v30 = vadd.f32 %v604_v27, %v5831_v21  ;;  %v606_v56 = vpop.f32.mrb[46].mxu0 }
 0x160   :  { %v941_v32 = vmax.f32 %v603_v26, 0.0  ;;  %v607_v44 = vadd.f32 %v606_v56, %v5826_v17  ;;  %v608_v33 = vpop.f32.mrb[47].mxu0  ;;  %2419 = vst [vmem:[#allocation7 + $0x98] sm:$0xff] %v4028_v16  ;;  %v4032_v61 = vpack.c.bf16 %v934_v39, %v933_v11  ;;  %v715_v23 = vpop.f32.mrb[44].mxu1 }
 0x161   :  { %v942_v36 = vmax.f32 %v605_v30, 0.0  ;;  %v609_v37 = vadd.f32 %v608_v33, %v5831_v21  ;;  %v716_v25 = vadd.f32 %v715_v23, %v5859_v22  ;;  %v717_v26 = vpop.f32.mrb[45].mxu1 }
 0x162   :  { %v951_v38 = vmax.f32 %v607_v44, 0.0  ;;  %3775 = vmatmul.mubr.msk.bf16.gmra.mrb[152].mxu0 %vm287_vm0, %v5660_v48  ;;  %2423 = vst [vmem:[#allocation7 + $0xb8] sm:$0xff] %v4032_v61  ;;  %v718_v27 = vadd.f32 %v717_v26, %v5864_v20  ;;  %v719_v28 = vpop.f32.mrb[46].mxu1 }
 0x163   :  { %v4035_v42 = vpack.c.bf16 %v942_v36, %v941_v32  ;;  %v952_v46 = vmax.f32 %v609_v37, 0.0  ;;  %1732 = vmatprep.mubr.bf16.mxu0 %v5302_v0  ;;  %v943_v56 = vmax.f32 %v716_v25, 0.0  ;;  %v720_v31 = vadd.f32 %v719_v28, %v5859_v22  ;;  %v721_v32 = vpop.f32.mrb[47].mxu1 }
 0x164   :  { %v944_v33 = vmax.f32 %v718_v27, 0.0  ;;  %v722_v34 = vadd.f32 %v721_v32, %v5864_v20 }
 0x165   :  { %2426 = vst [vmem:[#allocation7 + $0xd0] sm:$0xff] %v4035_v42  ;;  %v4039_v58 = vpack.c.bf16 %v952_v46, %v951_v38  ;;  %v612_v59 = vpop.f32.mrb[48].mxu0  ;;  %v953_v37 = vmax.f32 %v720_v31, 0.0  ;;  %3783 = vmatmul.mubr.msk.bf16.gmra.mrb[152].mxu1 %vm287_vm0, %v5660_v48 }
 0x166   :  { %v613_v3 = vadd.f32 %v612_v59, %v5826_v17  ;;  %v614_v6 = vpop.f32.mrb[49].mxu0  ;;  %v4036_v42 = vpack.c.bf16 %v944_v33, %v943_v56  ;;  %v954_v46 = vmax.f32 %v722_v34, 0.0  ;;  %1845 = vmatprep.mubr.bf16.mxu1 %v5302_v0 }
 0x167   :  { %2430 = vst [vmem:[#allocation7 + $0xf0] sm:$0xff] %v4039_v58  ;;  %v615_v9 = vadd.f32 %v614_v6, %v5831_v21  ;;  %v616_v10 = vpop.f32.mrb[50].mxu0 }
 0x168   :  { %v961_v14 = vmax.f32 %v613_v3, 0.0  ;;  %v617_v15 = vadd.f32 %v616_v10, %v5826_v17  ;;  %v618_v45 = vpop.f32.mrb[51].mxu0  ;;  %2427 = vst [vmem:[#allocation7 + $0xd8] sm:$0xff] %v4036_v42  ;;  %v4040_v53 = vpack.c.bf16 %v954_v46, %v953_v37  ;;  %v725_v58 = vpop.f32.mrb[48].mxu1 }
 0x169   :  { %v962_v60 = vmax.f32 %v615_v9, 0.0  ;;  %v619_v18 = vadd.f32 %v618_v45, %v5831_v21  ;;  %v726_v1 = vadd.f32 %v725_v58, %v5859_v22  ;;  %v727_v48 = vpop.f32.mrb[49].mxu1 }
 0x16a   :  { %v971_v19 = vmax.f32 %v617_v15, 0.0  ;;  %3776 = vmatmul.mubr.msk.bf16.gmra.mrb[156].mxu0 %vm287_vm0, %v5671_v52  ;;  %2431 = vst [vmem:[#allocation7 + $0xf8] sm:$0xff] %v4040_v53  ;;  %v728_v2 = vadd.f32 %v727_v48, %v5864_v20  ;;  %v729_v3 = vpop.f32.mrb[50].mxu1 }
 0x16b   :  { %v4043_v24 = vpack.c.bf16 %v962_v60, %v961_v14  ;;  %v972_v47 = vmax.f32 %v619_v18, 0.0  ;;  %v963_v0 = vmax.f32 %v726_v1, 0.0  ;;  %v730_v8 = vadd.f32 %v729_v3, %v5859_v22  ;;  %v731_v9 = vpop.f32.mrb[51].mxu1  ;;  %v5155_v60 = vld [vmem:[%s6265_s1 + $0x38] sm:$0xff]  }
 0x16c   :  { %v964_v14 = vmax.f32 %v728_v2, 0.0  ;;  %v732_v15 = vadd.f32 %v731_v9, %v5864_v20 }
 0x16d   :  { %2434 = vst [vmem:[#allocation7 + $0x110] sm:$0xff] %v4043_v24  ;;  %v4047_v29 = vpack.c.bf16 %v972_v47, %v971_v19  ;;  %v622_v30 = vpop.f32.mrb[52].mxu0  ;;  %v973_v39 = vmax.f32 %v730_v8, 0.0  ;;  %3784 = vmatmul.mubr.msk.bf16.gmra.mrb[156].mxu1 %vm287_vm0, %v5155_v60 }
 0x16e   :  { %v623_v52 = vadd.f32 %v622_v30, %v5826_v17  ;;  %v624_v44 = vpop.f32.mrb[53].mxu0  ;;  %v4044_v23 = vpack.c.bf16 %v964_v14, %v963_v0  ;;  %v974_v24 = vmax.f32 %v732_v15, 0.0 }
 0x16f   :  { %2438 = vst [vmem:[#allocation7 + $0x130] sm:$0xff] %v4047_v29  ;;  %v625_v35 = vadd.f32 %v624_v44, %v5831_v21  ;;  %v626_v36 = vpop.f32.mrb[54].mxu0 }
 0x170   :  { %v981_v38 = vmax.f32 %v623_v52, 0.0  ;;  %v627_v40 = vadd.f32 %v626_v36, %v5826_v17  ;;  %v628_v41 = vpop.f32.mrb[55].mxu0  ;;  %2435 = vst [vmem:[#allocation7 + $0x118] sm:$0xff] %v4044_v23  ;;  %v4048_v27 = vpack.c.bf16 %v974_v24, %v973_v39  ;;  %v735_v28 = vpop.f32.mrb[52].mxu1 }
 0x171   :  { %v982_v49 = vmax.f32 %v625_v35, 0.0  ;;  %v629_v50 = vadd.f32 %v628_v41, %v5831_v21  ;;  %v736_v56 = vadd.f32 %v735_v28, %v5859_v22  ;;  %v737_v31 = vpop.f32.mrb[53].mxu1 }
 0x172   :  { %v991_v51 = vmax.f32 %v627_v40, 0.0  ;;  %2439 = vst [vmem:[#allocation7 + $0x138] sm:$0xff] %v4048_v27  ;;  %v738_v32 = vadd.f32 %v737_v31, %v5864_v20  ;;  %v739_v52 = vpop.f32.mrb[54].mxu1 }
 0x173   :  { %v4051_v59 = vpack.c.bf16 %v982_v49, %v981_v38  ;;  %v992_v62 = vmax.f32 %v629_v50, 0.0  ;;  %v983_v34 = vmax.f32 %v736_v56, 0.0  ;;  %v740_v35 = vadd.f32 %v739_v52, %v5859_v22  ;;  %v741_v36 = vpop.f32.mrb[55].mxu1  ;;  %v94_v49 = vld [vmem:[%s6267_s3 + $0x8] sm:$0x3]  ;;  %s5303_s3 = smov [#allocation8]  }
 0x174   :  { %v984_v40 = vmax.f32 %v738_v32, 0.0  ;;  %v742_v41 = vadd.f32 %v741_v36, %v5864_v20  ;;  %v5950_v3 = vrot.slane %v94_v49, %v5682_v55  ;;  %v5953_v9 = vrot.slane %v94_v49, %v5690_v57  ;;  %s3601_s18 = sshll.u32 %s5303_s3, 4  ;;  %s3602_s18 = int_to_ptr.vmem [resolvable:$true] %s3601_s18 }
 0x175   :  { %2442 = vst [vmem:[#allocation7 + $0x150] sm:$0xff] %v4051_v59  ;;  %v4055_v6 = vpack.c.bf16 %v992_v62, %v991_v51  ;;  %v632_v7 = vpop.f32.mrb[56].mxu0  ;;  %v993_v50 = vmax.f32 %v740_v35, 0.0  ;;  %s5200_s20 = scalar_lea.vmem %s3602_s18, 2048  ;;  %p5205_p3 = scmp.lt.s32.totalorder %s3602_s18, %s3602_s18 }
 0x176   :  { %v633_v10 = vadd.f32 %v632_v7, %v5826_v17  ;;  %v634_v11 = vpop.f32.mrb[57].mxu0  ;;  %v4052_v59 = vpack.c.bf16 %v984_v40, %v983_v34  ;;  %v994_v62 = vmax.f32 %v742_v41, 0.0  ;;  %p5201_p2 = scmp.ne.s32.totalorder %s3602_s18, %s5200_s20  ;;  %p5206_p4 = scmp.lt.s32.totalorder %s5200_s20, %s5200_s20 }
 0x177   :  { %2446 = vst [vmem:[#allocation7 + $0x170] sm:$0xff] %v4055_v6  ;;  %v635_v45 = vadd.f32 %v634_v11, %v5831_v21  ;;  %v636_v16 = vpop.f32.mrb[58].mxu0 }
 0x178   :  { %v1001_v18 = vmax.f32 %v633_v10, 0.0  ;;  %v637_v19 = vadd.f32 %v636_v16, %v5826_v17  ;;  %v638_v61 = vpop.f32.mrb[59].mxu0  ;;  %2443 = vst [vmem:[#allocation7 + $0x158] sm:$0xff] %v4052_v59  ;;  %v4056_v6 = vpack.c.bf16 %v994_v62, %v993_v50  ;;  %v745_v7 = vpop.f32.mrb[56].mxu1  ;;  %p5207_p5 = por %p5206_p4, %p5205_p3 }
 0x179   :  { %v1002_v47 = vmax.f32 %v635_v45, 0.0  ;;  %v639_v25 = vadd.f32 %v638_v61, %v5831_v21  ;;  %v747_v10 = vpop.f32.mrb[57].mxu1 }
 0x17a   :  { %v1011_v26 = vmax.f32 %v637_v19, 0.0  ;;  %2447 = vst [vmem:[#allocation7 + $0x178] sm:$0xff] %v4056_v6  ;;  %v748_v11 = vadd.f32 %v747_v10, %v5864_v20  ;;  %v749_v14 = vpop.f32.mrb[58].mxu1  ;;  %p5208_p6 = pnand %p5207_p5, %p5201_p2 }
 0x17b   :  { %v4059_v29 = vpack.c.bf16 %v1002_v47, %v1001_v18  ;;  %v1012_v30 = vmax.f32 %v639_v25, 0.0  ;;  %v750_v16 = vadd.f32 %v749_v14, %v5859_v22  ;;  %v751_v39 = vpop.f32.mrb[59].mxu1 }
 0x17c   :  { %v1004_v19 = vmax.f32 %v748_v11, 0.0  ;;  %v752_v61 = vadd.f32 %v751_v39, %v5864_v20 }
 0x17d   :  { %2450 = vst [vmem:[#allocation7 + $0x190] sm:$0xff] %v4059_v29  ;;  %v4063_v44 = vpack.c.bf16 %v1012_v30, %v1011_v26  ;;  %v642_v33 = vpop.f32.mrb[60].mxu0  ;;  %v1013_v47 = vmax.f32 %v750_v16, 0.0 }
 0x17e   :  { %v643_v37 = vadd.f32 %v642_v33, %v5826_v17  ;;  %v644_v38 = vpop.f32.mrb[61].mxu0  ;;  %v1014_v29 = vmax.f32 %v752_v61, 0.0 }
 0x17f   :  { %2454 = vst [vmem:[#allocation7 + $0x1b0] sm:$0xff] %v4063_v44  ;;  %v645_v42 = vadd.f32 %v644_v38, %v5831_v21  ;;  %v646_v46 = vpop.f32.mrb[62].mxu0  ;;  %v5965_v38 = vld [vmem:[#allocation5] sm:$0xff] }
 0x180   :  { %v1021_v51 = vmax.f32 %v643_v37, 0.0  ;;  %v647_v53 = vadd.f32 %v646_v46, %v5826_v17  ;;  %v648_v58 = vpop.f32.mrb[63].mxu0  ;;  %v746_v17 = vadd.f32 %v745_v7, %v5859_v22  ;;  %v4064_v32 = vpack.c.bf16 %v1014_v29, %v1013_v47  ;;  %v755_v52 = vpop.f32.mrb[60].mxu1 }
 0x181   :  { %v1022_v1 = vmax.f32 %v645_v42, 0.0  ;;  %v649_v48 = vadd.f32 %v648_v58, %v5831_v21  ;;  %v756_v34 = vadd.f32 %v755_v52, %v5859_v22  ;;  %v757_v35 = vpop.f32.mrb[61].mxu1 }
 0x182   :  { %v1031_v2 = vmax.f32 %v647_v53, 0.0  ;;  %v1003_v45 = vmax.f32 %v746_v17, 0.0  ;;  %2455 = vst [vmem:[#allocation7 + $0x1b8] sm:$0xff] %v4064_v32  ;;  %v758_v36 = vadd.f32 %v757_v35, %v5864_v20  ;;  %v759_v37 = vpop.f32.mrb[62].mxu1 }
 0x183   :  { %v4067_v0 = vpack.c.bf16 %v1022_v1, %v1021_v51  ;;  %v1032_v8 = vmax.f32 %v649_v48, 0.0  ;;  %v1023_v42 = vmax.f32 %v756_v34, 0.0  ;;  %v760_v46 = vadd.f32 %v759_v37, %v5859_v22  ;;  %v761_v49 = vpop.f32.mrb[63].mxu1 }
 0x184   :  { %v4060_v28 = vpack.c.bf16 %v1004_v19, %v1003_v45  ;;  %v1024_v53 = vmax.f32 %v758_v36, 0.0  ;;  %v762_v58 = vadd.f32 %v761_v49, %v5864_v20  ;;  %v5973_v48 = vrot.slane %v5965_v38, %v5682_v55 }
 0x185   :  { %2458 = vst [vmem:[#allocation7 + $0x1d0] sm:$0xff] %v4067_v0  ;;  %v4071_v21 = vpack.c.bf16 %v1032_v8, %v1031_v2  ;;  %v798_v15 = vpop.f32.mrb[64].mxu0  ;;  %v1033_v1 = vmax.f32 %v760_v46, 0.0  ;;  %v5977_v2 = vrot.slane %v5965_v38, %v5690_v57 }
 0x186   :  { %v799_v60 = vadd.f32 %v798_v15, %v5950_v3  ;;  %v800_v18 = vpop.f32.mrb[65].mxu0  ;;  %2451 = vst [vmem:[#allocation7 + $0x198] sm:$0xff] %v4060_v28  ;;  %v4068_v0 = vpack.c.bf16 %v1024_v53, %v1023_v42  ;;  %v1034_v8 = vmax.f32 %v762_v58, 0.0 }
 0x187   :  { %2462 = vst [vmem:[#allocation7 + $0x1f0] sm:$0xff] %v4071_v21  ;;  %v801_v23 = vadd.f32 %v800_v18, %v5953_v9  ;;  %v802_v24 = vpop.f32.mrb[66].mxu0 }
 0x188   :  { %v885_v25 = vmax.f32 %v799_v60, 0.0  ;;  %v803_v26 = vadd.f32 %v802_v24, %v5950_v3  ;;  %v804_v27 = vpop.f32.mrb[67].mxu0  ;;  %2459 = vst [vmem:[#allocation7 + $0x1d8] sm:$0xff] %v4068_v0  ;;  %v4072_v11 = vpack.c.bf16 %v1034_v8, %v1033_v1  ;;  %v1325_v14 = vpop.f32.mrb[64].mxu1 }
 0x189   :  { %v886_v30 = vmax.f32 %v801_v23, 0.0  ;;  %v805_v56 = vadd.f32 %v804_v27, %v5953_v9  ;;  %v1326_v45 = vadd.f32 %v1325_v14, %v5973_v48  ;;  %v1327_v16 = vpop.f32.mrb[65].mxu1 }
 0x18a   :  { %v895_v31 = vmax.f32 %v803_v26, 0.0  ;;  %2463 = vst [vmem:[#allocation7 + $0x1f8] sm:$0xff] %v4072_v11  ;;  %v1328_v39 = vadd.f32 %v1327_v16, %v5977_v2  ;;  %v1329_v60 = vpop.f32.mrb[66].mxu1 }
 0x18b   :  { %v4073_v44 = vpack.c.bf16 %v886_v30, %v885_v25  ;;  %v896_v33 = vmax.f32 %v805_v56, 0.0  ;;  %v1856_v61 = vmax.f32 %v1326_v45, 0.0  ;;  %v1330_v23 = vadd.f32 %v1329_v60, %v5973_v48  ;;  %v1331_v24 = vpop.f32.mrb[67].mxu1 }
 0x18c   :  { %v1857_v26 = vmax.f32 %v1328_v39, 0.0  ;;  %v1332_v27 = vadd.f32 %v1331_v24, %v5977_v2 }
 0x18d   :  { %2560 = vst [vmem:[#allocation8] sm:$0xff] %v4073_v44  ;;  %v4074_v40 = vpack.c.bf16 %v896_v33, %v895_v31  ;;  %v808_v41 = vpop.f32.mrb[68].mxu0  ;;  %v1866_v30 = vmax.f32 %v1330_v23, 0.0 }
 0x18e   :  { %v809_v50 = vadd.f32 %v808_v41, %v5950_v3  ;;  %v810_v51 = vpop.f32.mrb[69].mxu0  ;;  %v1867_v52 = vmax.f32 %v1332_v27, 0.0  ;;  %v4631_v44 = vpack.i.bf16 %v1857_v26, %v1856_v61 }
 0x18f   :  { %2561 = vst [vmem:[#allocation8 + $0x8] sm:$0xff] %v4074_v40  ;;  %v811_v59 = vadd.f32 %v810_v51, %v5953_v9  ;;  %v812_v62 = vpop.f32.mrb[70].mxu0 }
 0x190   :  { %v905_v22 = vmax.f32 %v809_v50, 0.0  ;;  %v813_v6 = vadd.f32 %v812_v62, %v5950_v3  ;;  %v814_v7 = vpop.f32.mrb[71].mxu0  ;;  %v1335_v36 = vpop.f32.mrb[68].mxu1  ;;  %4632 = vxpose.xlu0.b32.start [1/16] %v4631_v44, 128  ;;  %v4633_v37 = vpack.i.bf16 %v1867_v52, %v1866_v30 }
 0x191   :  { %v906_v20 = vmax.f32 %v811_v59, 0.0  ;;  %v815_v17 = vadd.f32 %v814_v7, %v5953_v9  ;;  %v1336_v42 = vadd.f32 %v1335_v36, %v5973_v48  ;;  %v1337_v46 = vpop.f32.mrb[69].mxu1 }
 0x192   :  { %v915_v10 = vmax.f32 %v813_v6, 0.0  ;;  %v1338_v49 = vadd.f32 %v1337_v46, %v5977_v2  ;;  %v1339_v50 = vpop.f32.mrb[70].mxu1 }
 0x193   :  { %v4075_v21 = vpack.c.bf16 %v906_v20, %v905_v22  ;;  %v916_v15 = vmax.f32 %v815_v17, 0.0  ;;  %v1876_v58 = vmax.f32 %v1336_v42, 0.0  ;;  %v1340_v59 = vadd.f32 %v1339_v50, %v5973_v48  ;;  %v1341_v62 = vpop.f32.mrb[71].mxu1 }
 0x194   :  { %v1877_v6 = vmax.f32 %v1338_v49, 0.0  ;;  %4634 = vxpose.xlu0.b32.cont [2/16] %v4633_v37, 128  ;;  %v1342_v7 = vadd.f32 %v1341_v62, %v5977_v2 }
 0x195   :  { %2562 = vst [vmem:[#allocation8 + $0x10] sm:$0xff] %v4075_v21  ;;  %v4076_v18 = vpack.c.bf16 %v916_v15, %v915_v10  ;;  %v818_v19 = vpop.f32.mrb[72].mxu0  ;;  %v1886_v20 = vmax.f32 %v1340_v59, 0.0 }
 0x196   :  { %v819_v47 = vadd.f32 %v818_v19, %v5950_v3  ;;  %v820_v25 = vpop.f32.mrb[73].mxu0  ;;  %v1887_v14 = vmax.f32 %v1342_v7, 0.0  ;;  %v4635_v21 = vpack.i.bf16 %v1877_v6, %v1876_v58 }
 0x197   :  { %2563 = vst [vmem:[#allocation8 + $0x18] sm:$0xff] %v4076_v18  ;;  %v821_v28 = vadd.f32 %v820_v25, %v5953_v9  ;;  %v822_v29 = vpop.f32.mrb[74].mxu0 }
 0x198   :  { %v925_v56 = vmax.f32 %v819_v47, 0.0  ;;  %v823_v31 = vadd.f32 %v822_v29, %v5950_v3  ;;  %v824_v32 = vpop.f32.mrb[75].mxu0  ;;  %v1345_v39 = vpop.f32.mrb[72].mxu1  ;;  %4636 = vxpose.xlu0.b32.cont [3/16] %v4635_v21, 128  ;;  %v4637_v60 = vpack.i.bf16 %v1887_v14, %v1886_v20 }
 0x199   :  { %v926_v33 = vmax.f32 %v821_v28, 0.0  ;;  %v825_v34 = vadd.f32 %v824_v32, %v5953_v9  ;;  %v1346_v61 = vadd.f32 %v1345_v39, %v5973_v48  ;;  %v1347_v23 = vpop.f32.mrb[73].mxu1 }
 0x19a   :  { %v935_v35 = vmax.f32 %v823_v31, 0.0  ;;  %v1348_v24 = vadd.f32 %v1347_v23, %v5977_v2  ;;  %v1349_v47 = vpop.f32.mrb[74].mxu1 }
 0x19b   :  { %v4077_v40 = vpack.c.bf16 %v926_v33, %v925_v56  ;;  %v936_v41 = vmax.f32 %v825_v34, 0.0  ;;  %v1896_v27 = vmax.f32 %v1346_v61, 0.0  ;;  %v1350_v28 = vadd.f32 %v1349_v47, %v5973_v48  ;;  %v1351_v29 = vpop.f32.mrb[75].mxu1 }
 0x19c   :  { %v1897_v31 = vmax.f32 %v1348_v24, 0.0  ;;  %4638 = vxpose.xlu0.b32.cont [4/16] %v4637_v60, 128  ;;  %v1352_v32 = vadd.f32 %v1351_v29, %v5977_v2 }
 0x19d   :  { %2564 = vst [vmem:[#allocation8 + $0x20] sm:$0xff] %v4077_v40  ;;  %v4078_v51 = vpack.c.bf16 %v936_v41, %v935_v35  ;;  %v828_v53 = vpop.f32.mrb[76].mxu0  ;;  %v1906_v33 = vmax.f32 %v1350_v28, 0.0 }
 0x19e   :  { %v829_v1 = vadd.f32 %v828_v53, %v5950_v3  ;;  %v830_v22 = vpop.f32.mrb[77].mxu0  ;;  %v1907_v37 = vmax.f32 %v1352_v32, 0.0  ;;  %v4639_v40 = vpack.i.bf16 %v1897_v31, %v1896_v27 }
 0x19f   :  { %2565 = vst [vmem:[#allocation8 + $0x28] sm:$0xff] %v4078_v51  ;;  %v831_v0 = vadd.f32 %v830_v22, %v5953_v9  ;;  %v832_v8 = vpop.f32.mrb[78].mxu0 }
 0x1a0   :  { %v945_v17 = vmax.f32 %v829_v1, 0.0  ;;  %v833_v10 = vadd.f32 %v832_v8, %v5950_v3  ;;  %v834_v11 = vpop.f32.mrb[79].mxu0  ;;  %v1355_v49 = vpop.f32.mrb[76].mxu1  ;;  %4640 = vxpose.xlu0.b32.cont [5/16] %v4639_v40, 128  ;;  %v4641_v50 = vpack.i.bf16 %v1907_v37, %v1906_v33 }
 0x1a1   :  { %v946_v15 = vmax.f32 %v831_v0, 0.0  ;;  %v835_v45 = vadd.f32 %v834_v11, %v5953_v9  ;;  %v1356_v58 = vadd.f32 %v1355_v49, %v5973_v48  ;;  %v1357_v59 = vpop.f32.mrb[77].mxu1 }
 0x1a2   :  { %v955_v16 = vmax.f32 %v833_v10, 0.0  ;;  %v1358_v62 = vadd.f32 %v1357_v59, %v5977_v2  ;;  %v1359_v1 = vpop.f32.mrb[78].mxu1 }
 0x1a3   :  { %v4079_v18 = vpack.c.bf16 %v946_v15, %v945_v17  ;;  %v956_v19 = vmax.f32 %v835_v45, 0.0  ;;  %v1916_v7 = vmax.f32 %v1356_v58, 0.0  ;;  %v1360_v0 = vadd.f32 %v1359_v1, %v5973_v48  ;;  %v1361_v8 = vpop.f32.mrb[79].mxu1 }
 0x1a4   :  { %v1917_v10 = vmax.f32 %v1358_v62, 0.0  ;;  %4642 = vxpose.xlu0.b32.cont [6/16] %v4641_v50, 128  ;;  %v1362_v11 = vadd.f32 %v1361_v8, %v5977_v2 }
 0x1a5   :  { %2566 = vst [vmem:[#allocation8 + $0x30] sm:$0xff] %v4079_v18  ;;  %v4080_v25 = vpack.c.bf16 %v956_v19, %v955_v16  ;;  %v838_v26 = vpop.f32.mrb[80].mxu0  ;;  %v1926_v15 = vmax.f32 %v1360_v0, 0.0 }
 0x1a6   :  { %v839_v30 = vadd.f32 %v838_v26, %v5950_v3  ;;  %v840_v56 = vpop.f32.mrb[81].mxu0  ;;  %v1927_v60 = vmax.f32 %v1362_v11, 0.0  ;;  %v4643_v18 = vpack.i.bf16 %v1917_v10, %v1916_v7 }
 0x1a7   :  { %2567 = vst [vmem:[#allocation8 + $0x38] sm:$0xff] %v4080_v25  ;;  %v841_v52 = vadd.f32 %v840_v56, %v5953_v9  ;;  %v842_v44 = vpop.f32.mrb[82].mxu0 }
 0x1a8   :  { %v965_v34 = vmax.f32 %v839_v30, 0.0  ;;  %v843_v35 = vadd.f32 %v842_v44, %v5950_v3  ;;  %v844_v36 = vpop.f32.mrb[83].mxu0  ;;  %v1365_v24 = vpop.f32.mrb[80].mxu1  ;;  %4644 = vxpose.xlu0.b32.cont [7/16] %v4643_v18, 128  ;;  %v4645_v47 = vpack.i.bf16 %v1927_v60, %v1926_v15 }
 0x1a9   :  { %v966_v41 = vmax.f32 %v841_v52, 0.0  ;;  %v845_v42 = vadd.f32 %v844_v36, %v5953_v9  ;;  %v1366_v27 = vadd.f32 %v1365_v24, %v5973_v48  ;;  %v1367_v28 = vpop.f32.mrb[81].mxu1 }
 0x1aa   :  { %v975_v46 = vmax.f32 %v843_v35, 0.0  ;;  %v1368_v29 = vadd.f32 %v1367_v28, %v5977_v2  ;;  %v1369_v30 = vpop.f32.mrb[82].mxu1 }
 0x1ab   :  { %v4081_v51 = vpack.c.bf16 %v966_v41, %v965_v34  ;;  %v976_v53 = vmax.f32 %v845_v42, 0.0  ;;  %v1936_v32 = vmax.f32 %v1366_v27, 0.0  ;;  %v1370_v52 = vadd.f32 %v1369_v30, %v5973_v48  ;;  %v1371_v44 = vpop.f32.mrb[83].mxu1 }
 0x1ac   :  { %v1937_v35 = vmax.f32 %v1368_v29, 0.0  ;;  %4646 = vxpose.xlu0.b32.cont [8/16] %v4645_v47, 128  ;;  %v1372_v36 = vadd.f32 %v1371_v44, %v5977_v2  ;;  %v6032_v29 = vrot.slane %v5965_v38, %v107_v12 }
 0x1ad   :  { %2568 = vst [vmem:[#allocation8 + $0x40] sm:$0xff] %v4081_v51  ;;  %v4082_v22 = vpack.c.bf16 %v976_v53, %v975_v46  ;;  %v848_v6 = vpop.f32.mrb[84].mxu0  ;;  %v1946_v41 = vmax.f32 %v1370_v52, 0.0 }
 0x1ae   :  { %v849_v20 = vadd.f32 %v848_v6, %v5950_v3  ;;  %v850_v17 = vpop.f32.mrb[85].mxu0  ;;  %v1947_v50 = vmax.f32 %v1372_v36, 0.0  ;;  %v4647_v51 = vpack.i.bf16 %v1937_v35, %v1936_v32 }
 0x1af   :  { %2569 = vst [vmem:[#allocation8 + $0x48] sm:$0xff] %v4082_v22  ;;  %v851_v14 = vadd.f32 %v850_v17, %v5953_v9  ;;  %v852_v21 = vpop.f32.mrb[86].mxu0 }
 0x1b0   :  { %v985_v45 = vmax.f32 %v849_v20, 0.0  ;;  %v853_v16 = vadd.f32 %v852_v21, %v5950_v3  ;;  %v854_v39 = vpop.f32.mrb[87].mxu0  ;;  %v1375_v62 = vpop.f32.mrb[84].mxu1  ;;  %4648 = vxpose.xlu0.b32.cont [9/16] %v4647_v51, 128  ;;  %v4649_v1 = vpack.i.bf16 %v1947_v50, %v1946_v41 }
 0x1b1   :  { %v986_v19 = vmax.f32 %v851_v14, 0.0  ;;  %v855_v61 = vadd.f32 %v854_v39, %v5953_v9  ;;  %v1376_v7 = vadd.f32 %v1375_v62, %v5973_v48  ;;  %v1377_v0 = vpop.f32.mrb[85].mxu1 }
 0x1b2   :  { %v995_v23 = vmax.f32 %v853_v16, 0.0  ;;  %v1378_v8 = vadd.f32 %v1377_v0, %v5977_v2  ;;  %v1379_v20 = vpop.f32.mrb[86].mxu1 }
 0x1b3   :  { %v4083_v25 = vpack.c.bf16 %v986_v19, %v985_v45  ;;  %v996_v26 = vmax.f32 %v855_v61, 0.0  ;;  %v1956_v11 = vmax.f32 %v1376_v7, 0.0  ;;  %v1380_v14 = vadd.f32 %v1379_v20, %v5973_v48  ;;  %v1381_v21 = vpop.f32.mrb[87].mxu1 }
 0x1b4   :  { %v1957_v16 = vmax.f32 %v1378_v8, 0.0  ;;  %4650 = vxpose.xlu0.b32.cont [10/16] %v4649_v1, 128  ;;  %v1382_v39 = vadd.f32 %v1381_v21, %v5977_v2 }
 0x1b5   :  { %2570 = vst [vmem:[#allocation8 + $0x50] sm:$0xff] %v4083_v25  ;;  %v4084_v56 = vpack.c.bf16 %v996_v26, %v995_v23  ;;  %v858_v31 = vpop.f32.mrb[88].mxu0  ;;  %v1966_v19 = vmax.f32 %v1380_v14, 0.0 }
 0x1b6   :  { %v859_v33 = vadd.f32 %v858_v31, %v5950_v3  ;;  %v860_v34 = vpop.f32.mrb[89].mxu0  ;;  %v1967_v47 = vmax.f32 %v1382_v39, 0.0  ;;  %v4651_v25 = vpack.i.bf16 %v1957_v16, %v1956_v11 }
 0x1b7   :  { %2571 = vst [vmem:[#allocation8 + $0x58] sm:$0xff] %v4084_v56  ;;  %v861_v37 = vadd.f32 %v860_v34, %v5953_v9  ;;  %v862_v40 = vpop.f32.mrb[90].mxu0 }
 0x1b8   :  { %v1005_v42 = vmax.f32 %v859_v33, 0.0  ;;  %v863_v46 = vadd.f32 %v862_v40, %v5950_v3  ;;  %v864_v49 = vpop.f32.mrb[91].mxu0  ;;  %v1385_v30 = vpop.f32.mrb[88].mxu1  ;;  %4652 = vxpose.xlu0.b32.cont [11/16] %v4651_v25, 128  ;;  %v4653_v56 = vpack.i.bf16 %v1967_v47, %v1966_v19  ;;  %v6056_v25 = vrot.slane %v5965_v38, %v115_v63 }
 0x1b9   :  { %v1006_v53 = vmax.f32 %v861_v37, 0.0  ;;  %v865_v58 = vadd.f32 %v864_v49, %v5953_v9  ;;  %v1386_v52 = vadd.f32 %v1385_v30, %v5973_v48  ;;  %v1387_v44 = vpop.f32.mrb[89].mxu1 }
 0x1ba   :  { %v1015_v59 = vmax.f32 %v863_v46, 0.0  ;;  %v1389_v33 = vpop.f32.mrb[90].mxu1 }
 0x1bb   :  { %v4085_v22 = vpack.c.bf16 %v1006_v53, %v1005_v42  ;;  %v1016_v6 = vmax.f32 %v865_v58, 0.0  ;;  %v1976_v35 = vmax.f32 %v1386_v52, 0.0  ;;  %v1390_v36 = vadd.f32 %v1389_v33, %v5973_v48  ;;  %v1391_v37 = vpop.f32.mrb[91].mxu1 }
 0x1bc   :  { %4654 = vxpose.xlu0.b32.cont [12/16] %v4653_v56, 128 }
 0x1bd   :  { %2572 = vst [vmem:[#allocation8 + $0x60] sm:$0xff] %v4085_v22  ;;  %v4086_v17 = vpack.c.bf16 %v1016_v6, %v1015_v59  ;;  %v868_v10 = vpop.f32.mrb[92].mxu0  ;;  %v1986_v50 = vmax.f32 %v1390_v36, 0.0 }
 0x1be   :  { %v869_v15 = vadd.f32 %v868_v10, %v5950_v3  ;;  %v870_v45 = vpop.f32.mrb[93].mxu0 }
 0x1bf   :  { %2573 = vst [vmem:[#allocation8 + $0x68] sm:$0xff] %v4086_v17  ;;  %v871_v60 = vadd.f32 %v870_v45, %v5953_v9  ;;  %v872_v18 = vpop.f32.mrb[94].mxu0 }
 0x1c0   :  { %v1025_v61 = vmax.f32 %v869_v15, 0.0  ;;  %v873_v23 = vadd.f32 %v872_v18, %v5950_v3  ;;  %v874_v24 = vpop.f32.mrb[95].mxu0  ;;  %v6037_v3 = vrot.slane %v5965_v38, %v111_v13  ;;  %v1392_v13 = vadd.f32 %v1391_v37, %v5977_v2  ;;  %v1395_v7 = vpop.f32.mrb[92].mxu1 }
 0x1c1   :  { %v1026_v26 = vmax.f32 %v871_v60, 0.0  ;;  %v875_v27 = vadd.f32 %v874_v24, %v5953_v9  ;;  %v1388_v9 = vadd.f32 %v1387_v44, %v5977_v2  ;;  %v1396_v17 = vadd.f32 %v1395_v7, %v5973_v48  ;;  %v1397_v10 = vpop.f32.mrb[93].mxu1 }
 0x1c2   :  { %v1035_v28 = vmax.f32 %v873_v23, 0.0  ;;  %v1987_v59 = vmax.f32 %v1392_v13, 0.0  ;;  %v1398_v11 = vadd.f32 %v1397_v10, %v5977_v2  ;;  %v1399_v14 = vpop.f32.mrb[94].mxu1 }
 0x1c3   :  { %v4087_v31 = vpack.c.bf16 %v1026_v26, %v1025_v61  ;;  %v1036_v32 = vmax.f32 %v875_v27, 0.0  ;;  %v1977_v42 = vmax.f32 %v1388_v9, 0.0  ;;  %v1996_v45 = vmax.f32 %v1396_v17, 0.0  ;;  %v1401_v39 = vpop.f32.mrb[95].mxu1 }
 0x1c4   :  { %v4657_v0 = vpack.i.bf16 %v1987_v59, %v1986_v50  ;;  %v1400_v16 = vadd.f32 %v1399_v14, %v5973_v48  ;;  %v1997_v19 = vmax.f32 %v1398_v11, 0.0  ;;  %v1402_v61 = vadd.f32 %v1401_v39, %v5977_v2 }
 0x1c5   :  { %2574 = vst [vmem:[#allocation8 + $0x70] sm:$0xff] %v4087_v31  ;;  %v4088_v34 = vpack.c.bf16 %v1036_v32, %v1035_v28  ;;  %v1438_v12 = vpop.f32.mrb[96].mxu0  ;;  %v4655_v62 = vpack.i.bf16 %v1977_v42, %v1976_v35  ;;  %v6061_v48 = vrot.slane %v5965_v38, %v119_v5 }
 0x1c6   :  { %v1439_v40 = vadd.f32 %v1438_v12, %v6032_v29  ;;  %v1440_v41 = vpop.f32.mrb[97].mxu0  ;;  %v2006_v47 = vmax.f32 %v1400_v16, 0.0  ;;  %v2007_v30 = vmax.f32 %v1402_v61, 0.0  ;;  %v4659_v2 = vpack.i.bf16 %v1997_v19, %v1996_v45 }
 0x1c7   :  { %2575 = vst [vmem:[#allocation8 + $0x78] sm:$0xff] %v4088_v34  ;;  %v1441_v46 = vadd.f32 %v1440_v41, %v6037_v3  ;;  %v1442_v49 = vpop.f32.mrb[98].mxu0  ;;  %4656 = vxpose.xlu0.b32.cont [13/16] %v4655_v62, 128 }
 0x1c8   :  { %v1858_v51 = vmax.f32 %v1439_v40, 0.0  ;;  %v1443_v53 = vadd.f32 %v1442_v49, %v6032_v29  ;;  %v1444_v58 = vpop.f32.mrb[99].mxu0  ;;  %v1551_v52 = vpop.f32.mrb[96].mxu1  ;;  %v4661_v63 = vpack.i.bf16 %v2007_v30, %v2006_v47 }
 0x1c9   :  { %v1859_v1 = vmax.f32 %v1441_v46, 0.0  ;;  %v1445_v22 = vadd.f32 %v1444_v58, %v6037_v3  ;;  %v1552_v33 = vadd.f32 %v1551_v52, %v6056_v25  ;;  %v1553_v5 = vpop.f32.mrb[97].mxu1 }
 0x1ca   :  { %v1868_v6 = vmax.f32 %v1443_v53, 0.0  ;;  %v1554_v34 = vadd.f32 %v1553_v5, %v6061_v48  ;;  %v1555_v12 = vpop.f32.mrb[98].mxu1 }
 0x1cb   :  { %v1869_v8 = vmax.f32 %v1445_v22, 0.0  ;;  %v4743_v20 = vpack.i.bf16 %v1859_v1, %v1858_v51  ;;  %4658 = vxpose.xlu0.b32.cont [14/16] %v4657_v0, 128  ;;  %v1860_v37 = vmax.f32 %v1552_v33, 0.0  ;;  %v1556_v40 = vadd.f32 %v1555_v12, %v6056_v25  ;;  %v1557_v41 = vpop.f32.mrb[99].mxu1 }
 0x1cc   :  { %v1861_v46 = vmax.f32 %v1554_v34, 0.0  ;;  %v1558_v49 = vadd.f32 %v1557_v41, %v6061_v48 }
 0x1cd   :  { %v1448_v21 = vpop.f32.mrb[100].mxu0  ;;  %4744 = vxpose.xlu1.b32.start [1/16] %v4743_v20, 128  ;;  %v4745_v15 = vpack.i.bf16 %v1869_v8, %v1868_v6  ;;  %v1870_v53 = vmax.f32 %v1556_v40, 0.0 }
 0x1ce   :  { %v1449_v60 = vadd.f32 %v1448_v21, %v6032_v29  ;;  %v1450_v18 = vpop.f32.mrb[101].mxu0  ;;  %v1871_v1 = vmax.f32 %v1558_v49, 0.0  ;;  %v4855_v22 = vpack.i.bf16 %v1861_v46, %v1860_v37 }
 0x1cf   :  { %v1451_v23 = vadd.f32 %v1450_v18, %v6037_v3  ;;  %v1452_v24 = vpop.f32.mrb[102].mxu0  ;;  %4660 = vxpose.xlu0.b32.cont [15/16] %v4659_v2, 128 }
 0x1d0   :  { %v1878_v26 = vmax.f32 %v1449_v60, 0.0  ;;  %v1453_v27 = vadd.f32 %v1452_v24, %v6032_v29  ;;  %v1454_v28 = vpop.f32.mrb[103].mxu0  ;;  %v4857_v8 = vpack.i.bf16 %v1871_v1, %v1870_v53  ;;  %v1561_v20 = vpop.f32.mrb[100].mxu1 }
 0x1d1   :  { %v1879_v56 = vmax.f32 %v1451_v23, 0.0  ;;  %v1455_v31 = vadd.f32 %v1454_v28, %v6037_v3  ;;  %4746 = vxpose.xlu1.b32.cont [2/16] %v4745_v15, 128  ;;  %v1562_v11 = vadd.f32 %v1561_v20, %v6056_v25  ;;  %v1563_v14 = vpop.f32.mrb[101].mxu1 }
 0x1d2   :  { %v1888_v32 = vmax.f32 %v1453_v27, 0.0  ;;  %v1564_v21 = vadd.f32 %v1563_v14, %v6061_v48  ;;  %v1565_v15 = vpop.f32.mrb[102].mxu1 }
 0x1d3   :  { %v1889_v44 = vmax.f32 %v1455_v31, 0.0  ;;  %v4747_v9 = vpack.i.bf16 %v1879_v56, %v1878_v26  ;;  %4662 = vxpose.xlu0.b32.end [16/16] %v4661_v63, 128  ;;  %v1880_v39 = vmax.f32 %v1562_v11, 0.0  ;;  %v1566_v60 = vadd.f32 %v1565_v15, %v6056_v25  ;;  %v1567_v18 = vpop.f32.mrb[103].mxu1 }
 0x1d4   :  { %v1881_v23 = vmax.f32 %v1564_v21, 0.0  ;;  %v1568_v24 = vadd.f32 %v1567_v18, %v6061_v48 }
 0x1d5   :  { %v1458_v35 = vpop.f32.mrb[104].mxu0  ;;  %4748 = vxpose.xlu1.b32.cont [3/16] %v4747_v9, 128  ;;  %v4749_v36 = vpack.i.bf16 %v1889_v44, %v1888_v32  ;;  %v1890_v27 = vmax.f32 %v1566_v60, 0.0 }
 0x1d6   :  { %v1459_v42 = vadd.f32 %v1458_v35, %v6032_v29  ;;  %v1460_v13 = vpop.f32.mrb[105].mxu0  ;;  %v4859_v56 = vpack.i.bf16 %v1881_v23, %v1880_v39  ;;  %v1891_v31 = vmax.f32 %v1568_v24, 0.0 }
 0x1d7   :  { %v1461_v50 = vadd.f32 %v1460_v13, %v6037_v3  ;;  %v1462_v51 = vpop.f32.mrb[106].mxu0  ;;  %4856 = vxpose.xlu0.b32.start [1/16] %v4855_v22, 128 }
 0x1d8   :  { %v1898_v58 = vmax.f32 %v1459_v42, 0.0  ;;  %v1463_v59 = vadd.f32 %v1462_v51, %v6032_v29  ;;  %v1464_v62 = vpop.f32.mrb[107].mxu0  ;;  %v4861_v44 = vpack.i.bf16 %v1891_v31, %v1890_v27  ;;  %v1571_v9 = vpop.f32.mrb[104].mxu1 }
 0x1d9   :  { %v1899_v6 = vmax.f32 %v1461_v50, 0.0  ;;  %v1465_v7 = vadd.f32 %v1464_v62, %v6037_v3  ;;  %4750 = vxpose.xlu1.b32.cont [4/16] %v4749_v36, 128  ;;  %v1572_v34 = vadd.f32 %v1571_v9, %v6056_v25  ;;  %v1573_v12 = vpop.f32.mrb[105].mxu1 }
 0x1da   :  { %v1908_v0 = vmax.f32 %v1463_v59, 0.0  ;;  %v1574_v35 = vadd.f32 %v1573_v12, %v6061_v48  ;;  %v1575_v36 = vpop.f32.mrb[106].mxu1 }
 0x1db   :  { %v1909_v17 = vmax.f32 %v1465_v7, 0.0  ;;  %v4751_v10 = vpack.i.bf16 %v1899_v6, %v1898_v58  ;;  %4858 = vxpose.xlu0.b32.cont [2/16] %v4857_v8, 128  ;;  %v1900_v41 = vmax.f32 %v1572_v34, 0.0  ;;  %v1576_v42 = vadd.f32 %v1575_v36, %v6056_v25  ;;  %v1577_v13 = vpop.f32.mrb[107].mxu1 }
 0x1dc   :  { %v1901_v50 = vmax.f32 %v1574_v35, 0.0  ;;  %v1578_v51 = vadd.f32 %v1577_v13, %v6061_v48 }
 0x1dd   :  { %v1468_v45 = vpop.f32.mrb[108].mxu0  ;;  %4752 = vxpose.xlu1.b32.cont [5/16] %v4751_v10, 128  ;;  %v4753_v16 = vpack.i.bf16 %v1909_v17, %v1908_v0  ;;  %v1910_v59 = vmax.f32 %v1576_v42, 0.0 }
 0x1de   :  { %v1469_v19 = vadd.f32 %v1468_v45, %v6032_v29  ;;  %v1470_v61 = vpop.f32.mrb[109].mxu0  ;;  %v4863_v6 = vpack.i.bf16 %v1901_v50, %v1900_v41  ;;  %v1911_v7 = vmax.f32 %v1578_v51, 0.0 }
 0x1df   :  { %v1471_v47 = vadd.f32 %v1470_v61, %v6037_v3  ;;  %v1472_v26 = vpop.f32.mrb[110].mxu0  ;;  %4860 = vxpose.xlu0.b32.cont [3/16] %v4859_v56, 128 }
 0x1e0   :  { %v1918_v28 = vmax.f32 %v1469_v19, 0.0  ;;  %v1473_v30 = vadd.f32 %v1472_v26, %v6032_v29  ;;  %v1474_v2 = vpop.f32.mrb[111].mxu0  ;;  %v4865_v17 = vpack.i.bf16 %v1911_v7, %v1910_v59  ;;  %v1581_v10 = vpop.f32.mrb[108].mxu1 }
 0x1e1   :  { %v1919_v32 = vmax.f32 %v1471_v47, 0.0  ;;  %v1475_v52 = vadd.f32 %v1474_v2, %v6037_v3  ;;  %4754 = vxpose.xlu1.b32.cont [6/16] %v4753_v16, 128  ;;  %v1582_v21 = vadd.f32 %v1581_v10, %v6056_v25  ;;  %v1583_v15 = vpop.f32.mrb[109].mxu1 }
 0x1e2   :  { %v1928_v63 = vmax.f32 %v1473_v30, 0.0  ;;  %v1584_v45 = vadd.f32 %v1583_v15, %v6061_v48  ;;  %v1585_v16 = vpop.f32.mrb[110].mxu1 }
 0x1e3   :  { %v1929_v33 = vmax.f32 %v1475_v52, 0.0  ;;  %v4755_v5 = vpack.i.bf16 %v1919_v32, %v1918_v28  ;;  %4862 = vxpose.xlu0.b32.cont [4/16] %v4861_v44, 128  ;;  %v1920_v18 = vmax.f32 %v1582_v21, 0.0  ;;  %v1586_v19 = vadd.f32 %v1585_v16, %v6056_v25  ;;  %v1587_v61 = vpop.f32.mrb[111].mxu1 }
 0x1e4   :  { %v1921_v47 = vmax.f32 %v1584_v45, 0.0  ;;  %v1588_v26 = vadd.f32 %v1587_v61, %v6061_v48 }
 0x1e5   :  { %v1478_v37 = vpop.f32.mrb[112].mxu0  ;;  %4756 = vxpose.xlu1.b32.cont [7/16] %v4755_v5, 128  ;;  %v4757_v40 = vpack.i.bf16 %v1929_v33, %v1928_v63  ;;  %v1930_v30 = vmax.f32 %v1586_v19, 0.0 }
 0x1e6   :  { %v1479_v46 = vadd.f32 %v1478_v37, %v6032_v29  ;;  %v1480_v49 = vpop.f32.mrb[113].mxu0  ;;  %v4867_v32 = vpack.i.bf16 %v1921_v47, %v1920_v18  ;;  %v1931_v52 = vmax.f32 %v1588_v26, 0.0 }
 0x1e7   :  { %v1481_v53 = vadd.f32 %v1480_v49, %v6037_v3  ;;  %v1482_v58 = vpop.f32.mrb[114].mxu0  ;;  %4864 = vxpose.xlu0.b32.cont [5/16] %v4863_v6, 128 }
 0x1e8   :  { %v1938_v62 = vmax.f32 %v1479_v46, 0.0  ;;  %v1483_v1 = vadd.f32 %v1482_v58, %v6032_v29  ;;  %v1484_v22 = vpop.f32.mrb[115].mxu0  ;;  %v4869_v33 = vpack.i.bf16 %v1931_v52, %v1930_v30  ;;  %v1591_v5 = vpop.f32.mrb[112].mxu1 }
 0x1e9   :  { %v1939_v0 = vmax.f32 %v1481_v53, 0.0  ;;  %v1485_v8 = vadd.f32 %v1484_v22, %v6037_v3  ;;  %4758 = vxpose.xlu1.b32.cont [8/16] %v4757_v40, 128  ;;  %v1592_v35 = vadd.f32 %v1591_v5, %v6056_v25  ;;  %v1593_v36 = vpop.f32.mrb[113].mxu1 }
 0x1ea   :  { %v1948_v20 = vmax.f32 %v1483_v1, 0.0  ;;  %v1594_v37 = vadd.f32 %v1593_v36, %v6061_v48  ;;  %v1595_v40 = vpop.f32.mrb[114].mxu1 }
 0x1eb   :  { %v1949_v11 = vmax.f32 %v1485_v8, 0.0  ;;  %v4759_v14 = vpack.i.bf16 %v1939_v0, %v1938_v62  ;;  %4866 = vxpose.xlu0.b32.cont [6/16] %v4865_v17, 128  ;;  %v1940_v13 = vmax.f32 %v1592_v35, 0.0  ;;  %v1596_v46 = vadd.f32 %v1595_v40, %v6056_v25  ;;  %v1597_v49 = vpop.f32.mrb[115].mxu1 }
 0x1ec   :  { %v1941_v53 = vmax.f32 %v1594_v37, 0.0  ;;  %v1598_v58 = vadd.f32 %v1597_v49, %v6061_v48 }
 0x1ed   :  { %v1488_v39 = vpop.f32.mrb[116].mxu0  ;;  %4760 = vxpose.xlu1.b32.cont [9/16] %v4759_v14, 128  ;;  %v4761_v60 = vpack.i.bf16 %v1949_v11, %v1948_v20  ;;  %v1950_v1 = vmax.f32 %v1596_v46, 0.0 }
 0x1ee   :  { %v1489_v23 = vadd.f32 %v1488_v39, %v6032_v29  ;;  %v1490_v24 = vpop.f32.mrb[117].mxu0  ;;  %v4871_v0 = vpack.i.bf16 %v1941_v53, %v1940_v13  ;;  %v1951_v8 = vmax.f32 %v1598_v58, 0.0 }
 0x1ef   :  { %v1491_v27 = vadd.f32 %v1490_v24, %v6037_v3  ;;  %v1492_v28 = vpop.f32.mrb[118].mxu0  ;;  %4868 = vxpose.xlu0.b32.cont [7/16] %v4867_v32, 128 }
 0x1f0   :  { %v1958_v2 = vmax.f32 %v1489_v23, 0.0  ;;  %v1493_v56 = vadd.f32 %v1492_v28, %v6032_v29  ;;  %v1494_v31 = vpop.f32.mrb[119].mxu0  ;;  %v4873_v11 = vpack.i.bf16 %v1951_v8, %v1950_v1  ;;  %v1601_v14 = vpop.f32.mrb[116].mxu1 }
 0x1f1   :  { %v1959_v63 = vmax.f32 %v1491_v27, 0.0  ;;  %v1495_v44 = vadd.f32 %v1494_v31, %v6037_v3  ;;  %4762 = vxpose.xlu1.b32.cont [10/16] %v4761_v60, 128  ;;  %v1602_v45 = vadd.f32 %v1601_v14, %v6056_v25  ;;  %v1603_v16 = vpop.f32.mrb[117].mxu1 }
 0x1f2   :  { %v1968_v9 = vmax.f32 %v1493_v56, 0.0  ;;  %v1604_v39 = vadd.f32 %v1603_v16, %v6061_v48  ;;  %v1605_v60 = vpop.f32.mrb[118].mxu1 }
 0x1f3   :  { %v1969_v34 = vmax.f32 %v1495_v44, 0.0  ;;  %v4763_v12 = vpack.i.bf16 %v1959_v63, %v1958_v2  ;;  %4870 = vxpose.xlu0.b32.cont [8/16] %v4869_v33, 128  ;;  %v1960_v61 = vmax.f32 %v1602_v45, 0.0  ;;  %v1606_v23 = vadd.f32 %v1605_v60, %v6056_v25  ;;  %v1607_v24 = vpop.f32.mrb[119].mxu1 }
 0x1f4   :  { %v1961_v27 = vmax.f32 %v1604_v39, 0.0  ;;  %v1608_v28 = vadd.f32 %v1607_v24, %v6061_v48  ;;  %v1074_v39 = vld [vmem:[#allocation5 + $0x8] sm:$0x3] }
 0x1f5   :  { %v1498_v41 = vpop.f32.mrb[120].mxu0  ;;  %4764 = vxpose.xlu1.b32.cont [11/16] %v4763_v12, 128  ;;  %v4765_v42 = vpack.i.bf16 %v1969_v34, %v1968_v9  ;;  %v1970_v56 = vmax.f32 %v1606_v23, 0.0  ;;  %v6116_v34 = vrot.slane %v5965_v38, %v123_v43 }
 0x1f6   :  { %v1499_v50 = vadd.f32 %v1498_v41, %v6032_v29  ;;  %v1500_v51 = vpop.f32.mrb[121].mxu0  ;;  %v4875_v63 = vpack.i.bf16 %v1961_v27, %v1960_v61  ;;  %v1971_v44 = vmax.f32 %v1608_v28, 0.0 }
 0x1f7   :  { %v1501_v59 = vadd.f32 %v1500_v51, %v6037_v3  ;;  %v1502_v62 = vpop.f32.mrb[122].mxu0  ;;  %4872 = vxpose.xlu0.b32.cont [9/16] %v4871_v0, 128 }
 0x1f8   :  { %v1978_v22 = vmax.f32 %v1499_v50, 0.0  ;;  %v1503_v6 = vadd.f32 %v1502_v62, %v6032_v29  ;;  %v1504_v7 = vpop.f32.mrb[123].mxu0  ;;  %v4877_v12 = vpack.i.bf16 %v1971_v44, %v1970_v56  ;;  %v1611_v35 = vpop.f32.mrb[120].mxu1  ;;  %v6138_v56 = vrot.slane %v1074_v39, %v5682_v55 }
 0x1f9   :  { %v1979_v20 = vmax.f32 %v1501_v59, 0.0  ;;  %v1505_v17 = vadd.f32 %v1504_v7, %v6037_v3  ;;  %4766 = vxpose.xlu1.b32.cont [12/16] %v4765_v42, 128  ;;  %v1612_v40 = vadd.f32 %v1611_v35, %v6056_v25 }
 0x1fa   :  { %v1988_v10 = vmax.f32 %v1503_v6, 0.0 }
 0x1fb   :  { %v1989_v21 = vmax.f32 %v1505_v17, 0.0  ;;  %v4767_v15 = vpack.i.bf16 %v1979_v20, %v1978_v22  ;;  %4874 = vxpose.xlu0.b32.cont [10/16] %v4873_v11, 128  ;;  %v1980_v46 = vmax.f32 %v1612_v40, 0.0 }
 0x1fd   :  { %v1508_v18 = vpop.f32.mrb[124].mxu0  ;;  %4768 = vxpose.xlu1.b32.cont [13/16] %v4767_v15, 128  ;;  %v4769_v19 = vpack.i.bf16 %v1989_v21, %v1988_v10 }
 0x1fe   :  { %v1509_v47 = vadd.f32 %v1508_v18, %v6032_v29  ;;  %v1510_v26 = vpop.f32.mrb[125].mxu0 }
 0x1ff   :  { %v1511_v30 = vadd.f32 %v1510_v26, %v6037_v3  ;;  %v1512_v2 = vpop.f32.mrb[126].mxu0  ;;  %4876 = vxpose.xlu0.b32.cont [11/16] %v4875_v63, 128 }
 0x200   :  { %v1998_v31 = vmax.f32 %v1509_v47, 0.0  ;;  %v1513_v32 = vadd.f32 %v1512_v2, %v6032_v29  ;;  %v1514_v52 = vpop.f32.mrb[127].mxu0  ;;  %v6121_v29 = vrot.slane %v5965_v38, %v127_v4 }
 0x201   :  { %v1999_v9 = vmax.f32 %v1511_v30, 0.0  ;;  %v1515_v33 = vadd.f32 %v1514_v52, %v6037_v3  ;;  %4770 = vxpose.xlu1.b32.cont [14/16] %v4769_v19, 128  ;;  %v1613_v3 = vpop.f32.mrb[121].mxu1 }
 0x202   :  { %v2008_v5 = vmax.f32 %v1513_v32, 0.0  ;;  %v1614_v41 = vadd.f32 %v1613_v3, %v6061_v48  ;;  %v1615_v42 = vpop.f32.mrb[122].mxu1 }
 0x203   :  { %v2009_v36 = vmax.f32 %v1515_v33, 0.0  ;;  %v4771_v37 = vpack.i.bf16 %v1999_v9, %v1998_v31  ;;  %v1616_v49 = vadd.f32 %v1615_v42, %v6056_v25  ;;  %v1617_v50 = vpop.f32.mrb[123].mxu1  ;;  %4878 = vxpose.xlu0.b32.cont [12/16] %v4877_v12, 128  ;;  %v6141_v31 = vrot.slane %v1074_v39, %v5690_v57 }
 0x204   :  { %v1981_v54 = vmax.f32 %v1614_v41, 0.0  ;;  %v1618_v4 = vadd.f32 %v1617_v50, %v6061_v48  ;;  %v1621_v10 = vpop.f32.mrb[124].mxu1 }
 0x205   :  { %v1664_v13 = vpop.f32.mrb[128].mxu0  ;;  %4772 = vxpose.xlu1.b32.cont [15/16] %v4771_v37, 128  ;;  %v4773_v43 = vpack.i.bf16 %v2009_v36, %v2008_v5  ;;  %v1990_v59 = vmax.f32 %v1616_v49, 0.0  ;;  %v1622_v21 = vadd.f32 %v1621_v10, %v6056_v25  ;;  %v1623_v15 = vpop.f32.mrb[125].mxu1 }
 0x206   :  { %v1665_v51 = vadd.f32 %v1664_v13, %v6116_v34  ;;  %v1666_v53 = vpop.f32.mrb[129].mxu0  ;;  %v4879_v6 = vpack.i.bf16 %v1981_v54, %v1980_v46  ;;  %v1991_v7 = vmax.f32 %v1618_v4, 0.0  ;;  %v1624_v45 = vadd.f32 %v1623_v15, %v6061_v48  ;;  %v1625_v16 = vpop.f32.mrb[126].mxu1 }
 0x207   :  { %v1667_v38 = vadd.f32 %v1666_v53, %v6121_v29  ;;  %v1668_v58 = vpop.f32.mrb[130].mxu0  ;;  %v2000_v19 = vmax.f32 %v1622_v21, 0.0  ;;  %v1626_v61 = vadd.f32 %v1625_v16, %v6056_v25  ;;  %v1627_v23 = vpop.f32.mrb[127].mxu1 }
 0x208   :  { %v1862_v62 = vmax.f32 %v1665_v51, 0.0  ;;  %v1669_v1 = vadd.f32 %v1668_v58, %v6116_v34  ;;  %v1670_v22 = vpop.f32.mrb[131].mxu0  ;;  %v4881_v17 = vpack.i.bf16 %v1991_v7, %v1990_v59  ;;  %4880 = vxpose.xlu0.b32.cont [13/16] %v4879_v6, 128  ;;  %v2001_v26 = vmax.f32 %v1624_v45, 0.0  ;;  %v1777_v12 = vpop.f32.mrb[128].mxu1 }
 0x209   :  { %v1863_v0 = vmax.f32 %v1667_v38, 0.0  ;;  %v1671_v8 = vadd.f32 %v1670_v22, %v6121_v29  ;;  %4774 = vxpose.xlu1.b32.end [16/16] %v4773_v43, 128  ;;  %v1628_v27 = vadd.f32 %v1627_v23, %v6061_v48  ;;  %v2010_v2 = vmax.f32 %v1626_v61, 0.0  ;;  %v1779_v57 = vpop.f32.mrb[129].mxu1 }
 0x20a   :  { %v1872_v20 = vmax.f32 %v1669_v1, 0.0  ;;  %v4883_v63 = vpack.i.bf16 %v2001_v26, %v2000_v19  ;;  %v1778_v36 = vadd.f32 %v1777_v12, %v6138_v56  ;;  %v1780_v37 = vadd.f32 %v1779_v57, %v6141_v31  ;;  %v1781_v40 = vpop.f32.mrb[130].mxu1 }
 0x20b   :  { %v1873_v11 = vmax.f32 %v1671_v8, 0.0  ;;  %v4967_v14 = vpack.i.bf16 %v1863_v0, %v1862_v62  ;;  %v2011_v44 = vmax.f32 %v1628_v27, 0.0  ;;  %v1782_v13 = vadd.f32 %v1781_v40, %v6138_v56  ;;  %v1783_v43 = vpop.f32.mrb[131].mxu1 }
 0x20c   :  { %4882 = vxpose.xlu0.b32.cont [14/16] %v4881_v17, 128  ;;  %v1864_v42 = vmax.f32 %v1778_v36, 0.0  ;;  %v1865_v50 = vmax.f32 %v1780_v37, 0.0  ;;  %v1784_v51 = vadd.f32 %v1783_v43, %v6141_v31 }
 0x20d   :  { %v4969_v60 = vpack.i.bf16 %v1873_v11, %v1872_v20  ;;  %v1674_v18 = vpop.f32.mrb[132].mxu0  ;;  %4968 = vxpose.xlu1.b32.start [1/16] %v4967_v14, 128  ;;  %v4885_v5 = vpack.i.bf16 %v2011_v44, %v2010_v2  ;;  %v1874_v4 = vmax.f32 %v1782_v13, 0.0 }
 0x20e   :  { %v1675_v24 = vadd.f32 %v1674_v18, %v6116_v34  ;;  %v1676_v47 = vpop.f32.mrb[133].mxu0  ;;  %v4217_v62 = vpack.c.bf16 %v1865_v50, %v1864_v42  ;;  %v1875_v1 = vmax.f32 %v1784_v51, 0.0 }
 0x20f   :  { %v1677_v28 = vadd.f32 %v1676_v47, %v6121_v29  ;;  %v1678_v30 = vpop.f32.mrb[134].mxu0 }
 0x210   :  { %v1882_v32 = vmax.f32 %v1675_v24, 0.0  ;;  %v1679_v25 = vadd.f32 %v1678_v30, %v6116_v34  ;;  %v1680_v52 = vpop.f32.mrb[135].mxu0  ;;  %4884 = vxpose.xlu0.b32.cont [15/16] %v4883_v63, 128  ;;  %3568 = vst [vmem:[#allocation11] sm:$0xff] %v4217_v62  ;;  %v4218_v8 = vpack.c.bf16 %v1875_v1, %v1874_v4  ;;  %v1787_v20 = vpop.f32.mrb[132].mxu1 }
 0x211   :  { %v1883_v9 = vmax.f32 %v1677_v28, 0.0  ;;  %v1681_v33 = vadd.f32 %v1680_v52, %v6121_v29  ;;  %4970 = vxpose.xlu1.b32.cont [2/16] %v4969_v60, 128  ;;  %v1789_v11 = vpop.f32.mrb[133].mxu1  ;;  %v1788_v14 = vadd.f32 %v1787_v20, %v6138_v56 }
 0x212   :  { %v1892_v48 = vmax.f32 %v1679_v25, 0.0  ;;  %3569 = vst [vmem:[#allocation11 + $0x8] sm:$0xff] %v4218_v8  ;;  %v1790_v21 = vadd.f32 %v1789_v11, %v6141_v31  ;;  %v1791_v15 = vpop.f32.mrb[134].mxu1 }
 0x213   :  { %v4971_v35 = vpack.i.bf16 %v1883_v9, %v1882_v32  ;;  %v1893_v55 = vmax.f32 %v1681_v33, 0.0  ;;  %v1792_v18 = vadd.f32 %v1791_v15, %v6138_v56  ;;  %v1793_v19 = vpop.f32.mrb[135].mxu1  ;;  %v1884_v47 = vmax.f32 %v1788_v14, 0.0 }
 0x214   :  { %4886 = vxpose.xlu0.b32.end [16/16] %v4885_v5, 128  ;;  %v1885_v26 = vmax.f32 %v1790_v21, 0.0  ;;  %v1794_v27 = vadd.f32 %v1793_v19, %v6141_v31 }
 0x215   :  { %v4973_v3 = vpack.i.bf16 %v1893_v55, %v1892_v48  ;;  %v1684_v41 = vpop.f32.mrb[136].mxu0  ;;  %4972 = vxpose.xlu1.b32.cont [3/16] %v4971_v35, 128  ;;  %v1894_v5 = vmax.f32 %v1792_v18, 0.0 }
 0x216   :  { %v1685_v46 = vadd.f32 %v1684_v41, %v6116_v34  ;;  %v1686_v49 = vpop.f32.mrb[137].mxu0  ;;  %v4219_v44 = vpack.c.bf16 %v1885_v26, %v1884_v47  ;;  %v1895_v36 = vmax.f32 %v1794_v27, 0.0 }
 0x217   :  { %v1687_v53 = vadd.f32 %v1686_v49, %v6121_v29  ;;  %v1688_v54 = vpop.f32.mrb[138].mxu0  ;;  %v4663_v0 = vpop.trf.xlu0 }
 0x218   :  { %v1902_v38 = vmax.f32 %v1685_v46, 0.0  ;;  %v1689_v58 = vadd.f32 %v1688_v54, %v6116_v34  ;;  %v1690_v59 = vpop.f32.mrb[139].mxu0  ;;  %v4667_v39 = vunpack.i.h.bf16 %v4663_v0  ;;  %v4664_v60 = vunpack.i.l.bf16 %v4663_v0  ;;  %3570 = vst [vmem:[#allocation11 + $0x10] sm:$0xff] %v4219_v44  ;;  %v1797_v57 = vpop.f32.mrb[136].mxu1 }
 0x219   :  { %v1903_v22 = vmax.f32 %v1687_v53, 0.0  ;;  %v1691_v6 = vadd.f32 %v1690_v59, %v6121_v29  ;;  %4974 = vxpose.xlu1.b32.cont [4/16] %v4973_v3, 128  ;;  %v1799_v3 = vpop.f32.mrb[137].mxu1  ;;  %v4220_v41 = vpack.c.bf16 %v1895_v36, %v1894_v5  ;;  %v1798_v42 = vadd.f32 %v1797_v57, %v6138_v56 }
 0x21a   :  { %v1912_v7 = vmax.f32 %v1689_v58, 0.0  ;;  %v1801_v13 = vpop.f32.mrb[138].mxu1  ;;  %v1800_v50 = vadd.f32 %v1799_v3, %v6141_v31 }
 0x21b   :  { %v4975_v17 = vpack.i.bf16 %v1903_v22, %v1902_v38  ;;  %v1913_v10 = vmax.f32 %v1691_v6, 0.0  ;;  %v4668_v24 = vpop.trf.xlu0  ;;  %v1802_v51 = vadd.f32 %v1801_v13, %v6138_v56  ;;  %v1803_v53 = vpop.f32.mrb[139].mxu1  ;;  %3571 = vst [vmem:[#allocation11 + $0x18] sm:$0xff] %v4220_v41  ;;  %v1904_v59 = vmax.f32 %v1798_v42, 0.0 }
 0x21c   :  { %v4672_v2 = vunpack.i.h.bf16 %v4668_v24  ;;  %v4669_v63 = vunpack.i.l.bf16 %v4668_v24  ;;  %v1804_v62 = vadd.f32 %v1803_v53, %v6141_v31 }
 0x21d   :  { %v4977_v45 = vpack.i.bf16 %v1913_v10, %v1912_v7  ;;  %v1694_v16 = vpop.f32.mrb[140].mxu0  ;;  %4976 = vxpose.xlu1.b32.cont [5/16] %v4975_v17, 128  ;;  %v1905_v17 = vmax.f32 %v1800_v50, 0.0  ;;  %v1914_v21 = vmax.f32 %v1802_v51, 0.0 }
 0x21e   :  { %v1695_v61 = vadd.f32 %v1694_v16, %v6116_v34  ;;  %v1696_v23 = vpop.f32.mrb[141].mxu0  ;;  %v4276_v48 = vpack.c.bf16 %v4672_v2, %v4667_v39  ;;  %v4236_v35 = vpack.c.bf16 %v4669_v63, %v4664_v60  ;;  %v1915_v60 = vmax.f32 %v1804_v62, 0.0 }
 0x21f   :  { %v1697_v28 = vadd.f32 %v1696_v23, %v6121_v29  ;;  %v1698_v30 = vpop.f32.mrb[142].mxu0  ;;  %v4673_v55 = vpop.trf.xlu0  ;;  %v4221_v39 = vpack.c.bf16 %v1905_v17, %v1904_v59 }
 0x220   :  { %v1922_v32 = vmax.f32 %v1695_v61, 0.0  ;;  %v1699_v25 = vadd.f32 %v1698_v30, %v6116_v34  ;;  %v1700_v52 = vpop.f32.mrb[143].mxu0  ;;  %4560 = vst [vmem:[#allocation10 + $0x40] sm:$0xff] %v4276_v48   ;;  %4237 = vst [vmem:[#allocation10] sm:$0xff] %v4236_v35   ;;  %v4677_v49 = vunpack.i.h.bf16 %v4673_v55  ;;  %v4674_v38 = vunpack.i.l.bf16 %v4673_v55  ;;  %v1807_v18 = vpop.f32.mrb[140].mxu1 }
 0x221   :  { %v1923_v9 = vmax.f32 %v1697_v28, 0.0  ;;  %v1701_v33 = vadd.f32 %v1700_v52, %v6121_v29  ;;  %4978 = vxpose.xlu1.b32.cont [6/16] %v4977_v45, 128  ;;  %v1809_v23 = vpop.f32.mrb[141].mxu1  ;;  %3572 = vst [vmem:[#allocation11 + $0x20] sm:$0xff] %v4221_v39  ;;  %v4222_v24 = vpack.c.bf16 %v1915_v60, %v1914_v21  ;;  %v1808_v47 = vadd.f32 %v1807_v18, %v6138_v56 }
 0x222   :  { %v1932_v12 = vmax.f32 %v1699_v25, 0.0  ;;  %v1811_v26 = vpop.f32.mrb[142].mxu1  ;;  %v1810_v2 = vadd.f32 %v1809_v23, %v6141_v31 }
 0x223   :  { %v4979_v37 = vpack.i.bf16 %v1923_v9, %v1922_v32  ;;  %v1933_v40 = vmax.f32 %v1701_v33, 0.0  ;;  %v4678_v58 = vpop.trf.xlu0  ;;  %v1812_v32 = vadd.f32 %v1811_v26, %v6138_v56  ;;  %v1813_v25 = vpop.f32.mrb[143].mxu1  ;;  %3573 = vst [vmem:[#allocation11 + $0x28] sm:$0xff] %v4222_v24  ;;  %v1924_v33 = vmax.f32 %v1808_v47, 0.0 }
 0x224   :  { %v4682_v6 = vunpack.i.h.bf16 %v4678_v58  ;;  %v4679_v20 = vunpack.i.l.bf16 %v4678_v58  ;;  %v1814_v48 = vadd.f32 %v1813_v25, %v6141_v31 }
 0x225   :  { %v4981_v43 = vpack.i.bf16 %v1933_v40, %v1932_v12  ;;  %v1704_v46 = vpop.f32.mrb[144].mxu0  ;;  %4980 = vxpose.xlu1.b32.cont [7/16] %v4979_v37, 128  ;;  %v1925_v40 = vmax.f32 %v1810_v2, 0.0  ;;  %v1934_v13 = vmax.f32 %v1812_v32, 0.0 }
 0x226   :  { %v1705_v54 = vadd.f32 %v1704_v46, %v6116_v34  ;;  %v1706_v4 = vpop.f32.mrb[145].mxu0  ;;  %v4281_v14 = vpack.c.bf16 %v4682_v6, %v4677_v49  ;;  %v4241_v45 = vpack.c.bf16 %v4679_v20, %v4674_v38  ;;  %v1935_v51 = vmax.f32 %v1814_v48, 0.0 }
 0x227   :  { %v1707_v1 = vadd.f32 %v1706_v4, %v6121_v29  ;;  %v1708_v22 = vpop.f32.mrb[146].mxu0  ;;  %v4683_v16 = vpop.trf.xlu0  ;;  %v4223_v50 = vpack.c.bf16 %v1925_v40, %v1924_v33 }
 0x228   :  { %v1942_v7 = vmax.f32 %v1705_v54, 0.0  ;;  %v1709_v0 = vadd.f32 %v1708_v22, %v6116_v34  ;;  %v1710_v8 = vpop.f32.mrb[147].mxu0  ;;  %4561 = vst [vmem:[#allocation10 + $0x48] sm:$0xff] %v4281_v14   ;;  %4553 = vst [vmem:[#allocation10 + $0x8] sm:$0xff] %v4241_v45   ;;  %v4687_v30 = vunpack.i.h.bf16 %v4683_v16  ;;  %v4684_v44 = vunpack.i.l.bf16 %v4683_v16  ;;  %v1817_v53 = vpop.f32.mrb[144].mxu1 }
 0x229   :  { %v1943_v10 = vmax.f32 %v1707_v1, 0.0  ;;  %v1711_v11 = vadd.f32 %v1710_v8, %v6121_v29  ;;  %4982 = vxpose.xlu1.b32.cont [8/16] %v4981_v43, 128  ;;  %v1819_v38 = vpop.f32.mrb[145].mxu1  ;;  %3574 = vst [vmem:[#allocation11 + $0x30] sm:$0xff] %v4223_v50  ;;  %v4224_v58 = vpack.c.bf16 %v1935_v51, %v1934_v13  ;;  %v1818_v59 = vadd.f32 %v1817_v53, %v6138_v56 }
 0x22a   :  { %v1952_v15 = vmax.f32 %v1709_v0, 0.0  ;;  %v1821_v62 = vpop.f32.mrb[146].mxu1 }
 0x22b   :  { %v4983_v19 = vpack.i.bf16 %v1943_v10, %v1942_v7  ;;  %v1953_v61 = vmax.f32 %v1711_v11, 0.0  ;;  %v4688_v9 = vpop.trf.xlu0  ;;  %v1820_v7 = vadd.f32 %v1819_v38, %v6141_v31  ;;  %v1822_v0 = vadd.f32 %v1821_v62, %v6138_v56  ;;  %v1823_v8 = vpop.f32.mrb[147].mxu1  ;;  %3575 = vst [vmem:[#allocation11 + $0x38] sm:$0xff] %v4224_v58 }
 0x22c   :  { %v4692_v35 = vunpack.i.h.bf16 %v4688_v9  ;;  %v4689_v37 = vunpack.i.l.bf16 %v4688_v9  ;;  %v1944_v14 = vmax.f32 %v1818_v59, 0.0  ;;  %v1824_v21 = vadd.f32 %v1823_v8, %v6141_v31 }
 0x22d   :  { %v4985_v27 = vpack.i.bf16 %v1953_v61, %v1952_v15  ;;  %v1714_v28 = vpop.f32.mrb[148].mxu0  ;;  %4984 = vxpose.xlu1.b32.cont [9/16] %v4983_v19, 128  ;;  %v1945_v61 = vmax.f32 %v1820_v7, 0.0  ;;  %v1954_v26 = vmax.f32 %v1822_v0, 0.0 }
 0x22e   :  { %v1715_v52 = vadd.f32 %v1714_v28, %v6116_v34  ;;  %v1716_v63 = vpop.f32.mrb[149].mxu0  ;;  %v4286_v42 = vpack.c.bf16 %v4692_v35, %v4687_v30  ;;  %v4246_v46 = vpack.c.bf16 %v4689_v37, %v4684_v44  ;;  %v1955_v32 = vmax.f32 %v1824_v21, 0.0 }
 0x22f   :  { %v1717_v5 = vadd.f32 %v1716_v63, %v6121_v29  ;;  %v1718_v12 = vpop.f32.mrb[150].mxu0  ;;  %v4693_v49 = vpop.trf.xlu0  ;;  %v4225_v2 = vpack.c.bf16 %v1945_v61, %v1944_v14 }
 0x230   :  { %v1962_v55 = vmax.f32 %v1715_v52, 0.0  ;;  %v1719_v36 = vadd.f32 %v1718_v12, %v6116_v34  ;;  %v1720_v57 = vpop.f32.mrb[151].mxu0  ;;  %4562 = vst [vmem:[#allocation10 + $0x50] sm:$0xff] %v4286_v42   ;;  %4554 = vst [vmem:[#allocation10 + $0x10] sm:$0xff] %v4246_v46   ;;  %v4697_v6 = vunpack.i.h.bf16 %v4693_v49  ;;  %v4694_v10 = vunpack.i.l.bf16 %v4693_v49  ;;  %v1827_v25 = vpop.f32.mrb[148].mxu1 }
 0x231   :  { %v1963_v3 = vmax.f32 %v1717_v5, 0.0  ;;  %v1721_v41 = vadd.f32 %v1720_v57, %v6121_v29  ;;  %4986 = vxpose.xlu1.b32.cont [10/16] %v4985_v27, 128  ;;  %v1829_v44 = vpop.f32.mrb[149].mxu1  ;;  %3576 = vst [vmem:[#allocation11 + $0x40] sm:$0xff] %v4225_v2  ;;  %v4226_v9 = vpack.c.bf16 %v1955_v32, %v1954_v26  ;;  %v1828_v33 = vadd.f32 %v1827_v25, %v6138_v56 }
 0x232   :  { %v1972_v43 = vmax.f32 %v1719_v36, 0.0  ;;  %v1831_v48 = vpop.f32.mrb[150].mxu1 }
 0x233   :  { %v4987_v54 = vpack.i.bf16 %v1963_v3, %v1962_v55  ;;  %v1973_v4 = vmax.f32 %v1721_v41, 0.0  ;;  %v4698_v11 = vpop.trf.xlu0  ;;  %v1830_v55 = vadd.f32 %v1829_v44, %v6141_v31  ;;  %v1832_v36 = vadd.f32 %v1831_v48, %v6138_v56  ;;  %v1833_v57 = vpop.f32.mrb[151].mxu1  ;;  %3577 = vst [vmem:[#allocation11 + $0x48] sm:$0xff] %v4226_v9 }
 0x234   :  { %v4702_v16 = vunpack.i.h.bf16 %v4698_v11  ;;  %v4699_v19 = vunpack.i.l.bf16 %v4698_v11  ;;  %v1964_v42 = vmax.f32 %v1828_v33, 0.0  ;;  %v1834_v13 = vadd.f32 %v1833_v57, %v6141_v31 }
 0x235   :  { %v4989_v1 = vpack.i.bf16 %v1973_v4, %v1972_v43  ;;  %v1724_v22 = vpop.f32.mrb[152].mxu0  ;;  %4988 = vxpose.xlu1.b32.cont [11/16] %v4987_v54, 128  ;;  %v1965_v4 = vmax.f32 %v1830_v55, 0.0  ;;  %v1974_v62 = vmax.f32 %v1832_v36, 0.0 }
 0x236   :  { %v1725_v20 = vadd.f32 %v1724_v22, %v6116_v34  ;;  %v1726_v17 = vpop.f32.mrb[153].mxu0  ;;  %v4291_v47 = vpack.c.bf16 %v4702_v16, %v4697_v6  ;;  %v4251_v28 = vpack.c.bf16 %v4699_v19, %v4694_v10  ;;  %v1975_v0 = vmax.f32 %v1834_v13, 0.0 }
 0x237   :  { %v1727_v15 = vadd.f32 %v1726_v17, %v6121_v29  ;;  %v1728_v45 = vpop.f32.mrb[154].mxu0  ;;  %v4703_v30 = vpop.trf.xlu0  ;;  %v4227_v7 = vpack.c.bf16 %v1965_v4, %v1964_v42 }
 0x238   :  { %v1982_v39 = vmax.f32 %v1725_v20, 0.0  ;;  %v1729_v60 = vadd.f32 %v1728_v45, %v6116_v34  ;;  %v1730_v18 = vpop.f32.mrb[155].mxu0  ;;  %4563 = vst [vmem:[#allocation10 + $0x58] sm:$0xff] %v4291_v47   ;;  %4555 = vst [vmem:[#allocation10 + $0x18] sm:$0xff] %v4251_v28   ;;  %v4707_v35 = vunpack.i.h.bf16 %v4703_v30  ;;  %v4704_v3 = vunpack.i.l.bf16 %v4703_v30  ;;  %v1837_v8 = vpop.f32.mrb[152].mxu1 }
 0x239   :  { %v1983_v23 = vmax.f32 %v1727_v15, 0.0  ;;  %v1731_v24 = vadd.f32 %v1730_v18, %v6121_v29  ;;  %4990 = vxpose.xlu1.b32.cont [12/16] %v4989_v1, 128  ;;  %v1839_v10 = vpop.f32.mrb[153].mxu1  ;;  %3578 = vst [vmem:[#allocation11 + $0x50] sm:$0xff] %v4227_v7  ;;  %v4228_v11 = vpack.c.bf16 %v1975_v0, %v1974_v62  ;;  %v1838_v14 = vadd.f32 %v1837_v8, %v6138_v56 }
 0x23a   :  { %v1992_v27 = vmax.f32 %v1729_v60, 0.0  ;;  %v1840_v45 = vadd.f32 %v1839_v10, %v6141_v31 }
 0x23b   :  { %v4991_v52 = vpack.i.bf16 %v1983_v23, %v1982_v39  ;;  %v1993_v63 = vmax.f32 %v1731_v24, 0.0  ;;  %v4708_v41 = vpop.trf.xlu0  ;;  %3579 = vst [vmem:[#allocation11 + $0x58] sm:$0xff] %v4228_v11  ;;  %v1984_v18 = vmax.f32 %v1838_v14, 0.0 }
 0x23c   :  { %v4712_v49 = vunpack.i.h.bf16 %v4708_v41  ;;  %v4709_v54 = vunpack.i.l.bf16 %v4708_v41  ;;  %v1985_v24 = vmax.f32 %v1840_v45, 0.0 }
 0x23d   :  { %v4993_v5 = vpack.i.bf16 %v1993_v63, %v1992_v27  ;;  %v1734_v12 = vpop.f32.mrb[156].mxu0  ;;  %4992 = vxpose.xlu1.b32.cont [13/16] %v4991_v52, 128 }
 0x23e   :  { %v1735_v37 = vadd.f32 %v1734_v12, %v6116_v34  ;;  %v1736_v40 = vpop.f32.mrb[157].mxu0  ;;  %v4296_v59 = vpack.c.bf16 %v4712_v49, %v4707_v35  ;;  %v4256_v22 = vpack.c.bf16 %v4709_v54, %v4704_v3  ;;  %v4229_v2 = vpack.c.bf16 %v1985_v24, %v1984_v18 }
 0x23f   :  { %v1737_v43 = vadd.f32 %v1736_v40, %v6121_v29  ;;  %v1738_v46 = vpop.f32.mrb[158].mxu0  ;;  %v4713_v6 = vpop.trf.xlu0 }
 0x240   :  { %v2002_v50 = vmax.f32 %v1735_v37, 0.0  ;;  %v1739_v51 = vadd.f32 %v1738_v46, %v6116_v34  ;;  %v1740_v53 = vpop.f32.mrb[159].mxu0  ;;  %4564 = vst [vmem:[#allocation10 + $0x60] sm:$0xff] %v4296_v59   ;;  %4556 = vst [vmem:[#allocation10 + $0x20] sm:$0xff] %v4256_v22   ;;  %v4717_v34 = vunpack.i.h.bf16 %v4713_v6  ;;  %v4714_v15 = vunpack.i.l.bf16 %v4713_v6 }
 0x241   :  { %v2003_v38 = vmax.f32 %v1737_v43, 0.0  ;;  %v1741_v58 = vadd.f32 %v1740_v53, %v6121_v29  ;;  %4994 = vxpose.xlu1.b32.cont [14/16] %v4993_v5, 128  ;;  %v1841_v29 = vpop.f32.mrb[154].mxu1  ;;  %3580 = vst [vmem:[#allocation11 + $0x60] sm:$0xff] %v4229_v2 }
 0x242   :  { %v2012_v1 = vmax.f32 %v1739_v51, 0.0  ;;  %v1842_v16 = vadd.f32 %v1841_v29, %v6138_v56  ;;  %v1843_v39 = vpop.f32.mrb[155].mxu1 }
 0x243   :  { %v4995_v20 = vpack.i.bf16 %v2003_v38, %v2002_v50  ;;  %v2013_v17 = vmax.f32 %v1741_v58, 0.0  ;;  %v4718_v60 = vpop.trf.xlu0  ;;  %v1844_v19 = vadd.f32 %v1843_v39, %v6141_v31  ;;  %v1847_v25 = vpop.f32.mrb[156].mxu1 }
 0x244   :  { %v4722_v61 = vunpack.i.h.bf16 %v4718_v60  ;;  %v4719_v23 = vunpack.i.l.bf16 %v4718_v60  ;;  %v1994_v47 = vmax.f32 %v1842_v16, 0.0  ;;  %v1849_v52 = vpop.f32.mrb[157].mxu1  ;;  %v6198_v63 = vadd.f32 %v1847_v25, %v6138_v56 }
 0x245   :  { %v4997_v21 = vpack.i.bf16 %v2013_v17, %v2012_v1  ;;  %4996 = vxpose.xlu1.b32.cont [15/16] %v4995_v20, 128  ;;  %v1995_v26 = vmax.f32 %v1844_v19, 0.0  ;;  %v6201_v44 = vadd.f32 %v1849_v52, %v6141_v31  ;;  %v1851_v9 = vpop.f32.mrb[158].mxu1 }
 0x246   :  { %v4261_v27 = vpack.c.bf16 %v4719_v23, %v4714_v15  ;;  %v4301_v28 = vpack.c.bf16 %v4722_v61, %v4717_v34  ;;  %v6204_v12 = vadd.f32 %v1851_v9, %v6138_v56  ;;  %v1853_v35 = vpop.f32.mrb[159].mxu1 }
 0x247   :  { %v4723_v30 = vpop.trf.xlu0  ;;  %v4230_v32 = vpack.c.bf16 %v1995_v26, %v1994_v47 }
 0x248   :  { %4557 = vst [vmem:[#allocation10 + $0x28] sm:$0xff] %v4261_v27   ;;  %4565 = vst [vmem:[#allocation10 + $0x68] sm:$0xff] %v4301_v28   ;;  %v4727_v48 = vunpack.i.h.bf16 %v4723_v30  ;;  %v4724_v5 = vunpack.i.l.bf16 %v4723_v30 }
 0x249   :  { %4998 = vxpose.xlu1.b32.end [16/16] %v4997_v21, 128  ;;  %3581 = vst [vmem:[#allocation11 + $0x68] sm:$0xff] %v4230_v32 }
 0x24b   :  { %v4728_v55 = vpop.trf.xlu0 }
 0x24c   :  { %v4732_v36 = vunpack.i.h.bf16 %v4728_v55  ;;  %v4729_v57 = vunpack.i.l.bf16 %v4728_v55 }
 0x24d   :  { %v4775_v33 = vpop.trf.xlu1 }
 0x24e   :  { %5211 = shalt.err (!%p5208_p6)
}
 0x24f   :  { %s5212_s22 = scalar_lea.hbm %s6271_s7, 2048 }
 0x250   :  { %p5213_p7 = scmp.ne.s32.totalorder %s6271_s7, %s5212_s22  ;;  %p5216_p8 = scmp.lt.u32.totalorder %s5212_s22, %s6271_s7 }
 0x252   :  { %p5218_p9 = pnand %p5216_p8, %p5213_p7 }
 0x254   :  { %5221 = shalt.err (!%p5218_p9)
}
 0x255   :  { %s5305_s27 = smov 128   ;;  %s5306_s28 = smov 8   ;;  %v2004_v56 = vmax.f32 %v6198_v63, 0.0  ;;  %v2005_v37 = vmax.f32 %v6201_v44, 0.0  ;;  %v1854_v40 = vadd.f32 %v1853_v35, %v6141_v31  ;;  %v4779_v3 = vunpack.i.h.bf16 %v4775_v33  ;;  %v4780_v42 = vpop.trf.xlu1  ;;  %v4733_v50 = vpop.trf.xlu0 }
 0x256   :  { %3607 = dma.vmem_to_hbm [thread:$0]  %s3602_s18, 2048, %s6271_s7, [#allocation9], %s5305_s27, %s5305_s27, %s5306_s28   ;;  %v4776_v41 = vunpack.i.l.bf16 %v4775_v33  ;;  %v4266_v13 = vpack.c.bf16 %v4729_v57, %v4724_v5  ;;  %v4306_v43 = vpack.c.bf16 %v4732_v36, %v4727_v48  ;;  %v4784_v46 = vunpack.i.h.bf16 %v4780_v42 }
 0x257   :  { %v4781_v49 = vunpack.i.l.bf16 %v4780_v42  ;;  %s5222_s11 = scalar_lea.vmem %s3590_s19, 8192  ;;  %p5227_p11 = scmp.lt.s32.totalorder %s3590_s19, %s3590_s19 }
 0x258   :  { %p5223_p10 = scmp.ne.s32.totalorder %s3590_s19, %s5222_s11  ;;  %p5228_p12 = scmp.lt.s32.totalorder %s5222_s11, %s5222_s11 }
 0x25a   :  { %p5229_p13 = por %p5228_p12, %p5227_p11 }
 0x25c   :  { %p5230_p0 = pnand %p5229_p13, %p5223_p10 }
 0x25e   :  { %5233 = shalt.err (!%p5230_p0)
}
 0x25f   :  { %s5234_s4 = scalar_lea.hbm %s6270_s6, 8192 }
 0x260   :  { %p5235_p1 = scmp.ne.s32.totalorder %s6270_s6, %s5234_s4  ;;  %p5238_p2 = scmp.lt.u32.totalorder %s5234_s4, %s6270_s6 }
 0x262   :  { %p5240_p3 = pnand %p5238_p2, %p5235_p1 }
 0x264   :  { %5243 = shalt.err (!%p5240_p3)
}
 0x265   :  { %s5307_s16 = smov 512   ;;  %s5308_s17 = smov 32   ;;  %4558 = vst [vmem:[#allocation10 + $0x30] sm:$0xff] %v4266_v13   ;;  %4566 = vst [vmem:[#allocation10 + $0x70] sm:$0xff] %v4306_v43   ;;  %v2014_v31 = vmax.f32 %v6204_v12, 0.0  ;;  %v4316_v51 = vpack.c.bf16 %v4781_v49, %v4776_v41  ;;  %v4356_v53 = vpack.c.bf16 %v4784_v46, %v4779_v3  ;;  %v4231_v54 = vpack.c.bf16 %v2005_v37, %v2004_v56  ;;  %v4785_v38 = vpop.trf.xlu1  ;;  %v4738_v62 = vpop.trf.xlu0 }
 0x266   :  { %3595 = dma.vmem_to_hbm [thread:$0]  %s3590_s19, 8192, %s6270_s6, [#allocation4], %s5307_s16, %s5307_s16, %s5308_s17   ;;  %v2015_v4 = vmax.f32 %v1854_v40, 0.0  ;;  %v4737_v58 = vunpack.i.h.bf16 %v4733_v50  ;;  %v4734_v59 = vunpack.i.l.bf16 %v4733_v50  ;;  %v4742_v1 = vunpack.i.h.bf16 %v4738_v62 }
 0x267   :  { %4568 = vst [vmem:[#allocation10 + $0x80] sm:$0xff] %v4316_v51   ;;  %4576 = vst [vmem:[#allocation10 + $0xc0] sm:$0xff] %v4356_v53   ;;  %s5309_s3 = smov [#allocation11]   ;;  %v4739_v22 = vunpack.i.l.bf16 %v4738_v62  ;;  %v4789_v7 = vunpack.i.h.bf16 %v4785_v38  ;;  %v4786_v0 = vunpack.i.l.bf16 %v4785_v38 }
 0x268   :  { %3582 = vst [vmem:[#allocation11 + $0x70] sm:$0xff] %v4231_v54  ;;  %s3625_s18 = sshll.u32 %s5309_s3, 4  ;;  %v4232_v6 = vpack.c.bf16 %v2015_v4, %v2014_v31  ;;  %v4311_v17 = vpack.c.bf16 %v4742_v1, %v4737_v58  ;;  %s3626_s18 = int_to_ptr.vmem [resolvable:$true] %s3625_s18 }
 0x269   :  { %v4790_v8 = vpop.trf.xlu1  ;;  %v4271_v20 = vpack.c.bf16 %v4739_v22, %v4734_v59  ;;  %v4887_v11 = vpop.trf.xlu0  ;;  %s5244_s6 = scalar_lea.vmem %s3626_s18, 2048  ;;  %p5249_p5 = scmp.lt.s32.totalorder %s3626_s18, %s3626_s18 }
 0x26a   :  { %v4794_v10 = vunpack.i.h.bf16 %v4790_v8  ;;  %v4791_v34 = vunpack.i.l.bf16 %v4790_v8  ;;  %3583 = vst [vmem:[#allocation11 + $0x78] sm:$0xff] %v4232_v6  ;;  %4567 = vst [vmem:[#allocation10 + $0x78] sm:$0xff] %v4311_v17   ;;  %p5245_p4 = scmp.ne.s32.totalorder %s3626_s18, %s5244_s6  ;;  %p5250_p6 = scmp.lt.s32.totalorder %s5244_s6, %s5244_s6 }
 0x26b   :  { %4559 = vst [vmem:[#allocation10 + $0x38] sm:$0xff] %v4271_v20  }
 0x26c   :  { %p5251_p7 = por %p5250_p6, %p5249_p5 }
 0x26e   :  { %p5252_p8 = pnand %p5251_p7, %p5245_p4 }
 0x270   :  { %5255 = shalt.err (!%p5252_p8)
}
 0x271   :  { %s5256_s20 = scalar_lea.hbm %s6273_s9, 2048 }
 0x272   :  { %p5257_p9 = scmp.ne.s32.totalorder %s6273_s9, %s5256_s20  ;;  %p5260_p10 = scmp.lt.u32.totalorder %s5256_s20, %s6273_s9 }
 0x274   :  { %p5262_p11 = pnand %p5260_p10, %p5257_p9 }
 0x276   :  { %5265 = shalt.err (!%p5262_p11)
}
 0x277   :  { %3631 = dma.vmem_to_hbm [thread:$0]  %s3626_s18, 2048, %s6273_s9, [#allocation12], %s5305_s27, %s5305_s27, %s5306_s28   ;;  %v4321_v14 = vpack.c.bf16 %v4791_v34, %v4786_v0  ;;  %v4361_v29 = vpack.c.bf16 %v4794_v10, %v4789_v7  ;;  %v4795_v21 = vpop.trf.xlu1  ;;  %v4891_v15 = vunpack.i.h.bf16 %v4887_v11  ;;  %v4888_v45 = vunpack.i.l.bf16 %v4887_v11  ;;  %v4892_v16 = vpop.trf.xlu0 }
 0x278   :  { %v4896_v39 = vunpack.i.h.bf16 %v4892_v16  ;;  %v4893_v60 = vunpack.i.l.bf16 %v4892_v16  ;;  %v4799_v18 = vunpack.i.h.bf16 %v4795_v21  ;;  %v4796_v19 = vunpack.i.l.bf16 %v4795_v21  ;;  %s5310_s9 = smov [#allocation10]  }
 0x279   :  { %4569 = vst [vmem:[#allocation10 + $0x88] sm:$0xff] %v4321_v14   ;;  %4577 = vst [vmem:[#allocation10 + $0xc8] sm:$0xff] %v4361_v29   ;;  %s3613_s26 = sshll.u32 %s5310_s9, 4  ;;  %s3614_s26 = int_to_ptr.vmem [resolvable:$true] %s3613_s26 }
 0x27a   :  { %v4396_v23 = vpack.c.bf16 %v4893_v60, %v4888_v45  ;;  %v4436_v24 = vpack.c.bf16 %v4896_v39, %v4891_v15  ;;  %s5266_s27 = scalar_lea.vmem %s3614_s26, 8192  ;;  %p5271_p13 = scmp.lt.s32.totalorder %s3614_s26, %s3614_s26 }
 0x27b   :  { %v4800_v61 = vpop.trf.xlu1  ;;  %v4897_v27 = vpop.trf.xlu0  ;;  %p5267_p12 = scmp.ne.s32.totalorder %s3614_s26, %s5266_s27  ;;  %p5272_p0 = scmp.lt.s32.totalorder %s5266_s27, %s5266_s27 }
 0x27c   :  { %v4804_v47 = vunpack.i.h.bf16 %v4800_v61  ;;  %v4801_v26 = vunpack.i.l.bf16 %v4800_v61  ;;  %4584 = vst [vmem:[#allocation10 + $0x100] sm:$0xff] %v4396_v23   ;;  %4592 = vst [vmem:[#allocation10 + $0x140] sm:$0xff] %v4436_v24   ;;  %v4901_v32 = vunpack.i.h.bf16 %v4897_v27  ;;  %v4898_v25 = vunpack.i.l.bf16 %v4897_v27 }
 0x27d   :  { %p5273_p1 = por %p5272_p0, %p5271_p13 }
 0x27e   :  { %v4326_v28 = vpack.c.bf16 %v4801_v26, %v4796_v19  ;;  %v4366_v30 = vpack.c.bf16 %v4804_v47, %v4799_v18 }
 0x27f   :  { %v4805_v2 = vpop.trf.xlu1  ;;  %v4902_v52 = vpop.trf.xlu0  ;;  %p5274_p2 = pnand %p5273_p1, %p5267_p12 }
 0x280   :  { %4570 = vst [vmem:[#allocation10 + $0x90] sm:$0xff] %v4326_v28   ;;  %4578 = vst [vmem:[#allocation10 + $0xd0] sm:$0xff] %v4366_v30   ;;  %v4906_v63 = vunpack.i.h.bf16 %v4902_v52  ;;  %v4903_v44 = vunpack.i.l.bf16 %v4902_v52  ;;  %v4809_v9 = vunpack.i.h.bf16 %v4805_v2  ;;  %v4806_v33 = vunpack.i.l.bf16 %v4805_v2 }
 0x282   :  { %v4401_v5 = vpack.c.bf16 %v4903_v44, %v4898_v25  ;;  %v4441_v12 = vpack.c.bf16 %v4906_v63, %v4901_v32 }
 0x283   :  { %v4810_v48 = vpop.trf.xlu1  ;;  %v4907_v36 = vpop.trf.xlu0 }
 0x284   :  { %v4814_v35 = vunpack.i.h.bf16 %v4810_v48  ;;  %v4811_v55 = vunpack.i.l.bf16 %v4810_v48  ;;  %4585 = vst [vmem:[#allocation10 + $0x108] sm:$0xff] %v4401_v5   ;;  %4593 = vst [vmem:[#allocation10 + $0x148] sm:$0xff] %v4441_v12   ;;  %v4911_v40 = vunpack.i.h.bf16 %v4907_v36  ;;  %v4908_v3 = vunpack.i.l.bf16 %v4907_v36 }
 0x286   :  { %v4331_v57 = vpack.c.bf16 %v4811_v55, %v4806_v33  ;;  %v4371_v56 = vpack.c.bf16 %v4814_v35, %v4809_v9 }
 0x287   :  { %v4815_v37 = vpop.trf.xlu1  ;;  %v4912_v41 = vpop.trf.xlu0 }
 0x288   :  { %4571 = vst [vmem:[#allocation10 + $0x98] sm:$0xff] %v4331_v57   ;;  %4579 = vst [vmem:[#allocation10 + $0xd8] sm:$0xff] %v4371_v56   ;;  %v4916_v42 = vunpack.i.h.bf16 %v4912_v41  ;;  %v4913_v13 = vunpack.i.l.bf16 %v4912_v41  ;;  %v4819_v43 = vunpack.i.h.bf16 %v4815_v37  ;;  %v4816_v46 = vunpack.i.l.bf16 %v4815_v37 }
 0x28a   :  { %v4406_v50 = vpack.c.bf16 %v4913_v13, %v4908_v3  ;;  %v4446_v31 = vpack.c.bf16 %v4916_v42, %v4911_v40 }
 0x28b   :  { %v4820_v49 = vpop.trf.xlu1  ;;  %v4917_v54 = vpop.trf.xlu0 }
 0x28c   :  { %v4824_v51 = vunpack.i.h.bf16 %v4820_v49  ;;  %v4821_v53 = vunpack.i.l.bf16 %v4820_v49  ;;  %4586 = vst [vmem:[#allocation10 + $0x110] sm:$0xff] %v4406_v50   ;;  %4594 = vst [vmem:[#allocation10 + $0x150] sm:$0xff] %v4446_v31   ;;  %v4921_v59 = vunpack.i.h.bf16 %v4917_v54  ;;  %v4918_v62 = vunpack.i.l.bf16 %v4917_v54 }
 0x28e   :  { %v4336_v4 = vpack.c.bf16 %v4821_v53, %v4816_v46  ;;  %v4376_v38 = vpack.c.bf16 %v4824_v51, %v4819_v43 }
 0x28f   :  { %v4825_v58 = vpop.trf.xlu1  ;;  %v4922_v1 = vpop.trf.xlu0 }
 0x290   :  { %4572 = vst [vmem:[#allocation10 + $0xa0] sm:$0xff] %v4336_v4   ;;  %4580 = vst [vmem:[#allocation10 + $0xe0] sm:$0xff] %v4376_v38   ;;  %v4926_v22 = vunpack.i.h.bf16 %v4922_v1  ;;  %v4923_v6 = vunpack.i.l.bf16 %v4922_v1  ;;  %v4829_v7 = vunpack.i.h.bf16 %v4825_v58  ;;  %v4826_v0 = vunpack.i.l.bf16 %v4825_v58 }
 0x292   :  { %v4411_v20 = vpack.c.bf16 %v4923_v6, %v4918_v62  ;;  %v4451_v17 = vpack.c.bf16 %v4926_v22, %v4921_v59 }
 0x293   :  { %v4830_v8 = vpop.trf.xlu1  ;;  %v4927_v11 = vpop.trf.xlu0 }
 0x294   :  { %v4834_v10 = vunpack.i.h.bf16 %v4830_v8  ;;  %v4831_v34 = vunpack.i.l.bf16 %v4830_v8  ;;  %4587 = vst [vmem:[#allocation10 + $0x118] sm:$0xff] %v4411_v20   ;;  %4595 = vst [vmem:[#allocation10 + $0x158] sm:$0xff] %v4451_v17   ;;  %v4931_v15 = vunpack.i.h.bf16 %v4927_v11  ;;  %v4928_v45 = vunpack.i.l.bf16 %v4927_v11 }
 0x296   :  { %v4341_v14 = vpack.c.bf16 %v4831_v34, %v4826_v0  ;;  %v4381_v29 = vpack.c.bf16 %v4834_v10, %v4829_v7 }
 0x297   :  { %v4835_v21 = vpop.trf.xlu1  ;;  %v4932_v16 = vpop.trf.xlu0 }
 0x298   :  { %4573 = vst [vmem:[#allocation10 + $0xa8] sm:$0xff] %v4341_v14   ;;  %4581 = vst [vmem:[#allocation10 + $0xe8] sm:$0xff] %v4381_v29   ;;  %v4936_v39 = vunpack.i.h.bf16 %v4932_v16  ;;  %v4933_v60 = vunpack.i.l.bf16 %v4932_v16  ;;  %v4839_v18 = vunpack.i.h.bf16 %v4835_v21  ;;  %v4836_v19 = vunpack.i.l.bf16 %v4835_v21 }
 0x29a   :  { %v4416_v23 = vpack.c.bf16 %v4933_v60, %v4928_v45  ;;  %v4456_v24 = vpack.c.bf16 %v4936_v39, %v4931_v15 }
 0x29b   :  { %v4840_v61 = vpop.trf.xlu1  ;;  %v4937_v27 = vpop.trf.xlu0 }
 0x29c   :  { %v4844_v47 = vunpack.i.h.bf16 %v4840_v61  ;;  %v4841_v26 = vunpack.i.l.bf16 %v4840_v61  ;;  %4588 = vst [vmem:[#allocation10 + $0x120] sm:$0xff] %v4416_v23   ;;  %4596 = vst [vmem:[#allocation10 + $0x160] sm:$0xff] %v4456_v24   ;;  %v4941_v32 = vunpack.i.h.bf16 %v4937_v27  ;;  %v4938_v25 = vunpack.i.l.bf16 %v4937_v27 }
 0x29e   :  { %v4346_v28 = vpack.c.bf16 %v4841_v26, %v4836_v19  ;;  %v4386_v30 = vpack.c.bf16 %v4844_v47, %v4839_v18 }
 0x29f   :  { %v4845_v2 = vpop.trf.xlu1  ;;  %v4942_v52 = vpop.trf.xlu0 }
 0x2a0   :  { %4574 = vst [vmem:[#allocation10 + $0xb0] sm:$0xff] %v4346_v28   ;;  %4582 = vst [vmem:[#allocation10 + $0xf0] sm:$0xff] %v4386_v30   ;;  %v4946_v63 = vunpack.i.h.bf16 %v4942_v52  ;;  %v4943_v44 = vunpack.i.l.bf16 %v4942_v52  ;;  %v4849_v9 = vunpack.i.h.bf16 %v4845_v2  ;;  %v4846_v33 = vunpack.i.l.bf16 %v4845_v2 }
 0x2a2   :  { %v4421_v5 = vpack.c.bf16 %v4943_v44, %v4938_v25  ;;  %v4461_v12 = vpack.c.bf16 %v4946_v63, %v4941_v32 }
 0x2a3   :  { %v4850_v48 = vpop.trf.xlu1  ;;  %v4947_v36 = vpop.trf.xlu0 }
 0x2a4   :  { %v4854_v35 = vunpack.i.h.bf16 %v4850_v48  ;;  %v4851_v55 = vunpack.i.l.bf16 %v4850_v48  ;;  %4589 = vst [vmem:[#allocation10 + $0x128] sm:$0xff] %v4421_v5   ;;  %4597 = vst [vmem:[#allocation10 + $0x168] sm:$0xff] %v4461_v12   ;;  %v4951_v40 = vunpack.i.h.bf16 %v4947_v36  ;;  %v4948_v3 = vunpack.i.l.bf16 %v4947_v36 }
 0x2a6   :  { %v4351_v57 = vpack.c.bf16 %v4851_v55, %v4846_v33  ;;  %v4391_v56 = vpack.c.bf16 %v4854_v35, %v4849_v9 }
 0x2a7   :  { %v4999_v37 = vpop.trf.xlu1  ;;  %v4952_v41 = vpop.trf.xlu0 }
 0x2a8   :  { %4575 = vst [vmem:[#allocation10 + $0xb8] sm:$0xff] %v4351_v57   ;;  %4583 = vst [vmem:[#allocation10 + $0xf8] sm:$0xff] %v4391_v56   ;;  %v4956_v42 = vunpack.i.h.bf16 %v4952_v41  ;;  %v4953_v13 = vunpack.i.l.bf16 %v4952_v41  ;;  %v5003_v43 = vunpack.i.h.bf16 %v4999_v37  ;;  %v5000_v46 = vunpack.i.l.bf16 %v4999_v37 }
 0x2aa   :  { %v4426_v50 = vpack.c.bf16 %v4953_v13, %v4948_v3  ;;  %v4466_v31 = vpack.c.bf16 %v4956_v42, %v4951_v40 }
 0x2ab   :  { %v5004_v49 = vpop.trf.xlu1  ;;  %v4957_v54 = vpop.trf.xlu0 }
 0x2ac   :  { %v5008_v51 = vunpack.i.h.bf16 %v5004_v49  ;;  %v5005_v53 = vunpack.i.l.bf16 %v5004_v49  ;;  %4590 = vst [vmem:[#allocation10 + $0x130] sm:$0xff] %v4426_v50   ;;  %4598 = vst [vmem:[#allocation10 + $0x170] sm:$0xff] %v4466_v31   ;;  %v4961_v59 = vunpack.i.h.bf16 %v4957_v54  ;;  %v4958_v62 = vunpack.i.l.bf16 %v4957_v54 }
 0x2ae   :  { %v4476_v4 = vpack.c.bf16 %v5005_v53, %v5000_v46  ;;  %v4516_v38 = vpack.c.bf16 %v5008_v51, %v5003_v43 }
 0x2af   :  { %v5009_v58 = vpop.trf.xlu1  ;;  %v4962_v1 = vpop.trf.xlu0 }
 0x2b0   :  { %4600 = vst [vmem:[#allocation10 + $0x180] sm:$0xff] %v4476_v4   ;;  %4608 = vst [vmem:[#allocation10 + $0x1c0] sm:$0xff] %v4516_v38   ;;  %v4966_v22 = vunpack.i.h.bf16 %v4962_v1  ;;  %v4963_v6 = vunpack.i.l.bf16 %v4962_v1  ;;  %v5013_v7 = vunpack.i.h.bf16 %v5009_v58  ;;  %v5010_v0 = vunpack.i.l.bf16 %v5009_v58 }
 0x2b2   :  { %v4431_v20 = vpack.c.bf16 %v4963_v6, %v4958_v62  ;;  %v4471_v17 = vpack.c.bf16 %v4966_v22, %v4961_v59 }
 0x2b3   :  { %v5014_v8 = vpop.trf.xlu1 }
 0x2b4   :  { %v5018_v10 = vunpack.i.h.bf16 %v5014_v8  ;;  %v5015_v34 = vunpack.i.l.bf16 %v5014_v8  ;;  %4591 = vst [vmem:[#allocation10 + $0x138] sm:$0xff] %v4431_v20   ;;  %4599 = vst [vmem:[#allocation10 + $0x178] sm:$0xff] %v4471_v17  }
 0x2b6   :  { %v4481_v11 = vpack.c.bf16 %v5015_v34, %v5010_v0  ;;  %v4521_v14 = vpack.c.bf16 %v5018_v10, %v5013_v7 }
 0x2b7   :  { %v5019_v29 = vpop.trf.xlu1 }
 0x2b8   :  { %4601 = vst [vmem:[#allocation10 + $0x188] sm:$0xff] %v4481_v11   ;;  %4609 = vst [vmem:[#allocation10 + $0x1c8] sm:$0xff] %v4521_v14   ;;  %v5023_v21 = vunpack.i.h.bf16 %v5019_v29  ;;  %v5020_v15 = vunpack.i.l.bf16 %v5019_v29 }
 0x2bb   :  { %v5024_v45 = vpop.trf.xlu1 }
 0x2bc   :  { %v5028_v16 = vunpack.i.h.bf16 %v5024_v45  ;;  %v5025_v39 = vunpack.i.l.bf16 %v5024_v45 }
 0x2be   :  { %v4486_v60 = vpack.c.bf16 %v5025_v39, %v5020_v15  ;;  %v4526_v18 = vpack.c.bf16 %v5028_v16, %v5023_v21 }
 0x2bf   :  { %v5029_v19 = vpop.trf.xlu1 }
 0x2c0   :  { %4602 = vst [vmem:[#allocation10 + $0x190] sm:$0xff] %v4486_v60   ;;  %4610 = vst [vmem:[#allocation10 + $0x1d0] sm:$0xff] %v4526_v18   ;;  %v5033_v61 = vunpack.i.h.bf16 %v5029_v19  ;;  %v5030_v23 = vunpack.i.l.bf16 %v5029_v19 }
 0x2c3   :  { %v5034_v24 = vpop.trf.xlu1 }
 0x2c4   :  { %v5038_v47 = vunpack.i.h.bf16 %v5034_v24  ;;  %v5035_v26 = vunpack.i.l.bf16 %v5034_v24 }
 0x2c6   :  { %v4491_v27 = vpack.c.bf16 %v5035_v26, %v5030_v23  ;;  %v4531_v28 = vpack.c.bf16 %v5038_v47, %v5033_v61 }
 0x2c7   :  { %v5039_v30 = vpop.trf.xlu1 }
 0x2c8   :  { %4603 = vst [vmem:[#allocation10 + $0x198] sm:$0xff] %v4491_v27   ;;  %4611 = vst [vmem:[#allocation10 + $0x1d8] sm:$0xff] %v4531_v28   ;;  %v5043_v2 = vunpack.i.h.bf16 %v5039_v30  ;;  %v5040_v32 = vunpack.i.l.bf16 %v5039_v30 }
 0x2cb   :  { %v5044_v25 = vpop.trf.xlu1 }
 0x2cc   :  { %v5048_v52 = vunpack.i.h.bf16 %v5044_v25  ;;  %v5045_v63 = vunpack.i.l.bf16 %v5044_v25 }
 0x2ce   :  { %v4496_v44 = vpack.c.bf16 %v5045_v63, %v5040_v32  ;;  %v4536_v9 = vpack.c.bf16 %v5048_v52, %v5043_v2 }
 0x2cf   :  { %v5049_v33 = vpop.trf.xlu1 }
 0x2d0   :  { %4604 = vst [vmem:[#allocation10 + $0x1a0] sm:$0xff] %v4496_v44   ;;  %4612 = vst [vmem:[#allocation10 + $0x1e0] sm:$0xff] %v4536_v9   ;;  %v5053_v48 = vunpack.i.h.bf16 %v5049_v33  ;;  %v5050_v5 = vunpack.i.l.bf16 %v5049_v33 }
 0x2d3   :  { %v5054_v12 = vpop.trf.xlu1 }
 0x2d4   :  { %v5058_v35 = vunpack.i.h.bf16 %v5054_v12  ;;  %v5055_v55 = vunpack.i.l.bf16 %v5054_v12 }
 0x2d6   :  { %v4501_v36 = vpack.c.bf16 %v5055_v55, %v5050_v5  ;;  %v4541_v57 = vpack.c.bf16 %v5058_v35, %v5053_v48 }
 0x2d7   :  { %v5059_v56 = vpop.trf.xlu1 }
 0x2d8   :  { %4605 = vst [vmem:[#allocation10 + $0x1a8] sm:$0xff] %v4501_v36   ;;  %4613 = vst [vmem:[#allocation10 + $0x1e8] sm:$0xff] %v4541_v57   ;;  %v5063_v37 = vunpack.i.h.bf16 %v5059_v56  ;;  %v5060_v40 = vunpack.i.l.bf16 %v5059_v56 }
 0x2db   :  { %v5064_v3 = vpop.trf.xlu1 }
 0x2dc   :  { %v5068_v41 = vunpack.i.h.bf16 %v5064_v3  ;;  %v5065_v42 = vunpack.i.l.bf16 %v5064_v3 }
 0x2de   :  { %v4506_v13 = vpack.c.bf16 %v5065_v42, %v5060_v40  ;;  %v4546_v43 = vpack.c.bf16 %v5068_v41, %v5063_v37 }
 0x2df   :  { %v5069_v46 = vpop.trf.xlu1 }
 0x2e0   :  { %4606 = vst [vmem:[#allocation10 + $0x1b0] sm:$0xff] %v4506_v13   ;;  %4614 = vst [vmem:[#allocation10 + $0x1f0] sm:$0xff] %v4546_v43   ;;  %v5073_v49 = vunpack.i.h.bf16 %v5069_v46  ;;  %v5070_v50 = vunpack.i.l.bf16 %v5069_v46 }
 0x2e3   :  { %v5074_v31 = vpop.trf.xlu1 }
 0x2e4   :  { %v5078_v51 = vunpack.i.h.bf16 %v5074_v31  ;;  %v5075_v53 = vunpack.i.l.bf16 %v5074_v31 }
 0x2e6   :  { %v4511_v54 = vpack.c.bf16 %v5075_v53, %v5070_v50  ;;  %v4551_v4 = vpack.c.bf16 %v5078_v51, %v5073_v49 }
 0x2e8   :  { %4607 = vst [vmem:[#allocation10 + $0x1b8] sm:$0xff] %v4511_v54   ;;  %4615 = vst [vmem:[#allocation10 + $0x1f8] sm:$0xff] %v4551_v4  }
 0x2e9   :  { %5277 = shalt.err (!%p5274_p2)
}
 0x2ea   :  { %s5278_s30 = scalar_lea.hbm %s6272_s8, 8192 }
 0x2eb   :  { %p5279_p3 = scmp.ne.s32.totalorder %s6272_s8, %s5278_s30  ;;  %p5282_p4 = scmp.lt.u32.totalorder %s5278_s30, %s6272_s8 }
 0x2ed   :  { %p5284_p5 = pnand %p5282_p4, %p5279_p3 }
 0x2ef   :  { %5287 = shalt.err (!%p5284_p5)
}
 0x2f0   :  { %s5311_s10 = smov 64   ;;  %s5312_s13 = smov 4  }
 0x2f1   :  { %3619 = dma.vmem_to_hbm [thread:$0]  %s3614_s26, 8192, %s6272_s8, [#allocation9], %s5311_s10, %s5311_s10, %s5312_s13  }
 0x2f2   :  { %5292 = dma.done.wait [#allocation4], 8192  }
 0x2f3   :  { %5293 = vsyncadd [#allocation4], 4294959104 }
 0x2f4   :  { %5294 = dma.done.wait [#allocation9], 10240  }
 0x2f5   :  { %5295 = vsyncadd [#allocation9], 4294957056 }
 0x2f6   :  { %5296 = dma.done.wait [#allocation12], 2048  }
 0x2f7   :  { %5297 = vsyncadd [#allocation12], 4294965248 }
 0x2f8   :  { %3644 = vsyncpa [#allocation3], 1 }
 0x2f9   :  { %3645 = vsyncpa [#allocation6], 1 }
 0x2fa   :  { %3646 = vsyncpa [#allocation4], 1 }
 0x2fb   :  { %3647 = vsyncpa [#allocation9], 1 }
 0x2fc   :  { %3648 = vsyncpa [#allocation12], 1 }

// kernel: tpu_custom_call.1
= control target key start
LH: loop header
LB: loop body
LE: loop exit
PB: predicated region body
PF: predicated region fallthrough
CT: control target
= control target key end

     0   :  { %15 = vsyncpa [#allocation3], 0  ;;  %s6264_s0 = inlined_call_operand.vmem [shape: bf16[128,32], index: 0, kind: input, shape index: {}]   ;;  %s6265_s1 = inlined_call_operand.vmem [shape: bf16[128,32], index: 1, kind: input, shape index: {}]   ;;  %s6266_s2 = inlined_call_operand.vmem [shape: bf16[32,1280], index: 2, kind: input, shape index: {}]   ;;  %s6267_s3 = inlined_call_operand.vmem [shape: f32[1,1280], index: 3, kind: input, shape index: {}]   ;;  %s6268_s4 = inlined_call_operand.hbm [shape: bf16[32,1280], index: 4, kind: input, shape index: {}]   ;;  %s6269_s5 = inlined_call_operand.hbm [shape: f32[1,1280], index: 5, kind: input, shape index: {}]   ;;  %s6270_s6 = inlined_call_operand.hbm [shape: bf16[128,1024], index: 6, kind: output, shape index: {0}]   ;;  %s6271_s7 = inlined_call_operand.hbm [shape: bf16[128,256], index: 7, kind: output, shape index: {1}]   ;;  %s6272_s8 = inlined_call_operand.hbm [shape: bf16[1024,128], index: 8, kind: output, shape index: {2}]   ;;  %s6273_s9 = inlined_call_operand.hbm [shape: bf16[128,256], index: 9, kind: output, shape index: {3}]  }
   0x1   :  { %16 = vsyncpa [#allocation6], 0 }
   0x2   :  { %17 = vsyncpa [#allocation4], 0 }
   0x3   :  { %18 = vsyncpa [#allocation9], 0 }
   0x4   :  { %19 = vsyncpa [#allocation12], 0  ;;  %s5298_s30 = smov [#allocation2]   ;;  %s5156_s13 = scalar_lea.hbm %s6268_s4, 2560 }
   0x5   :  { %s33_s10 = sshll.u32 %s5298_s30, 4  ;;  %p5157_p0 = scmp.ne.s32.totalorder %s6268_s4, %s5156_s13  ;;  %s34_s10 = int_to_ptr.vmem [resolvable:$true] %s33_s10 }
   0x6   :  { %p5160_p1 = scmp.lt.u32.totalorder %s5156_s13, %s6268_s4 }
   0x8   :  { %p5162_p2 = pnand %p5160_p1, %p5157_p0 }
   0xa   :  { %5165 = shalt.err (!%p5162_p2)
}
   0xb   :  { %s5166_s18 = scalar_lea.vmem %s34_s10, 2560  ;;  %p5171_p4 = scmp.lt.s32.totalorder %s34_s10, %s34_s10 }
   0xc   :  { %p5167_p3 = scmp.ne.s32.totalorder %s34_s10, %s5166_s18  ;;  %p5172_p5 = scmp.lt.s32.totalorder %s5166_s18, %s5166_s18 }
   0xe   :  { %p5173_p6 = por %p5172_p5, %p5171_p4 }
  0x10   :  { %p5174_p7 = pnand %p5173_p6, %p5167_p3 }
  0x12   :  { %5177 = shalt.err (!%p5174_p7)
}
  0x13   :  { %s5299_s19 = smov 640   ;;  %s5300_s20 = smov 40  }
  0x14   :  { %39 = dma.hbm_to_vmem [thread:$0]  %s6268_s4, 2560, %s34_s10, [#allocation3], %s5299_s19, %s5299_s19, %s5300_s20  }
  0x15   :  { %s5301_s23 = smov [#allocation5]   ;;  %s5178_s27 = scalar_lea.hbm %s6269_s5, 160 }
  0x16   :  { %s46_s24 = sshll.u32 %s5301_s23, 4  ;;  %p5179_p8 = scmp.ne.s32.totalorder %s6269_s5, %s5178_s27  ;;  %s47_s24 = int_to_ptr.vmem [resolvable:$true] %s46_s24 }
  0x17   :  { %p5182_p9 = scmp.lt.u32.totalorder %s5178_s27, %s6269_s5 }
  0x19   :  { %p5184_p10 = pnand %p5182_p9, %p5179_p8 }
  0x1b   :  { %5187 = shalt.err (!%p5184_p10)
}
  0x1c   :  { %s5188_s12 = scalar_lea.vmem %s47_s24, 160  ;;  %p5193_p12 = scmp.lt.s32.totalorder %s47_s24, %s47_s24 }
  0x1d   :  { %p5189_p11 = scmp.ne.s32.totalorder %s47_s24, %s5188_s12  ;;  %p5194_p13 = scmp.lt.s32.totalorder %s5188_s12, %s5188_s12 }
  0x1f   :  { %p5195_p0 = por %p5194_p13, %p5193_p12 }
  0x21   :  { %p5196_p1 = pnand %p5195_p0, %p5189_p11 }
  0x23   :  { %5199 = shalt.err (!%p5196_p1)
}
  0x24   :  { %49 = dma.hbm_to_vmem [thread:$0]  %s6269_s5, 160, %s47_s24, [#allocation6]  }
  0x25   :  { %5288 = dma.done.wait [#allocation3], 2560  }
  0x26   :  { %5289 = vsyncadd [#allocation3], 4294964736 }
  0x27   :  { %5290 = dma.done.wait [#allocation6], 160  }
  0x28   :  { %5291 = vsyncadd [#allocation6], 4294967136  ;;  %v5302_v0 = vmov 0   ;;  %v5079_v1 = vld [vmem:[%s6266_s2 + $0x4] ss:$40 sps:$4 sm:$0xff]   ;;  %vm287_vm0 = vcmask 261120   ;;  %v97_v53 = vlaneseq }
  0x29   :  { %344 = vmatprep.mubr.bf16.mxu0 %v5302_v0  ;;  %457 = vmatprep.mubr.bf16.mxu1 %v5302_v0  ;;  %v5081_v2 = vld [vmem:[%s6266_s2] ss:$40 sps:$4 sm:$0xff]   ;;  %v5082_v3 = vld [vmem:[%s6266_s2 + $0x54] ss:$40 sps:$4 sm:$0xff]   ;;  %v5084_v4 = vld [vmem:[%s6266_s2 + $0x50] ss:$40 sps:$4 sm:$0xff]  }
  0x2a   :  { %312 = vmatprep.subr.bf16.mxu0 %v5079_v1  ;;  %v5088_v5 = vld [vmem:[%s6266_s2 + $0x14] ss:$40 sps:$4 sm:$0xff]   ;;  %v5407_v6 = vld [vmem:[%s6264_s0] sm:$0xff]   ;;  %v5086_v7 = vld [vmem:[%s6266_s2 + $0x10] ss:$40 sps:$4 sm:$0xff]   ;;  %v5678_v54 = vshrl.u32 %v97_v53, 7 }
  0x2b   :  { %313 = vmatpush1.bf16.msra.mxu0 %v5081_v2  ;;  %v5095_v8 = vld [vmem:[%s6266_s2 + $0x64] ss:$40 sps:$4 sm:$0xff]   ;;  %v5093_v9 = vld [vmem:[%s6266_s2 + $0x60] ss:$40 sps:$4 sm:$0xff]   ;;  %v5456_v19 = vld [vmem:[%s6264_s0 + $0x10] sm:$0xff]  }
  0x2c   :  { %314 = vmatprep.subr.bf16.mxu0 %v5082_v3  ;;  %v5098_v10 = vld [vmem:[%s6266_s2 + $0xc] ss:$40 sps:$4 sm:$0xff]   ;;  %v5100_v11 = vld [vmem:[%s6266_s2 + $0x8] ss:$40 sps:$4 sm:$0xff]   ;;  %v5102_v13 = vld [vmem:[%s6266_s2 + $0x5c] ss:$40 sps:$4 sm:$0xff]  }
  0x2d   :  { %v5430_v12 = vld [vmem:[%s6264_s0 + $0x8] sm:$0xff]   ;;  %425 = vmatprep.subr.bf16.mxu1 %v5098_v10  ;;  %v5104_v14 = vld [vmem:[%s6266_s2 + $0x58] ss:$40 sps:$4 sm:$0xff]   ;;  %v5107_v15 = vld [vmem:[%s6266_s2 + $0x1c] ss:$40 sps:$4 sm:$0xff]   ;;  %v5682_v55 = vsub.s32 0, %v5678_v54 }
  0x2e   :  { %426 = vmatpush1.bf16.msra.mxu1 %v5100_v11  ;;  %v5110_v16 = vld [vmem:[%s6266_s2 + $0x24] ss:$40 sps:$4 sm:$0xff]   ;;  %v5105_v17 = vld [vmem:[%s6266_s2 + $0x18] ss:$40 sps:$4 sm:$0xff]   ;;  %v5111_v20 = vld [vmem:[%s6266_s2 + $0x68] ss:$40 sps:$4 sm:$0xff]  }
  0x2f   :  { %315 = vmatpush1.bf16.msra.mxu0 %v5084_v4  ;;  %427 = vmatprep.subr.bf16.mxu1 %v5102_v13  ;;  %v5113_v18 = vld [vmem:[%s6266_s2 + $0x6c] ss:$40 sps:$4 sm:$0xff]   ;;  %v5470_v22 = vld [vmem:[%s6264_s0 + $0x18] sm:$0xff]   ;;  %v5481_v23 = vld [vmem:[%s6264_s0 + $0x20] sm:$0xff]   ;;  %v5690_v57 = vsub.s32 1, %v5678_v54  ;;  %v111_v13 = vsub.s32 3, %v5678_v54 }
  0x30   :  { %538 = vmatprep.subr.bf16.mxu0 %v5088_v5  ;;  %v5119_v21 = vld [vmem:[#allocation2 + $0x4] ss:$40 sps:$4 sm:$0xff]   ;;  %v5503_v25 = vld [vmem:[%s6264_s0 + $0x30] sm:$0xff]   ;;  %v5514_v26 = vld [vmem:[%s6264_s0 + $0x38] sm:$0xff]  }
  0x31   :  { %v5492_v24 = vld [vmem:[%s6264_s0 + $0x28] sm:$0xff]   ;;  %v5116_v28 = vld [vmem:[%s6266_s2 + $0x74] ss:$40 sps:$4 sm:$0xff]   ;;  %v5114_v29 = vld [vmem:[%s6266_s2 + $0x70] ss:$40 sps:$4 sm:$0xff]   ;;  %s5304_s0 = smov [#allocation7]  }
  0x32   :  { %3677 = vmatmul.mubr.msk.bf16.vlgmr.msra.gmra.mrb[0].mxu0 %vm287_vm0, %v5407_v6  ;;  %428 = vmatpush1.bf16.msra.mxu1 %v5104_v14  ;;  %v5108_v27 = vld [vmem:[%s6266_s2 + $0x20] ss:$40 sps:$4 sm:$0xff]   ;;  %v5122_v30 = vld [vmem:[#allocation2 + $0xc] ss:$40 sps:$4 sm:$0xff]   ;;  %v5123_v33 = vld [vmem:[#allocation2 + $0x50] ss:$40 sps:$4 sm:$0xff]  }
  0x33   :  { %539 = vmatpush1.bf16.msra.mxu0 %v5086_v7  ;;  %354 = vmatprep.mubr.bf16.mxu0 %v5302_v0  ;;  %v5117_v31 = vld [vmem:[#allocation2] ss:$40 sps:$4 sm:$0xff]   ;;  %v5125_v32 = vld [vmem:[#allocation2 + $0x54] ss:$40 sps:$4 sm:$0xff]   ;;  %v5130_v40 = vld [vmem:[#allocation2 + $0x10] ss:$40 sps:$4 sm:$0xff]  }
  0x34   :  { %540 = vmatprep.subr.bf16.mxu0 %v5095_v8  ;;  %651 = vmatprep.subr.bf16.mxu1 %v5107_v15  ;;  %v5132_v34 = vld [vmem:[#allocation2 + $0x14] ss:$40 sps:$4 sm:$0xff]   ;;  %v5120_v35 = vld [vmem:[#allocation2 + $0x8] ss:$40 sps:$4 sm:$0xff]   ;;  %v5126_v37 = vld [vmem:[#allocation2 + $0x58] ss:$40 sps:$4 sm:$0xff]  }
  0x35   :  { %3685 = vmatmul.mubr.msk.bf16.vlgmr.msra.gmra.mrb[0].mxu1 %vm287_vm0, %v5407_v6  ;;  %v5128_v36 = vld [vmem:[#allocation2 + $0x5c] ss:$40 sps:$4 sm:$0xff]   ;;  %v5140_v42 = vld [vmem:[#allocation2 + $0x60] ss:$40 sps:$4 sm:$0xff]   ;;  %v5616_v44 = vld [vmem:[%s6265_s1 + $0x10] sm:$0xff]   ;;  %s3589_s19 = sshll.u32 %s5304_s0, 4  ;;  %s3590_s19 = int_to_ptr.vmem [resolvable:$true] %s3589_s19 }
  0x36   :  { %652 = vmatpush1.bf16.msra.mxu1 %v5105_v17  ;;  %467 = vmatprep.mubr.bf16.mxu1 %v5302_v0  ;;  %v5135_v38 = vld [vmem:[#allocation2 + $0x1c] ss:$40 sps:$4 sm:$0xff]   ;;  %v5605_v43 = vld [vmem:[%s6265_s1 + $0x8] sm:$0xff]   ;;  %v5660_v48 = vld [vmem:[%s6265_s1 + $0x30] sm:$0xff]  }
  0x37   :  { %541 = vmatpush1.bf16.msra.mxu0 %v5093_v9  ;;  %653 = vmatprep.subr.bf16.mxu1 %v5113_v18  ;;  %v5594_v39 = vld [vmem:[%s6265_s1] sm:$0xff]   ;;  %v5627_v45 = vld [vmem:[%s6265_s1 + $0x18] sm:$0xff]   ;;  %v5649_v47 = vld [vmem:[%s6265_s1 + $0x28] sm:$0xff]  }
  0x38   :  { %764 = vmatprep.subr.bf16.mxu0 %v5110_v16  ;;  %v5142_v41 = vld [vmem:[#allocation2 + $0x64] ss:$40 sps:$4 sm:$0xff]   ;;  %v5133_v49 = vld [vmem:[#allocation2 + $0x18] ss:$40 sps:$4 sm:$0xff]   ;;  %v5143_v51 = vld [vmem:[#allocation2 + $0x68] ss:$40 sps:$4 sm:$0xff]  }
  0x39   :  { %v5638_v46 = vld [vmem:[%s6265_s1 + $0x20] sm:$0xff]   ;;  %v5145_v50 = vld [vmem:[#allocation2 + $0x6c] ss:$40 sps:$4 sm:$0xff]   ;;  %v5671_v52 = vld [vmem:[%s6265_s1 + $0x38] sm:$0xff]  }
  0x3a   :  { %3678 = vmatmul.mubr.msk.bf16.gmra.mrb[4].mxu0 %vm287_vm0, %v5430_v12  ;;  %654 = vmatpush1.bf16.msra.mxu1 %v5111_v20  ;;  %v5687_v56 = vld [vmem:[%s6267_s3] sm:$0xff] }
  0x3b   :  { %364 = vmatprep.mubr.bf16.mxu0 %v5302_v0  ;;  %1291 = vmatprep.subr.bf16.mxu1 %v5119_v21  ;;  %v5149_v58 = vld [vmem:[#allocation2 + $0x20] ss:$40 sps:$4 sm:$0xff]   ;;  %v5151_v59 = vld [vmem:[#allocation2 + $0x24] ss:$40 sps:$4 sm:$0xff]   ;;  %v5699_v60 = vrot.slane %v5687_v56, %v5682_v55  ;;  %v5703_v61 = vrot.slane %v5687_v56, %v5690_v57 }
  0x3d   :  { %3686 = vmatmul.mubr.msk.bf16.gmra.mrb[4].mxu1 %vm287_vm0, %v5430_v12 }
  0x3e   :  { %477 = vmatprep.mubr.bf16.mxu1 %v5302_v0 }
  0x42   :  { %3679 = vmatmul.mubr.msk.bf16.gmra.mrb[8].mxu0 %vm287_vm0, %v5456_v19 }
  0x43   :  { %374 = vmatprep.mubr.bf16.mxu0 %v5302_v0 }
  0x45   :  { %3687 = vmatmul.mubr.msk.bf16.gmra.mrb[8].mxu1 %vm287_vm0, %v5456_v19 }
  0x46   :  { %487 = vmatprep.mubr.bf16.mxu1 %v5302_v0 }
  0x4a   :  { %3680 = vmatmul.mubr.msk.bf16.gmra.mrb[12].mxu0 %vm287_vm0, %v5470_v22 }
  0x4b   :  { %384 = vmatprep.mubr.bf16.mxu0 %v5302_v0 }
  0x4d   :  { %3688 = vmatmul.mubr.msk.bf16.gmra.mrb[12].mxu1 %vm287_vm0, %v5470_v22 }
  0x4e   :  { %497 = vmatprep.mubr.bf16.mxu1 %v5302_v0 }
  0x52   :  { %3681 = vmatmul.mubr.msk.bf16.gmra.mrb[16].mxu0 %vm287_vm0, %v5481_v23 }
  0x53   :  { %394 = vmatprep.mubr.bf16.mxu0 %v5302_v0 }
  0x55   :  { %3689 = vmatmul.mubr.msk.bf16.gmra.mrb[16].mxu1 %vm287_vm0, %v5481_v23 }
  0x56   :  { %507 = vmatprep.mubr.bf16.mxu1 %v5302_v0 }
  0x5a   :  { %3682 = vmatmul.mubr.msk.bf16.gmra.mrb[20].mxu0 %vm287_vm0, %v5492_v24 }
  0x5b   :  { %404 = vmatprep.mubr.bf16.mxu0 %v5302_v0 }
  0x5d   :  { %3690 = vmatmul.mubr.msk.bf16.gmra.mrb[20].mxu1 %vm287_vm0, %v5492_v24 }
  0x5e   :  { %517 = vmatprep.mubr.bf16.mxu1 %v5302_v0 }
  0x62   :  { %3683 = vmatmul.mubr.msk.bf16.gmra.mrb[24].mxu0 %vm287_vm0, %v5503_v25 }
  0x63   :  { %414 = vmatprep.mubr.bf16.mxu0 %v5302_v0 }
  0x65   :  { %3691 = vmatmul.mubr.msk.bf16.gmra.mrb[24].mxu1 %vm287_vm0, %v5503_v25 }
  0x66   :  { %527 = vmatprep.mubr.bf16.mxu1 %v5302_v0 }
  0x6a   :  { %3684 = vmatmul.mubr.msk.bf16.gmra.mrb[28].mxu0 %vm287_vm0, %v5514_v26 }
  0x6b   :  { %570 = vmatprep.mubr.bf16.mxu0 %v5302_v0 }
  0x6d   :  { %3692 = vmatmul.mubr.msk.bf16.gmra.mrb[28].mxu1 %vm287_vm0, %v5514_v26 }
  0x6e   :  { %683 = vmatprep.mubr.bf16.mxu1 %v5302_v0 }
  0x72   :  { %3693 = vmatmul.mubr.msk.bf16.vlgmr.msra.gmra.mrb[32].mxu0 %vm287_vm0, %v5407_v6 }
  0x73   :  { %765 = vmatpush1.bf16.msra.mxu0 %v5108_v27  ;;  %580 = vmatprep.mubr.bf16.mxu0 %v5302_v0 }
  0x74   :  { %766 = vmatprep.subr.bf16.mxu0 %v5116_v28 }
  0x75   :  { %3701 = vmatmul.mubr.msk.bf16.vlgmr.msra.gmra.mrb[32].mxu1 %vm287_vm0, %v5407_v6 }
  0x76   :  { %1292 = vmatpush1.bf16.msra.mxu1 %v5117_v31  ;;  %693 = vmatprep.mubr.bf16.mxu1 %v5302_v0 }
  0x77   :  { %767 = vmatpush1.bf16.msra.mxu0 %v5114_v29  ;;  %1293 = vmatprep.subr.bf16.mxu1 %v5125_v32 }
  0x78   :  { %1404 = vmatprep.subr.bf16.mxu0 %v5122_v30 }
  0x7a   :  { %3694 = vmatmul.mubr.msk.bf16.gmra.mrb[36].mxu0 %vm287_vm0, %v5430_v12  ;;  %1294 = vmatpush1.bf16.msra.mxu1 %v5123_v33 }
  0x7b   :  { %590 = vmatprep.mubr.bf16.mxu0 %v5302_v0  ;;  %1517 = vmatprep.subr.bf16.mxu1 %v5132_v34 }
  0x7d   :  { %3702 = vmatmul.mubr.msk.bf16.gmra.mrb[36].mxu1 %vm287_vm0, %v5430_v12 }
  0x7e   :  { %703 = vmatprep.mubr.bf16.mxu1 %v5302_v0 }
  0x82   :  { %3695 = vmatmul.mubr.msk.bf16.gmra.mrb[40].mxu0 %vm287_vm0, %v5456_v19 }
  0x83   :  { %600 = vmatprep.mubr.bf16.mxu0 %v5302_v0 }
  0x85   :  { %3703 = vmatmul.mubr.msk.bf16.gmra.mrb[40].mxu1 %vm287_vm0, %v5456_v19 }
  0x86   :  { %713 = vmatprep.mubr.bf16.mxu1 %v5302_v0 }
  0x8a   :  { %3696 = vmatmul.mubr.msk.bf16.gmra.mrb[44].mxu0 %vm287_vm0, %v5470_v22 }
  0x8b   :  { %610 = vmatprep.mubr.bf16.mxu0 %v5302_v0 }
  0x8d   :  { %3704 = vmatmul.mubr.msk.bf16.gmra.mrb[44].mxu1 %vm287_vm0, %v5470_v22 }
  0x8e   :  { %723 = vmatprep.mubr.bf16.mxu1 %v5302_v0 }
  0x92   :  { %3697 = vmatmul.mubr.msk.bf16.gmra.mrb[48].mxu0 %vm287_vm0, %v5481_v23 }
  0x93   :  { %620 = vmatprep.mubr.bf16.mxu0 %v5302_v0 }
  0x95   :  { %3705 = vmatmul.mubr.msk.bf16.gmra.mrb[48].mxu1 %vm287_vm0, %v5481_v23 }
  0x96   :  { %733 = vmatprep.mubr.bf16.mxu1 %v5302_v0 }
  0x9a   :  { %3698 = vmatmul.mubr.msk.bf16.gmra.mrb[52].mxu0 %vm287_vm0, %v5492_v24 }
  0x9b   :  { %630 = vmatprep.mubr.bf16.mxu0 %v5302_v0 }
  0x9d   :  { %3706 = vmatmul.mubr.msk.bf16.gmra.mrb[52].mxu1 %vm287_vm0, %v5492_v24 }
  0x9e   :  { %743 = vmatprep.mubr.bf16.mxu1 %v5302_v0 }
  0xa2   :  { %3699 = vmatmul.mubr.msk.bf16.gmra.mrb[56].mxu0 %vm287_vm0, %v5503_v25 }
  0xa3   :  { %640 = vmatprep.mubr.bf16.mxu0 %v5302_v0 }
  0xa5   :  { %3707 = vmatmul.mubr.msk.bf16.gmra.mrb[56].mxu1 %vm287_vm0, %v5503_v25 }
  0xa6   :  { %753 = vmatprep.mubr.bf16.mxu1 %v5302_v0 }
  0xaa   :  { %3700 = vmatmul.mubr.msk.bf16.gmra.mrb[60].mxu0 %vm287_vm0, %v5514_v26 }
  0xab   :  { %796 = vmatprep.mubr.bf16.mxu0 %v5302_v0 }
  0xad   :  { %3708 = vmatmul.mubr.msk.bf16.gmra.mrb[60].mxu1 %vm287_vm0, %v5514_v26 }
  0xae   :  { %1323 = vmatprep.mubr.bf16.mxu1 %v5302_v0 }
  0xb2   :  { %3709 = vmatmul.mubr.msk.bf16.vlgmr.msra.gmra.mrb[64].mxu0 %vm287_vm0, %v5407_v6 }
  0xb3   :  { %1405 = vmatpush1.bf16.msra.mxu0 %v5120_v35  ;;  %806 = vmatprep.mubr.bf16.mxu0 %v5302_v0 }
  0xb4   :  { %1406 = vmatprep.subr.bf16.mxu0 %v5128_v36 }
  0xb5   :  { %3745 = vmatmul.mubr.msk.bf16.vlgmr.msra.gmra.mrb[64].mxu1 %vm287_vm0, %v5594_v39 }
  0xb6   :  { %1518 = vmatpush1.bf16.msra.mxu1 %v5130_v40  ;;  %1333 = vmatprep.mubr.bf16.mxu1 %v5302_v0 }
  0xb7   :  { %1407 = vmatpush1.bf16.msra.mxu0 %v5126_v37  ;;  %1519 = vmatprep.subr.bf16.mxu1 %v5142_v41 }
  0xb8   :  { %1630 = vmatprep.subr.bf16.mxu0 %v5135_v38 }
  0xba   :  { %3710 = vmatmul.mubr.msk.bf16.gmra.mrb[68].mxu0 %vm287_vm0, %v5430_v12  ;;  %1520 = vmatpush1.bf16.msra.mxu1 %v5140_v42  ;;  %v107_v12 = vsub.s32 2, %v5678_v54 }
  0xbb   :  { %816 = vmatprep.mubr.bf16.mxu0 %v5302_v0  ;;  %1743 = vmatprep.subr.bf16.mxu1 %v5151_v59 }
  0xbc   :  { %v5725_v20 = vrot.slane %v5687_v56, %v107_v12 }
  0xbd   :  { %3746 = vmatmul.mubr.msk.bf16.gmra.mrb[68].mxu1 %vm287_vm0, %v5605_v43 }
  0xbe   :  { %1343 = vmatprep.mubr.bf16.mxu1 %v5302_v0 }
  0xc2   :  { %3711 = vmatmul.mubr.msk.bf16.gmra.mrb[72].mxu0 %vm287_vm0, %v5456_v19 }
  0xc3   :  { %826 = vmatprep.mubr.bf16.mxu0 %v5302_v0 }
  0xc5   :  { %3747 = vmatmul.mubr.msk.bf16.gmra.mrb[72].mxu1 %vm287_vm0, %v5616_v44 }
  0xc6   :  { %1353 = vmatprep.mubr.bf16.mxu1 %v5302_v0 }
  0xca   :  { %3712 = vmatmul.mubr.msk.bf16.gmra.mrb[76].mxu0 %vm287_vm0, %v5470_v22 }
  0xcb   :  { %836 = vmatprep.mubr.bf16.mxu0 %v5302_v0 }
  0xcd   :  { %3748 = vmatmul.mubr.msk.bf16.gmra.mrb[76].mxu1 %vm287_vm0, %v5627_v45 }
  0xce   :  { %1363 = vmatprep.mubr.bf16.mxu1 %v5302_v0 }
  0xd2   :  { %3713 = vmatmul.mubr.msk.bf16.gmra.mrb[80].mxu0 %vm287_vm0, %v5481_v23 }
  0xd3   :  { %846 = vmatprep.mubr.bf16.mxu0 %v5302_v0 }
  0xd5   :  { %3749 = vmatmul.mubr.msk.bf16.gmra.mrb[80].mxu1 %vm287_vm0, %v5638_v46 }
  0xd6   :  { %1373 = vmatprep.mubr.bf16.mxu1 %v5302_v0 }
  0xda   :  { %3714 = vmatmul.mubr.msk.bf16.gmra.mrb[84].mxu0 %vm287_vm0, %v5492_v24  ;;  %v5731_v24 = vrot.slane %v5687_v56, %v111_v13 }
  0xdb   :  { %856 = vmatprep.mubr.bf16.mxu0 %v5302_v0 }
  0xdd   :  { %3750 = vmatmul.mubr.msk.bf16.gmra.mrb[84].mxu1 %vm287_vm0, %v5649_v47 }
  0xde   :  { %1383 = vmatprep.mubr.bf16.mxu1 %v5302_v0 }
  0xe2   :  { %3715 = vmatmul.mubr.msk.bf16.gmra.mrb[88].mxu0 %vm287_vm0, %v5503_v25 }
  0xe3   :  { %866 = vmatprep.mubr.bf16.mxu0 %v5302_v0 }
  0xe5   :  { %3751 = vmatmul.mubr.msk.bf16.gmra.mrb[88].mxu1 %vm287_vm0, %v5660_v48 }
  0xe6   :  { %1393 = vmatprep.mubr.bf16.mxu1 %v5302_v0 }
  0xea   :  { %3716 = vmatmul.mubr.msk.bf16.gmra.mrb[92].mxu0 %vm287_vm0, %v5514_v26 }
  0xeb   :  { %1436 = vmatprep.mubr.bf16.mxu0 %v5302_v0 }
  0xed   :  { %3752 = vmatmul.mubr.msk.bf16.gmra.mrb[92].mxu1 %vm287_vm0, %v5671_v52 }
  0xee   :  { %1549 = vmatprep.mubr.bf16.mxu1 %v5302_v0 }
  0xf2   :  { %3753 = vmatmul.mubr.msk.bf16.vlgmr.msra.gmra.mrb[96].mxu0 %vm287_vm0, %v5594_v39 }
  0xf3   :  { %1631 = vmatpush1.bf16.msra.mxu0 %v5133_v49  ;;  %1446 = vmatprep.mubr.bf16.mxu0 %v5302_v0 }
  0xf4   :  { %1632 = vmatprep.subr.bf16.mxu0 %v5145_v50 }
  0xf5   :  { %3761 = vmatmul.mubr.msk.bf16.vlgmr.msra.gmra.mrb[96].mxu1 %vm287_vm0, %v5594_v39 }
  0xf6   :  { %1559 = vmatprep.mubr.bf16.mxu1 %v5302_v0  ;;  %1744 = vmatpush1.bf16.msra.mxu1 %v5149_v58 }
  0xf7   :  { %1633 = vmatpush1.bf16.msra.mxu0 %v5143_v51 }
  0xfa   :  { %3754 = vmatmul.mubr.msk.bf16.gmra.mrb[100].mxu0 %vm287_vm0, %v5605_v43 }
  0xfb   :  { %1456 = vmatprep.mubr.bf16.mxu0 %v5302_v0 }
  0xfd   :  { %3762 = vmatmul.mubr.msk.bf16.gmra.mrb[100].mxu1 %vm287_vm0, %v5605_v43 }
  0xfe   :  { %1569 = vmatprep.mubr.bf16.mxu1 %v5302_v0 }
 0x102   :  { %3755 = vmatmul.mubr.msk.bf16.gmra.mrb[104].mxu0 %vm287_vm0, %v5616_v44 }
 0x103   :  { %1466 = vmatprep.mubr.bf16.mxu0 %v5302_v0 }
 0x105   :  { %v346_v62 = vpop.f32.mrb[0].mxu0  ;;  %3763 = vmatmul.mubr.msk.bf16.gmra.mrb[104].mxu1 %vm287_vm0, %v5616_v44 }
 0x106   :  { %v347_v63 = vadd.f32 %v346_v62, %v5699_v60  ;;  %v348_v1 = vpop.f32.mrb[1].mxu0  ;;  %1579 = vmatprep.mubr.bf16.mxu1 %v5302_v0 }
 0x107   :  { %v349_v2 = vadd.f32 %v348_v1, %v5703_v61  ;;  %v350_v3 = vpop.f32.mrb[2].mxu0 }
 0x108   :  { %v877_v4 = vmax.f32 %v347_v63, 0.0  ;;  %v351_v5 = vadd.f32 %v350_v3, %v5699_v60  ;;  %v352_v6 = vpop.f32.mrb[3].mxu0  ;;  %v459_v28 = vpop.f32.mrb[0].mxu1 }
 0x109   :  { %v878_v7 = vmax.f32 %v349_v2, 0.0  ;;  %v353_v8 = vadd.f32 %v352_v6, %v5703_v61  ;;  %v460_v31 = vadd.f32 %v459_v28, %v5725_v20  ;;  %v461_v32 = vpop.f32.mrb[1].mxu1 }
 0x10a   :  { %v887_v9 = vmax.f32 %v351_v5, 0.0  ;;  %3756 = vmatmul.mubr.msk.bf16.gmra.mrb[108].mxu0 %vm287_vm0, %v5627_v45  ;;  %v462_v33 = vadd.f32 %v461_v32, %v5731_v24  ;;  %v463_v34 = vpop.f32.mrb[2].mxu1 }
 0x10b   :  { %v4009_v10 = vpack.c.bf16 %v878_v7, %v877_v4  ;;  %v888_v11 = vmax.f32 %v353_v8, 0.0  ;;  %1476 = vmatprep.mubr.bf16.mxu0 %v5302_v0  ;;  %v879_v37 = vmax.f32 %v460_v31, 0.0  ;;  %v464_v38 = vadd.f32 %v463_v34, %v5725_v20  ;;  %v465_v40 = vpop.f32.mrb[3].mxu1  ;;  %v5154_v31 = vld [vmem:[#allocation2 + $0x74] ss:$40 sps:$4 sm:$0xff]  }
 0x10c   :  { %v880_v49 = vmax.f32 %v462_v33, 0.0  ;;  %v466_v50 = vadd.f32 %v465_v40, %v5731_v24  ;;  %1745 = vmatprep.subr.bf16.mxu1 %v5154_v31 }
 0x10d   :  { %2400 = vst [vmem:[#allocation7] sm:$0xff] %v4009_v10  ;;  %v4013_v14 = vpack.c.bf16 %v888_v11, %v887_v9  ;;  %v356_v15 = vpop.f32.mrb[4].mxu0  ;;  %v889_v58 = vmax.f32 %v464_v38, 0.0  ;;  %3764 = vmatmul.mubr.msk.bf16.gmra.mrb[108].mxu1 %vm287_vm0, %v5627_v45 }
 0x10e   :  { %v357_v16 = vadd.f32 %v356_v15, %v5699_v60  ;;  %v358_v17 = vpop.f32.mrb[5].mxu0  ;;  %v4010_v1 = vpack.c.bf16 %v880_v49, %v879_v37  ;;  %v890_v2 = vmax.f32 %v466_v50, 0.0  ;;  %1589 = vmatprep.mubr.bf16.mxu1 %v5302_v0 }
 0x10f   :  { %2404 = vst [vmem:[#allocation7 + $0x20] sm:$0xff] %v4013_v14  ;;  %v359_v18 = vadd.f32 %v358_v17, %v5703_v61  ;;  %v360_v19 = vpop.f32.mrb[6].mxu0 }
 0x110   :  { %v897_v21 = vmax.f32 %v357_v16, 0.0  ;;  %v361_v22 = vadd.f32 %v360_v19, %v5699_v60  ;;  %v362_v23 = vpop.f32.mrb[7].mxu0  ;;  %2401 = vst [vmem:[#allocation7 + $0x8] sm:$0xff] %v4010_v1  ;;  %v4014_v6 = vpack.c.bf16 %v890_v2, %v889_v58  ;;  %v469_v7 = vpop.f32.mrb[4].mxu1 }
 0x111   :  { %v898_v25 = vmax.f32 %v359_v18, 0.0  ;;  %v363_v26 = vadd.f32 %v362_v23, %v5703_v61  ;;  %v470_v10 = vadd.f32 %v469_v7, %v5725_v20  ;;  %v471_v11 = vpop.f32.mrb[5].mxu1 }
 0x112   :  { %v907_v27 = vmax.f32 %v361_v22, 0.0  ;;  %3757 = vmatmul.mubr.msk.bf16.gmra.mrb[112].mxu0 %vm287_vm0, %v5638_v46  ;;  %2405 = vst [vmem:[#allocation7 + $0x28] sm:$0xff] %v4014_v6  ;;  %v472_v14 = vadd.f32 %v471_v11, %v5731_v24  ;;  %v473_v15 = vpop.f32.mrb[6].mxu1 }
 0x113   :  { %v4017_v29 = vpack.c.bf16 %v898_v25, %v897_v21  ;;  %v908_v30 = vmax.f32 %v363_v26, 0.0  ;;  %1486 = vmatprep.mubr.bf16.mxu0 %v5302_v0  ;;  %v899_v18 = vmax.f32 %v470_v10, 0.0  ;;  %v474_v19 = vadd.f32 %v473_v15, %v5725_v20  ;;  %v475_v21 = vpop.f32.mrb[7].mxu1 }
 0x114   :  { %v900_v25 = vmax.f32 %v472_v14, 0.0  ;;  %v476_v26 = vadd.f32 %v475_v21, %v5731_v24 }
 0x115   :  { %2408 = vst [vmem:[#allocation7 + $0x40] sm:$0xff] %v4017_v29  ;;  %v4021_v35 = vpack.c.bf16 %v908_v30, %v907_v27  ;;  %v366_v36 = vpop.f32.mrb[8].mxu0  ;;  %v909_v29 = vmax.f32 %v474_v19, 0.0  ;;  %3765 = vmatmul.mubr.msk.bf16.gmra.mrb[112].mxu1 %vm287_vm0, %v5638_v46  ;;  %v5152_v30 = vld [vmem:[#allocation2 + $0x70] ss:$40 sps:$4 sm:$0xff]  }
 0x116   :  { %v367_v41 = vadd.f32 %v366_v36, %v5699_v60  ;;  %v368_v42 = vpop.f32.mrb[9].mxu0  ;;  %v910_v36 = vmax.f32 %v476_v26, 0.0  ;;  %1599 = vmatprep.mubr.bf16.mxu1 %v5302_v0  ;;  %1746 = vmatpush1.bf16.msra.mxu1 %v5152_v30 }
 0x117   :  { %2412 = vst [vmem:[#allocation7 + $0x60] sm:$0xff] %v4021_v35  ;;  %v369_v51 = vadd.f32 %v368_v42, %v5703_v61  ;;  %v370_v53 = vpop.f32.mrb[10].mxu0  ;;  %v4018_v35 = vpack.c.bf16 %v900_v25, %v899_v18 }
 0x118   :  { %v917_v59 = vmax.f32 %v367_v41, 0.0  ;;  %v371_v62 = vadd.f32 %v370_v53, %v5699_v60  ;;  %v372_v63 = vpop.f32.mrb[11].mxu0  ;;  %v4022_v41 = vpack.c.bf16 %v910_v36, %v909_v29  ;;  %v479_v42 = vpop.f32.mrb[8].mxu1 }
 0x119   :  { %v918_v3 = vmax.f32 %v369_v51, 0.0  ;;  %v373_v4 = vadd.f32 %v372_v63, %v5703_v61  ;;  %2409 = vst [vmem:[#allocation7 + $0x48] sm:$0xff] %v4018_v35  ;;  %v480_v51 = vadd.f32 %v479_v42, %v5725_v20  ;;  %v481_v53 = vpop.f32.mrb[9].mxu1 }
 0x11a   :  { %v927_v5 = vmax.f32 %v371_v62, 0.0  ;;  %3758 = vmatmul.mubr.msk.bf16.gmra.mrb[116].mxu0 %vm287_vm0, %v5649_v47  ;;  %2413 = vst [vmem:[#allocation7 + $0x68] sm:$0xff] %v4022_v41  ;;  %v482_v58 = vadd.f32 %v481_v53, %v5731_v24 }
 0x11b   :  { %v4025_v8 = vpack.c.bf16 %v918_v3, %v917_v59  ;;  %v928_v9 = vmax.f32 %v373_v4, 0.0  ;;  %1496 = vmatprep.mubr.bf16.mxu0 %v5302_v0  ;;  %v483_v59 = vpop.f32.mrb[10].mxu1  ;;  %v919_v1 = vmax.f32 %v480_v51, 0.0 }
 0x11c   :  { %v484_v2 = vadd.f32 %v483_v59, %v5725_v20  ;;  %v485_v3 = vpop.f32.mrb[11].mxu1  ;;  %v920_v6 = vmax.f32 %v482_v58, 0.0 }
 0x11d   :  { %2416 = vst [vmem:[#allocation7 + $0x80] sm:$0xff] %v4025_v8  ;;  %v4029_v16 = vpack.c.bf16 %v928_v9, %v927_v5  ;;  %v376_v17 = vpop.f32.mrb[12].mxu0  ;;  %v486_v7 = vadd.f32 %v485_v3, %v5731_v24  ;;  %3766 = vmatmul.mubr.msk.bf16.gmra.mrb[116].mxu1 %vm287_vm0, %v5649_v47 }
 0x11e   :  { %v377_v22 = vadd.f32 %v376_v17, %v5699_v60  ;;  %v378_v23 = vpop.f32.mrb[13].mxu0  ;;  %v929_v10 = vmax.f32 %v484_v2, 0.0  ;;  %1609 = vmatprep.mubr.bf16.mxu1 %v5302_v0 }
 0x11f   :  { %2420 = vst [vmem:[#allocation7 + $0xa0] sm:$0xff] %v4029_v16  ;;  %v379_v27 = vadd.f32 %v378_v23, %v5703_v61  ;;  %v380_v28 = vpop.f32.mrb[14].mxu0  ;;  %v4026_v16 = vpack.c.bf16 %v920_v6, %v919_v1  ;;  %v930_v17 = vmax.f32 %v486_v7, 0.0 }
 0x120   :  { %v937_v32 = vmax.f32 %v377_v22, 0.0  ;;  %v381_v33 = vadd.f32 %v380_v28, %v5699_v60  ;;  %v382_v34 = vpop.f32.mrb[15].mxu0  ;;  %v489_v23 = vpop.f32.mrb[12].mxu1 }
 0x121   :  { %v938_v37 = vmax.f32 %v379_v27, 0.0  ;;  %v383_v38 = vadd.f32 %v382_v34, %v5703_v61  ;;  %2417 = vst [vmem:[#allocation7 + $0x88] sm:$0xff] %v4026_v16  ;;  %v4030_v22 = vpack.c.bf16 %v930_v17, %v929_v10  ;;  %v490_v27 = vadd.f32 %v489_v23, %v5725_v20  ;;  %v491_v28 = vpop.f32.mrb[13].mxu1 }
 0x122   :  { %v947_v40 = vmax.f32 %v381_v33, 0.0  ;;  %3759 = vmatmul.mubr.msk.bf16.gmra.mrb[120].mxu0 %vm287_vm0, %v5660_v48  ;;  %v492_v29 = vadd.f32 %v491_v28, %v5731_v24  ;;  %v493_v30 = vpop.f32.mrb[14].mxu1 }
 0x123   :  { %v4033_v49 = vpack.c.bf16 %v938_v37, %v937_v32  ;;  %v948_v50 = vmax.f32 %v383_v38, 0.0  ;;  %1506 = vmatprep.mubr.bf16.mxu0 %v5302_v0  ;;  %2421 = vst [vmem:[#allocation7 + $0xa8] sm:$0xff] %v4030_v22  ;;  %v939_v33 = vmax.f32 %v490_v27, 0.0  ;;  %v494_v34 = vadd.f32 %v493_v30, %v5725_v20  ;;  %v495_v35 = vpop.f32.mrb[15].mxu1 }
 0x124   :  { %v940_v38 = vmax.f32 %v492_v29, 0.0 }
 0x125   :  { %2424 = vst [vmem:[#allocation7 + $0xc0] sm:$0xff] %v4033_v49  ;;  %v4037_v62 = vpack.c.bf16 %v948_v50, %v947_v40  ;;  %v386_v63 = vpop.f32.mrb[16].mxu0  ;;  %v496_v40 = vadd.f32 %v495_v35, %v5731_v24  ;;  %v949_v49 = vmax.f32 %v494_v34, 0.0  ;;  %3767 = vmatmul.mubr.msk.bf16.gmra.mrb[120].mxu1 %vm287_vm0, %v5660_v48 }
 0x126   :  { %v387_v4 = vadd.f32 %v386_v63, %v5699_v60  ;;  %v388_v5 = vpop.f32.mrb[17].mxu0  ;;  %v4034_v58 = vpack.c.bf16 %v940_v38, %v939_v33  ;;  %1619 = vmatprep.mubr.bf16.mxu1 %v5302_v0 }
 0x127   :  { %2428 = vst [vmem:[#allocation7 + $0xe0] sm:$0xff] %v4037_v62  ;;  %v389_v8 = vadd.f32 %v388_v5, %v5703_v61  ;;  %v390_v9 = vpop.f32.mrb[18].mxu0  ;;  %v950_v59 = vmax.f32 %v496_v40, 0.0 }
 0x128   :  { %v957_v11 = vmax.f32 %v387_v4, 0.0  ;;  %v391_v14 = vadd.f32 %v390_v9, %v5699_v60  ;;  %v392_v15 = vpop.f32.mrb[19].mxu0  ;;  %2425 = vst [vmem:[#allocation7 + $0xc8] sm:$0xff] %v4034_v58  ;;  %v499_v3 = vpop.f32.mrb[16].mxu1 }
 0x129   :  { %v958_v18 = vmax.f32 %v389_v8, 0.0  ;;  %v393_v19 = vadd.f32 %v392_v15, %v5703_v61  ;;  %v4038_v2 = vpack.c.bf16 %v950_v59, %v949_v49  ;;  %v500_v6 = vadd.f32 %v499_v3, %v5725_v20  ;;  %v501_v7 = vpop.f32.mrb[17].mxu1 }
 0x12a   :  { %v967_v21 = vmax.f32 %v391_v14, 0.0  ;;  %3760 = vmatmul.mubr.msk.bf16.gmra.mrb[124].mxu0 %vm287_vm0, %v5671_v52  ;;  %v502_v8 = vadd.f32 %v501_v7, %v5731_v24  ;;  %v503_v9 = vpop.f32.mrb[18].mxu1 }
 0x12b   :  { %v4041_v25 = vpack.c.bf16 %v958_v18, %v957_v11  ;;  %v968_v26 = vmax.f32 %v393_v19, 0.0  ;;  %1662 = vmatprep.mubr.bf16.mxu0 %v5302_v0  ;;  %2429 = vst [vmem:[#allocation7 + $0xe8] sm:$0xff] %v4038_v2  ;;  %v959_v14 = vmax.f32 %v500_v6, 0.0  ;;  %v504_v15 = vadd.f32 %v503_v9, %v5725_v20  ;;  %v505_v16 = vpop.f32.mrb[19].mxu1 }
 0x12c   :  { %v960_v19 = vmax.f32 %v502_v8, 0.0 }
 0x12d   :  { %2432 = vst [vmem:[#allocation7 + $0x100] sm:$0xff] %v4041_v25  ;;  %v4045_v31 = vpack.c.bf16 %v968_v26, %v967_v21  ;;  %v396_v32 = vpop.f32.mrb[20].mxu0  ;;  %v506_v21 = vadd.f32 %v505_v16, %v5731_v24  ;;  %v969_v25 = vmax.f32 %v504_v15, 0.0  ;;  %3768 = vmatmul.mubr.msk.bf16.gmra.mrb[124].mxu1 %vm287_vm0, %v5671_v52 }
 0x12e   :  { %v397_v36 = vadd.f32 %v396_v32, %v5699_v60  ;;  %v398_v37 = vpop.f32.mrb[21].mxu0  ;;  %v4042_v29 = vpack.c.bf16 %v960_v19, %v959_v14  ;;  %1775 = vmatprep.mubr.bf16.mxu1 %v5302_v0 }
 0x12f   :  { %2436 = vst [vmem:[#allocation7 + $0x120] sm:$0xff] %v4045_v31  ;;  %v399_v41 = vadd.f32 %v398_v37, %v5703_v61  ;;  %v400_v42 = vpop.f32.mrb[22].mxu0  ;;  %v970_v30 = vmax.f32 %v506_v21, 0.0 }
 0x130   :  { %v977_v50 = vmax.f32 %v397_v36, 0.0  ;;  %v401_v51 = vadd.f32 %v400_v42, %v5699_v60  ;;  %v402_v53 = vpop.f32.mrb[23].mxu0  ;;  %2433 = vst [vmem:[#allocation7 + $0x108] sm:$0xff] %v4042_v29  ;;  %v509_v35 = vpop.f32.mrb[20].mxu1 }
 0x131   :  { %v978_v62 = vmax.f32 %v399_v41, 0.0  ;;  %v403_v63 = vadd.f32 %v402_v53, %v5703_v61  ;;  %v4046_v34 = vpack.c.bf16 %v970_v30, %v969_v25  ;;  %v510_v38 = vadd.f32 %v509_v35, %v5725_v20  ;;  %v511_v40 = vpop.f32.mrb[21].mxu1 }
 0x132   :  { %v987_v1 = vmax.f32 %v401_v51, 0.0  ;;  %3769 = vmatmul.mubr.msk.bf16.vlgmr.msra.gmra.mrb[128].mxu0 %vm287_vm0, %v5594_v39  ;;  %v512_v41 = vadd.f32 %v511_v40, %v5731_v24  ;;  %v513_v42 = vpop.f32.mrb[22].mxu1 }
 0x133   :  { %v4049_v4 = vpack.c.bf16 %v978_v62, %v977_v50  ;;  %v988_v5 = vmax.f32 %v403_v63, 0.0  ;;  %1672 = vmatprep.mubr.bf16.mxu0 %v5302_v0  ;;  %2437 = vst [vmem:[#allocation7 + $0x128] sm:$0xff] %v4046_v34  ;;  %v979_v51 = vmax.f32 %v510_v38, 0.0  ;;  %v514_v53 = vadd.f32 %v513_v42, %v5725_v20  ;;  %v515_v58 = vpop.f32.mrb[23].mxu1 }
 0x134   :  { %v115_v63 = vsub.s32 4, %v5678_v54  ;;  %v516_v2 = vadd.f32 %v515_v58, %v5731_v24 }
 0x135   :  { %2440 = vst [vmem:[#allocation7 + $0x140] sm:$0xff] %v4049_v4  ;;  %v4053_v10 = vpack.c.bf16 %v988_v5, %v987_v1  ;;  %v406_v11 = vpop.f32.mrb[24].mxu0  ;;  %v980_v1 = vmax.f32 %v512_v41, 0.0  ;;  %v119_v5 = vsub.s32 5, %v5678_v54  ;;  %v989_v6 = vmax.f32 %v514_v53, 0.0  ;;  %3777 = vmatmul.mubr.msk.bf16.vlgmr.msra.gmra.mrb[128].mxu1 %vm287_vm0, %v5594_v39 }
 0x136   :  { %v407_v17 = vadd.f32 %v406_v11, %v5699_v60  ;;  %v408_v18 = vpop.f32.mrb[25].mxu0  ;;  %v990_v11 = vmax.f32 %v516_v2, 0.0  ;;  %1785 = vmatprep.mubr.bf16.mxu1 %v5302_v0 }
 0x137   :  { %2444 = vst [vmem:[#allocation7 + $0x160] sm:$0xff] %v4053_v10  ;;  %v409_v22 = vadd.f32 %v408_v18, %v5703_v61  ;;  %v410_v23 = vpop.f32.mrb[26].mxu0  ;;  %v4050_v10 = vpack.c.bf16 %v980_v1, %v979_v51  ;;  %v5831_v21 = vrot.slane %v5687_v56, %v119_v5 }
 0x138   :  { %v997_v26 = vmax.f32 %v407_v17, 0.0  ;;  %v411_v27 = vadd.f32 %v410_v23, %v5699_v60  ;;  %v412_v28 = vpop.f32.mrb[27].mxu0  ;;  %v5826_v17 = vrot.slane %v5687_v56, %v115_v63  ;;  %v4054_v39 = vpack.c.bf16 %v990_v11, %v989_v6 }
 0x139   :  { %v998_v31 = vmax.f32 %v409_v22, 0.0  ;;  %v413_v32 = vadd.f32 %v412_v28, %v5703_v61  ;;  %2441 = vst [vmem:[#allocation7 + $0x148] sm:$0xff] %v4050_v10 }
 0x13a   :  { %v1007_v33 = vmax.f32 %v411_v27, 0.0  ;;  %3770 = vmatmul.mubr.msk.bf16.gmra.mrb[132].mxu0 %vm287_vm0, %v5605_v43  ;;  %2445 = vst [vmem:[#allocation7 + $0x168] sm:$0xff] %v4054_v39 }
 0x13b   :  { %v4057_v36 = vpack.c.bf16 %v998_v31, %v997_v26  ;;  %v1008_v37 = vmax.f32 %v413_v32, 0.0  ;;  %1682 = vmatprep.mubr.bf16.mxu0 %v5302_v0 }
 0x13d   :  { %2448 = vst [vmem:[#allocation7 + $0x180] sm:$0xff] %v4057_v36  ;;  %v4061_v49 = vpack.c.bf16 %v1008_v37, %v1007_v33  ;;  %v416_v50 = vpop.f32.mrb[28].mxu0  ;;  %3778 = vmatmul.mubr.msk.bf16.gmra.mrb[132].mxu1 %vm287_vm0, %v5605_v43  ;;  %v123_v43 = vsub.s32 6, %v5678_v54 }
 0x13e   :  { %v417_v59 = vadd.f32 %v416_v50, %v5699_v60  ;;  %v418_v62 = vpop.f32.mrb[29].mxu0  ;;  %1795 = vmatprep.mubr.bf16.mxu1 %v5302_v0 }
 0x13f   :  { %2452 = vst [vmem:[#allocation7 + $0x1a0] sm:$0xff] %v4061_v49  ;;  %v419_v3 = vadd.f32 %v418_v62, %v5703_v61  ;;  %v420_v4 = vpop.f32.mrb[30].mxu0 }
 0x140   :  { %v1017_v7 = vmax.f32 %v417_v59, 0.0  ;;  %v421_v8 = vadd.f32 %v420_v4, %v5699_v60  ;;  %v422_v9 = vpop.f32.mrb[31].mxu0  ;;  %v519_v60 = vpop.f32.mrb[24].mxu1  ;;  %v127_v4 = vsub.s32 7, %v5678_v54 }
 0x141   :  { %v1018_v14 = vmax.f32 %v419_v3, 0.0  ;;  %v423_v15 = vadd.f32 %v422_v9, %v5703_v61  ;;  %v520_v61 = vadd.f32 %v519_v60, %v5725_v20  ;;  %v521_v22 = vpop.f32.mrb[25].mxu1 }
 0x142   :  { %v1027_v16 = vmax.f32 %v421_v8, 0.0  ;;  %3771 = vmatmul.mubr.msk.bf16.gmra.mrb[136].mxu0 %vm287_vm0, %v5616_v44  ;;  %v522_v23 = vadd.f32 %v521_v22, %v5731_v24  ;;  %v523_v25 = vpop.f32.mrb[26].mxu1  ;;  %v5859_v22 = vrot.slane %v5687_v56, %v123_v43 }
 0x143   :  { %v4065_v18 = vpack.c.bf16 %v1018_v14, %v1017_v7  ;;  %v1028_v19 = vmax.f32 %v423_v15, 0.0  ;;  %1692 = vmatprep.mubr.bf16.mxu0 %v5302_v0  ;;  %v999_v28 = vmax.f32 %v520_v61, 0.0  ;;  %v524_v29 = vadd.f32 %v523_v25, %v5725_v20  ;;  %v525_v30 = vpop.f32.mrb[27].mxu1 }
 0x144   :  { %v1000_v33 = vmax.f32 %v522_v23, 0.0  ;;  %v526_v34 = vadd.f32 %v525_v30, %v5731_v24  ;;  %v529_v59 = vpop.f32.mrb[28].mxu1 }
 0x145   :  { %2456 = vst [vmem:[#allocation7 + $0x1c0] sm:$0xff] %v4065_v18  ;;  %v4069_v26 = vpack.c.bf16 %v1028_v19, %v1027_v16  ;;  %v572_v27 = vpop.f32.mrb[32].mxu0  ;;  %v1009_v37 = vmax.f32 %v524_v29, 0.0  ;;  %v530_v2 = vadd.f32 %v529_v59, %v5725_v20  ;;  %v531_v3 = vpop.f32.mrb[29].mxu1  ;;  %3779 = vmatmul.mubr.msk.bf16.gmra.mrb[136].mxu1 %vm287_vm0, %v5616_v44 }
 0x146   :  { %v573_v31 = vadd.f32 %v572_v27, %v5826_v17  ;;  %v574_v32 = vpop.f32.mrb[33].mxu0  ;;  %v4058_v42 = vpack.c.bf16 %v1000_v33, %v999_v28  ;;  %v1010_v49 = vmax.f32 %v526_v34, 0.0  ;;  %v532_v6 = vadd.f32 %v531_v3, %v5731_v24  ;;  %v533_v7 = vpop.f32.mrb[30].mxu1  ;;  %1805 = vmatprep.mubr.bf16.mxu1 %v5302_v0 }
 0x147   :  { %2460 = vst [vmem:[#allocation7 + $0x1e0] sm:$0xff] %v4069_v26  ;;  %v575_v35 = vadd.f32 %v574_v32, %v5831_v21  ;;  %v576_v36 = vpop.f32.mrb[34].mxu0  ;;  %v1019_v10 = vmax.f32 %v530_v2, 0.0  ;;  %v534_v11 = vadd.f32 %v533_v7, %v5725_v20  ;;  %v535_v14 = vpop.f32.mrb[31].mxu1  ;;  %v5864_v20 = vrot.slane %v5687_v56, %v127_v4 }
 0x148   :  { %v881_v38 = vmax.f32 %v573_v31, 0.0  ;;  %v577_v40 = vadd.f32 %v576_v36, %v5826_v17  ;;  %v578_v41 = vpop.f32.mrb[35].mxu0  ;;  %2449 = vst [vmem:[#allocation7 + $0x188] sm:$0xff] %v4058_v42  ;;  %v4062_v58 = vpack.c.bf16 %v1010_v49, %v1009_v37  ;;  %v1020_v39 = vmax.f32 %v532_v6, 0.0  ;;  %v685_v31 = vpop.f32.mrb[32].mxu1 }
 0x149   :  { %v882_v50 = vmax.f32 %v575_v35, 0.0  ;;  %v579_v51 = vadd.f32 %v578_v41, %v5831_v21  ;;  %v536_v60 = vadd.f32 %v535_v14, %v5731_v24  ;;  %v1029_v61 = vmax.f32 %v534_v11, 0.0  ;;  %v687_v34 = vpop.f32.mrb[33].mxu1 }
 0x14a   :  { %v891_v53 = vmax.f32 %v577_v40, 0.0  ;;  %3772 = vmatmul.mubr.msk.bf16.gmra.mrb[140].mxu0 %vm287_vm0, %v5627_v45  ;;  %2453 = vst [vmem:[#allocation7 + $0x1a8] sm:$0xff] %v4062_v58  ;;  %v4066_v26 = vpack.c.bf16 %v1020_v39, %v1019_v10  ;;  %v686_v33 = vadd.f32 %v685_v31, %v5859_v22  ;;  %v688_v35 = vadd.f32 %v687_v34, %v5864_v20  ;;  %v689_v36 = vpop.f32.mrb[34].mxu1 }
 0x14b   :  { %v4011_v62 = vpack.c.bf16 %v882_v50, %v881_v38  ;;  %v892_v1 = vmax.f32 %v579_v51, 0.0  ;;  %1702 = vmatprep.mubr.bf16.mxu0 %v5302_v0  ;;  %v1030_v27 = vmax.f32 %v536_v60, 0.0  ;;  %v690_v41 = vadd.f32 %v689_v36, %v5859_v22  ;;  %v691_v42 = vpop.f32.mrb[35].mxu1 }
 0x14c   :  { %2457 = vst [vmem:[#allocation7 + $0x1c8] sm:$0xff] %v4066_v26  ;;  %v883_v40 = vmax.f32 %v686_v33, 0.0  ;;  %v884_v51 = vmax.f32 %v688_v35, 0.0 }
 0x14d   :  { %2402 = vst [vmem:[#allocation7 + $0x10] sm:$0xff] %v4011_v62  ;;  %v4015_v8 = vpack.c.bf16 %v892_v1, %v891_v53  ;;  %v582_v9 = vpop.f32.mrb[36].mxu0  ;;  %v4070_v56 = vpack.c.bf16 %v1030_v27, %v1029_v61  ;;  %v692_v53 = vadd.f32 %v691_v42, %v5864_v20  ;;  %v893_v62 = vmax.f32 %v690_v41, 0.0  ;;  %3780 = vmatmul.mubr.msk.bf16.gmra.mrb[140].mxu1 %vm287_vm0, %v5627_v45 }
 0x14e   :  { %v583_v15 = vadd.f32 %v582_v9, %v5826_v17  ;;  %v584_v16 = vpop.f32.mrb[37].mxu0  ;;  %v4012_v6 = vpack.c.bf16 %v884_v51, %v883_v40  ;;  %1815 = vmatprep.mubr.bf16.mxu1 %v5302_v0 }
 0x14f   :  { %2406 = vst [vmem:[#allocation7 + $0x30] sm:$0xff] %v4015_v8  ;;  %v585_v18 = vadd.f32 %v584_v16, %v5831_v21  ;;  %v586_v19 = vpop.f32.mrb[38].mxu0  ;;  %2461 = vst [vmem:[#allocation7 + $0x1e8] sm:$0xff] %v4070_v56  ;;  %v894_v7 = vmax.f32 %v692_v53, 0.0 }
 0x150   :  { %v901_v23 = vmax.f32 %v583_v15, 0.0  ;;  %v587_v24 = vadd.f32 %v586_v19, %v5826_v17  ;;  %v588_v25 = vpop.f32.mrb[39].mxu0  ;;  %2403 = vst [vmem:[#allocation7 + $0x18] sm:$0xff] %v4012_v6  ;;  %v695_v14 = vpop.f32.mrb[36].mxu1 }
 0x151   :  { %v902_v28 = vmax.f32 %v585_v18, 0.0  ;;  %v589_v29 = vadd.f32 %v588_v25, %v5831_v21  ;;  %v4016_v11 = vpack.c.bf16 %v894_v7, %v893_v62  ;;  %v696_v16 = vadd.f32 %v695_v14, %v5859_v22  ;;  %v697_v39 = vpop.f32.mrb[37].mxu1 }
 0x152   :  { %v911_v30 = vmax.f32 %v587_v24, 0.0  ;;  %3773 = vmatmul.mubr.msk.bf16.gmra.mrb[144].mxu0 %vm287_vm0, %v5638_v46  ;;  %v698_v60 = vadd.f32 %v697_v39, %v5864_v20  ;;  %v699_v18 = vpop.f32.mrb[38].mxu1 }
 0x153   :  { %v4019_v32 = vpack.c.bf16 %v902_v28, %v901_v23  ;;  %v912_v44 = vmax.f32 %v589_v29, 0.0  ;;  %1712 = vmatprep.mubr.bf16.mxu0 %v5302_v0  ;;  %2407 = vst [vmem:[#allocation7 + $0x38] sm:$0xff] %v4016_v11  ;;  %v903_v23 = vmax.f32 %v696_v16, 0.0  ;;  %v700_v24 = vadd.f32 %v699_v18, %v5859_v22  ;;  %v701_v25 = vpop.f32.mrb[39].mxu1 }
 0x154   :  { %v904_v28 = vmax.f32 %v698_v60, 0.0  ;;  %v702_v29 = vadd.f32 %v701_v25, %v5864_v20 }
 0x155   :  { %2410 = vst [vmem:[#allocation7 + $0x50] sm:$0xff] %v4019_v32  ;;  %v4023_v37 = vpack.c.bf16 %v912_v44, %v911_v30  ;;  %v592_v38 = vpop.f32.mrb[40].mxu0  ;;  %v913_v31 = vmax.f32 %v700_v24, 0.0  ;;  %3781 = vmatmul.mubr.msk.bf16.gmra.mrb[144].mxu1 %vm287_vm0, %v5638_v46 }
 0x156   :  { %v593_v49 = vadd.f32 %v592_v38, %v5826_v17  ;;  %v594_v50 = vpop.f32.mrb[41].mxu0  ;;  %v4020_v34 = vpack.c.bf16 %v904_v28, %v903_v23  ;;  %v914_v35 = vmax.f32 %v702_v29, 0.0  ;;  %1825 = vmatprep.mubr.bf16.mxu1 %v5302_v0 }
 0x157   :  { %2414 = vst [vmem:[#allocation7 + $0x70] sm:$0xff] %v4023_v37  ;;  %v595_v58 = vadd.f32 %v594_v50, %v5831_v21  ;;  %v596_v59 = vpop.f32.mrb[42].mxu0 }
 0x158   :  { %v921_v1 = vmax.f32 %v593_v49, 0.0  ;;  %v597_v2 = vadd.f32 %v596_v59, %v5826_v17  ;;  %v598_v3 = vpop.f32.mrb[43].mxu0  ;;  %2411 = vst [vmem:[#allocation7 + $0x58] sm:$0xff] %v4020_v34  ;;  %v4024_v40 = vpack.c.bf16 %v914_v35, %v913_v31  ;;  %v705_v41 = vpop.f32.mrb[40].mxu1 }
 0x159   :  { %v922_v8 = vmax.f32 %v595_v58, 0.0  ;;  %v599_v9 = vadd.f32 %v598_v3, %v5831_v21  ;;  %v706_v49 = vadd.f32 %v705_v41, %v5859_v22  ;;  %v707_v50 = vpop.f32.mrb[41].mxu1 }
 0x15a   :  { %v931_v10 = vmax.f32 %v597_v2, 0.0  ;;  %3774 = vmatmul.mubr.msk.bf16.gmra.mrb[148].mxu0 %vm287_vm0, %v5649_v47  ;;  %2415 = vst [vmem:[#allocation7 + $0x78] sm:$0xff] %v4024_v40  ;;  %v708_v51 = vadd.f32 %v707_v50, %v5864_v20  ;;  %v709_v53 = vpop.f32.mrb[42].mxu1 }
 0x15b   :  { %v4027_v15 = vpack.c.bf16 %v922_v8, %v921_v1  ;;  %v932_v45 = vmax.f32 %v599_v9, 0.0  ;;  %1722 = vmatprep.mubr.bf16.mxu0 %v5302_v0  ;;  %v923_v62 = vmax.f32 %v706_v49, 0.0  ;;  %v710_v1 = vadd.f32 %v709_v53, %v5859_v22  ;;  %v711_v2 = vpop.f32.mrb[43].mxu1 }
 0x15c   :  { %v924_v7 = vmax.f32 %v708_v51, 0.0  ;;  %v712_v8 = vadd.f32 %v711_v2, %v5864_v20 }
 0x15d   :  { %2418 = vst [vmem:[#allocation7 + $0x90] sm:$0xff] %v4027_v15  ;;  %v4031_v19 = vpack.c.bf16 %v932_v45, %v931_v10  ;;  %v602_v61 = vpop.f32.mrb[44].mxu0  ;;  %v933_v11 = vmax.f32 %v710_v1, 0.0  ;;  %3782 = vmatmul.mubr.msk.bf16.gmra.mrb[148].mxu1 %vm287_vm0, %v5649_v47 }
 0x15e   :  { %v603_v26 = vadd.f32 %v602_v61, %v5826_v17  ;;  %v604_v27 = vpop.f32.mrb[45].mxu0  ;;  %v4028_v16 = vpack.c.bf16 %v924_v7, %v923_v62  ;;  %v934_v39 = vmax.f32 %v712_v8, 0.0  ;;  %1835 = vmatprep.mubr.bf16.mxu1 %v5302_v0 }
 0x15f   :  { %2422 = vst [vmem:[#allocation7 + $0xb0] sm:$0xff] %v4031_v19  ;;  %v605_v30 = vadd.f32 %v604_v27, %v5831_v21  ;;  %v606_v56 = vpop.f32.mrb[46].mxu0 }
 0x160   :  { %v941_v32 = vmax.f32 %v603_v26, 0.0  ;;  %v607_v44 = vadd.f32 %v606_v56, %v5826_v17  ;;  %v608_v33 = vpop.f32.mrb[47].mxu0  ;;  %2419 = vst [vmem:[#allocation7 + $0x98] sm:$0xff] %v4028_v16  ;;  %v4032_v61 = vpack.c.bf16 %v934_v39, %v933_v11  ;;  %v715_v23 = vpop.f32.mrb[44].mxu1 }
 0x161   :  { %v942_v36 = vmax.f32 %v605_v30, 0.0  ;;  %v609_v37 = vadd.f32 %v608_v33, %v5831_v21  ;;  %v716_v25 = vadd.f32 %v715_v23, %v5859_v22  ;;  %v717_v26 = vpop.f32.mrb[45].mxu1 }
 0x162   :  { %v951_v38 = vmax.f32 %v607_v44, 0.0  ;;  %3775 = vmatmul.mubr.msk.bf16.gmra.mrb[152].mxu0 %vm287_vm0, %v5660_v48  ;;  %2423 = vst [vmem:[#allocation7 + $0xb8] sm:$0xff] %v4032_v61  ;;  %v718_v27 = vadd.f32 %v717_v26, %v5864_v20  ;;  %v719_v28 = vpop.f32.mrb[46].mxu1 }
 0x163   :  { %v4035_v42 = vpack.c.bf16 %v942_v36, %v941_v32  ;;  %v952_v46 = vmax.f32 %v609_v37, 0.0  ;;  %1732 = vmatprep.mubr.bf16.mxu0 %v5302_v0  ;;  %v943_v56 = vmax.f32 %v716_v25, 0.0  ;;  %v720_v31 = vadd.f32 %v719_v28, %v5859_v22  ;;  %v721_v32 = vpop.f32.mrb[47].mxu1 }
 0x164   :  { %v944_v33 = vmax.f32 %v718_v27, 0.0  ;;  %v722_v34 = vadd.f32 %v721_v32, %v5864_v20 }
 0x165   :  { %2426 = vst [vmem:[#allocation7 + $0xd0] sm:$0xff] %v4035_v42  ;;  %v4039_v58 = vpack.c.bf16 %v952_v46, %v951_v38  ;;  %v612_v59 = vpop.f32.mrb[48].mxu0  ;;  %v953_v37 = vmax.f32 %v720_v31, 0.0  ;;  %3783 = vmatmul.mubr.msk.bf16.gmra.mrb[152].mxu1 %vm287_vm0, %v5660_v48 }
 0x166   :  { %v613_v3 = vadd.f32 %v612_v59, %v5826_v17  ;;  %v614_v6 = vpop.f32.mrb[49].mxu0  ;;  %v4036_v42 = vpack.c.bf16 %v944_v33, %v943_v56  ;;  %v954_v46 = vmax.f32 %v722_v34, 0.0  ;;  %1845 = vmatprep.mubr.bf16.mxu1 %v5302_v0 }
 0x167   :  { %2430 = vst [vmem:[#allocation7 + $0xf0] sm:$0xff] %v4039_v58  ;;  %v615_v9 = vadd.f32 %v614_v6, %v5831_v21  ;;  %v616_v10 = vpop.f32.mrb[50].mxu0 }
 0x168   :  { %v961_v14 = vmax.f32 %v613_v3, 0.0  ;;  %v617_v15 = vadd.f32 %v616_v10, %v5826_v17  ;;  %v618_v45 = vpop.f32.mrb[51].mxu0  ;;  %2427 = vst [vmem:[#allocation7 + $0xd8] sm:$0xff] %v4036_v42  ;;  %v4040_v53 = vpack.c.bf16 %v954_v46, %v953_v37  ;;  %v725_v58 = vpop.f32.mrb[48].mxu1 }
 0x169   :  { %v962_v60 = vmax.f32 %v615_v9, 0.0  ;;  %v619_v18 = vadd.f32 %v618_v45, %v5831_v21  ;;  %v726_v1 = vadd.f32 %v725_v58, %v5859_v22  ;;  %v727_v48 = vpop.f32.mrb[49].mxu1 }
 0x16a   :  { %v971_v19 = vmax.f32 %v617_v15, 0.0  ;;  %3776 = vmatmul.mubr.msk.bf16.gmra.mrb[156].mxu0 %vm287_vm0, %v5671_v52  ;;  %2431 = vst [vmem:[#allocation7 + $0xf8] sm:$0xff] %v4040_v53  ;;  %v728_v2 = vadd.f32 %v727_v48, %v5864_v20  ;;  %v729_v3 = vpop.f32.mrb[50].mxu1 }
 0x16b   :  { %v4043_v24 = vpack.c.bf16 %v962_v60, %v961_v14  ;;  %v972_v47 = vmax.f32 %v619_v18, 0.0  ;;  %v963_v0 = vmax.f32 %v726_v1, 0.0  ;;  %v730_v8 = vadd.f32 %v729_v3, %v5859_v22  ;;  %v731_v9 = vpop.f32.mrb[51].mxu1  ;;  %v5155_v60 = vld [vmem:[%s6265_s1 + $0x38] sm:$0xff]  }
 0x16c   :  { %v964_v14 = vmax.f32 %v728_v2, 0.0  ;;  %v732_v15 = vadd.f32 %v731_v9, %v5864_v20 }
 0x16d   :  { %2434 = vst [vmem:[#allocation7 + $0x110] sm:$0xff] %v4043_v24  ;;  %v4047_v29 = vpack.c.bf16 %v972_v47, %v971_v19  ;;  %v622_v30 = vpop.f32.mrb[52].mxu0  ;;  %v973_v39 = vmax.f32 %v730_v8, 0.0  ;;  %3784 = vmatmul.mubr.msk.bf16.gmra.mrb[156].mxu1 %vm287_vm0, %v5155_v60 }
 0x16e   :  { %v623_v52 = vadd.f32 %v622_v30, %v5826_v17  ;;  %v624_v44 = vpop.f32.mrb[53].mxu0  ;;  %v4044_v23 = vpack.c.bf16 %v964_v14, %v963_v0  ;;  %v974_v24 = vmax.f32 %v732_v15, 0.0 }
 0x16f   :  { %2438 = vst [vmem:[#allocation7 + $0x130] sm:$0xff] %v4047_v29  ;;  %v625_v35 = vadd.f32 %v624_v44, %v5831_v21  ;;  %v626_v36 = vpop.f32.mrb[54].mxu0 }
 0x170   :  { %v981_v38 = vmax.f32 %v623_v52, 0.0  ;;  %v627_v40 = vadd.f32 %v626_v36, %v5826_v17  ;;  %v628_v41 = vpop.f32.mrb[55].mxu0  ;;  %2435 = vst [vmem:[#allocation7 + $0x118] sm:$0xff] %v4044_v23  ;;  %v4048_v27 = vpack.c.bf16 %v974_v24, %v973_v39  ;;  %v735_v28 = vpop.f32.mrb[52].mxu1 }
 0x171   :  { %v982_v49 = vmax.f32 %v625_v35, 0.0  ;;  %v629_v50 = vadd.f32 %v628_v41, %v5831_v21  ;;  %v736_v56 = vadd.f32 %v735_v28, %v5859_v22  ;;  %v737_v31 = vpop.f32.mrb[53].mxu1 }
 0x172   :  { %v991_v51 = vmax.f32 %v627_v40, 0.0  ;;  %2439 = vst [vmem:[#allocation7 + $0x138] sm:$0xff] %v4048_v27  ;;  %v738_v32 = vadd.f32 %v737_v31, %v5864_v20  ;;  %v739_v52 = vpop.f32.mrb[54].mxu1 }
 0x173   :  { %v4051_v59 = vpack.c.bf16 %v982_v49, %v981_v38  ;;  %v992_v62 = vmax.f32 %v629_v50, 0.0  ;;  %v983_v34 = vmax.f32 %v736_v56, 0.0  ;;  %v740_v35 = vadd.f32 %v739_v52, %v5859_v22  ;;  %v741_v36 = vpop.f32.mrb[55].mxu1  ;;  %v94_v49 = vld [vmem:[%s6267_s3 + $0x8] sm:$0x3]  ;;  %s5303_s3 = smov [#allocation8]  }
 0x174   :  { %v984_v40 = vmax.f32 %v738_v32, 0.0  ;;  %v742_v41 = vadd.f32 %v741_v36, %v5864_v20  ;;  %v5950_v3 = vrot.slane %v94_v49, %v5682_v55  ;;  %v5953_v9 = vrot.slane %v94_v49, %v5690_v57  ;;  %s3601_s18 = sshll.u32 %s5303_s3, 4  ;;  %s3602_s18 = int_to_ptr.vmem [resolvable:$true] %s3601_s18 }
 0x175   :  { %2442 = vst [vmem:[#allocation7 + $0x150] sm:$0xff] %v4051_v59  ;;  %v4055_v6 = vpack.c.bf16 %v992_v62, %v991_v51  ;;  %v632_v7 = vpop.f32.mrb[56].mxu0  ;;  %v993_v50 = vmax.f32 %v740_v35, 0.0  ;;  %s5200_s20 = scalar_lea.vmem %s3602_s18, 2048  ;;  %p5205_p3 = scmp.lt.s32.totalorder %s3602_s18, %s3602_s18 }
 0x176   :  { %v633_v10 = vadd.f32 %v632_v7, %v5826_v17  ;;  %v634_v11 = vpop.f32.mrb[57].mxu0  ;;  %v4052_v59 = vpack.c.bf16 %v984_v40, %v983_v34  ;;  %v994_v62 = vmax.f32 %v742_v41, 0.0  ;;  %p5201_p2 = scmp.ne.s32.totalorder %s3602_s18, %s5200_s20  ;;  %p5206_p4 = scmp.lt.s32.totalorder %s5200_s20, %s5200_s20 }
 0x177   :  { %2446 = vst [vmem:[#allocation7 + $0x170] sm:$0xff] %v4055_v6  ;;  %v635_v45 = vadd.f32 %v634_v11, %v5831_v21  ;;  %v636_v16 = vpop.f32.mrb[58].mxu0 }
 0x178   :  { %v1001_v18 = vmax.f32 %v633_v10, 0.0  ;;  %v637_v19 = vadd.f32 %v636_v16, %v5826_v17  ;;  %v638_v61 = vpop.f32.mrb[59].mxu0  ;;  %2443 = vst [vmem:[#allocation7 + $0x158] sm:$0xff] %v4052_v59  ;;  %v4056_v6 = vpack.c.bf16 %v994_v62, %v993_v50  ;;  %v745_v7 = vpop.f32.mrb[56].mxu1  ;;  %p5207_p5 = por %p5206_p4, %p5205_p3 }
 0x179   :  { %v1002_v47 = vmax.f32 %v635_v45, 0.0  ;;  %v639_v25 = vadd.f32 %v638_v61, %v5831_v21  ;;  %v747_v10 = vpop.f32.mrb[57].mxu1 }
 0x17a   :  { %v1011_v26 = vmax.f32 %v637_v19, 0.0  ;;  %2447 = vst [vmem:[#allocation7 + $0x178] sm:$0xff] %v4056_v6  ;;  %v748_v11 = vadd.f32 %v747_v10, %v5864_v20  ;;  %v749_v14 = vpop.f32.mrb[58].mxu1  ;;  %p5208_p6 = pnand %p5207_p5, %p5201_p2 }
 0x17b   :  { %v4059_v29 = vpack.c.bf16 %v1002_v47, %v1001_v18  ;;  %v1012_v30 = vmax.f32 %v639_v25, 0.0  ;;  %v750_v16 = vadd.f32 %v749_v14, %v5859_v22  ;;  %v751_v39 = vpop.f32.mrb[59].mxu1 }
 0x17c   :  { %v1004_v19 = vmax.f32 %v748_v11, 0.0  ;;  %v752_v61 = vadd.f32 %v751_v39, %v5864_v20 }
 0x17d   :  { %2450 = vst [vmem:[#allocation7 + $0x190] sm:$0xff] %v4059_v29  ;;  %v4063_v44 = vpack.c.bf16 %v1012_v30, %v1011_v26  ;;  %v642_v33 = vpop.f32.mrb[60].mxu0  ;;  %v1013_v47 = vmax.f32 %v750_v16, 0.0 }
 0x17e   :  { %v643_v37 = vadd.f32 %v642_v33, %v5826_v17  ;;  %v644_v38 = vpop.f32.mrb[61].mxu0  ;;  %v1014_v29 = vmax.f32 %v752_v61, 0.0 }
 0x17f   :  { %2454 = vst [vmem:[#allocation7 + $0x1b0] sm:$0xff] %v4063_v44  ;;  %v645_v42 = vadd.f32 %v644_v38, %v5831_v21  ;;  %v646_v46 = vpop.f32.mrb[62].mxu0  ;;  %v5965_v38 = vld [vmem:[#allocation5] sm:$0xff] }
 0x180   :  { %v1021_v51 = vmax.f32 %v643_v37, 0.0  ;;  %v647_v53 = vadd.f32 %v646_v46, %v5826_v17  ;;  %v648_v58 = vpop.f32.mrb[63].mxu0  ;;  %v746_v17 = vadd.f32 %v745_v7, %v5859_v22  ;;  %v4064_v32 = vpack.c.bf16 %v1014_v29, %v1013_v47  ;;  %v755_v52 = vpop.f32.mrb[60].mxu1 }
 0x181   :  { %v1022_v1 = vmax.f32 %v645_v42, 0.0  ;;  %v649_v48 = vadd.f32 %v648_v58, %v5831_v21  ;;  %v756_v34 = vadd.f32 %v755_v52, %v5859_v22  ;;  %v757_v35 = vpop.f32.mrb[61].mxu1 }
 0x182   :  { %v1031_v2 = vmax.f32 %v647_v53, 0.0  ;;  %v1003_v45 = vmax.f32 %v746_v17, 0.0  ;;  %2455 = vst [vmem:[#allocation7 + $0x1b8] sm:$0xff] %v4064_v32  ;;  %v758_v36 = vadd.f32 %v757_v35, %v5864_v20  ;;  %v759_v37 = vpop.f32.mrb[62].mxu1 }
 0x183   :  { %v4067_v0 = vpack.c.bf16 %v1022_v1, %v1021_v51  ;;  %v1032_v8 = vmax.f32 %v649_v48, 0.0  ;;  %v1023_v42 = vmax.f32 %v756_v34, 0.0  ;;  %v760_v46 = vadd.f32 %v759_v37, %v5859_v22  ;;  %v761_v49 = vpop.f32.mrb[63].mxu1 }
 0x184   :  { %v4060_v28 = vpack.c.bf16 %v1004_v19, %v1003_v45  ;;  %v1024_v53 = vmax.f32 %v758_v36, 0.0  ;;  %v762_v58 = vadd.f32 %v761_v49, %v5864_v20  ;;  %v5973_v48 = vrot.slane %v5965_v38, %v5682_v55 }
 0x185   :  { %2458 = vst [vmem:[#allocation7 + $0x1d0] sm:$0xff] %v4067_v0  ;;  %v4071_v21 = vpack.c.bf16 %v1032_v8, %v1031_v2  ;;  %v798_v15 = vpop.f32.mrb[64].mxu0  ;;  %v1033_v1 = vmax.f32 %v760_v46, 0.0  ;;  %v5977_v2 = vrot.slane %v5965_v38, %v5690_v57 }
 0x186   :  { %v799_v60 = vadd.f32 %v798_v15, %v5950_v3  ;;  %v800_v18 = vpop.f32.mrb[65].mxu0  ;;  %2451 = vst [vmem:[#allocation7 + $0x198] sm:$0xff] %v4060_v28  ;;  %v4068_v0 = vpack.c.bf16 %v1024_v53, %v1023_v42  ;;  %v1034_v8 = vmax.f32 %v762_v58, 0.0 }
 0x187   :  { %2462 = vst [vmem:[#allocation7 + $0x1f0] sm:$0xff] %v4071_v21  ;;  %v801_v23 = vadd.f32 %v800_v18, %v5953_v9  ;;  %v802_v24 = vpop.f32.mrb[66].mxu0 }
 0x188   :  { %v885_v25 = vmax.f32 %v799_v60, 0.0  ;;  %v803_v26 = vadd.f32 %v802_v24, %v5950_v3  ;;  %v804_v27 = vpop.f32.mrb[67].mxu0  ;;  %2459 = vst [vmem:[#allocation7 + $0x1d8] sm:$0xff] %v4068_v0  ;;  %v4072_v11 = vpack.c.bf16 %v1034_v8, %v1033_v1  ;;  %v1325_v14 = vpop.f32.mrb[64].mxu1 }
 0x189   :  { %v886_v30 = vmax.f32 %v801_v23, 0.0  ;;  %v805_v56 = vadd.f32 %v804_v27, %v5953_v9  ;;  %v1326_v45 = vadd.f32 %v1325_v14, %v5973_v48  ;;  %v1327_v16 = vpop.f32.mrb[65].mxu1 }
 0x18a   :  { %v895_v31 = vmax.f32 %v803_v26, 0.0  ;;  %2463 = vst [vmem:[#allocation7 + $0x1f8] sm:$0xff] %v4072_v11  ;;  %v1328_v39 = vadd.f32 %v1327_v16, %v5977_v2  ;;  %v1329_v60 = vpop.f32.mrb[66].mxu1 }
 0x18b   :  { %v4073_v44 = vpack.c.bf16 %v886_v30, %v885_v25  ;;  %v896_v33 = vmax.f32 %v805_v56, 0.0  ;;  %v1856_v61 = vmax.f32 %v1326_v45, 0.0  ;;  %v1330_v23 = vadd.f32 %v1329_v60, %v5973_v48  ;;  %v1331_v24 = vpop.f32.mrb[67].mxu1 }
 0x18c   :  { %v1857_v26 = vmax.f32 %v1328_v39, 0.0  ;;  %v1332_v27 = vadd.f32 %v1331_v24, %v5977_v2 }
 0x18d   :  { %2560 = vst [vmem:[#allocation8] sm:$0xff] %v4073_v44  ;;  %v4074_v40 = vpack.c.bf16 %v896_v33, %v895_v31  ;;  %v808_v41 = vpop.f32.mrb[68].mxu0  ;;  %v1866_v30 = vmax.f32 %v1330_v23, 0.0 }
 0x18e   :  { %v809_v50 = vadd.f32 %v808_v41, %v5950_v3  ;;  %v810_v51 = vpop.f32.mrb[69].mxu0  ;;  %v1867_v52 = vmax.f32 %v1332_v27, 0.0  ;;  %v4631_v44 = vpack.i.bf16 %v1857_v26, %v1856_v61 }
 0x18f   :  { %2561 = vst [vmem:[#allocation8 + $0x8] sm:$0xff] %v4074_v40  ;;  %v811_v59 = vadd.f32 %v810_v51, %v5953_v9  ;;  %v812_v62 = vpop.f32.mrb[70].mxu0 }
 0x190   :  { %v905_v22 = vmax.f32 %v809_v50, 0.0  ;;  %v813_v6 = vadd.f32 %v812_v62, %v5950_v3  ;;  %v814_v7 = vpop.f32.mrb[71].mxu0  ;;  %v1335_v36 = vpop.f32.mrb[68].mxu1  ;;  %4632 = vxpose.xlu0.b32.start [1/16] %v4631_v44, 128  ;;  %v4633_v37 = vpack.i.bf16 %v1867_v52, %v1866_v30 }
 0x191   :  { %v906_v20 = vmax.f32 %v811_v59, 0.0  ;;  %v815_v17 = vadd.f32 %v814_v7, %v5953_v9  ;;  %v1336_v42 = vadd.f32 %v1335_v36, %v5973_v48  ;;  %v1337_v46 = vpop.f32.mrb[69].mxu1 }
 0x192   :  { %v915_v10 = vmax.f32 %v813_v6, 0.0  ;;  %v1338_v49 = vadd.f32 %v1337_v46, %v5977_v2  ;;  %v1339_v50 = vpop.f32.mrb[70].mxu1 }
 0x193   :  { %v4075_v21 = vpack.c.bf16 %v906_v20, %v905_v22  ;;  %v916_v15 = vmax.f32 %v815_v17, 0.0  ;;  %v1876_v58 = vmax.f32 %v1336_v42, 0.0  ;;  %v1340_v59 = vadd.f32 %v1339_v50, %v5973_v48  ;;  %v1341_v62 = vpop.f32.mrb[71].mxu1 }
 0x194   :  { %v1877_v6 = vmax.f32 %v1338_v49, 0.0  ;;  %4634 = vxpose.xlu0.b32.cont [2/16] %v4633_v37, 128  ;;  %v1342_v7 = vadd.f32 %v1341_v62, %v5977_v2 }
 0x195   :  { %2562 = vst [vmem:[#allocation8 + $0x10] sm:$0xff] %v4075_v21  ;;  %v4076_v18 = vpack.c.bf16 %v916_v15, %v915_v10  ;;  %v818_v19 = vpop.f32.mrb[72].mxu0  ;;  %v1886_v20 = vmax.f32 %v1340_v59, 0.0 }
 0x196   :  { %v819_v47 = vadd.f32 %v818_v19, %v5950_v3  ;;  %v820_v25 = vpop.f32.mrb[73].mxu0  ;;  %v1887_v14 = vmax.f32 %v1342_v7, 0.0  ;;  %v4635_v21 = vpack.i.bf16 %v1877_v6, %v1876_v58 }
 0x197   :  { %2563 = vst [vmem:[#allocation8 + $0x18] sm:$0xff] %v4076_v18  ;;  %v821_v28 = vadd.f32 %v820_v25, %v5953_v9  ;;  %v822_v29 = vpop.f32.mrb[74].mxu0 }
 0x198   :  { %v925_v56 = vmax.f32 %v819_v47, 0.0  ;;  %v823_v31 = vadd.f32 %v822_v29, %v5950_v3  ;;  %v824_v32 = vpop.f32.mrb[75].mxu0  ;;  %v1345_v39 = vpop.f32.mrb[72].mxu1  ;;  %4636 = vxpose.xlu0.b32.cont [3/16] %v4635_v21, 128  ;;  %v4637_v60 = vpack.i.bf16 %v1887_v14, %v1886_v20 }
 0x199   :  { %v926_v33 = vmax.f32 %v821_v28, 0.0  ;;  %v825_v34 = vadd.f32 %v824_v32, %v5953_v9  ;;  %v1346_v61 = vadd.f32 %v1345_v39, %v5973_v48  ;;  %v1347_v23 = vpop.f32.mrb[73].mxu1 }
 0x19a   :  { %v935_v35 = vmax.f32 %v823_v31, 0.0  ;;  %v1348_v24 = vadd.f32 %v1347_v23, %v5977_v2  ;;  %v1349_v47 = vpop.f32.mrb[74].mxu1 }
 0x19b   :  { %v4077_v40 = vpack.c.bf16 %v926_v33, %v925_v56  ;;  %v936_v41 = vmax.f32 %v825_v34, 0.0  ;;  %v1896_v27 = vmax.f32 %v1346_v61, 0.0  ;;  %v1350_v28 = vadd.f32 %v1349_v47, %v5973_v48  ;;  %v1351_v29 = vpop.f32.mrb[75].mxu1 }
 0x19c   :  { %v1897_v31 = vmax.f32 %v1348_v24, 0.0  ;;  %4638 = vxpose.xlu0.b32.cont [4/16] %v4637_v60, 128  ;;  %v1352_v32 = vadd.f32 %v1351_v29, %v5977_v2 }
 0x19d   :  { %2564 = vst [vmem:[#allocation8 + $0x20] sm:$0xff] %v4077_v40  ;;  %v4078_v51 = vpack.c.bf16 %v936_v41, %v935_v35  ;;  %v828_v53 = vpop.f32.mrb[76].mxu0  ;;  %v1906_v33 = vmax.f32 %v1350_v28, 0.0 }
 0x19e   :  { %v829_v1 = vadd.f32 %v828_v53, %v5950_v3  ;;  %v830_v22 = vpop.f32.mrb[77].mxu0  ;;  %v1907_v37 = vmax.f32 %v1352_v32, 0.0  ;;  %v4639_v40 = vpack.i.bf16 %v1897_v31, %v1896_v27 }
 0x19f   :  { %2565 = vst [vmem:[#allocation8 + $0x28] sm:$0xff] %v4078_v51  ;;  %v831_v0 = vadd.f32 %v830_v22, %v5953_v9  ;;  %v832_v8 = vpop.f32.mrb[78].mxu0 }
 0x1a0   :  { %v945_v17 = vmax.f32 %v829_v1, 0.0  ;;  %v833_v10 = vadd.f32 %v832_v8, %v5950_v3  ;;  %v834_v11 = vpop.f32.mrb[79].mxu0  ;;  %v1355_v49 = vpop.f32.mrb[76].mxu1  ;;  %4640 = vxpose.xlu0.b32.cont [5/16] %v4639_v40, 128  ;;  %v4641_v50 = vpack.i.bf16 %v1907_v37, %v1906_v33 }
 0x1a1   :  { %v946_v15 = vmax.f32 %v831_v0, 0.0  ;;  %v835_v45 = vadd.f32 %v834_v11, %v5953_v9  ;;  %v1356_v58 = vadd.f32 %v1355_v49, %v5973_v48  ;;  %v1357_v59 = vpop.f32.mrb[77].mxu1 }
 0x1a2   :  { %v955_v16 = vmax.f32 %v833_v10, 0.0  ;;  %v1358_v62 = vadd.f32 %v1357_v59, %v5977_v2  ;;  %v1359_v1 = vpop.f32.mrb[78].mxu1 }
 0x1a3   :  { %v4079_v18 = vpack.c.bf16 %v946_v15, %v945_v17  ;;  %v956_v19 = vmax.f32 %v835_v45, 0.0  ;;  %v1916_v7 = vmax.f32 %v1356_v58, 0.0  ;;  %v1360_v0 = vadd.f32 %v1359_v1, %v5973_v48  ;;  %v1361_v8 = vpop.f32.mrb[79].mxu1 }
 0x1a4   :  { %v1917_v10 = vmax.f32 %v1358_v62, 0.0  ;;  %4642 = vxpose.xlu0.b32.cont [6/16] %v4641_v50, 128  ;;  %v1362_v11 = vadd.f32 %v1361_v8, %v5977_v2 }
 0x1a5   :  { %2566 = vst [vmem:[#allocation8 + $0x30] sm:$0xff] %v4079_v18  ;;  %v4080_v25 = vpack.c.bf16 %v956_v19, %v955_v16  ;;  %v838_v26 = vpop.f32.mrb[80].mxu0  ;;  %v1926_v15 = vmax.f32 %v1360_v0, 0.0 }
 0x1a6   :  { %v839_v30 = vadd.f32 %v838_v26, %v5950_v3  ;;  %v840_v56 = vpop.f32.mrb[81].mxu0  ;;  %v1927_v60 = vmax.f32 %v1362_v11, 0.0  ;;  %v4643_v18 = vpack.i.bf16 %v1917_v10, %v1916_v7 }
 0x1a7   :  { %2567 = vst [vmem:[#allocation8 + $0x38] sm:$0xff] %v4080_v25  ;;  %v841_v52 = vadd.f32 %v840_v56, %v5953_v9  ;;  %v842_v44 = vpop.f32.mrb[82].mxu0 }
 0x1a8   :  { %v965_v34 = vmax.f32 %v839_v30, 0.0  ;;  %v843_v35 = vadd.f32 %v842_v44, %v5950_v3  ;;  %v844_v36 = vpop.f32.mrb[83].mxu0  ;;  %v1365_v24 = vpop.f32.mrb[80].mxu1  ;;  %4644 = vxpose.xlu0.b32.cont [7/16] %v4643_v18, 128  ;;  %v4645_v47 = vpack.i.bf16 %v1927_v60, %v1926_v15 }
 0x1a9   :  { %v966_v41 = vmax.f32 %v841_v52, 0.0  ;;  %v845_v42 = vadd.f32 %v844_v36, %v5953_v9  ;;  %v1366_v27 = vadd.f32 %v1365_v24, %v5973_v48  ;;  %v1367_v28 = vpop.f32.mrb[81].mxu1 }
 0x1aa   :  { %v975_v46 = vmax.f32 %v843_v35, 0.0  ;;  %v1368_v29 = vadd.f32 %v1367_v28, %v5977_v2  ;;  %v1369_v30 = vpop.f32.mrb[82].mxu1 }
 0x1ab   :  { %v4081_v51 = vpack.c.bf16 %v966_v41, %v965_v34  ;;  %v976_v53 = vmax.f32 %v845_v42, 0.0  ;;  %v1936_v32 = vmax.f32 %v1366_v27, 0.0  ;;  %v1370_v52 = vadd.f32 %v1369_v30, %v5973_v48  ;;  %v1371_v44 = vpop.f32.mrb[83].mxu1 }
 0x1ac   :  { %v1937_v35 = vmax.f32 %v1368_v29, 0.0  ;;  %4646 = vxpose.xlu0.b32.cont [8/16] %v4645_v47, 128  ;;  %v1372_v36 = vadd.f32 %v1371_v44, %v5977_v2  ;;  %v6032_v29 = vrot.slane %v5965_v38, %v107_v12 }
 0x1ad   :  { %2568 = vst [vmem:[#allocation8 + $0x40] sm:$0xff] %v4081_v51  ;;  %v4082_v22 = vpack.c.bf16 %v976_v53, %v975_v46  ;;  %v848_v6 = vpop.f32.mrb[84].mxu0  ;;  %v1946_v41 = vmax.f32 %v1370_v52, 0.0 }
 0x1ae   :  { %v849_v20 = vadd.f32 %v848_v6, %v5950_v3  ;;  %v850_v17 = vpop.f32.mrb[85].mxu0  ;;  %v1947_v50 = vmax.f32 %v1372_v36, 0.0  ;;  %v4647_v51 = vpack.i.bf16 %v1937_v35, %v1936_v32 }
 0x1af   :  { %2569 = vst [vmem:[#allocation8 + $0x48] sm:$0xff] %v4082_v22  ;;  %v851_v14 = vadd.f32 %v850_v17, %v5953_v9  ;;  %v852_v21 = vpop.f32.mrb[86].mxu0 }
 0x1b0   :  { %v985_v45 = vmax.f32 %v849_v20, 0.0  ;;  %v853_v16 = vadd.f32 %v852_v21, %v5950_v3  ;;  %v854_v39 = vpop.f32.mrb[87].mxu0  ;;  %v1375_v62 = vpop.f32.mrb[84].mxu1  ;;  %4648 = vxpose.xlu0.b32.cont [9/16] %v4647_v51, 128  ;;  %v4649_v1 = vpack.i.bf16 %v1947_v50, %v1946_v41 }
 0x1b1   :  { %v986_v19 = vmax.f32 %v851_v14, 0.0  ;;  %v855_v61 = vadd.f32 %v854_v39, %v5953_v9  ;;  %v1376_v7 = vadd.f32 %v1375_v62, %v5973_v48  ;;  %v1377_v0 = vpop.f32.mrb[85].mxu1 }
 0x1b2   :  { %v995_v23 = vmax.f32 %v853_v16, 0.0  ;;  %v1378_v8 = vadd.f32 %v1377_v0, %v5977_v2  ;;  %v1379_v20 = vpop.f32.mrb[86].mxu1 }
 0x1b3   :  { %v4083_v25 = vpack.c.bf16 %v986_v19, %v985_v45  ;;  %v996_v26 = vmax.f32 %v855_v61, 0.0  ;;  %v1956_v11 = vmax.f32 %v1376_v7, 0.0  ;;  %v1380_v14 = vadd.f32 %v1379_v20, %v5973_v48  ;;  %v1381_v21 = vpop.f32.mrb[87].mxu1 }
 0x1b4   :  { %v1957_v16 = vmax.f32 %v1378_v8, 0.0  ;;  %4650 = vxpose.xlu0.b32.cont [10/16] %v4649_v1, 128  ;;  %v1382_v39 = vadd.f32 %v1381_v21, %v5977_v2 }
 0x1b5   :  { %2570 = vst [vmem:[#allocation8 + $0x50] sm:$0xff] %v4083_v25  ;;  %v4084_v56 = vpack.c.bf16 %v996_v26, %v995_v23  ;;  %v858_v31 = vpop.f32.mrb[88].mxu0  ;;  %v1966_v19 = vmax.f32 %v1380_v14, 0.0 }
 0x1b6   :  { %v859_v33 = vadd.f32 %v858_v31, %v5950_v3  ;;  %v860_v34 = vpop.f32.mrb[89].mxu0  ;;  %v1967_v47 = vmax.f32 %v1382_v39, 0.0  ;;  %v4651_v25 = vpack.i.bf16 %v1957_v16, %v1956_v11 }
 0x1b7   :  { %2571 = vst [vmem:[#allocation8 + $0x58] sm:$0xff] %v4084_v56  ;;  %v861_v37 = vadd.f32 %v860_v34, %v5953_v9  ;;  %v862_v40 = vpop.f32.mrb[90].mxu0 }
 0x1b8   :  { %v1005_v42 = vmax.f32 %v859_v33, 0.0  ;;  %v863_v46 = vadd.f32 %v862_v40, %v5950_v3  ;;  %v864_v49 = vpop.f32.mrb[91].mxu0  ;;  %v1385_v30 = vpop.f32.mrb[88].mxu1  ;;  %4652 = vxpose.xlu0.b32.cont [11/16] %v4651_v25, 128  ;;  %v4653_v56 = vpack.i.bf16 %v1967_v47, %v1966_v19  ;;  %v6056_v25 = vrot.slane %v5965_v38, %v115_v63 }
 0x1b9   :  { %v1006_v53 = vmax.f32 %v861_v37, 0.0  ;;  %v865_v58 = vadd.f32 %v864_v49, %v5953_v9  ;;  %v1386_v52 = vadd.f32 %v1385_v30, %v5973_v48  ;;  %v1387_v44 = vpop.f32.mrb[89].mxu1 }
 0x1ba   :  { %v1015_v59 = vmax.f32 %v863_v46, 0.0  ;;  %v1389_v33 = vpop.f32.mrb[90].mxu1 }
 0x1bb   :  { %v4085_v22 = vpack.c.bf16 %v1006_v53, %v1005_v42  ;;  %v1016_v6 = vmax.f32 %v865_v58, 0.0  ;;  %v1976_v35 = vmax.f32 %v1386_v52, 0.0  ;;  %v1390_v36 = vadd.f32 %v1389_v33, %v5973_v48  ;;  %v1391_v37 = vpop.f32.mrb[91].mxu1 }
 0x1bc   :  { %4654 = vxpose.xlu0.b32.cont [12/16] %v4653_v56, 128 }
 0x1bd   :  { %2572 = vst [vmem:[#allocation8 + $0x60] sm:$0xff] %v4085_v22  ;;  %v4086_v17 = vpack.c.bf16 %v1016_v6, %v1015_v59  ;;  %v868_v10 = vpop.f32.mrb[92].mxu0  ;;  %v1986_v50 = vmax.f32 %v1390_v36, 0.0 }
 0x1be   :  { %v869_v15 = vadd.f32 %v868_v10, %v5950_v3  ;;  %v870_v45 = vpop.f32.mrb[93].mxu0 }
 0x1bf   :  { %2573 = vst [vmem:[#allocation8 + $0x68] sm:$0xff] %v4086_v17  ;;  %v871_v60 = vadd.f32 %v870_v45, %v5953_v9  ;;  %v872_v18 = vpop.f32.mrb[94].mxu0 }
 0x1c0   :  { %v1025_v61 = vmax.f32 %v869_v15, 0.0  ;;  %v873_v23 = vadd.f32 %v872_v18, %v5950_v3  ;;  %v874_v24 = vpop.f32.mrb[95].mxu0  ;;  %v6037_v3 = vrot.slane %v5965_v38, %v111_v13  ;;  %v1392_v13 = vadd.f32 %v1391_v37, %v5977_v2  ;;  %v1395_v7 = vpop.f32.mrb[92].mxu1 }
 0x1c1   :  { %v1026_v26 = vmax.f32 %v871_v60, 0.0  ;;  %v875_v27 = vadd.f32 %v874_v24, %v5953_v9  ;;  %v1388_v9 = vadd.f32 %v1387_v44, %v5977_v2  ;;  %v1396_v17 = vadd.f32 %v1395_v7, %v5973_v48  ;;  %v1397_v10 = vpop.f32.mrb[93].mxu1 }
 0x1c2   :  { %v1035_v28 = vmax.f32 %v873_v23, 0.0  ;;  %v1987_v59 = vmax.f32 %v1392_v13, 0.0  ;;  %v1398_v11 = vadd.f32 %v1397_v10, %v5977_v2  ;;  %v1399_v14 = vpop.f32.mrb[94].mxu1 }
 0x1c3   :  { %v4087_v31 = vpack.c.bf16 %v1026_v26, %v1025_v61  ;;  %v1036_v32 = vmax.f32 %v875_v27, 0.0  ;;  %v1977_v42 = vmax.f32 %v1388_v9, 0.0  ;;  %v1996_v45 = vmax.f32 %v1396_v17, 0.0  ;;  %v1401_v39 = vpop.f32.mrb[95].mxu1 }
 0x1c4   :  { %v4657_v0 = vpack.i.bf16 %v1987_v59, %v1986_v50  ;;  %v1400_v16 = vadd.f32 %v1399_v14, %v5973_v48  ;;  %v1997_v19 = vmax.f32 %v1398_v11, 0.0  ;;  %v1402_v61 = vadd.f32 %v1401_v39, %v5977_v2 }
 0x1c5   :  { %2574 = vst [vmem:[#allocation8 + $0x70] sm:$0xff] %v4087_v31  ;;  %v4088_v34 = vpack.c.bf16 %v1036_v32, %v1035_v28  ;;  %v1438_v12 = vpop.f32.mrb[96].mxu0  ;;  %v4655_v62 = vpack.i.bf16 %v1977_v42, %v1976_v35  ;;  %v6061_v48 = vrot.slane %v5965_v38, %v119_v5 }
 0x1c6   :  { %v1439_v40 = vadd.f32 %v1438_v12, %v6032_v29  ;;  %v1440_v41 = vpop.f32.mrb[97].mxu0  ;;  %v2006_v47 = vmax.f32 %v1400_v16, 0.0  ;;  %v2007_v30 = vmax.f32 %v1402_v61, 0.0  ;;  %v4659_v2 = vpack.i.bf16 %v1997_v19, %v1996_v45 }
 0x1c7   :  { %2575 = vst [vmem:[#allocation8 + $0x78] sm:$0xff] %v4088_v34  ;;  %v1441_v46 = vadd.f32 %v1440_v41, %v6037_v3  ;;  %v1442_v49 = vpop.f32.mrb[98].mxu0  ;;  %4656 = vxpose.xlu0.b32.cont [13/16] %v4655_v62, 128 }
 0x1c8   :  { %v1858_v51 = vmax.f32 %v1439_v40, 0.0  ;;  %v1443_v53 = vadd.f32 %v1442_v49, %v6032_v29  ;;  %v1444_v58 = vpop.f32.mrb[99].mxu0  ;;  %v1551_v52 = vpop.f32.mrb[96].mxu1  ;;  %v4661_v63 = vpack.i.bf16 %v2007_v30, %v2006_v47 }
 0x1c9   :  { %v1859_v1 = vmax.f32 %v1441_v46, 0.0  ;;  %v1445_v22 = vadd.f32 %v1444_v58, %v6037_v3  ;;  %v1552_v33 = vadd.f32 %v1551_v52, %v6056_v25  ;;  %v1553_v5 = vpop.f32.mrb[97].mxu1 }
 0x1ca   :  { %v1868_v6 = vmax.f32 %v1443_v53, 0.0  ;;  %v1554_v34 = vadd.f32 %v1553_v5, %v6061_v48  ;;  %v1555_v12 = vpop.f32.mrb[98].mxu1 }
 0x1cb   :  { %v1869_v8 = vmax.f32 %v1445_v22, 0.0  ;;  %v4743_v20 = vpack.i.bf16 %v1859_v1, %v1858_v51  ;;  %4658 = vxpose.xlu0.b32.cont [14/16] %v4657_v0, 128  ;;  %v1860_v37 = vmax.f32 %v1552_v33, 0.0  ;;  %v1556_v40 = vadd.f32 %v1555_v12, %v6056_v25  ;;  %v1557_v41 = vpop.f32.mrb[99].mxu1 }
 0x1cc   :  { %v1861_v46 = vmax.f32 %v1554_v34, 0.0  ;;  %v1558_v49 = vadd.f32 %v1557_v41, %v6061_v48 }
 0x1cd   :  { %v1448_v21 = vpop.f32.mrb[100].mxu0  ;;  %4744 = vxpose.xlu1.b32.start [1/16] %v4743_v20, 128  ;;  %v4745_v15 = vpack.i.bf16 %v1869_v8, %v1868_v6  ;;  %v1870_v53 = vmax.f32 %v1556_v40, 0.0 }
 0x1ce   :  { %v1449_v60 = vadd.f32 %v1448_v21, %v6032_v29  ;;  %v1450_v18 = vpop.f32.mrb[101].mxu0  ;;  %v1871_v1 = vmax.f32 %v1558_v49, 0.0  ;;  %v4855_v22 = vpack.i.bf16 %v1861_v46, %v1860_v37 }
 0x1cf   :  { %v1451_v23 = vadd.f32 %v1450_v18, %v6037_v3  ;;  %v1452_v24 = vpop.f32.mrb[102].mxu0  ;;  %4660 = vxpose.xlu0.b32.cont [15/16] %v4659_v2, 128 }
 0x1d0   :  { %v1878_v26 = vmax.f32 %v1449_v60, 0.0  ;;  %v1453_v27 = vadd.f32 %v1452_v24, %v6032_v29  ;;  %v1454_v28 = vpop.f32.mrb[103].mxu0  ;;  %v4857_v8 = vpack.i.bf16 %v1871_v1, %v1870_v53  ;;  %v1561_v20 = vpop.f32.mrb[100].mxu1 }
 0x1d1   :  { %v1879_v56 = vmax.f32 %v1451_v23, 0.0  ;;  %v1455_v31 = vadd.f32 %v1454_v28, %v6037_v3  ;;  %4746 = vxpose.xlu1.b32.cont [2/16] %v4745_v15, 128  ;;  %v1562_v11 = vadd.f32 %v1561_v20, %v6056_v25  ;;  %v1563_v14 = vpop.f32.mrb[101].mxu1 }
 0x1d2   :  { %v1888_v32 = vmax.f32 %v1453_v27, 0.0  ;;  %v1564_v21 = vadd.f32 %v1563_v14, %v6061_v48  ;;  %v1565_v15 = vpop.f32.mrb[102].mxu1 }
 0x1d3   :  { %v1889_v44 = vmax.f32 %v1455_v31, 0.0  ;;  %v4747_v9 = vpack.i.bf16 %v1879_v56, %v1878_v26  ;;  %4662 = vxpose.xlu0.b32.end [16/16] %v4661_v63, 128  ;;  %v1880_v39 = vmax.f32 %v1562_v11, 0.0  ;;  %v1566_v60 = vadd.f32 %v1565_v15, %v6056_v25  ;;  %v1567_v18 = vpop.f32.mrb[103].mxu1 }
 0x1d4   :  { %v1881_v23 = vmax.f32 %v1564_v21, 0.0  ;;  %v1568_v24 = vadd.f32 %v1567_v18, %v6061_v48 }
 0x1d5   :  { %v1458_v35 = vpop.f32.mrb[104].mxu0  ;;  %4748 = vxpose.xlu1.b32.cont [3/16] %v4747_v9, 128  ;;  %v4749_v36 = vpack.i.bf16 %v1889_v44, %v1888_v32  ;;  %v1890_v27 = vmax.f32 %v1566_v60, 0.0 }
 0x1d6   :  { %v1459_v42 = vadd.f32 %v1458_v35, %v6032_v29  ;;  %v1460_v13 = vpop.f32.mrb[105].mxu0  ;;  %v4859_v56 = vpack.i.bf16 %v1881_v23, %v1880_v39  ;;  %v1891_v31 = vmax.f32 %v1568_v24, 0.0 }
 0x1d7   :  { %v1461_v50 = vadd.f32 %v1460_v13, %v6037_v3  ;;  %v1462_v51 = vpop.f32.mrb[106].mxu0  ;;  %4856 = vxpose.xlu0.b32.start [1/16] %v4855_v22, 128 }
 0x1d8   :  { %v1898_v58 = vmax.f32 %v1459_v42, 0.0  ;;  %v1463_v59 = vadd.f32 %v1462_v51, %v6032_v29  ;;  %v1464_v62 = vpop.f32.mrb[107].mxu0  ;;  %v4861_v44 = vpack.i.bf16 %v1891_v31, %v1890_v27  ;;  %v1571_v9 = vpop.f32.mrb[104].mxu1 }
 0x1d9   :  { %v1899_v6 = vmax.f32 %v1461_v50, 0.0  ;;  %v1465_v7 = vadd.f32 %v1464_v62, %v6037_v3  ;;  %4750 = vxpose.xlu1.b32.cont [4/16] %v4749_v36, 128  ;;  %v1572_v34 = vadd.f32 %v1571_v9, %v6056_v25  ;;  %v1573_v12 = vpop.f32.mrb[105].mxu1 }
 0x1da   :  { %v1908_v0 = vmax.f32 %v1463_v59, 0.0  ;;  %v1574_v35 = vadd.f32 %v1573_v12, %v6061_v48  ;;  %v1575_v36 = vpop.f32.mrb[106].mxu1 }
 0x1db   :  { %v1909_v17 = vmax.f32 %v1465_v7, 0.0  ;;  %v4751_v10 = vpack.i.bf16 %v1899_v6, %v1898_v58  ;;  %4858 = vxpose.xlu0.b32.cont [2/16] %v4857_v8, 128  ;;  %v1900_v41 = vmax.f32 %v1572_v34, 0.0  ;;  %v1576_v42 = vadd.f32 %v1575_v36, %v6056_v25  ;;  %v1577_v13 = vpop.f32.mrb[107].mxu1 }
 0x1dc   :  { %v1901_v50 = vmax.f32 %v1574_v35, 0.0  ;;  %v1578_v51 = vadd.f32 %v1577_v13, %v6061_v48 }
 0x1dd   :  { %v1468_v45 = vpop.f32.mrb[108].mxu0  ;;  %4752 = vxpose.xlu1.b32.cont [5/16] %v4751_v10, 128  ;;  %v4753_v16 = vpack.i.bf16 %v1909_v17, %v1908_v0  ;;  %v1910_v59 = vmax.f32 %v1576_v42, 0.0 }
 0x1de   :  { %v1469_v19 = vadd.f32 %v1468_v45, %v6032_v29  ;;  %v1470_v61 = vpop.f32.mrb[109].mxu0  ;;  %v4863_v6 = vpack.i.bf16 %v1901_v50, %v1900_v41  ;;  %v1911_v7 = vmax.f32 %v1578_v51, 0.0 }
 0x1df   :  { %v1471_v47 = vadd.f32 %v1470_v61, %v6037_v3  ;;  %v1472_v26 = vpop.f32.mrb[110].mxu0  ;;  %4860 = vxpose.xlu0.b32.cont [3/16] %v4859_v56, 128 }
 0x1e0   :  { %v1918_v28 = vmax.f32 %v1469_v19, 0.0  ;;  %v1473_v30 = vadd.f32 %v1472_v26, %v6032_v29  ;;  %v1474_v2 = vpop.f32.mrb[111].mxu0  ;;  %v4865_v17 = vpack.i.bf16 %v1911_v7, %v1910_v59  ;;  %v1581_v10 = vpop.f32.mrb[108].mxu1 }
 0x1e1   :  { %v1919_v32 = vmax.f32 %v1471_v47, 0.0  ;;  %v1475_v52 = vadd.f32 %v1474_v2, %v6037_v3  ;;  %4754 = vxpose.xlu1.b32.cont [6/16] %v4753_v16, 128  ;;  %v1582_v21 = vadd.f32 %v1581_v10, %v6056_v25  ;;  %v1583_v15 = vpop.f32.mrb[109].mxu1 }
 0x1e2   :  { %v1928_v63 = vmax.f32 %v1473_v30, 0.0  ;;  %v1584_v45 = vadd.f32 %v1583_v15, %v6061_v48  ;;  %v1585_v16 = vpop.f32.mrb[110].mxu1 }
 0x1e3   :  { %v1929_v33 = vmax.f32 %v1475_v52, 0.0  ;;  %v4755_v5 = vpack.i.bf16 %v1919_v32, %v1918_v28  ;;  %4862 = vxpose.xlu0.b32.cont [4/16] %v4861_v44, 128  ;;  %v1920_v18 = vmax.f32 %v1582_v21, 0.0  ;;  %v1586_v19 = vadd.f32 %v1585_v16, %v6056_v25  ;;  %v1587_v61 = vpop.f32.mrb[111].mxu1 }
 0x1e4   :  { %v1921_v47 = vmax.f32 %v1584_v45, 0.0  ;;  %v1588_v26 = vadd.f32 %v1587_v61, %v6061_v48 }
 0x1e5   :  { %v1478_v37 = vpop.f32.mrb[112].mxu0  ;;  %4756 = vxpose.xlu1.b32.cont [7/16] %v4755_v5, 128  ;;  %v4757_v40 = vpack.i.bf16 %v1929_v33, %v1928_v63  ;;  %v1930_v30 = vmax.f32 %v1586_v19, 0.0 }
 0x1e6   :  { %v1479_v46 = vadd.f32 %v1478_v37, %v6032_v29  ;;  %v1480_v49 = vpop.f32.mrb[113].mxu0  ;;  %v4867_v32 = vpack.i.bf16 %v1921_v47, %v1920_v18  ;;  %v1931_v52 = vmax.f32 %v1588_v26, 0.0 }
 0x1e7   :  { %v1481_v53 = vadd.f32 %v1480_v49, %v6037_v3  ;;  %v1482_v58 = vpop.f32.mrb[114].mxu0  ;;  %4864 = vxpose.xlu0.b32.cont [5/16] %v4863_v6, 128 }
 0x1e8   :  { %v1938_v62 = vmax.f32 %v1479_v46, 0.0  ;;  %v1483_v1 = vadd.f32 %v1482_v58, %v6032_v29  ;;  %v1484_v22 = vpop.f32.mrb[115].mxu0  ;;  %v4869_v33 = vpack.i.bf16 %v1931_v52, %v1930_v30  ;;  %v1591_v5 = vpop.f32.mrb[112].mxu1 }
 0x1e9   :  { %v1939_v0 = vmax.f32 %v1481_v53, 0.0  ;;  %v1485_v8 = vadd.f32 %v1484_v22, %v6037_v3  ;;  %4758 = vxpose.xlu1.b32.cont [8/16] %v4757_v40, 128  ;;  %v1592_v35 = vadd.f32 %v1591_v5, %v6056_v25  ;;  %v1593_v36 = vpop.f32.mrb[113].mxu1 }
 0x1ea   :  { %v1948_v20 = vmax.f32 %v1483_v1, 0.0  ;;  %v1594_v37 = vadd.f32 %v1593_v36, %v6061_v48  ;;  %v1595_v40 = vpop.f32.mrb[114].mxu1 }
 0x1eb   :  { %v1949_v11 = vmax.f32 %v1485_v8, 0.0  ;;  %v4759_v14 = vpack.i.bf16 %v1939_v0, %v1938_v62  ;;  %4866 = vxpose.xlu0.b32.cont [6/16] %v4865_v17, 128  ;;  %v1940_v13 = vmax.f32 %v1592_v35, 0.0  ;;  %v1596_v46 = vadd.f32 %v1595_v40, %v6056_v25  ;;  %v1597_v49 = vpop.f32.mrb[115].mxu1 }
 0x1ec   :  { %v1941_v53 = vmax.f32 %v1594_v37, 0.0  ;;  %v1598_v58 = vadd.f32 %v1597_v49, %v6061_v48 }
 0x1ed   :  { %v1488_v39 = vpop.f32.mrb[116].mxu0  ;;  %4760 = vxpose.xlu1.b32.cont [9/16] %v4759_v14, 128  ;;  %v4761_v60 = vpack.i.bf16 %v1949_v11, %v1948_v20  ;;  %v1950_v1 = vmax.f32 %v1596_v46, 0.0 }
 0x1ee   :  { %v1489_v23 = vadd.f32 %v1488_v39, %v6032_v29  ;;  %v1490_v24 = vpop.f32.mrb[117].mxu0  ;;  %v4871_v0 = vpack.i.bf16 %v1941_v53, %v1940_v13  ;;  %v1951_v8 = vmax.f32 %v1598_v58, 0.0 }
 0x1ef   :  { %v1491_v27 = vadd.f32 %v1490_v24, %v6037_v3  ;;  %v1492_v28 = vpop.f32.mrb[118].mxu0  ;;  %4868 = vxpose.xlu0.b32.cont [7/16] %v4867_v32, 128 }
 0x1f0   :  { %v1958_v2 = vmax.f32 %v1489_v23, 0.0  ;;  %v1493_v56 = vadd.f32 %v1492_v28, %v6032_v29  ;;  %v1494_v31 = vpop.f32.mrb[119].mxu0  ;;  %v4873_v11 = vpack.i.bf16 %v1951_v8, %v1950_v1  ;;  %v1601_v14 = vpop.f32.mrb[116].mxu1 }
 0x1f1   :  { %v1959_v63 = vmax.f32 %v1491_v27, 0.0  ;;  %v1495_v44 = vadd.f32 %v1494_v31, %v6037_v3  ;;  %4762 = vxpose.xlu1.b32.cont [10/16] %v4761_v60, 128  ;;  %v1602_v45 = vadd.f32 %v1601_v14, %v6056_v25  ;;  %v1603_v16 = vpop.f32.mrb[117].mxu1 }
 0x1f2   :  { %v1968_v9 = vmax.f32 %v1493_v56, 0.0  ;;  %v1604_v39 = vadd.f32 %v1603_v16, %v6061_v48  ;;  %v1605_v60 = vpop.f32.mrb[118].mxu1 }
 0x1f3   :  { %v1969_v34 = vmax.f32 %v1495_v44, 0.0  ;;  %v4763_v12 = vpack.i.bf16 %v1959_v63, %v1958_v2  ;;  %4870 = vxpose.xlu0.b32.cont [8/16] %v4869_v33, 128  ;;  %v1960_v61 = vmax.f32 %v1602_v45, 0.0  ;;  %v1606_v23 = vadd.f32 %v1605_v60, %v6056_v25  ;;  %v1607_v24 = vpop.f32.mrb[119].mxu1 }
 0x1f4   :  { %v1961_v27 = vmax.f32 %v1604_v39, 0.0  ;;  %v1608_v28 = vadd.f32 %v1607_v24, %v6061_v48  ;;  %v1074_v39 = vld [vmem:[#allocation5 + $0x8] sm:$0x3] }
 0x1f5   :  { %v1498_v41 = vpop.f32.mrb[120].mxu0  ;;  %4764 = vxpose.xlu1.b32.cont [11/16] %v4763_v12, 128  ;;  %v4765_v42 = vpack.i.bf16 %v1969_v34, %v1968_v9  ;;  %v1970_v56 = vmax.f32 %v1606_v23, 0.0  ;;  %v6116_v34 = vrot.slane %v5965_v38, %v123_v43 }
 0x1f6   :  { %v1499_v50 = vadd.f32 %v1498_v41, %v6032_v29  ;;  %v1500_v51 = vpop.f32.mrb[121].mxu0  ;;  %v4875_v63 = vpack.i.bf16 %v1961_v27, %v1960_v61  ;;  %v1971_v44 = vmax.f32 %v1608_v28, 0.0 }
 0x1f7   :  { %v1501_v59 = vadd.f32 %v1500_v51, %v6037_v3  ;;  %v1502_v62 = vpop.f32.mrb[122].mxu0  ;;  %4872 = vxpose.xlu0.b32.cont [9/16] %v4871_v0, 128 }
 0x1f8   :  { %v1978_v22 = vmax.f32 %v1499_v50, 0.0  ;;  %v1503_v6 = vadd.f32 %v1502_v62, %v6032_v29  ;;  %v1504_v7 = vpop.f32.mrb[123].mxu0  ;;  %v4877_v12 = vpack.i.bf16 %v1971_v44, %v1970_v56  ;;  %v1611_v35 = vpop.f32.mrb[120].mxu1  ;;  %v6138_v56 = vrot.slane %v1074_v39, %v5682_v55 }
 0x1f9   :  { %v1979_v20 = vmax.f32 %v1501_v59, 0.0  ;;  %v1505_v17 = vadd.f32 %v1504_v7, %v6037_v3  ;;  %4766 = vxpose.xlu1.b32.cont [12/16] %v4765_v42, 128  ;;  %v1612_v40 = vadd.f32 %v1611_v35, %v6056_v25 }
 0x1fa   :  { %v1988_v10 = vmax.f32 %v1503_v6, 0.0 }
 0x1fb   :  { %v1989_v21 = vmax.f32 %v1505_v17, 0.0  ;;  %v4767_v15 = vpack.i.bf16 %v1979_v20, %v1978_v22  ;;  %4874 = vxpose.xlu0.b32.cont [10/16] %v4873_v11, 128  ;;  %v1980_v46 = vmax.f32 %v1612_v40, 0.0 }
 0x1fd   :  { %v1508_v18 = vpop.f32.mrb[124].mxu0  ;;  %4768 = vxpose.xlu1.b32.cont [13/16] %v4767_v15, 128  ;;  %v4769_v19 = vpack.i.bf16 %v1989_v21, %v1988_v10 }
 0x1fe   :  { %v1509_v47 = vadd.f32 %v1508_v18, %v6032_v29  ;;  %v1510_v26 = vpop.f32.mrb[125].mxu0 }
 0x1ff   :  { %v1511_v30 = vadd.f32 %v1510_v26, %v6037_v3  ;;  %v1512_v2 = vpop.f32.mrb[126].mxu0  ;;  %4876 = vxpose.xlu0.b32.cont [11/16] %v4875_v63, 128 }
 0x200   :  { %v1998_v31 = vmax.f32 %v1509_v47, 0.0  ;;  %v1513_v32 = vadd.f32 %v1512_v2, %v6032_v29  ;;  %v1514_v52 = vpop.f32.mrb[127].mxu0  ;;  %v6121_v29 = vrot.slane %v5965_v38, %v127_v4 }
 0x201   :  { %v1999_v9 = vmax.f32 %v1511_v30, 0.0  ;;  %v1515_v33 = vadd.f32 %v1514_v52, %v6037_v3  ;;  %4770 = vxpose.xlu1.b32.cont [14/16] %v4769_v19, 128  ;;  %v1613_v3 = vpop.f32.mrb[121].mxu1 }
 0x202   :  { %v2008_v5 = vmax.f32 %v1513_v32, 0.0  ;;  %v1614_v41 = vadd.f32 %v1613_v3, %v6061_v48  ;;  %v1615_v42 = vpop.f32.mrb[122].mxu1 }
 0x203   :  { %v2009_v36 = vmax.f32 %v1515_v33, 0.0  ;;  %v4771_v37 = vpack.i.bf16 %v1999_v9, %v1998_v31  ;;  %v1616_v49 = vadd.f32 %v1615_v42, %v6056_v25  ;;  %v1617_v50 = vpop.f32.mrb[123].mxu1  ;;  %4878 = vxpose.xlu0.b32.cont [12/16] %v4877_v12, 128  ;;  %v6141_v31 = vrot.slane %v1074_v39, %v5690_v57 }
 0x204   :  { %v1981_v54 = vmax.f32 %v1614_v41, 0.0  ;;  %v1618_v4 = vadd.f32 %v1617_v50, %v6061_v48  ;;  %v1621_v10 = vpop.f32.mrb[124].mxu1 }
 0x205   :  { %v1664_v13 = vpop.f32.mrb[128].mxu0  ;;  %4772 = vxpose.xlu1.b32.cont [15/16] %v4771_v37, 128  ;;  %v4773_v43 = vpack.i.bf16 %v2009_v36, %v2008_v5  ;;  %v1990_v59 = vmax.f32 %v1616_v49, 0.0  ;;  %v1622_v21 = vadd.f32 %v1621_v10, %v6056_v25  ;;  %v1623_v15 = vpop.f32.mrb[125].mxu1 }
 0x206   :  { %v1665_v51 = vadd.f32 %v1664_v13, %v6116_v34  ;;  %v1666_v53 = vpop.f32.mrb[129].mxu0  ;;  %v4879_v6 = vpack.i.bf16 %v1981_v54, %v1980_v46  ;;  %v1991_v7 = vmax.f32 %v1618_v4, 0.0  ;;  %v1624_v45 = vadd.f32 %v1623_v15, %v6061_v48  ;;  %v1625_v16 = vpop.f32.mrb[126].mxu1 }
 0x207   :  { %v1667_v38 = vadd.f32 %v1666_v53, %v6121_v29  ;;  %v1668_v58 = vpop.f32.mrb[130].mxu0  ;;  %v2000_v19 = vmax.f32 %v1622_v21, 0.0  ;;  %v1626_v61 = vadd.f32 %v1625_v16, %v6056_v25  ;;  %v1627_v23 = vpop.f32.mrb[127].mxu1 }
 0x208   :  { %v1862_v62 = vmax.f32 %v1665_v51, 0.0  ;;  %v1669_v1 = vadd.f32 %v1668_v58, %v6116_v34  ;;  %v1670_v22 = vpop.f32.mrb[131].mxu0  ;;  %v4881_v17 = vpack.i.bf16 %v1991_v7, %v1990_v59  ;;  %4880 = vxpose.xlu0.b32.cont [13/16] %v4879_v6, 128  ;;  %v2001_v26 = vmax.f32 %v1624_v45, 0.0  ;;  %v1777_v12 = vpop.f32.mrb[128].mxu1 }
 0x209   :  { %v1863_v0 = vmax.f32 %v1667_v38, 0.0  ;;  %v1671_v8 = vadd.f32 %v1670_v22, %v6121_v29  ;;  %4774 = vxpose.xlu1.b32.end [16/16] %v4773_v43, 128  ;;  %v1628_v27 = vadd.f32 %v1627_v23, %v6061_v48  ;;  %v2010_v2 = vmax.f32 %v1626_v61, 0.0  ;;  %v1779_v57 = vpop.f32.mrb[129].mxu1 }
 0x20a   :  { %v1872_v20 = vmax.f32 %v1669_v1, 0.0  ;;  %v4883_v63 = vpack.i.bf16 %v2001_v26, %v2000_v19  ;;  %v1778_v36 = vadd.f32 %v1777_v12, %v6138_v56  ;;  %v1780_v37 = vadd.f32 %v1779_v57, %v6141_v31  ;;  %v1781_v40 = vpop.f32.mrb[130].mxu1 }
 0x20b   :  { %v1873_v11 = vmax.f32 %v1671_v8, 0.0  ;;  %v4967_v14 = vpack.i.bf16 %v1863_v0, %v1862_v62  ;;  %v2011_v44 = vmax.f32 %v1628_v27, 0.0  ;;  %v1782_v13 = vadd.f32 %v1781_v40, %v6138_v56  ;;  %v1783_v43 = vpop.f32.mrb[131].mxu1 }
 0x20c   :  { %4882 = vxpose.xlu0.b32.cont [14/16] %v4881_v17, 128  ;;  %v1864_v42 = vmax.f32 %v1778_v36, 0.0  ;;  %v1865_v50 = vmax.f32 %v1780_v37, 0.0  ;;  %v1784_v51 = vadd.f32 %v1783_v43, %v6141_v31 }
 0x20d   :  { %v4969_v60 = vpack.i.bf16 %v1873_v11, %v1872_v20  ;;  %v1674_v18 = vpop.f32.mrb[132].mxu0  ;;  %4968 = vxpose.xlu1.b32.start [1/16] %v4967_v14, 128  ;;  %v4885_v5 = vpack.i.bf16 %v2011_v44, %v2010_v2  ;;  %v1874_v4 = vmax.f32 %v1782_v13, 0.0 }
 0x20e   :  { %v1675_v24 = vadd.f32 %v1674_v18, %v6116_v34  ;;  %v1676_v47 = vpop.f32.mrb[133].mxu0  ;;  %v4217_v62 = vpack.c.bf16 %v1865_v50, %v1864_v42  ;;  %v1875_v1 = vmax.f32 %v1784_v51, 0.0 }
 0x20f   :  { %v1677_v28 = vadd.f32 %v1676_v47, %v6121_v29  ;;  %v1678_v30 = vpop.f32.mrb[134].mxu0 }
 0x210   :  { %v1882_v32 = vmax.f32 %v1675_v24, 0.0  ;;  %v1679_v25 = vadd.f32 %v1678_v30, %v6116_v34  ;;  %v1680_v52 = vpop.f32.mrb[135].mxu0  ;;  %4884 = vxpose.xlu0.b32.cont [15/16] %v4883_v63, 128  ;;  %3568 = vst [vmem:[#allocation11] sm:$0xff] %v4217_v62  ;;  %v4218_v8 = vpack.c.bf16 %v1875_v1, %v1874_v4  ;;  %v1787_v20 = vpop.f32.mrb[132].mxu1 }
 0x211   :  { %v1883_v9 = vmax.f32 %v1677_v28, 0.0  ;;  %v1681_v33 = vadd.f32 %v1680_v52, %v6121_v29  ;;  %4970 = vxpose.xlu1.b32.cont [2/16] %v4969_v60, 128  ;;  %v1789_v11 = vpop.f32.mrb[133].mxu1  ;;  %v1788_v14 = vadd.f32 %v1787_v20, %v6138_v56 }
 0x212   :  { %v1892_v48 = vmax.f32 %v1679_v25, 0.0  ;;  %3569 = vst [vmem:[#allocation11 + $0x8] sm:$0xff] %v4218_v8  ;;  %v1790_v21 = vadd.f32 %v1789_v11, %v6141_v31  ;;  %v1791_v15 = vpop.f32.mrb[134].mxu1 }
 0x213   :  { %v4971_v35 = vpack.i.bf16 %v1883_v9, %v1882_v32  ;;  %v1893_v55 = vmax.f32 %v1681_v33, 0.0  ;;  %v1792_v18 = vadd.f32 %v1791_v15, %v6138_v56  ;;  %v1793_v19 = vpop.f32.mrb[135].mxu1  ;;  %v1884_v47 = vmax.f32 %v1788_v14, 0.0 }
 0x214   :  { %4886 = vxpose.xlu0.b32.end [16/16] %v4885_v5, 128  ;;  %v1885_v26 = vmax.f32 %v1790_v21, 0.0  ;;  %v1794_v27 = vadd.f32 %v1793_v19, %v6141_v31 }
 0x215   :  { %v4973_v3 = vpack.i.bf16 %v1893_v55, %v1892_v48  ;;  %v1684_v41 = vpop.f32.mrb[136].mxu0  ;;  %4972 = vxpose.xlu1.b32.cont [3/16] %v4971_v35, 128  ;;  %v1894_v5 = vmax.f32 %v1792_v18, 0.0 }
 0x216   :  { %v1685_v46 = vadd.f32 %v1684_v41, %v6116_v34  ;;  %v1686_v49 = vpop.f32.mrb[137].mxu0  ;;  %v4219_v44 = vpack.c.bf16 %v1885_v26, %v1884_v47  ;;  %v1895_v36 = vmax.f32 %v1794_v27, 0.0 }
 0x217   :  { %v1687_v53 = vadd.f32 %v1686_v49, %v6121_v29  ;;  %v1688_v54 = vpop.f32.mrb[138].mxu0  ;;  %v4663_v0 = vpop.trf.xlu0 }
 0x218   :  { %v1902_v38 = vmax.f32 %v1685_v46, 0.0  ;;  %v1689_v58 = vadd.f32 %v1688_v54, %v6116_v34  ;;  %v1690_v59 = vpop.f32.mrb[139].mxu0  ;;  %v4667_v39 = vunpack.i.h.bf16 %v4663_v0  ;;  %v4664_v60 = vunpack.i.l.bf16 %v4663_v0  ;;  %3570 = vst [vmem:[#allocation11 + $0x10] sm:$0xff] %v4219_v44  ;;  %v1797_v57 = vpop.f32.mrb[136].mxu1 }
 0x219   :  { %v1903_v22 = vmax.f32 %v1687_v53, 0.0  ;;  %v1691_v6 = vadd.f32 %v1690_v59, %v6121_v29  ;;  %4974 = vxpose.xlu1.b32.cont [4/16] %v4973_v3, 128  ;;  %v1799_v3 = vpop.f32.mrb[137].mxu1  ;;  %v4220_v41 = vpack.c.bf16 %v1895_v36, %v1894_v5  ;;  %v1798_v42 = vadd.f32 %v1797_v57, %v6138_v56 }
 0x21a   :  { %v1912_v7 = vmax.f32 %v1689_v58, 0.0  ;;  %v1801_v13 = vpop.f32.mrb[138].mxu1  ;;  %v1800_v50 = vadd.f32 %v1799_v3, %v6141_v31 }
 0x21b   :  { %v4975_v17 = vpack.i.bf16 %v1903_v22, %v1902_v38  ;;  %v1913_v10 = vmax.f32 %v1691_v6, 0.0  ;;  %v4668_v24 = vpop.trf.xlu0  ;;  %v1802_v51 = vadd.f32 %v1801_v13, %v6138_v56  ;;  %v1803_v53 = vpop.f32.mrb[139].mxu1  ;;  %3571 = vst [vmem:[#allocation11 + $0x18] sm:$0xff] %v4220_v41  ;;  %v1904_v59 = vmax.f32 %v1798_v42, 0.0 }
 0x21c   :  { %v4672_v2 = vunpack.i.h.bf16 %v4668_v24  ;;  %v4669_v63 = vunpack.i.l.bf16 %v4668_v24  ;;  %v1804_v62 = vadd.f32 %v1803_v53, %v6141_v31 }
 0x21d   :  { %v4977_v45 = vpack.i.bf16 %v1913_v10, %v1912_v7  ;;  %v1694_v16 = vpop.f32.mrb[140].mxu0  ;;  %4976 = vxpose.xlu1.b32.cont [5/16] %v4975_v17, 128  ;;  %v1905_v17 = vmax.f32 %v1800_v50, 0.0  ;;  %v1914_v21 = vmax.f32 %v1802_v51, 0.0 }
 0x21e   :  { %v1695_v61 = vadd.f32 %v1694_v16, %v6116_v34  ;;  %v1696_v23 = vpop.f32.mrb[141].mxu0  ;;  %v4276_v48 = vpack.c.bf16 %v4672_v2, %v4667_v39  ;;  %v4236_v35 = vpack.c.bf16 %v4669_v63, %v4664_v60  ;;  %v1915_v60 = vmax.f32 %v1804_v62, 0.0 }
 0x21f   :  { %v1697_v28 = vadd.f32 %v1696_v23, %v6121_v29  ;;  %v1698_v30 = vpop.f32.mrb[142].mxu0  ;;  %v4673_v55 = vpop.trf.xlu0  ;;  %v4221_v39 = vpack.c.bf16 %v1905_v17, %v1904_v59 }
 0x220   :  { %v1922_v32 = vmax.f32 %v1695_v61, 0.0  ;;  %v1699_v25 = vadd.f32 %v1698_v30, %v6116_v34  ;;  %v1700_v52 = vpop.f32.mrb[143].mxu0  ;;  %4560 = vst [vmem:[#allocation10 + $0x40] sm:$0xff] %v4276_v48   ;;  %4237 = vst [vmem:[#allocation10] sm:$0xff] %v4236_v35   ;;  %v4677_v49 = vunpack.i.h.bf16 %v4673_v55  ;;  %v4674_v38 = vunpack.i.l.bf16 %v4673_v55  ;;  %v1807_v18 = vpop.f32.mrb[140].mxu1 }
 0x221   :  { %v1923_v9 = vmax.f32 %v1697_v28, 0.0  ;;  %v1701_v33 = vadd.f32 %v1700_v52, %v6121_v29  ;;  %4978 = vxpose.xlu1.b32.cont [6/16] %v4977_v45, 128  ;;  %v1809_v23 = vpop.f32.mrb[141].mxu1  ;;  %3572 = vst [vmem:[#allocation11 + $0x20] sm:$0xff] %v4221_v39  ;;  %v4222_v24 = vpack.c.bf16 %v1915_v60, %v1914_v21  ;;  %v1808_v47 = vadd.f32 %v1807_v18, %v6138_v56 }
 0x222   :  { %v1932_v12 = vmax.f32 %v1699_v25, 0.0  ;;  %v1811_v26 = vpop.f32.mrb[142].mxu1  ;;  %v1810_v2 = vadd.f32 %v1809_v23, %v6141_v31 }
 0x223   :  { %v4979_v37 = vpack.i.bf16 %v1923_v9, %v1922_v32  ;;  %v1933_v40 = vmax.f32 %v1701_v33, 0.0  ;;  %v4678_v58 = vpop.trf.xlu0  ;;  %v1812_v32 = vadd.f32 %v1811_v26, %v6138_v56  ;;  %v1813_v25 = vpop.f32.mrb[143].mxu1  ;;  %3573 = vst [vmem:[#allocation11 + $0x28] sm:$0xff] %v4222_v24  ;;  %v1924_v33 = vmax.f32 %v1808_v47, 0.0 }
 0x224   :  { %v4682_v6 = vunpack.i.h.bf16 %v4678_v58  ;;  %v4679_v20 = vunpack.i.l.bf16 %v4678_v58  ;;  %v1814_v48 = vadd.f32 %v1813_v25, %v6141_v31 }
 0x225   :  { %v4981_v43 = vpack.i.bf16 %v1933_v40, %v1932_v12  ;;  %v1704_v46 = vpop.f32.mrb[144].mxu0  ;;  %4980 = vxpose.xlu1.b32.cont [7/16] %v4979_v37, 128  ;;  %v1925_v40 = vmax.f32 %v1810_v2, 0.0  ;;  %v1934_v13 = vmax.f32 %v1812_v32, 0.0 }
 0x226   :  { %v1705_v54 = vadd.f32 %v1704_v46, %v6116_v34  ;;  %v1706_v4 = vpop.f32.mrb[145].mxu0  ;;  %v4281_v14 = vpack.c.bf16 %v4682_v6, %v4677_v49  ;;  %v4241_v45 = vpack.c.bf16 %v4679_v20, %v4674_v38  ;;  %v1935_v51 = vmax.f32 %v1814_v48, 0.0 }
 0x227   :  { %v1707_v1 = vadd.f32 %v1706_v4, %v6121_v29  ;;  %v1708_v22 = vpop.f32.mrb[146].mxu0  ;;  %v4683_v16 = vpop.trf.xlu0  ;;  %v4223_v50 = vpack.c.bf16 %v1925_v40, %v1924_v33 }
 0x228   :  { %v1942_v7 = vmax.f32 %v1705_v54, 0.0  ;;  %v1709_v0 = vadd.f32 %v1708_v22, %v6116_v34  ;;  %v1710_v8 = vpop.f32.mrb[147].mxu0  ;;  %4561 = vst [vmem:[#allocation10 + $0x48] sm:$0xff] %v4281_v14   ;;  %4553 = vst [vmem:[#allocation10 + $0x8] sm:$0xff] %v4241_v45   ;;  %v4687_v30 = vunpack.i.h.bf16 %v4683_v16  ;;  %v4684_v44 = vunpack.i.l.bf16 %v4683_v16  ;;  %v1817_v53 = vpop.f32.mrb[144].mxu1 }
 0x229   :  { %v1943_v10 = vmax.f32 %v1707_v1, 0.0  ;;  %v1711_v11 = vadd.f32 %v1710_v8, %v6121_v29  ;;  %4982 = vxpose.xlu1.b32.cont [8/16] %v4981_v43, 128  ;;  %v1819_v38 = vpop.f32.mrb[145].mxu1  ;;  %3574 = vst [vmem:[#allocation11 + $0x30] sm:$0xff] %v4223_v50  ;;  %v4224_v58 = vpack.c.bf16 %v1935_v51, %v1934_v13  ;;  %v1818_v59 = vadd.f32 %v1817_v53, %v6138_v56 }
 0x22a   :  { %v1952_v15 = vmax.f32 %v1709_v0, 0.0  ;;  %v1821_v62 = vpop.f32.mrb[146].mxu1 }
 0x22b   :  { %v4983_v19 = vpack.i.bf16 %v1943_v10, %v1942_v7  ;;  %v1953_v61 = vmax.f32 %v1711_v11, 0.0  ;;  %v4688_v9 = vpop.trf.xlu0  ;;  %v1820_v7 = vadd.f32 %v1819_v38, %v6141_v31  ;;  %v1822_v0 = vadd.f32 %v1821_v62, %v6138_v56  ;;  %v1823_v8 = vpop.f32.mrb[147].mxu1  ;;  %3575 = vst [vmem:[#allocation11 + $0x38] sm:$0xff] %v4224_v58 }
 0x22c   :  { %v4692_v35 = vunpack.i.h.bf16 %v4688_v9  ;;  %v4689_v37 = vunpack.i.l.bf16 %v4688_v9  ;;  %v1944_v14 = vmax.f32 %v1818_v59, 0.0  ;;  %v1824_v21 = vadd.f32 %v1823_v8, %v6141_v31 }
 0x22d   :  { %v4985_v27 = vpack.i.bf16 %v1953_v61, %v1952_v15  ;;  %v1714_v28 = vpop.f32.mrb[148].mxu0  ;;  %4984 = vxpose.xlu1.b32.cont [9/16] %v4983_v19, 128  ;;  %v1945_v61 = vmax.f32 %v1820_v7, 0.0  ;;  %v1954_v26 = vmax.f32 %v1822_v0, 0.0 }
 0x22e   :  { %v1715_v52 = vadd.f32 %v1714_v28, %v6116_v34  ;;  %v1716_v63 = vpop.f32.mrb[149].mxu0  ;;  %v4286_v42 = vpack.c.bf16 %v4692_v35, %v4687_v30  ;;  %v4246_v46 = vpack.c.bf16 %v4689_v37, %v4684_v44  ;;  %v1955_v32 = vmax.f32 %v1824_v21, 0.0 }
 0x22f   :  { %v1717_v5 = vadd.f32 %v1716_v63, %v6121_v29  ;;  %v1718_v12 = vpop.f32.mrb[150].mxu0  ;;  %v4693_v49 = vpop.trf.xlu0  ;;  %v4225_v2 = vpack.c.bf16 %v1945_v61, %v1944_v14 }
 0x230   :  { %v1962_v55 = vmax.f32 %v1715_v52, 0.0  ;;  %v1719_v36 = vadd.f32 %v1718_v12, %v6116_v34  ;;  %v1720_v57 = vpop.f32.mrb[151].mxu0  ;;  %4562 = vst [vmem:[#allocation10 + $0x50] sm:$0xff] %v4286_v42   ;;  %4554 = vst [vmem:[#allocation10 + $0x10] sm:$0xff] %v4246_v46   ;;  %v4697_v6 = vunpack.i.h.bf16 %v4693_v49  ;;  %v4694_v10 = vunpack.i.l.bf16 %v4693_v49  ;;  %v1827_v25 = vpop.f32.mrb[148].mxu1 }
 0x231   :  { %v1963_v3 = vmax.f32 %v1717_v5, 0.0  ;;  %v1721_v41 = vadd.f32 %v1720_v57, %v6121_v29  ;;  %4986 = vxpose.xlu1.b32.cont [10/16] %v4985_v27, 128  ;;  %v1829_v44 = vpop.f32.mrb[149].mxu1  ;;  %3576 = vst [vmem:[#allocation11 + $0x40] sm:$0xff] %v4225_v2  ;;  %v4226_v9 = vpack.c.bf16 %v1955_v32, %v1954_v26  ;;  %v1828_v33 = vadd.f32 %v1827_v25, %v6138_v56 }
 0x232   :  { %v1972_v43 = vmax.f32 %v1719_v36, 0.0  ;;  %v1831_v48 = vpop.f32.mrb[150].mxu1 }
 0x233   :  { %v4987_v54 = vpack.i.bf16 %v1963_v3, %v1962_v55  ;;  %v1973_v4 = vmax.f32 %v1721_v41, 0.0  ;;  %v4698_v11 = vpop.trf.xlu0  ;;  %v1830_v55 = vadd.f32 %v1829_v44, %v6141_v31  ;;  %v1832_v36 = vadd.f32 %v1831_v48, %v6138_v56  ;;  %v1833_v57 = vpop.f32.mrb[151].mxu1  ;;  %3577 = vst [vmem:[#allocation11 + $0x48] sm:$0xff] %v4226_v9 }
 0x234   :  { %v4702_v16 = vunpack.i.h.bf16 %v4698_v11  ;;  %v4699_v19 = vunpack.i.l.bf16 %v4698_v11  ;;  %v1964_v42 = vmax.f32 %v1828_v33, 0.0  ;;  %v1834_v13 = vadd.f32 %v1833_v57, %v6141_v31 }
 0x235   :  { %v4989_v1 = vpack.i.bf16 %v1973_v4, %v1972_v43  ;;  %v1724_v22 = vpop.f32.mrb[152].mxu0  ;;  %4988 = vxpose.xlu1.b32.cont [11/16] %v4987_v54, 128  ;;  %v1965_v4 = vmax.f32 %v1830_v55, 0.0  ;;  %v1974_v62 = vmax.f32 %v1832_v36, 0.0 }
 0x236   :  { %v1725_v20 = vadd.f32 %v1724_v22, %v6116_v34  ;;  %v1726_v17 = vpop.f32.mrb[153].mxu0  ;;  %v4291_v47 = vpack.c.bf16 %v4702_v16, %v4697_v6  ;;  %v4251_v28 = vpack.c.bf16 %v4699_v19, %v4694_v10  ;;  %v1975_v0 = vmax.f32 %v1834_v13, 0.0 }
 0x237   :  { %v1727_v15 = vadd.f32 %v1726_v17, %v6121_v29  ;;  %v1728_v45 = vpop.f32.mrb[154].mxu0  ;;  %v4703_v30 = vpop.trf.xlu0  ;;  %v4227_v7 = vpack.c.bf16 %v1965_v4, %v1964_v42 }
 0x238   :  { %v1982_v39 = vmax.f32 %v1725_v20, 0.0  ;;  %v1729_v60 = vadd.f32 %v1728_v45, %v6116_v34  ;;  %v1730_v18 = vpop.f32.mrb[155].mxu0  ;;  %4563 = vst [vmem:[#allocation10 + $0x58] sm:$0xff] %v4291_v47   ;;  %4555 = vst [vmem:[#allocation10 + $0x18] sm:$0xff] %v4251_v28   ;;  %v4707_v35 = vunpack.i.h.bf16 %v4703_v30  ;;  %v4704_v3 = vunpack.i.l.bf16 %v4703_v30  ;;  %v1837_v8 = vpop.f32.mrb[152].mxu1 }
 0x239   :  { %v1983_v23 = vmax.f32 %v1727_v15, 0.0  ;;  %v1731_v24 = vadd.f32 %v1730_v18, %v6121_v29  ;;  %4990 = vxpose.xlu1.b32.cont [12/16] %v4989_v1, 128  ;;  %v1839_v10 = vpop.f32.mrb[153].mxu1  ;;  %3578 = vst [vmem:[#allocation11 + $0x50] sm:$0xff] %v4227_v7  ;;  %v4228_v11 = vpack.c.bf16 %v1975_v0, %v1974_v62  ;;  %v1838_v14 = vadd.f32 %v1837_v8, %v6138_v56 }
 0x23a   :  { %v1992_v27 = vmax.f32 %v1729_v60, 0.0  ;;  %v1840_v45 = vadd.f32 %v1839_v10, %v6141_v31 }
 0x23b   :  { %v4991_v52 = vpack.i.bf16 %v1983_v23, %v1982_v39  ;;  %v1993_v63 = vmax.f32 %v1731_v24, 0.0  ;;  %v4708_v41 = vpop.trf.xlu0  ;;  %3579 = vst [vmem:[#allocation11 + $0x58] sm:$0xff] %v4228_v11  ;;  %v1984_v18 = vmax.f32 %v1838_v14, 0.0 }
 0x23c   :  { %v4712_v49 = vunpack.i.h.bf16 %v4708_v41  ;;  %v4709_v54 = vunpack.i.l.bf16 %v4708_v41  ;;  %v1985_v24 = vmax.f32 %v1840_v45, 0.0 }
 0x23d   :  { %v4993_v5 = vpack.i.bf16 %v1993_v63, %v1992_v27  ;;  %v1734_v12 = vpop.f32.mrb[156].mxu0  ;;  %4992 = vxpose.xlu1.b32.cont [13/16] %v4991_v52, 128 }
 0x23e   :  { %v1735_v37 = vadd.f32 %v1734_v12, %v6116_v34  ;;  %v1736_v40 = vpop.f32.mrb[157].mxu0  ;;  %v4296_v59 = vpack.c.bf16 %v4712_v49, %v4707_v35  ;;  %v4256_v22 = vpack.c.bf16 %v4709_v54, %v4704_v3  ;;  %v4229_v2 = vpack.c.bf16 %v1985_v24, %v1984_v18 }
 0x23f   :  { %v1737_v43 = vadd.f32 %v1736_v40, %v6121_v29  ;;  %v1738_v46 = vpop.f32.mrb[158].mxu0  ;;  %v4713_v6 = vpop.trf.xlu0 }
 0x240   :  { %v2002_v50 = vmax.f32 %v1735_v37, 0.0  ;;  %v1739_v51 = vadd.f32 %v1738_v46, %v6116_v34  ;;  %v1740_v53 = vpop.f32.mrb[159].mxu0  ;;  %4564 = vst [vmem:[#allocation10 + $0x60] sm:$0xff] %v4296_v59   ;;  %4556 = vst [vmem:[#allocation10 + $0x20] sm:$0xff] %v4256_v22   ;;  %v4717_v34 = vunpack.i.h.bf16 %v4713_v6  ;;  %v4714_v15 = vunpack.i.l.bf16 %v4713_v6 }
 0x241   :  { %v2003_v38 = vmax.f32 %v1737_v43, 0.0  ;;  %v1741_v58 = vadd.f32 %v1740_v53, %v6121_v29  ;;  %4994 = vxpose.xlu1.b32.cont [14/16] %v4993_v5, 128  ;;  %v1841_v29 = vpop.f32.mrb[154].mxu1  ;;  %3580 = vst [vmem:[#allocation11 + $0x60] sm:$0xff] %v4229_v2 }
 0x242   :  { %v2012_v1 = vmax.f32 %v1739_v51, 0.0  ;;  %v1842_v16 = vadd.f32 %v1841_v29, %v6138_v56  ;;  %v1843_v39 = vpop.f32.mrb[155].mxu1 }
 0x243   :  { %v4995_v20 = vpack.i.bf16 %v2003_v38, %v2002_v50  ;;  %v2013_v17 = vmax.f32 %v1741_v58, 0.0  ;;  %v4718_v60 = vpop.trf.xlu0  ;;  %v1844_v19 = vadd.f32 %v1843_v39, %v6141_v31  ;;  %v1847_v25 = vpop.f32.mrb[156].mxu1 }
 0x244   :  { %v4722_v61 = vunpack.i.h.bf16 %v4718_v60  ;;  %v4719_v23 = vunpack.i.l.bf16 %v4718_v60  ;;  %v1994_v47 = vmax.f32 %v1842_v16, 0.0  ;;  %v1849_v52 = vpop.f32.mrb[157].mxu1  ;;  %v6198_v63 = vadd.f32 %v1847_v25, %v6138_v56 }
 0x245   :  { %v4997_v21 = vpack.i.bf16 %v2013_v17, %v2012_v1  ;;  %4996 = vxpose.xlu1.b32.cont [15/16] %v4995_v20, 128  ;;  %v1995_v26 = vmax.f32 %v1844_v19, 0.0  ;;  %v6201_v44 = vadd.f32 %v1849_v52, %v6141_v31  ;;  %v1851_v9 = vpop.f32.mrb[158].mxu1 }
 0x246   :  { %v4261_v27 = vpack.c.bf16 %v4719_v23, %v4714_v15  ;;  %v4301_v28 = vpack.c.bf16 %v4722_v61, %v4717_v34  ;;  %v6204_v12 = vadd.f32 %v1851_v9, %v6138_v56  ;;  %v1853_v35 = vpop.f32.mrb[159].mxu1 }
 0x247   :  { %v4723_v30 = vpop.trf.xlu0  ;;  %v4230_v32 = vpack.c.bf16 %v1995_v26, %v1994_v47 }
 0x248   :  { %4557 = vst [vmem:[#allocation10 + $0x28] sm:$0xff] %v4261_v27   ;;  %4565 = vst [vmem:[#allocation10 + $0x68] sm:$0xff] %v4301_v28   ;;  %v4727_v48 = vunpack.i.h.bf16 %v4723_v30  ;;  %v4724_v5 = vunpack.i.l.bf16 %v4723_v30 }
 0x249   :  { %4998 = vxpose.xlu1.b32.end [16/16] %v4997_v21, 128  ;;  %3581 = vst [vmem:[#allocation11 + $0x68] sm:$0xff] %v4230_v32 }
 0x24b   :  { %v4728_v55 = vpop.trf.xlu0 }
 0x24c   :  { %v4732_v36 = vunpack.i.h.bf16 %v4728_v55  ;;  %v4729_v57 = vunpack.i.l.bf16 %v4728_v55 }
 0x24d   :  { %v4775_v33 = vpop.trf.xlu1 }
 0x24e   :  { %5211 = shalt.err (!%p5208_p6)
}
 0x24f   :  { %s5212_s22 = scalar_lea.hbm %s6271_s7, 2048 }
 0x250   :  { %p5213_p7 = scmp.ne.s32.totalorder %s6271_s7, %s5212_s22  ;;  %p5216_p8 = scmp.lt.u32.totalorder %s5212_s22, %s6271_s7 }
 0x252   :  { %p5218_p9 = pnand %p5216_p8, %p5213_p7 }
 0x254   :  { %5221 = shalt.err (!%p5218_p9)
}
 0x255   :  { %s5305_s27 = smov 128   ;;  %s5306_s28 = smov 8   ;;  %v2004_v56 = vmax.f32 %v6198_v63, 0.0  ;;  %v2005_v37 = vmax.f32 %v6201_v44, 0.0  ;;  %v1854_v40 = vadd.f32 %v1853_v35, %v6141_v31  ;;  %v4779_v3 = vunpack.i.h.bf16 %v4775_v33  ;;  %v4780_v42 = vpop.trf.xlu1  ;;  %v4733_v50 = vpop.trf.xlu0 }
 0x256   :  { %3607 = dma.vmem_to_hbm [thread:$0]  %s3602_s18, 2048, %s6271_s7, [#allocation9], %s5305_s27, %s5305_s27, %s5306_s28   ;;  %v4776_v41 = vunpack.i.l.bf16 %v4775_v33  ;;  %v4266_v13 = vpack.c.bf16 %v4729_v57, %v4724_v5  ;;  %v4306_v43 = vpack.c.bf16 %v4732_v36, %v4727_v48  ;;  %v4784_v46 = vunpack.i.h.bf16 %v4780_v42 }
 0x257   :  { %v4781_v49 = vunpack.i.l.bf16 %v4780_v42  ;;  %s5222_s11 = scalar_lea.vmem %s3590_s19, 8192  ;;  %p5227_p11 = scmp.lt.s32.totalorder %s3590_s19, %s3590_s19 }
 0x258   :  { %p5223_p10 = scmp.ne.s32.totalorder %s3590_s19, %s5222_s11  ;;  %p5228_p12 = scmp.lt.s32.totalorder %s5222_s11, %s5222_s11 }
 0x25a   :  { %p5229_p13 = por %p5228_p12, %p5227_p11 }
 0x25c   :  { %p5230_p0 = pnand %p5229_p13, %p5223_p10 }
 0x25e   :  { %5233 = shalt.err (!%p5230_p0)
}
 0x25f   :  { %s5234_s4 = scalar_lea.hbm %s6270_s6, 8192 }
 0x260   :  { %p5235_p1 = scmp.ne.s32.totalorder %s6270_s6, %s5234_s4  ;;  %p5238_p2 = scmp.lt.u32.totalorder %s5234_s4, %s6270_s6 }
 0x262   :  { %p5240_p3 = pnand %p5238_p2, %p5235_p1 }
 0x264   :  { %5243 = shalt.err (!%p5240_p3)
}
 0x265   :  { %s5307_s16 = smov 512   ;;  %s5308_s17 = smov 32   ;;  %4558 = vst [vmem:[#allocation10 + $0x30] sm:$0xff] %v4266_v13   ;;  %4566 = vst [vmem:[#allocation10 + $0x70] sm:$0xff] %v4306_v43   ;;  %v2014_v31 = vmax.f32 %v6204_v12, 0.0  ;;  %v4316_v51 = vpack.c.bf16 %v4781_v49, %v4776_v41  ;;  %v4356_v53 = vpack.c.bf16 %v4784_v46, %v4779_v3  ;;  %v4231_v54 = vpack.c.bf16 %v2005_v37, %v2004_v56  ;;  %v4785_v38 = vpop.trf.xlu1  ;;  %v4738_v62 = vpop.trf.xlu0 }
 0x266   :  { %3595 = dma.vmem_to_hbm [thread:$0]  %s3590_s19, 8192, %s6270_s6, [#allocation4], %s5307_s16, %s5307_s16, %s5308_s17   ;;  %v2015_v4 = vmax.f32 %v1854_v40, 0.0  ;;  %v4737_v58 = vunpack.i.h.bf16 %v4733_v50  ;;  %v4734_v59 = vunpack.i.l.bf16 %v4733_v50  ;;  %v4742_v1 = vunpack.i.h.bf16 %v4738_v62 }
 0x267   :  { %4568 = vst [vmem:[#allocation10 + $0x80] sm:$0xff] %v4316_v51   ;;  %4576 = vst [vmem:[#allocation10 + $0xc0] sm:$0xff] %v4356_v53   ;;  %s5309_s3 = smov [#allocation11]   ;;  %v4739_v22 = vunpack.i.l.bf16 %v4738_v62  ;;  %v4789_v7 = vunpack.i.h.bf16 %v4785_v38  ;;  %v4786_v0 = vunpack.i.l.bf16 %v4785_v38 }
 0x268   :  { %3582 = vst [vmem:[#allocation11 + $0x70] sm:$0xff] %v4231_v54  ;;  %s3625_s18 = sshll.u32 %s5309_s3, 4  ;;  %v4232_v6 = vpack.c.bf16 %v2015_v4, %v2014_v31  ;;  %v4311_v17 = vpack.c.bf16 %v4742_v1, %v4737_v58  ;;  %s3626_s18 = int_to_ptr.vmem [resolvable:$true] %s3625_s18 }
 0x269   :  { %v4790_v8 = vpop.trf.xlu1  ;;  %v4271_v20 = vpack.c.bf16 %v4739_v22, %v4734_v59  ;;  %v4887_v11 = vpop.trf.xlu0  ;;  %s5244_s6 = scalar_lea.vmem %s3626_s18, 2048  ;;  %p5249_p5 = scmp.lt.s32.totalorder %s3626_s18, %s3626_s18 }
 0x26a   :  { %v4794_v10 = vunpack.i.h.bf16 %v4790_v8  ;;  %v4791_v34 = vunpack.i.l.bf16 %v4790_v8  ;;  %3583 = vst [vmem:[#allocation11 + $0x78] sm:$0xff] %v4232_v6  ;;  %4567 = vst [vmem:[#allocation10 + $0x78] sm:$0xff] %v4311_v17   ;;  %p5245_p4 = scmp.ne.s32.totalorder %s3626_s18, %s5244_s6  ;;  %p5250_p6 = scmp.lt.s32.totalorder %s5244_s6, %s5244_s6 }
 0x26b   :  { %4559 = vst [vmem:[#allocation10 + $0x38] sm:$0xff] %v4271_v20  }
 0x26c   :  { %p5251_p7 = por %p5250_p6, %p5249_p5 }
 0x26e   :  { %p5252_p8 = pnand %p5251_p7, %p5245_p4 }
 0x270   :  { %5255 = shalt.err (!%p5252_p8)
}
 0x271   :  { %s5256_s20 = scalar_lea.hbm %s6273_s9, 2048 }
 0x272   :  { %p5257_p9 = scmp.ne.s32.totalorder %s6273_s9, %s5256_s20  ;;  %p5260_p10 = scmp.lt.u32.totalorder %s5256_s20, %s6273_s9 }
 0x274   :  { %p5262_p11 = pnand %p5260_p10, %p5257_p9 }
 0x276   :  { %5265 = shalt.err (!%p5262_p11)
}
 0x277   :  { %3631 = dma.vmem_to_hbm [thread:$0]  %s3626_s18, 2048, %s6273_s9, [#allocation12], %s5305_s27, %s5305_s27, %s5306_s28   ;;  %v4321_v14 = vpack.c.bf16 %v4791_v34, %v4786_v0  ;;  %v4361_v29 = vpack.c.bf16 %v4794_v10, %v4789_v7  ;;  %v4795_v21 = vpop.trf.xlu1  ;;  %v4891_v15 = vunpack.i.h.bf16 %v4887_v11  ;;  %v4888_v45 = vunpack.i.l.bf16 %v4887_v11  ;;  %v4892_v16 = vpop.trf.xlu0 }
 0x278   :  { %v4896_v39 = vunpack.i.h.bf16 %v4892_v16  ;;  %v4893_v60 = vunpack.i.l.bf16 %v4892_v16  ;;  %v4799_v18 = vunpack.i.h.bf16 %v4795_v21  ;;  %v4796_v19 = vunpack.i.l.bf16 %v4795_v21  ;;  %s5310_s9 = smov [#allocation10]  }
 0x279   :  { %4569 = vst [vmem:[#allocation10 + $0x88] sm:$0xff] %v4321_v14   ;;  %4577 = vst [vmem:[#allocation10 + $0xc8] sm:$0xff] %v4361_v29   ;;  %s3613_s26 = sshll.u32 %s5310_s9, 4  ;;  %s3614_s26 = int_to_ptr.vmem [resolvable:$true] %s3613_s26 }
 0x27a   :  { %v4396_v23 = vpack.c.bf16 %v4893_v60, %v4888_v45  ;;  %v4436_v24 = vpack.c.bf16 %v4896_v39, %v4891_v15  ;;  %s5266_s27 = scalar_lea.vmem %s3614_s26, 8192  ;;  %p5271_p13 = scmp.lt.s32.totalorder %s3614_s26, %s3614_s26 }
 0x27b   :  { %v4800_v61 = vpop.trf.xlu1  ;;  %v4897_v27 = vpop.trf.xlu0  ;;  %p5267_p12 = scmp.ne.s32.totalorder %s3614_s26, %s5266_s27  ;;  %p5272_p0 = scmp.lt.s32.totalorder %s5266_s27, %s5266_s27 }
 0x27c   :  { %v4804_v47 = vunpack.i.h.bf16 %v4800_v61  ;;  %v4801_v26 = vunpack.i.l.bf16 %v4800_v61  ;;  %4584 = vst [vmem:[#allocation10 + $0x100] sm:$0xff] %v4396_v23   ;;  %4592 = vst [vmem:[#allocation10 + $0x140] sm:$0xff] %v4436_v24   ;;  %v4901_v32 = vunpack.i.h.bf16 %v4897_v27  ;;  %v4898_v25 = vunpack.i.l.bf16 %v4897_v27 }
 0x27d   :  { %p5273_p1 = por %p5272_p0, %p5271_p13 }
 0x27e   :  { %v4326_v28 = vpack.c.bf16 %v4801_v26, %v4796_v19  ;;  %v4366_v30 = vpack.c.bf16 %v4804_v47, %v4799_v18 }
 0x27f   :  { %v4805_v2 = vpop.trf.xlu1  ;;  %v4902_v52 = vpop.trf.xlu0  ;;  %p5274_p2 = pnand %p5273_p1, %p5267_p12 }
 0x280   :  { %4570 = vst [vmem:[#allocation10 + $0x90] sm:$0xff] %v4326_v28   ;;  %4578 = vst [vmem:[#allocation10 + $0xd0] sm:$0xff] %v4366_v30   ;;  %v4906_v63 = vunpack.i.h.bf16 %v4902_v52  ;;  %v4903_v44 = vunpack.i.l.bf16 %v4902_v52  ;;  %v4809_v9 = vunpack.i.h.bf16 %v4805_v2  ;;  %v4806_v33 = vunpack.i.l.bf16 %v4805_v2 }
 0x282   :  { %v4401_v5 = vpack.c.bf16 %v4903_v44, %v4898_v25  ;;  %v4441_v12 = vpack.c.bf16 %v4906_v63, %v4901_v32 }
 0x283   :  { %v4810_v48 = vpop.trf.xlu1  ;;  %v4907_v36 = vpop.trf.xlu0 }
 0x284   :  { %v4814_v35 = vunpack.i.h.bf16 %v4810_v48  ;;  %v4811_v55 = vunpack.i.l.bf16 %v4810_v48  ;;  %4585 = vst [vmem:[#allocation10 + $0x108] sm:$0xff] %v4401_v5   ;;  %4593 = vst [vmem:[#allocation10 + $0x148] sm:$0xff] %v4441_v12   ;;  %v4911_v40 = vunpack.i.h.bf16 %v4907_v36  ;;  %v4908_v3 = vunpack.i.l.bf16 %v4907_v36 }
 0x286   :  { %v4331_v57 = vpack.c.bf16 %v4811_v55, %v4806_v33  ;;  %v4371_v56 = vpack.c.bf16 %v4814_v35, %v4809_v9 }
 0x287   :  { %v4815_v37 = vpop.trf.xlu1  ;;  %v4912_v41 = vpop.trf.xlu0 }
 0x288   :  { %4571 = vst [vmem:[#allocation10 + $0x98] sm:$0xff] %v4331_v57   ;;  %4579 = vst [vmem:[#allocation10 + $0xd8] sm:$0xff] %v4371_v56   ;;  %v4916_v42 = vunpack.i.h.bf16 %v4912_v41  ;;  %v4913_v13 = vunpack.i.l.bf16 %v4912_v41  ;;  %v4819_v43 = vunpack.i.h.bf16 %v4815_v37  ;;  %v4816_v46 = vunpack.i.l.bf16 %v4815_v37 }
 0x28a   :  { %v4406_v50 = vpack.c.bf16 %v4913_v13, %v4908_v3  ;;  %v4446_v31 = vpack.c.bf16 %v4916_v42, %v4911_v40 }
 0x28b   :  { %v4820_v49 = vpop.trf.xlu1  ;;  %v4917_v54 = vpop.trf.xlu0 }
 0x28c   :  { %v4824_v51 = vunpack.i.h.bf16 %v4820_v49  ;;  %v4821_v53 = vunpack.i.l.bf16 %v4820_v49  ;;  %4586 = vst [vmem:[#allocation10 + $0x110] sm:$0xff] %v4406_v50   ;;  %4594 = vst [vmem:[#allocation10 + $0x150] sm:$0xff] %v4446_v31   ;;  %v4921_v59 = vunpack.i.h.bf16 %v4917_v54  ;;  %v4918_v62 = vunpack.i.l.bf16 %v4917_v54 }
 0x28e   :  { %v4336_v4 = vpack.c.bf16 %v4821_v53, %v4816_v46  ;;  %v4376_v38 = vpack.c.bf16 %v4824_v51, %v4819_v43 }
 0x28f   :  { %v4825_v58 = vpop.trf.xlu1  ;;  %v4922_v1 = vpop.trf.xlu0 }
 0x290   :  { %4572 = vst [vmem:[#allocation10 + $0xa0] sm:$0xff] %v4336_v4   ;;  %4580 = vst [vmem:[#allocation10 + $0xe0] sm:$0xff] %v4376_v38   ;;  %v4926_v22 = vunpack.i.h.bf16 %v4922_v1  ;;  %v4923_v6 = vunpack.i.l.bf16 %v4922_v1  ;;  %v4829_v7 = vunpack.i.h.bf16 %v4825_v58  ;;  %v4826_v0 = vunpack.i.l.bf16 %v4825_v58 }
 0x292   :  { %v4411_v20 = vpack.c.bf16 %v4923_v6, %v4918_v62  ;;  %v4451_v17 = vpack.c.bf16 %v4926_v22, %v4921_v59 }
 0x293   :  { %v4830_v8 = vpop.trf.xlu1  ;;  %v4927_v11 = vpop.trf.xlu0 }
 0x294   :  { %v4834_v10 = vunpack.i.h.bf16 %v4830_v8  ;;  %v4831_v34 = vunpack.i.l.bf16 %v4830_v8  ;;  %4587 = vst [vmem:[#allocation10 + $0x118] sm:$0xff] %v4411_v20   ;;  %4595 = vst [vmem:[#allocation10 + $0x158] sm:$0xff] %v4451_v17   ;;  %v4931_v15 = vunpack.i.h.bf16 %v4927_v11  ;;  %v4928_v45 = vunpack.i.l.bf16 %v4927_v11 }
 0x296   :  { %v4341_v14 = vpack.c.bf16 %v4831_v34, %v4826_v0  ;;  %v4381_v29 = vpack.c.bf16 %v4834_v10, %v4829_v7 }
 0x297   :  { %v4835_v21 = vpop.trf.xlu1  ;;  %v4932_v16 = vpop.trf.xlu0 }
 0x298   :  { %4573 = vst [vmem:[#allocation10 + $0xa8] sm:$0xff] %v4341_v14   ;;  %4581 = vst [vmem:[#allocation10 + $0xe8] sm:$0xff] %v4381_v29   ;;  %v4936_v39 = vunpack.i.h.bf16 %v4932_v16  ;;  %v4933_v60 = vunpack.i.l.bf16 %v4932_v16  ;;  %v4839_v18 = vunpack.i.h.bf16 %v4835_v21  ;;  %v4836_v19 = vunpack.i.l.bf16 %v4835_v21 }
 0x29a   :  { %v4416_v23 = vpack.c.bf16 %v4933_v60, %v4928_v45  ;;  %v4456_v24 = vpack.c.bf16 %v4936_v39, %v4931_v15 }
 0x29b   :  { %v4840_v61 = vpop.trf.xlu1  ;;  %v4937_v27 = vpop.trf.xlu0 }
 0x29c   :  { %v4844_v47 = vunpack.i.h.bf16 %v4840_v61  ;;  %v4841_v26 = vunpack.i.l.bf16 %v4840_v61  ;;  %4588 = vst [vmem:[#allocation10 + $0x120] sm:$0xff] %v4416_v23   ;;  %4596 = vst [vmem:[#allocation10 + $0x160] sm:$0xff] %v4456_v24   ;;  %v4941_v32 = vunpack.i.h.bf16 %v4937_v27  ;;  %v4938_v25 = vunpack.i.l.bf16 %v4937_v27 }
 0x29e   :  { %v4346_v28 = vpack.c.bf16 %v4841_v26, %v4836_v19  ;;  %v4386_v30 = vpack.c.bf16 %v4844_v47, %v4839_v18 }
 0x29f   :  { %v4845_v2 = vpop.trf.xlu1  ;;  %v4942_v52 = vpop.trf.xlu0 }
 0x2a0   :  { %4574 = vst [vmem:[#allocation10 + $0xb0] sm:$0xff] %v4346_v28   ;;  %4582 = vst [vmem:[#allocation10 + $0xf0] sm:$0xff] %v4386_v30   ;;  %v4946_v63 = vunpack.i.h.bf16 %v4942_v52  ;;  %v4943_v44 = vunpack.i.l.bf16 %v4942_v52  ;;  %v4849_v9 = vunpack.i.h.bf16 %v4845_v2  ;;  %v4846_v33 = vunpack.i.l.bf16 %v4845_v2 }
 0x2a2   :  { %v4421_v5 = vpack.c.bf16 %v4943_v44, %v4938_v25  ;;  %v4461_v12 = vpack.c.bf16 %v4946_v63, %v4941_v32 }
 0x2a3   :  { %v4850_v48 = vpop.trf.xlu1  ;;  %v4947_v36 = vpop.trf.xlu0 }
 0x2a4   :  { %v4854_v35 = vunpack.i.h.bf16 %v4850_v48  ;;  %v4851_v55 = vunpack.i.l.bf16 %v4850_v48  ;;  %4589 = vst [vmem:[#allocation10 + $0x128] sm:$0xff] %v4421_v5   ;;  %4597 = vst [vmem:[#allocation10 + $0x168] sm:$0xff] %v4461_v12   ;;  %v4951_v40 = vunpack.i.h.bf16 %v4947_v36  ;;  %v4948_v3 = vunpack.i.l.bf16 %v4947_v36 }
 0x2a6   :  { %v4351_v57 = vpack.c.bf16 %v4851_v55, %v4846_v33  ;;  %v4391_v56 = vpack.c.bf16 %v4854_v35, %v4849_v9 }
 0x2a7   :  { %v4999_v37 = vpop.trf.xlu1  ;;  %v4952_v41 = vpop.trf.xlu0 }
 0x2a8   :  { %4575 = vst [vmem:[#allocation10 + $0xb8] sm:$0xff] %v4351_v57   ;;  %4583 = vst [vmem:[#allocation10 + $0xf8] sm:$0xff] %v4391_v56   ;;  %v4956_v42 = vunpack.i.h.bf16 %v4952_v41  ;;  %v4953_v13 = vunpack.i.l.bf16 %v4952_v41  ;;  %v5003_v43 = vunpack.i.h.bf16 %v4999_v37  ;;  %v5000_v46 = vunpack.i.l.bf16 %v4999_v37 }
 0x2aa   :  { %v4426_v50 = vpack.c.bf16 %v4953_v13, %v4948_v3  ;;  %v4466_v31 = vpack.c.bf16 %v4956_v42, %v4951_v40 }
 0x2ab   :  { %v5004_v49 = vpop.trf.xlu1  ;;  %v4957_v54 = vpop.trf.xlu0 }
 0x2ac   :  { %v5008_v51 = vunpack.i.h.bf16 %v5004_v49  ;;  %v5005_v53 = vunpack.i.l.bf16 %v5004_v49  ;;  %4590 = vst [vmem:[#allocation10 + $0x130] sm:$0xff] %v4426_v50   ;;  %4598 = vst [vmem:[#allocation10 + $0x170] sm:$0xff] %v4466_v31   ;;  %v4961_v59 = vunpack.i.h.bf16 %v4957_v54  ;;  %v4958_v62 = vunpack.i.l.bf16 %v4957_v54 }
 0x2ae   :  { %v4476_v4 = vpack.c.bf16 %v5005_v53, %v5000_v46  ;;  %v4516_v38 = vpack.c.bf16 %v5008_v51, %v5003_v43 }
 0x2af   :  { %v5009_v58 = vpop.trf.xlu1  ;;  %v4962_v1 = vpop.trf.xlu0 }
 0x2b0   :  { %4600 = vst [vmem:[#allocation10 + $0x180] sm:$0xff] %v4476_v4   ;;  %4608 = vst [vmem:[#allocation10 + $0x1c0] sm:$0xff] %v4516_v38   ;;  %v4966_v22 = vunpack.i.h.bf16 %v4962_v1  ;;  %v4963_v6 = vunpack.i.l.bf16 %v4962_v1  ;;  %v5013_v7 = vunpack.i.h.bf16 %v5009_v58  ;;  %v5010_v0 = vunpack.i.l.bf16 %v5009_v58 }
 0x2b2   :  { %v4431_v20 = vpack.c.bf16 %v4963_v6, %v4958_v62  ;;  %v4471_v17 = vpack.c.bf16 %v4966_v22, %v4961_v59 }
 0x2b3   :  { %v5014_v8 = vpop.trf.xlu1 }
 0x2b4   :  { %v5018_v10 = vunpack.i.h.bf16 %v5014_v8  ;;  %v5015_v34 = vunpack.i.l.bf16 %v5014_v8  ;;  %4591 = vst [vmem:[#allocation10 + $0x138] sm:$0xff] %v4431_v20   ;;  %4599 = vst [vmem:[#allocation10 + $0x178] sm:$0xff] %v4471_v17  }
 0x2b6   :  { %v4481_v11 = vpack.c.bf16 %v5015_v34, %v5010_v0  ;;  %v4521_v14 = vpack.c.bf16 %v5018_v10, %v5013_v7 }
 0x2b7   :  { %v5019_v29 = vpop.trf.xlu1 }
 0x2b8   :  { %4601 = vst [vmem:[#allocation10 + $0x188] sm:$0xff] %v4481_v11   ;;  %4609 = vst [vmem:[#allocation10 + $0x1c8] sm:$0xff] %v4521_v14   ;;  %v5023_v21 = vunpack.i.h.bf16 %v5019_v29  ;;  %v5020_v15 = vunpack.i.l.bf16 %v5019_v29 }
 0x2bb   :  { %v5024_v45 = vpop.trf.xlu1 }
 0x2bc   :  { %v5028_v16 = vunpack.i.h.bf16 %v5024_v45  ;;  %v5025_v39 = vunpack.i.l.bf16 %v5024_v45 }
 0x2be   :  { %v4486_v60 = vpack.c.bf16 %v5025_v39, %v5020_v15  ;;  %v4526_v18 = vpack.c.bf16 %v5028_v16, %v5023_v21 }
 0x2bf   :  { %v5029_v19 = vpop.trf.xlu1 }
 0x2c0   :  { %4602 = vst [vmem:[#allocation10 + $0x190] sm:$0xff] %v4486_v60   ;;  %4610 = vst [vmem:[#allocation10 + $0x1d0] sm:$0xff] %v4526_v18   ;;  %v5033_v61 = vunpack.i.h.bf16 %v5029_v19  ;;  %v5030_v23 = vunpack.i.l.bf16 %v5029_v19 }
 0x2c3   :  { %v5034_v24 = vpop.trf.xlu1 }
 0x2c4   :  { %v5038_v47 = vunpack.i.h.bf16 %v5034_v24  ;;  %v5035_v26 = vunpack.i.l.bf16 %v5034_v24 }
 0x2c6   :  { %v4491_v27 = vpack.c.bf16 %v5035_v26, %v5030_v23  ;;  %v4531_v28 = vpack.c.bf16 %v5038_v47, %v5033_v61 }
 0x2c7   :  { %v5039_v30 = vpop.trf.xlu1 }
 0x2c8   :  { %4603 = vst [vmem:[#allocation10 + $0x198] sm:$0xff] %v4491_v27   ;;  %4611 = vst [vmem:[#allocation10 + $0x1d8] sm:$0xff] %v4531_v28   ;;  %v5043_v2 = vunpack.i.h.bf16 %v5039_v30  ;;  %v5040_v32 = vunpack.i.l.bf16 %v5039_v30 }
 0x2cb   :  { %v5044_v25 = vpop.trf.xlu1 }
 0x2cc   :  { %v5048_v52 = vunpack.i.h.bf16 %v5044_v25  ;;  %v5045_v63 = vunpack.i.l.bf16 %v5044_v25 }
 0x2ce   :  { %v4496_v44 = vpack.c.bf16 %v5045_v63, %v5040_v32  ;;  %v4536_v9 = vpack.c.bf16 %v5048_v52, %v5043_v2 }
 0x2cf   :  { %v5049_v33 = vpop.trf.xlu1 }
 0x2d0   :  { %4604 = vst [vmem:[#allocation10 + $0x1a0] sm:$0xff] %v4496_v44   ;;  %4612 = vst [vmem:[#allocation10 + $0x1e0] sm:$0xff] %v4536_v9   ;;  %v5053_v48 = vunpack.i.h.bf16 %v5049_v33  ;;  %v5050_v5 = vunpack.i.l.bf16 %v5049_v33 }
 0x2d3   :  { %v5054_v12 = vpop.trf.xlu1 }
 0x2d4   :  { %v5058_v35 = vunpack.i.h.bf16 %v5054_v12  ;;  %v5055_v55 = vunpack.i.l.bf16 %v5054_v12 }
 0x2d6   :  { %v4501_v36 = vpack.c.bf16 %v5055_v55, %v5050_v5  ;;  %v4541_v57 = vpack.c.bf16 %v5058_v35, %v5053_v48 }
 0x2d7   :  { %v5059_v56 = vpop.trf.xlu1 }
 0x2d8   :  { %4605 = vst [vmem:[#allocation10 + $0x1a8] sm:$0xff] %v4501_v36   ;;  %4613 = vst [vmem:[#allocation10 + $0x1e8] sm:$0xff] %v4541_v57   ;;  %v5063_v37 = vunpack.i.h.bf16 %v5059_v56  ;;  %v5060_v40 = vunpack.i.l.bf16 %v5059_v56 }
 0x2db   :  { %v5064_v3 = vpop.trf.xlu1 }
 0x2dc   :  { %v5068_v41 = vunpack.i.h.bf16 %v5064_v3  ;;  %v5065_v42 = vunpack.i.l.bf16 %v5064_v3 }
 0x2de   :  { %v4506_v13 = vpack.c.bf16 %v5065_v42, %v5060_v40  ;;  %v4546_v43 = vpack.c.bf16 %v5068_v41, %v5063_v37 }
 0x2df   :  { %v5069_v46 = vpop.trf.xlu1 }
 0x2e0   :  { %4606 = vst [vmem:[#allocation10 + $0x1b0] sm:$0xff] %v4506_v13   ;;  %4614 = vst [vmem:[#allocation10 + $0x1f0] sm:$0xff] %v4546_v43   ;;  %v5073_v49 = vunpack.i.h.bf16 %v5069_v46  ;;  %v5070_v50 = vunpack.i.l.bf16 %v5069_v46 }
 0x2e3   :  { %v5074_v31 = vpop.trf.xlu1 }
 0x2e4   :  { %v5078_v51 = vunpack.i.h.bf16 %v5074_v31  ;;  %v5075_v53 = vunpack.i.l.bf16 %v5074_v31 }
 0x2e6   :  { %v4511_v54 = vpack.c.bf16 %v5075_v53, %v5070_v50  ;;  %v4551_v4 = vpack.c.bf16 %v5078_v51, %v5073_v49 }
 0x2e8   :  { %4607 = vst [vmem:[#allocation10 + $0x1b8] sm:$0xff] %v4511_v54   ;;  %4615 = vst [vmem:[#allocation10 + $0x1f8] sm:$0xff] %v4551_v4  }
 0x2e9   :  { %5277 = shalt.err (!%p5274_p2)
}
 0x2ea   :  { %s5278_s30 = scalar_lea.hbm %s6272_s8, 8192 }
 0x2eb   :  { %p5279_p3 = scmp.ne.s32.totalorder %s6272_s8, %s5278_s30  ;;  %p5282_p4 = scmp.lt.u32.totalorder %s5278_s30, %s6272_s8 }
 0x2ed   :  { %p5284_p5 = pnand %p5282_p4, %p5279_p3 }
 0x2ef   :  { %5287 = shalt.err (!%p5284_p5)
}
 0x2f0   :  { %s5311_s10 = smov 64   ;;  %s5312_s13 = smov 4  }
 0x2f1   :  { %3619 = dma.vmem_to_hbm [thread:$0]  %s3614_s26, 8192, %s6272_s8, [#allocation9], %s5311_s10, %s5311_s10, %s5312_s13  }
 0x2f2   :  { %5292 = dma.done.wait [#allocation4], 8192  }
 0x2f3   :  { %5293 = vsyncadd [#allocation4], 4294959104 }
 0x2f4   :  { %5294 = dma.done.wait [#allocation9], 10240  }
 0x2f5   :  { %5295 = vsyncadd [#allocation9], 4294957056 }
 0x2f6   :  { %5296 = dma.done.wait [#allocation12], 2048  }
 0x2f7   :  { %5297 = vsyncadd [#allocation12], 4294965248 }
 0x2f8   :  { %3644 = vsyncpa [#allocation3], 1 }
 0x2f9   :  { %3645 = vsyncpa [#allocation6], 1 }
 0x2fa   :  { %3646 = vsyncpa [#allocation4], 1 }
 0x2fb   :  { %3647 = vsyncpa [#allocation9], 1 }
 0x2fc   :  { %3648 = vsyncpa [#allocation12], 1 }

</bundles_post_ra>
